<compile_context>
chip_gen: v6e
topology: v6e:2x2x1
jax: 0.10.0
libtpu: 0.0.40
codegen_flags: <defaults>
</compile_context>

<pallas_src>
import functools

import jax
import jax.numpy as jnp
from jax import lax
from jax.experimental import pallas as pl
from jax.experimental.pallas import tpu as pltpu


# ---------------------------------------------------------------------------
# Fused kernel: PG stage + all refinement stages, whole batch in one step
# ---------------------------------------------------------------------------
def mst_tcn2_kernel(f0_ref,
                    w_pg_ref, b_pg_ref, w_out_pg_ref, b_out_pg_ref,
                    w_in_r_ref, b_in_r_ref, wd_r_ref, bd_r_ref,
                    w1_r_ref, b1_r_ref, w_out_r_ref, b_out_r_ref,
                    out_ref, pad_ref,
                    *, n_batch, seq_len, num_layers_pg, num_layers_r,
                    num_r, num_valid_c):
    f32, bf16 = jnp.float32, jnp.bfloat16
    N, T = n_batch, seq_len
    F = pad_ref.shape[2]
    maxpad = pad_ref.shape[1] - T
    NT = N * T
    C_PAD = out_ref.shape[2]

    # Zero the causal-pad rows once; rows [maxpad, maxpad+T) are rewritten by
    # stash() before every read, rows [0, maxpad) stay zero for the whole call.
    for b in range(N):
        pad_ref[b, pl.ds(0, maxpad), :] = jnp.zeros((maxpad, F), f32)

    def stash(f):
        # f: (N*T, F) f32 -> per-batch rows [maxpad, maxpad+T) of the scratch.
        for b in range(N):
            pad_ref[b, pl.ds(maxpad, T), :] = f[b * T:(b + 1) * T, :]

    def shifted(s):
        # (N*T, F) f32; row b*T + t holds f[b, t - s] (zeros for t < s).
        return jnp.concatenate(
            [pad_ref[b, pl.ds(maxpad - s, T), :] for b in range(N)], axis=0)

    # --------------------------- PG stage ---------------------------
    f = f0_ref[...]                                             # (NT, F) f32
    for i in range(num_layers_pg):
        d1 = 2 ** (num_layers_pg - 1 - i)
        d2 = 2 ** i
        stash(f)
        # Both dilated convs + fusion 1x1 (folded in the wrapper) as ONE
        # (NT, 5F) @ (5F, F) MXU matmul; K-blocks of the operand match the
        # row-blocks of w_pg: [f[t-2d1] | f[t-d1] | f[t-2d2] | f[t-d2] | f[t]].
        op = jnp.concatenate([shifted(2 * d1), shifted(d1),
                              shifted(2 * d2), shifted(d2), f],
                             axis=-1).astype(bf16)
        h = jnp.dot(op, w_pg_ref[i], preferred_element_type=f32) + b_pg_ref[i]
        f = jnp.maximum(h, 0.0) + f     # TODO(synk): dropout = identity (eval)

    logits = (jnp.dot(f.astype(bf16), w_out_pg_ref[...],
                      preferred_element_type=f32) + b_out_pg_ref[...])
    out_ref[0] = logits.astype(out_ref.dtype)                   # (NT, C_PAD)

    # ------------------------ refinement stages ------------------------
    lane = lax.broadcasted_iota(jnp.int32, (NT, C_PAD), 1)
    valid = lane < num_valid_c           # mask the zero-padded head columns
    for r in range(num_r):
        # softmax over the real channels (f32); exp of the masked logits keeps
        # the padded lanes exactly 0 without a second select.
        lm = jnp.where(valid, logits, -jnp.inf)
        m = jnp.max(lm, axis=-1, keepdims=True)
        e = jnp.exp(lm - m)
        denom = jnp.sum(e, axis=-1, keepdims=True)
        probs = e * pl.reciprocal(denom, approx=True)           # EUP slot

        f = (jnp.dot(probs.astype(bf16), w_in_r_ref[r],
                     preferred_element_type=f32) + b_in_r_ref[r])
        for i in range(num_layers_r):
            d = 2 ** i
            li = r * num_layers_r + i
            stash(f)
            # causal k=3 dilated conv as ONE (NT, 3F) @ (3F, F) matmul
            op = jnp.concatenate([shifted(2 * d), shifted(d), f],
                                 axis=-1).astype(bf16)
            h = (jnp.dot(op, wd_r_ref[li], preferred_element_type=f32)
                 + bd_r_ref[li])
            h = jnp.maximum(h, 0.0)
            h = (jnp.dot(h.astype(bf16), w1_r_ref[li],
                         preferred_element_type=f32) + b1_r_ref[li])
            f = f + h                   # TODO(synk): dropout = identity (eval)

        logits = (jnp.dot(f.astype(bf16), w_out_r_ref[r],
                          preferred_element_type=f32) + b_out_r_ref[r])
        out_ref[1 + r] = logits.astype(out_ref.dtype)


# ---------------------------------------------------------------------------
# pallas_call wrapper (single fused launch for the whole network)
# ---------------------------------------------------------------------------
def _full_spec(shape):
    rank = len(shape)
    return pl.BlockSpec(shape, lambda i, _r=rank: (0,) * _r)


def mst_tcn2_forward(x_ncw, pg_params, r_params, num_layers_PG, num_layers_R,
                     num_classes_list):
    assert len(r_params) >= 1, "fused kernel expects num_R >= 1"
    N, dim, T = x_ncw.shape
    F = pg_params["w_in"].shape[1]
    sum_c = sum(num_classes_list)
    C_PAD = ((sum_c + 127) // 128) * 128          # lane-dense head output
    num_R = len(r_params)
    L_R = num_layers_R
    num_stages = 1 + num_R
    NT = N * T
    maxpad = 2 * max(2 ** (num_layers_PG - 1), 2 ** (num_layers_R - 1))

    bf16, f32 = jnp.bfloat16, jnp.float32

    # Input 1x1 projection hoisted to XLA (lane-sparse dim=8 / K=8 matmul does
    # not belong on the kernel MXU path); kernel receives lane-denser (NT, F).
    x_flat = jnp.transpose(x_ncw, (0, 2, 1)).reshape(NT, dim).astype(f32)
    f0 = x_flat @ pg_params["w_in"].astype(f32) + pg_params["b_in"].astype(f32)

    # Fold the PG fusion 1x1 into the dilated-conv weights and stack both
    # dilations' taps along K: each PG block becomes one (5F, F) weight.
    # (Valid because MS-TCN++ applies no nonlinearity between the dilated
    #  convs and the fusion conv; the reference below matches.)
    wf0 = pg_params["wf"][:, 0]                               # (L, F, F)
    wf1 = pg_params["wf"][:, 1]
    w1f = jnp.einsum("lkab,lbc->lkac", pg_params["w1"], wf0)  # (L, 3, F, F)
    w2f = jnp.einsum("lkab,lbc->lkac", pg_params["w2"], wf1)
    w_pg = jnp.concatenate([w1f[:, 0], w1f[:, 1], w2f[:, 0], w2f[:, 1],
                            w1f[:, 2] + w2f[:, 2]], axis=1)   # (L, 5F, F)
    b_pg = (jnp.einsum("lab,lbc->lac", pg_params["b1"], wf0)
            + jnp.einsum("lab,lbc->lac", pg_params["b2"], wf1)
            + pg_params["bf"])                                # (L, 1, F)

    def pad_out_w(w):   # (F, sum_c) -> (F, C_PAD), zero-padded columns
        return jnp.zeros((w.shape[0], C_PAD), w.dtype).at[:, :sum_c].set(w)

    def pad_out_b(b):   # (1, sum_c) -> (1, C_PAD)
        return jnp.zeros((1, C_PAD), b.dtype).at[:, :sum_c].set(b)

    def pad_in_w(w):    # (sum_c, F) -> (C_PAD, F), zero-padded rows
        return jnp.zeros((C_PAD, w.shape[1]), w.dtype).at[:sum_c, :].set(w)

    args = [
        f0.astype(f32),                                                      # (NT, F)
        w_pg.astype(bf16),                                                   # (L, 5F, F)
        b_pg.astype(f32),                                                    # (L, 1, F)
        pad_out_w(pg_params["w_out"]).astype(bf16),                          # (F, C_PAD)
        pad_out_b(pg_params["b_out"]).astype(f32),                           # (1, C_PAD)
        jnp.stack([pad_in_w(rp["w_in"]) for rp in r_params]).astype(bf16),   # (R, C_PAD, F)
        jnp.stack([rp["b_in"] for rp in r_params]).astype(f32),              # (R, 1, F)
        jnp.concatenate([rp["wd"].reshape(L_R, 3 * F, F)
                         for rp in r_params], axis=0).astype(bf16),          # (R*LR, 3F, F)
        jnp.concatenate([rp["bd"] for rp in r_params], axis=0).astype(f32),  # (R*LR, 1, F)
        jnp.concatenate([rp["w1"] for rp in r_params], axis=0).astype(bf16), # (R*LR, F, F)
        jnp.concatenate([rp["b1"] for rp in r_params], axis=0).astype(f32),  # (R*LR, 1, F)
        jnp.stack([pad_out_w(rp["w_out"]) for rp in r_params]).astype(bf16), # (R, F, C_PAD)
        jnp.stack([pad_out_b(rp["b_out"]) for rp in r_params]).astype(f32),  # (R, 1, C_PAD)
    ]

    kernel = functools.partial(
        mst_tcn2_kernel,
        n_batch=N, seq_len=T, num_layers_pg=num_layers_PG,
        num_layers_r=num_layers_R, num_r=num_R, num_valid_c=sum_c)

    # Advisory cost estimate for XLA's scheduler around the fused custom call.
    flops = 2 * NT * (num_layers_PG * 5 * F * F
                      + F * C_PAD
                      + num_R * (C_PAD * F + L_R * (3 * F * F + F * F)
                                 + F * C_PAD))
    transcendentals = num_R * NT * C_PAD
    bytes_accessed = int(sum(a.size * a.dtype.itemsize for a in args)
                         + num_stages * NT * C_PAD * 2)

    stacked = pl.pallas_call(
        kernel,
        out_shape=jax.ShapeDtypeStruct((num_stages, NT, C_PAD), bf16),
        grid=(1,),                      # batch folded into M -> single step
        in_specs=[_full_spec(a.shape) for a in args],
        out_specs=pl.BlockSpec((num_stages, NT, C_PAD), lambda i: (0, 0, 0)),
        scratch_shapes=[pltpu.VMEM((N, maxpad + T, F), f32)],
        compiler_params=pltpu.CompilerParams(
            dimension_semantics=("arbitrary",)),
        cost_estimate=pl.CostEstimate(flops=flops,
                                      transcendentals=transcendentals,
                                      bytes_accessed=bytes_accessed),
    )(*args)

    # (S, N*T, C_PAD) bf16 -> per-head (S, N, C_s, T) f32, matching PyTorch.
    stacked = stacked.reshape(num_stages, N, T, C_PAD)
    outputs, off = [], 0
    for c in num_classes_list:
        head = stacked[:, :, :, off:off + c]
        outputs.append(jnp.transpose(head, (0, 1, 3, 2)).astype(f32))
        off += c
    return outputs


# ---------------------------------------------------------------------------
# Parameters (deterministic, synthetic)
# ---------------------------------------------------------------------------
def init_params(key, num_layers_PG, num_layers_R, num_R, num_f_maps, dim,
                num_classes_list):
    sum_c = sum(num_classes_list)
    keys = iter(jax.random.split(key, 128))

    def rnd(shape, scale=0.1):
        return (scale * jax.random.normal(next(keys), shape)).astype(jnp.float32)

    F_ = num_f_maps
    L = num_layers_PG
    pg = dict(
        w_in=rnd((dim, F_)), b_in=rnd((1, F_)),
        w1=rnd((L, 3, F_, F_)), b1=rnd((L, 1, F_)),        # dilation 2^(L-1-i)
        w2=rnd((L, 3, F_, F_)), b2=rnd((L, 1, F_)),        # dilation 2^i
        wf=rnd((L, 2, F_, F_)), bf=rnd((L, 1, F_)),        # fusion 1x1 (2F -> F)
        w_out=rnd((F_, sum_c)), b_out=rnd((1, sum_c)),     # fused conv_outs
    )
    rs = []
    for _ in range(num_R):
        LR = num_layers_R
        rs.append(dict(
            w_in=rnd((sum_c, F_)), b_in=rnd((1, F_)),
            wd=rnd((LR, 3, F_, F_)), bd=rnd((LR, 1, F_)),  # dilation 2^i
            w1=rnd((LR, F_, F_)), b1=rnd((LR, 1, F_)),
            w_out=rnd((F_, sum_c)), b_out=rnd((1, sum_c)),
        ))
    return pg, rs


# ---------------------------------------------------------------------------
# Pure-JAX reference (f32, no folding) for correctness checking
# ---------------------------------------------------------------------------
def _ref_causal_conv3(f, w, b, d):
    T = f.shape[0]
    fp = jnp.concatenate([jnp.zeros((2 * d, f.shape[1]), f.dtype), f], axis=0)
    return fp[0:T] @ w[0] + fp[d:d + T] @ w[1] + fp[2 * d:2 * d + T] @ w[2] + b


def mst_tcn2_reference(x_ncw, pg, rs, L_PG, L_R, num_classes_list):
    x = jnp.transpose(x_ncw, (0, 2, 1)).astype(jnp.float32)   # (N, T, dim)

    def pg_stage(xb):
        f = xb @ pg["w_in"] + pg["b_in"]
        for i in range(L_PG):
            d1, d2 = 2 ** (L_PG - 1 - i), 2 ** i
            h1 = _ref_causal_conv3(f, pg["w1"][i], pg["b1"][i], d1)
            h2 = _ref_causal_conv3(f, pg["w2"][i], pg["b2"][i], d2)
            h = h1 @ pg["wf"][i, 0] + h2 @ pg["wf"][i, 1] + pg["bf"][i]
            f = jnp.maximum(h, 0.0) + f
        return f @ pg["w_out"] + pg["b_out"]

    def r_stage(rp, logits_b):
        p = jax.nn.softmax(logits_b, axis=-1)
        f = p @ rp["w_in"] + rp["b_in"]
        for i in range(L_R):
            d = 2 ** i
            h = jnp.maximum(_ref_causal_conv3(f, rp["wd"][i], rp["bd"][i], d), 0.0)
            h = h @ rp["w1"][i] + rp["b1"][i]
            f = f + h
        return f @ rp["w_out"] + rp["b_out"]

    cur = jax.vmap(pg_stage)(x)
    stages = [cur]
    for rp in rs:
        cur = jax.vmap(lambda lb, rp=rp: r_stage(rp, lb))(cur)
        stages.append(cur)
    return jnp.stack(stages, axis=0)     # (S, N, T, sum_c)


# ---------------------------------------------------------------------------
if __name__ == "__main__":
    num_layers_PG, num_layers_R, num_R = 4, 3, 2
    num_f_maps, dim = 32, 8
    num_classes_list = [5, 7]
    N, T = 2, 64

    key = jax.random.PRNGKey(0)
    kx, kp = jax.random.split(key)
    x = jax.random.normal(kx, (N, dim, T), dtype=jnp.float32)   # NCW, like PyTorch

    pg_params, r_params = init_params(kp, num_layers_PG, num_layers_R, num_R,
                                      num_f_maps, dim, num_classes_list)

    fwd = jax.jit(functools.partial(
        mst_tcn2_forward, num_layers_PG=num_layers_PG,
        num_layers_R=num_layers_R, num_classes_list=num_classes_list))
    outputs = jax.block_until_ready(fwd(x, pg_params, r_params))

    # shape / finiteness checks (PyTorch-equivalent layout)
    assert outputs[0].shape == (num_R + 1, N, num_classes_list[0], T)
    assert outputs[1].shape == (num_R + 1, N, num_classes_list[1], T)
    assert all(bool(jnp.all(jnp.isfinite(o))) for o in outputs)

    # numerical check against a pure-JAX f32 reference (bf16 matmuls, bf16
    # output store + approx reciprocal in the kernel -> loose tolerance)
    ref = mst_tcn2_reference(x, pg_params, r_params, num_layers_PG,
                             num_layers_R, num_classes_list)
    got = jnp.concatenate([jnp.transpose(o, (0, 1, 3, 2)) for o in outputs],
                          axis=-1)
    max_err = float(jnp.max(jnp.abs(got - ref)))
    assert max_err < 1e-1, f"max abs error vs reference: {max_err}"

    print("KERNEL_OK")
</pallas_src>

<mosaic_0001>
module attributes {stable_mosaic.version = 11 : i64} {
  func.func @mst_tcn2_kernel(%arg0: i32, %arg1: memref<128x32xf32, #tpu.memory_space<vmem>>, %arg2: memref<4x160x32xbf16, #tpu.memory_space<vmem>>, %arg3: memref<4x1x32xf32, #tpu.memory_space<vmem>>, %arg4: memref<32x128xbf16, #tpu.memory_space<vmem>>, %arg5: memref<1x128xf32, #tpu.memory_space<vmem>>, %arg6: memref<2x128x32xbf16, #tpu.memory_space<vmem>>, %arg7: memref<2x1x32xf32, #tpu.memory_space<vmem>>, %arg8: memref<6x96x32xbf16, #tpu.memory_space<vmem>>, %arg9: memref<6x1x32xf32, #tpu.memory_space<vmem>>, %arg10: memref<6x32x32xbf16, #tpu.memory_space<vmem>>, %arg11: memref<6x1x32xf32, #tpu.memory_space<vmem>>, %arg12: memref<2x32x128xbf16, #tpu.memory_space<vmem>>, %arg13: memref<2x1x128xf32, #tpu.memory_space<vmem>>, %arg14: memref<3x128x128xbf16, #tpu.memory_space<vmem>>, %arg15: memref<2x80x32xf32, #tpu.memory_space<vmem>>) attributes {dimension_semantics = [#tpu.dimension_semantics<arbitrary>], iteration_bounds = array<i64: 1>, scalar_prefetch = 0 : i64, scratch_operands = 1 : i64, tpu.core_type = #tpu.core_type<tc>, window_params = [{pipeline_mode = #tpu.pipeline_mode<synchronous>, transform_indices = @transform_0, window_bounds = array<i64: 128, 32>}, {pipeline_mode = #tpu.pipeline_mode<synchronous>, transform_indices = @transform_1, window_bounds = array<i64: 4, 160, 32>}, {pipeline_mode = #tpu.pipeline_mode<synchronous>, transform_indices = @transform_2, window_bounds = array<i64: 4, 1, 32>}, {pipeline_mode = #tpu.pipeline_mode<synchronous>, transform_indices = @transform_3, window_bounds = array<i64: 32, 128>}, {pipeline_mode = #tpu.pipeline_mode<synchronous>, transform_indices = @transform_4, window_bounds = array<i64: 1, 128>}, {pipeline_mode = #tpu.pipeline_mode<synchronous>, transform_indices = @transform_5, window_bounds = array<i64: 2, 128, 32>}, {pipeline_mode = #tpu.pipeline_mode<synchronous>, transform_indices = @transform_6, window_bounds = array<i64: 2, 1, 32>}, {pipeline_mode = #tpu.pipeline_mode<synchronous>, transform_indices = @transform_7, window_bounds = array<i64: 6, 96, 32>}, {pipeline_mode = #tpu.pipeline_mode<synchronous>, transform_indices = @transform_8, window_bounds = array<i64: 6, 1, 32>}, {pipeline_mode = #tpu.pipeline_mode<synchronous>, transform_indices = @transform_9, window_bounds = array<i64: 6, 32, 32>}, {pipeline_mode = #tpu.pipeline_mode<synchronous>, transform_indices = @transform_10, window_bounds = array<i64: 6, 1, 32>}, {pipeline_mode = #tpu.pipeline_mode<synchronous>, transform_indices = @transform_11, window_bounds = array<i64: 2, 32, 128>}, {pipeline_mode = #tpu.pipeline_mode<synchronous>, transform_indices = @transform_12, window_bounds = array<i64: 2, 1, 128>}, {pipeline_mode = #tpu.pipeline_mode<synchronous>, transform_indices = @transform_13, window_bounds = array<i64: 3, 128, 128>}]} {
    %cst = arith.constant 0.000000e+00 : f32
    %0 = vector.broadcast %cst : f32 to vector<16x32xf32>
    %c0 = arith.constant 0 : index
    %c0_0 = arith.constant 0 : index
    %c0_1 = arith.constant 0 : index
    %1 = vector.load %arg15[%c0, %c0_0, %c0_1] : memref<2x80x32xf32, #tpu.memory_space<vmem>>, vector<1x16x32xf32>
    %2 = vector.shape_cast %1 : vector<1x16x32xf32> to vector<16x32xf32>
    %3 = vector.shape_cast %0 : vector<16x32xf32> to vector<1x16x32xf32>
    tpu.vector_store %arg15[%c0, %c0_0, %c0_1], %3 {strides = array<i32>} : memref<2x80x32xf32, #tpu.memory_space<vmem>>, vector<1x16x32xf32>,
    %cst_2 = arith.constant 0.000000e+00 : f32
    %4 = vector.broadcast %cst_2 : f32 to vector<16x32xf32>
    %c1 = arith.constant 1 : index
    %c0_3 = arith.constant 0 : index
    %c0_4 = arith.constant 0 : index
    %5 = vector.load %arg15[%c1, %c0_3, %c0_4] : memref<2x80x32xf32, #tpu.memory_space<vmem>>, vector<1x16x32xf32>
    %6 = vector.shape_cast %5 : vector<1x16x32xf32> to vector<16x32xf32>
    %7 = vector.shape_cast %4 : vector<16x32xf32> to vector<1x16x32xf32>
    tpu.vector_store %arg15[%c1, %c0_3, %c0_4], %7 {strides = array<i32>} : memref<2x80x32xf32, #tpu.memory_space<vmem>>, vector<1x16x32xf32>,
    %c0_5 = arith.constant 0 : index
    %c0_6 = arith.constant 0 : index
    %8 = vector.load %arg1[%c0_5, %c0_6] : memref<128x32xf32, #tpu.memory_space<vmem>>, vector<128x32xf32>
    %9 = vector.extract_strided_slice %8 {offsets = [0, 0], sizes = [64, 32], strides = [1, 1]} : vector<128x32xf32> to vector<64x32xf32>
    %c0_7 = arith.constant 0 : index
    %c16 = arith.constant 16 : index
    %c0_8 = arith.constant 0 : index
    %10 = vector.load %arg15[%c0_7, %c16, %c0_8] : memref<2x80x32xf32, #tpu.memory_space<vmem>>, vector<1x64x32xf32>
    %11 = vector.shape_cast %10 : vector<1x64x32xf32> to vector<64x32xf32>
    %12 = vector.shape_cast %9 : vector<64x32xf32> to vector<1x64x32xf32>
    tpu.vector_store %arg15[%c0_7, %c16, %c0_8], %12 {strides = array<i32>} : memref<2x80x32xf32, #tpu.memory_space<vmem>>, vector<1x64x32xf32>,
    %13 = vector.extract_strided_slice %8 {offsets = [64, 0], sizes = [64, 32], strides = [1, 1]} : vector<128x32xf32> to vector<64x32xf32>
    %c1_9 = arith.constant 1 : index
    %c16_10 = arith.constant 16 : index
    %c0_11 = arith.constant 0 : index
    %14 = vector.load %arg15[%c1_9, %c16_10, %c0_11] : memref<2x80x32xf32, #tpu.memory_space<vmem>>, vector<1x64x32xf32>
    %15 = vector.shape_cast %14 : vector<1x64x32xf32> to vector<64x32xf32>
    %16 = vector.shape_cast %13 : vector<64x32xf32> to vector<1x64x32xf32>
    tpu.vector_store %arg15[%c1_9, %c16_10, %c0_11], %16 {strides = array<i32>} : memref<2x80x32xf32, #tpu.memory_space<vmem>>, vector<1x64x32xf32>,
    %c0_12 = arith.constant 0 : index
    %c0_13 = arith.constant 0 : index
    %c0_14 = arith.constant 0 : index
    %17 = vector.load %arg15[%c0_12, %c0_13, %c0_14] : memref<2x80x32xf32, #tpu.memory_space<vmem>>, vector<1x64x32xf32>
    %18 = vector.shape_cast %17 : vector<1x64x32xf32> to vector<64x32xf32>
    %c1_15 = arith.constant 1 : index
    %c0_16 = arith.constant 0 : index
    %c0_17 = arith.constant 0 : index
    %19 = vector.load %arg15[%c1_15, %c0_16, %c0_17] : memref<2x80x32xf32, #tpu.memory_space<vmem>>, vector<1x64x32xf32>
    %20 = vector.shape_cast %19 : vector<1x64x32xf32> to vector<64x32xf32>
    %21 = tpu.concatenate %18, %20 in 0 : vector<64x32xf32>, vector<64x32xf32> -> vector<128x32xf32>
    %c0_18 = arith.constant 0 : index
    %c8 = arith.constant 8 : index
    %c0_19 = arith.constant 0 : index
    %22 = vector.load %arg15[%c0_18, %c8, %c0_19] : memref<2x80x32xf32, #tpu.memory_space<vmem>>, vector<1x64x32xf32>
    %23 = vector.shape_cast %22 : vector<1x64x32xf32> to vector<64x32xf32>
    %c1_20 = arith.constant 1 : index
    %c8_21 = arith.constant 8 : index
    %c0_22 = arith.constant 0 : index
    %24 = vector.load %arg15[%c1_20, %c8_21, %c0_22] : memref<2x80x32xf32, #tpu.memory_space<vmem>>, vector<1x64x32xf32>
    %25 = vector.shape_cast %24 : vector<1x64x32xf32> to vector<64x32xf32>
    %26 = tpu.concatenate %23, %25 in 0 : vector<64x32xf32>, vector<64x32xf32> -> vector<128x32xf32>
    %c0_23 = arith.constant 0 : index
    %c14 = arith.constant 14 : index
    %c0_24 = arith.constant 0 : index
    %27 = vector.load %arg15[%c0_23, %c14, %c0_24] : memref<2x80x32xf32, #tpu.memory_space<vmem>>, vector<1x64x32xf32>
    %28 = vector.shape_cast %27 : vector<1x64x32xf32> to vector<64x32xf32>
    %c1_25 = arith.constant 1 : index
    %c14_26 = arith.constant 14 : index
    %c0_27 = arith.constant 0 : index
    %29 = vector.load %arg15[%c1_25, %c14_26, %c0_27] : memref<2x80x32xf32, #tpu.memory_space<vmem>>, vector<1x64x32xf32>
    %30 = vector.shape_cast %29 : vector<1x64x32xf32> to vector<64x32xf32>
    %31 = tpu.concatenate %28, %30 in 0 : vector<64x32xf32>, vector<64x32xf32> -> vector<128x32xf32>
    %c0_28 = arith.constant 0 : index
    %c15 = arith.constant 15 : index
    %c0_29 = arith.constant 0 : index
    %32 = vector.load %arg15[%c0_28, %c15, %c0_29] : memref<2x80x32xf32, #tpu.memory_space<vmem>>, vector<1x64x32xf32>
    %33 = vector.shape_cast %32 : vector<1x64x32xf32> to vector<64x32xf32>
    %c1_30 = arith.constant 1 : index
    %c15_31 = arith.constant 15 : index
    %c0_32 = arith.constant 0 : index
    %34 = vector.load %arg15[%c1_30, %c15_31, %c0_32] : memref<2x80x32xf32, #tpu.memory_space<vmem>>, vector<1x64x32xf32>
    %35 = vector.shape_cast %34 : vector<1x64x32xf32> to vector<64x32xf32>
    %36 = tpu.concatenate %33, %35 in 0 : vector<64x32xf32>, vector<64x32xf32> -> vector<128x32xf32>
    %37 = tpu.concatenate %21, %26, %31, %36, %8 in 1 : vector<128x32xf32>, vector<128x32xf32>, vector<128x32xf32>, vector<128x32xf32>, vector<128x32xf32> -> vector<128x160xf32>
    %38 = arith.truncf %37 : vector<128x160xf32> to vector<128x160xbf16>
    %c0_33 = arith.constant 0 : index
    %c0_34 = arith.constant 0 : index
    %c0_35 = arith.constant 0 : index
    %39 = vector.load %arg2[%c0_33, %c0_34, %c0_35] : memref<4x160x32xbf16, #tpu.memory_space<vmem>>, vector<1x160x32xbf16>
    %40 = vector.shape_cast %39 : vector<1x160x32xbf16> to vector<160x32xbf16>
    %cst_36 = arith.constant dense<0.000000e+00> : vector<128x32xf32>
    %41 = tpu.matmul %38, %40, %cst_36 {dimension_numbers = #tpu.dot_dimension_numbers<[1], [0], [0], [1], [0, 0, 1, 1], [], []>} : vector<128x160xbf16>, vector<160x32xbf16>, vector<128x32xf32> -> vector<128x32xf32>
    %c0_37 = arith.constant 0 : index
    %c0_38 = arith.constant 0 : index
    %c0_39 = arith.constant 0 : index
    %42 = vector.load %arg3[%c0_37, %c0_38, %c0_39] : memref<4x1x32xf32, #tpu.memory_space<vmem>>, vector<1x1x32xf32>
    %43 = vector.shape_cast %42 : vector<1x1x32xf32> to vector<1x32xf32>
    %44 = vector.broadcast %43 : vector<1x32xf32> to vector<128x32xf32>
    %45 = arith.addf %41, %44 : vector<128x32xf32>
    %cst_40 = arith.constant 0.000000e+00 : f32
    %46 = vector.broadcast %cst_40 : f32 to vector<128x32xf32>
    %47 = arith.maximumf %45, %46 : vector<128x32xf32>
    %48 = arith.addf %47, %8 : vector<128x32xf32>
    %49 = vector.extract_strided_slice %48 {offsets = [0, 0], sizes = [64, 32], strides = [1, 1]} : vector<128x32xf32> to vector<64x32xf32>
    %c0_41 = arith.constant 0 : index
    %c16_42 = arith.constant 16 : index
    %c0_43 = arith.constant 0 : index
    %50 = vector.load %arg15[%c0_41, %c16_42, %c0_43] : memref<2x80x32xf32, #tpu.memory_space<vmem>>, vector<1x64x32xf32>
    %51 = vector.shape_cast %50 : vector<1x64x32xf32> to vector<64x32xf32>
    %52 = vector.shape_cast %49 : vector<64x32xf32> to vector<1x64x32xf32>
    tpu.vector_store %arg15[%c0_41, %c16_42, %c0_43], %52 {strides = array<i32>} : memref<2x80x32xf32, #tpu.memory_space<vmem>>, vector<1x64x32xf32>,
    %53 = vector.extract_strided_slice %48 {offsets = [64, 0], sizes = [64, 32], strides = [1, 1]} : vector<128x32xf32> to vector<64x32xf32>
    %c1_44 = arith.constant 1 : index
    %c16_45 = arith.constant 16 : index
    %c0_46 = arith.constant 0 : index
    %54 = vector.load %arg15[%c1_44, %c16_45, %c0_46] : memref<2x80x32xf32, #tpu.memory_space<vmem>>, vector<1x64x32xf32>
    %55 = vector.shape_cast %54 : vector<1x64x32xf32> to vector<64x32xf32>
    %56 = vector.shape_cast %53 : vector<64x32xf32> to vector<1x64x32xf32>
    tpu.vector_store %arg15[%c1_44, %c16_45, %c0_46], %56 {strides = array<i32>} : memref<2x80x32xf32, #tpu.memory_space<vmem>>, vector<1x64x32xf32>,
    %c0_47 = arith.constant 0 : index
    %c8_48 = arith.constant 8 : index
    %c0_49 = arith.constant 0 : index
    %57 = vector.load %arg15[%c0_47, %c8_48, %c0_49] : memref<2x80x32xf32, #tpu.memory_space<vmem>>, vector<1x64x32xf32>
    %58 = vector.shape_cast %57 : vector<1x64x32xf32> to vector<64x32xf32>
    %c1_50 = arith.constant 1 : index
    %c8_51 = arith.constant 8 : index
    %c0_52 = arith.constant 0 : index
    %59 = vector.load %arg15[%c1_50, %c8_51, %c0_52] : memref<2x80x32xf32, #tpu.memory_space<vmem>>, vector<1x64x32xf32>
    %60 = vector.shape_cast %59 : vector<1x64x32xf32> to vector<64x32xf32>
    %61 = tpu.concatenate %58, %60 in 0 : vector<64x32xf32>, vector<64x32xf32> -> vector<128x32xf32>
    %c0_53 = arith.constant 0 : index
    %c12 = arith.constant 12 : index
    %c0_54 = arith.constant 0 : index
    %62 = vector.load %arg15[%c0_53, %c12, %c0_54] : memref<2x80x32xf32, #tpu.memory_space<vmem>>, vector<1x64x32xf32>
    %63 = vector.shape_cast %62 : vector<1x64x32xf32> to vector<64x32xf32>
    %c1_55 = arith.constant 1 : index
    %c12_56 = arith.constant 12 : index
    %c0_57 = arith.constant 0 : index
    %64 = vector.load %arg15[%c1_55, %c12_56, %c0_57] : memref<2x80x32xf32, #tpu.memory_space<vmem>>, vector<1x64x32xf32>
    %65 = vector.shape_cast %64 : vector<1x64x32xf32> to vector<64x32xf32>
    %66 = tpu.concatenate %63, %65 in 0 : vector<64x32xf32>, vector<64x32xf32> -> vector<128x32xf32>
    %c0_58 = arith.constant 0 : index
    %c12_59 = arith.constant 12 : index
    %c0_60 = arith.constant 0 : index
    %67 = vector.load %arg15[%c0_58, %c12_59, %c0_60] : memref<2x80x32xf32, #tpu.memory_space<vmem>>, vector<1x64x32xf32>
    %68 = vector.shape_cast %67 : vector<1x64x32xf32> to vector<64x32xf32>
    %c1_61 = arith.constant 1 : index
    %c12_62 = arith.constant 12 : index
    %c0_63 = arith.constant 0 : index
    %69 = vector.load %arg15[%c1_61, %c12_62, %c0_63] : memref<2x80x32xf32, #tpu.memory_space<vmem>>, vector<1x64x32xf32>
    %70 = vector.shape_cast %69 : vector<1x64x32xf32> to vector<64x32xf32>
    %71 = tpu.concatenate %68, %70 in 0 : vector<64x32xf32>, vector<64x32xf32> -> vector<128x32xf32>
    %c0_64 = arith.constant 0 : index
    %c14_65 = arith.constant 14 : index
    %c0_66 = arith.constant 0 : index
    %72 = vector.load %arg15[%c0_64, %c14_65, %c0_66] : memref<2x80x32xf32, #tpu.memory_space<vmem>>, vector<1x64x32xf32>
    %73 = vector.shape_cast %72 : vector<1x64x32xf32> to vector<64x32xf32>
    %c1_67 = arith.constant 1 : index
    %c14_68 = arith.constant 14 : index
    %c0_69 = arith.constant 0 : index
    %74 = vector.load %arg15[%c1_67, %c14_68, %c0_69] : memref<2x80x32xf32, #tpu.memory_space<vmem>>, vector<1x64x32xf32>
    %75 = vector.shape_cast %74 : vector<1x64x32xf32> to vector<64x32xf32>
    %76 = tpu.concatenate %73, %75 in 0 : vector<64x32xf32>, vector<64x32xf32> -> vector<128x32xf32>
    %77 = tpu.concatenate %61, %66, %71, %76, %48 in 1 : vector<128x32xf32>, vector<128x32xf32>, vector<128x32xf32>, vector<128x32xf32>, vector<128x32xf32> -> vector<128x160xf32>
    %78 = arith.truncf %77 : vector<128x160xf32> to vector<128x160xbf16>
    %c1_70 = arith.constant 1 : index
    %c0_71 = arith.constant 0 : index
    %c0_72 = arith.constant 0 : index
    %79 = vector.load %arg2[%c1_70, %c0_71, %c0_72] : memref<4x160x32xbf16, #tpu.memory_space<vmem>>, vector<1x160x32xbf16>
    %80 = vector.shape_cast %79 : vector<1x160x32xbf16> to vector<160x32xbf16>
    %cst_73 = arith.constant dense<0.000000e+00> : vector<128x32xf32>
    %81 = tpu.matmul %78, %80, %cst_73 {dimension_numbers = #tpu.dot_dimension_numbers<[1], [0], [0], [1], [0, 0, 1, 1], [], []>} : vector<128x160xbf16>, vector<160x32xbf16>, vector<128x32xf32> -> vector<128x32xf32>
    %c1_74 = arith.constant 1 : index
    %c0_75 = arith.constant 0 : index
    %c0_76 = arith.constant 0 : index
    %82 = vector.load %arg3[%c1_74, %c0_75, %c0_76] : memref<4x1x32xf32, #tpu.memory_space<vmem>>, vector<1x1x32xf32>
    %83 = vector.shape_cast %82 : vector<1x1x32xf32> to vector<1x32xf32>
    %84 = vector.broadcast %83 : vector<1x32xf32> to vector<128x32xf32>
    %85 = arith.addf %81, %84 : vector<128x32xf32>
    %cst_77 = arith.constant 0.000000e+00 : f32
    %86 = vector.broadcast %cst_77 : f32 to vector<128x32xf32>
    %87 = arith.maximumf %85, %86 : vector<128x32xf32>
    %88 = arith.addf %87, %48 : vector<128x32xf32>
    %89 = vector.extract_strided_slice %88 {offsets = [0, 0], sizes = [64, 32], strides = [1, 1]} : vector<128x32xf32> to vector<64x32xf32>
    %c0_78 = arith.constant 0 : index
    %c16_79 = arith.constant 16 : index
    %c0_80 = arith.constant 0 : index
    %90 = vector.load %arg15[%c0_78, %c16_79, %c0_80] : memref<2x80x32xf32, #tpu.memory_space<vmem>>, vector<1x64x32xf32>
    %91 = vector.shape_cast %90 : vector<1x64x32xf32> to vector<64x32xf32>
    %92 = vector.shape_cast %89 : vector<64x32xf32> to vector<1x64x32xf32>
    tpu.vector_store %arg15[%c0_78, %c16_79, %c0_80], %92 {strides = array<i32>} : memref<2x80x32xf32, #tpu.memory_space<vmem>>, vector<1x64x32xf32>,
    %93 = vector.extract_strided_slice %88 {offsets = [64, 0], sizes = [64, 32], strides = [1, 1]} : vector<128x32xf32> to vector<64x32xf32>
    %c1_81 = arith.constant 1 : index
    %c16_82 = arith.constant 16 : index
    %c0_83 = arith.constant 0 : index
    %94 = vector.load %arg15[%c1_81, %c16_82, %c0_83] : memref<2x80x32xf32, #tpu.memory_space<vmem>>, vector<1x64x32xf32>
    %95 = vector.shape_cast %94 : vector<1x64x32xf32> to vector<64x32xf32>
    %96 = vector.shape_cast %93 : vector<64x32xf32> to vector<1x64x32xf32>
    tpu.vector_store %arg15[%c1_81, %c16_82, %c0_83], %96 {strides = array<i32>} : memref<2x80x32xf32, #tpu.memory_space<vmem>>, vector<1x64x32xf32>,
    %c0_84 = arith.constant 0 : index
    %c12_85 = arith.constant 12 : index
    %c0_86 = arith.constant 0 : index
    %97 = vector.load %arg15[%c0_84, %c12_85, %c0_86] : memref<2x80x32xf32, #tpu.memory_space<vmem>>, vector<1x64x32xf32>
    %98 = vector.shape_cast %97 : vector<1x64x32xf32> to vector<64x32xf32>
    %c1_87 = arith.constant 1 : index
    %c12_88 = arith.constant 12 : index
    %c0_89 = arith.constant 0 : index
    %99 = vector.load %arg15[%c1_87, %c12_88, %c0_89] : memref<2x80x32xf32, #tpu.memory_space<vmem>>, vector<1x64x32xf32>
    %100 = vector.shape_cast %99 : vector<1x64x32xf32> to vector<64x32xf32>
    %101 = tpu.concatenate %98, %100 in 0 : vector<64x32xf32>, vector<64x32xf32> -> vector<128x32xf32>
    %c0_90 = arith.constant 0 : index
    %c14_91 = arith.constant 14 : index
    %c0_92 = arith.constant 0 : index
    %102 = vector.load %arg15[%c0_90, %c14_91, %c0_92] : memref<2x80x32xf32, #tpu.memory_space<vmem>>, vector<1x64x32xf32>
    %103 = vector.shape_cast %102 : vector<1x64x32xf32> to vector<64x32xf32>
    %c1_93 = arith.constant 1 : index
    %c14_94 = arith.constant 14 : index
    %c0_95 = arith.constant 0 : index
    %104 = vector.load %arg15[%c1_93, %c14_94, %c0_95] : memref<2x80x32xf32, #tpu.memory_space<vmem>>, vector<1x64x32xf32>
    %105 = vector.shape_cast %104 : vector<1x64x32xf32> to vector<64x32xf32>
    %106 = tpu.concatenate %103, %105 in 0 : vector<64x32xf32>, vector<64x32xf32> -> vector<128x32xf32>
    %c0_96 = arith.constant 0 : index
    %c8_97 = arith.constant 8 : index
    %c0_98 = arith.constant 0 : index
    %107 = vector.load %arg15[%c0_96, %c8_97, %c0_98] : memref<2x80x32xf32, #tpu.memory_space<vmem>>, vector<1x64x32xf32>
    %108 = vector.shape_cast %107 : vector<1x64x32xf32> to vector<64x32xf32>
    %c1_99 = arith.constant 1 : index
    %c8_100 = arith.constant 8 : index
    %c0_101 = arith.constant 0 : index
    %109 = vector.load %arg15[%c1_99, %c8_100, %c0_101] : memref<2x80x32xf32, #tpu.memory_space<vmem>>, vector<1x64x32xf32>
    %110 = vector.shape_cast %109 : vector<1x64x32xf32> to vector<64x32xf32>
    %111 = tpu.concatenate %108, %110 in 0 : vector<64x32xf32>, vector<64x32xf32> -> vector<128x32xf32>
    %c0_102 = arith.constant 0 : index
    %c12_103 = arith.constant 12 : index
    %c0_104 = arith.constant 0 : index
    %112 = vector.load %arg15[%c0_102, %c12_103, %c0_104] : memref<2x80x32xf32, #tpu.memory_space<vmem>>, vector<1x64x32xf32>
    %113 = vector.shape_cast %112 : vector<1x64x32xf32> to vector<64x32xf32>
    %c1_105 = arith.constant 1 : index
    %c12_106 = arith.constant 12 : index
    %c0_107 = arith.constant 0 : index
    %114 = vector.load %arg15[%c1_105, %c12_106, %c0_107] : memref<2x80x32xf32, #tpu.memory_space<vmem>>, vector<1x64x32xf32>
    %115 = vector.shape_cast %114 : vector<1x64x32xf32> to vector<64x32xf32>
    %116 = tpu.concatenate %113, %115 in 0 : vector<64x32xf32>, vector<64x32xf32> -> vector<128x32xf32>
    %117 = tpu.concatenate %101, %106, %111, %116, %88 in 1 : vector<128x32xf32>, vector<128x32xf32>, vector<128x32xf32>, vector<128x32xf32>, vector<128x32xf32> -> vector<128x160xf32>
    %118 = arith.truncf %117 : vector<128x160xf32> to vector<128x160xbf16>
    %c2 = arith.constant 2 : index
    %c0_108 = arith.constant 0 : index
    %c0_109 = arith.constant 0 : index
    %119 = vector.load %arg2[%c2, %c0_108, %c0_109] : memref<4x160x32xbf16, #tpu.memory_space<vmem>>, vector<1x160x32xbf16>
    %120 = vector.shape_cast %119 : vector<1x160x32xbf16> to vector<160x32xbf16>
    %cst_110 = arith.constant dense<0.000000e+00> : vector<128x32xf32>
    %121 = tpu.matmul %118, %120, %cst_110 {dimension_numbers = #tpu.dot_dimension_numbers<[1], [0], [0], [1], [0, 0, 1, 1], [], []>} : vector<128x160xbf16>, vector<160x32xbf16>, vector<128x32xf32> -> vector<128x32xf32>
    %c2_111 = arith.constant 2 : index
    %c0_112 = arith.constant 0 : index
    %c0_113 = arith.constant 0 : index
    %122 = vector.load %arg3[%c2_111, %c0_112, %c0_113] : memref<4x1x32xf32, #tpu.memory_space<vmem>>, vector<1x1x32xf32>
    %123 = vector.shape_cast %122 : vector<1x1x32xf32> to vector<1x32xf32>
    %124 = vector.broadcast %123 : vector<1x32xf32> to vector<128x32xf32>
    %125 = arith.addf %121, %124 : vector<128x32xf32>
    %cst_114 = arith.constant 0.000000e+00 : f32
    %126 = vector.broadcast %cst_114 : f32 to vector<128x32xf32>
    %127 = arith.maximumf %125, %126 : vector<128x32xf32>
    %128 = arith.addf %127, %88 : vector<128x32xf32>
    %129 = vector.extract_strided_slice %128 {offsets = [0, 0], sizes = [64, 32], strides = [1, 1]} : vector<128x32xf32> to vector<64x32xf32>
    %c0_115 = arith.constant 0 : index
    %c16_116 = arith.constant 16 : index
    %c0_117 = arith.constant 0 : index
    %130 = vector.load %arg15[%c0_115, %c16_116, %c0_117] : memref<2x80x32xf32, #tpu.memory_space<vmem>>, vector<1x64x32xf32>
    %131 = vector.shape_cast %130 : vector<1x64x32xf32> to vector<64x32xf32>
    %132 = vector.shape_cast %129 : vector<64x32xf32> to vector<1x64x32xf32>
    tpu.vector_store %arg15[%c0_115, %c16_116, %c0_117], %132 {strides = array<i32>} : memref<2x80x32xf32, #tpu.memory_space<vmem>>, vector<1x64x32xf32>,
    %133 = vector.extract_strided_slice %128 {offsets = [64, 0], sizes = [64, 32], strides = [1, 1]} : vector<128x32xf32> to vector<64x32xf32>
    %c1_118 = arith.constant 1 : index
    %c16_119 = arith.constant 16 : index
    %c0_120 = arith.constant 0 : index
    %134 = vector.load %arg15[%c1_118, %c16_119, %c0_120] : memref<2x80x32xf32, #tpu.memory_space<vmem>>, vector<1x64x32xf32>
    %135 = vector.shape_cast %134 : vector<1x64x32xf32> to vector<64x32xf32>
    %136 = vector.shape_cast %133 : vector<64x32xf32> to vector<1x64x32xf32>
    tpu.vector_store %arg15[%c1_118, %c16_119, %c0_120], %136 {strides = array<i32>} : memref<2x80x32xf32, #tpu.memory_space<vmem>>, vector<1x64x32xf32>,
    %c0_121 = arith.constant 0 : index
    %c14_122 = arith.constant 14 : index
    %c0_123 = arith.constant 0 : index
    %137 = vector.load %arg15[%c0_121, %c14_122, %c0_123] : memref<2x80x32xf32, #tpu.memory_space<vmem>>, vector<1x64x32xf32>
    %138 = vector.shape_cast %137 : vector<1x64x32xf32> to vector<64x32xf32>
    %c1_124 = arith.constant 1 : index
    %c14_125 = arith.constant 14 : index
    %c0_126 = arith.constant 0 : index
    %139 = vector.load %arg15[%c1_124, %c14_125, %c0_126] : memref<2x80x32xf32, #tpu.memory_space<vmem>>, vector<1x64x32xf32>
    %140 = vector.shape_cast %139 : vector<1x64x32xf32> to vector<64x32xf32>
    %141 = tpu.concatenate %138, %140 in 0 : vector<64x32xf32>, vector<64x32xf32> -> vector<128x32xf32>
    %c0_127 = arith.constant 0 : index
    %c15_128 = arith.constant 15 : index
    %c0_129 = arith.constant 0 : index
    %142 = vector.load %arg15[%c0_127, %c15_128, %c0_129] : memref<2x80x32xf32, #tpu.memory_space<vmem>>, vector<1x64x32xf32>
    %143 = vector.shape_cast %142 : vector<1x64x32xf32> to vector<64x32xf32>
    %c1_130 = arith.constant 1 : index
    %c15_131 = arith.constant 15 : index
    %c0_132 = arith.constant 0 : index
    %144 = vector.load %arg15[%c1_130, %c15_131, %c0_132] : memref<2x80x32xf32, #tpu.memory_space<vmem>>, vector<1x64x32xf32>
    %145 = vector.shape_cast %144 : vector<1x64x32xf32> to vector<64x32xf32>
    %146 = tpu.concatenate %143, %145 in 0 : vector<64x32xf32>, vector<64x32xf32> -> vector<128x32xf32>
    %c0_133 = arith.constant 0 : index
    %c0_134 = arith.constant 0 : index
    %c0_135 = arith.constant 0 : index
    %147 = vector.load %arg15[%c0_133, %c0_134, %c0_135] : memref<2x80x32xf32, #tpu.memory_space<vmem>>, vector<1x64x32xf32>
    %148 = vector.shape_cast %147 : vector<1x64x32xf32> to vector<64x32xf32>
    %c1_136 = arith.constant 1 : index
    %c0_137 = arith.constant 0 : index
    %c0_138 = arith.constant 0 : index
    %149 = vector.load %arg15[%c1_136, %c0_137, %c0_138] : memref<2x80x32xf32, #tpu.memory_space<vmem>>, vector<1x64x32xf32>
    %150 = vector.shape_cast %149 : vector<1x64x32xf32> to vector<64x32xf32>
    %151 = tpu.concatenate %148, %150 in 0 : vector<64x32xf32>, vector<64x32xf32> -> vector<128x32xf32>
    %c0_139 = arith.constant 0 : index
    %c8_140 = arith.constant 8 : index
    %c0_141 = arith.constant 0 : index
    %152 = vector.load %arg15[%c0_139, %c8_140, %c0_141] : memref<2x80x32xf32, #tpu.memory_space<vmem>>, vector<1x64x32xf32>
    %153 = vector.shape_cast %152 : vector<1x64x32xf32> to vector<64x32xf32>
    %c1_142 = arith.constant 1 : index
    %c8_143 = arith.constant 8 : index
    %c0_144 = arith.constant 0 : index
    %154 = vector.load %arg15[%c1_142, %c8_143, %c0_144] : memref<2x80x32xf32, #tpu.memory_space<vmem>>, vector<1x64x32xf32>
    %155 = vector.shape_cast %154 : vector<1x64x32xf32> to vector<64x32xf32>
    %156 = tpu.concatenate %153, %155 in 0 : vector<64x32xf32>, vector<64x32xf32> -> vector<128x32xf32>
    %157 = tpu.concatenate %141, %146, %151, %156, %128 in 1 : vector<128x32xf32>, vector<128x32xf32>, vector<128x32xf32>, vector<128x32xf32>, vector<128x32xf32> -> vector<128x160xf32>
    %158 = arith.truncf %157 : vector<128x160xf32> to vector<128x160xbf16>
    %c3 = arith.constant 3 : index
    %c0_145 = arith.constant 0 : index
    %c0_146 = arith.constant 0 : index
    %159 = vector.load %arg2[%c3, %c0_145, %c0_146] : memref<4x160x32xbf16, #tpu.memory_space<vmem>>, vector<1x160x32xbf16>
    %160 = vector.shape_cast %159 : vector<1x160x32xbf16> to vector<160x32xbf16>
    %cst_147 = arith.constant dense<0.000000e+00> : vector<128x32xf32>
    %161 = tpu.matmul %158, %160, %cst_147 {dimension_numbers = #tpu.dot_dimension_numbers<[1], [0], [0], [1], [0, 0, 1, 1], [], []>} : vector<128x160xbf16>, vector<160x32xbf16>, vector<128x32xf32> -> vector<128x32xf32>
    %c3_148 = arith.constant 3 : index
    %c0_149 = arith.constant 0 : index
    %c0_150 = arith.constant 0 : index
    %162 = vector.load %arg3[%c3_148, %c0_149, %c0_150] : memref<4x1x32xf32, #tpu.memory_space<vmem>>, vector<1x1x32xf32>
    %163 = vector.shape_cast %162 : vector<1x1x32xf32> to vector<1x32xf32>
    %164 = vector.broadcast %163 : vector<1x32xf32> to vector<128x32xf32>
    %165 = arith.addf %161, %164 : vector<128x32xf32>
    %cst_151 = arith.constant 0.000000e+00 : f32
    %166 = vector.broadcast %cst_151 : f32 to vector<128x32xf32>
    %167 = arith.maximumf %165, %166 : vector<128x32xf32>
    %168 = arith.addf %167, %128 : vector<128x32xf32>
    %169 = arith.truncf %168 : vector<128x32xf32> to vector<128x32xbf16>
    %c0_152 = arith.constant 0 : index
    %c0_153 = arith.constant 0 : index
    %170 = vector.load %arg4[%c0_152, %c0_153] : memref<32x128xbf16, #tpu.memory_space<vmem>>, vector<32x128xbf16>
    %cst_154 = arith.constant dense<0.000000e+00> : vector<128x128xf32>
    %171 = tpu.matmul %169, %170, %cst_154 {dimension_numbers = #tpu.dot_dimension_numbers<[1], [0], [0], [1], [0, 0, 1, 1], [], []>} : vector<128x32xbf16>, vector<32x128xbf16>, vector<128x128xf32> -> vector<128x128xf32>
    %c0_155 = arith.constant 0 : index
    %c0_156 = arith.constant 0 : index
    %172 = vector.load %arg5[%c0_155, %c0_156] : memref<1x128xf32, #tpu.memory_space<vmem>>, vector<1x128xf32>
    %173 = vector.broadcast %172 : vector<1x128xf32> to vector<128x128xf32>
    %174 = arith.addf %171, %173 : vector<128x128xf32>
    %175 = arith.truncf %174 : vector<128x128xf32> to vector<128x128xbf16>
    %c0_157 = arith.constant 0 : index
    %c0_158 = arith.constant 0 : index
    %c0_159 = arith.constant 0 : index
    %176 = vector.load %arg14[%c0_157, %c0_158, %c0_159] : memref<3x128x128xbf16, #tpu.memory_space<vmem>>, vector<1x128x128xbf16>
    %177 = vector.shape_cast %176 : vector<1x128x128xbf16> to vector<128x128xbf16>
    %178 = vector.shape_cast %175 : vector<128x128xbf16> to vector<1x128x128xbf16>
    tpu.vector_store %arg14[%c0_157, %c0_158, %c0_159], %178 {strides = array<i32>} : memref<3x128x128xbf16, #tpu.memory_space<vmem>>, vector<1x128x128xbf16>,
    %179 = tpu.iota {dimensions = array<i32: 1>} : vector<128x128xi32>
    %c12_i32 = arith.constant 12 : i32
    %180 = vector.broadcast %c12_i32 : i32 to vector<128x128xi32>
    %181 = arith.cmpi slt, %179, %180 : vector<128x128xi32>
    %cst_160 = arith.constant 0xFF800000 : f32
    %182 = vector.broadcast %cst_160 : f32 to vector<128x128xf32>
    %183 = arith.select %181, %174, %182 : vector<128x128xi1>, vector<128x128xf32>
    %cst_161 = arith.constant dense<0xFF800000> : vector<128xf32>
    %184 = vector.multi_reduction <maximumf>, %183, %cst_161 [1] : vector<128x128xf32> to vector<128xf32>
    %185 = vector.shape_cast %184 : vector<128xf32> to vector<128x1xf32>
    %186 = vector.broadcast %185 : vector<128x1xf32> to vector<128x128xf32>
    %187 = arith.subf %183, %186 : vector<128x128xf32>
    %188 = math.exp %187 : vector<128x128xf32>
    %cst_162 = arith.constant dense<0.000000e+00> : vector<128xf32>
    %189 = vector.multi_reduction <add>, %188, %cst_162 [1] : vector<128x128xf32> to vector<128xf32>
    %190 = vector.shape_cast %189 : vector<128xf32> to vector<128x1xf32>
    %191 = tpu.reciprocal %190 {approx = true} : vector<128x1xf32> -> vector<128x1xf32>
    %192 = vector.broadcast %191 : vector<128x1xf32> to vector<128x128xf32>
    %193 = arith.mulf %188, %192 : vector<128x128xf32>
    %194 = arith.truncf %193 : vector<128x128xf32> to vector<128x128xbf16>
    %c0_163 = arith.constant 0 : index
    %c0_164 = arith.constant 0 : index
    %c0_165 = arith.constant 0 : index
    %195 = vector.load %arg6[%c0_163, %c0_164, %c0_165] : memref<2x128x32xbf16, #tpu.memory_space<vmem>>, vector<1x128x32xbf16>
    %196 = vector.shape_cast %195 : vector<1x128x32xbf16> to vector<128x32xbf16>
    %cst_166 = arith.constant dense<0.000000e+00> : vector<128x32xf32>
    %197 = tpu.matmul %194, %196, %cst_166 {dimension_numbers = #tpu.dot_dimension_numbers<[1], [0], [0], [1], [0, 0, 1, 1], [], []>} : vector<128x128xbf16>, vector<128x32xbf16>, vector<128x32xf32> -> vector<128x32xf32>
    %c0_167 = arith.constant 0 : index
    %c0_168 = arith.constant 0 : index
    %c0_169 = arith.constant 0 : index
    %198 = vector.load %arg7[%c0_167, %c0_168, %c0_169] : memref<2x1x32xf32, #tpu.memory_space<vmem>>, vector<1x1x32xf32>
    %199 = vector.shape_cast %198 : vector<1x1x32xf32> to vector<1x32xf32>
    %200 = vector.broadcast %199 : vector<1x32xf32> to vector<128x32xf32>
    %201 = arith.addf %197, %200 : vector<128x32xf32>
    %202 = vector.extract_strided_slice %201 {offsets = [0, 0], sizes = [64, 32], strides = [1, 1]} : vector<128x32xf32> to vector<64x32xf32>
    %c0_170 = arith.constant 0 : index
    %c16_171 = arith.constant 16 : index
    %c0_172 = arith.constant 0 : index
    %203 = vector.load %arg15[%c0_170, %c16_171, %c0_172] : memref<2x80x32xf32, #tpu.memory_space<vmem>>, vector<1x64x32xf32>
    %204 = vector.shape_cast %203 : vector<1x64x32xf32> to vector<64x32xf32>
    %205 = vector.shape_cast %202 : vector<64x32xf32> to vector<1x64x32xf32>
    tpu.vector_store %arg15[%c0_170, %c16_171, %c0_172], %205 {strides = array<i32>} : memref<2x80x32xf32, #tpu.memory_space<vmem>>, vector<1x64x32xf32>,
    %206 = vector.extract_strided_slice %201 {offsets = [64, 0], sizes = [64, 32], strides = [1, 1]} : vector<128x32xf32> to vector<64x32xf32>
    %c1_173 = arith.constant 1 : index
    %c16_174 = arith.constant 16 : index
    %c0_175 = arith.constant 0 : index
    %207 = vector.load %arg15[%c1_173, %c16_174, %c0_175] : memref<2x80x32xf32, #tpu.memory_space<vmem>>, vector<1x64x32xf32>
    %208 = vector.shape_cast %207 : vector<1x64x32xf32> to vector<64x32xf32>
    %209 = vector.shape_cast %206 : vector<64x32xf32> to vector<1x64x32xf32>
    tpu.vector_store %arg15[%c1_173, %c16_174, %c0_175], %209 {strides = array<i32>} : memref<2x80x32xf32, #tpu.memory_space<vmem>>, vector<1x64x32xf32>,
    %c0_176 = arith.constant 0 : index
    %c14_177 = arith.constant 14 : index
    %c0_178 = arith.constant 0 : index
    %210 = vector.load %arg15[%c0_176, %c14_177, %c0_178] : memref<2x80x32xf32, #tpu.memory_space<vmem>>, vector<1x64x32xf32>
    %211 = vector.shape_cast %210 : vector<1x64x32xf32> to vector<64x32xf32>
    %c1_179 = arith.constant 1 : index
    %c14_180 = arith.constant 14 : index
    %c0_181 = arith.constant 0 : index
    %212 = vector.load %arg15[%c1_179, %c14_180, %c0_181] : memref<2x80x32xf32, #tpu.memory_space<vmem>>, vector<1x64x32xf32>
    %213 = vector.shape_cast %212 : vector<1x64x32xf32> to vector<64x32xf32>
    %214 = tpu.concatenate %211, %213 in 0 : vector<64x32xf32>, vector<64x32xf32> -> vector<128x32xf32>
    %c0_182 = arith.constant 0 : index
    %c15_183 = arith.constant 15 : index
    %c0_184 = arith.constant 0 : index
    %215 = vector.load %arg15[%c0_182, %c15_183, %c0_184] : memref<2x80x32xf32, #tpu.memory_space<vmem>>, vector<1x64x32xf32>
    %216 = vector.shape_cast %215 : vector<1x64x32xf32> to vector<64x32xf32>
    %c1_185 = arith.constant 1 : index
    %c15_186 = arith.constant 15 : index
    %c0_187 = arith.constant 0 : index
    %217 = vector.load %arg15[%c1_185, %c15_186, %c0_187] : memref<2x80x32xf32, #tpu.memory_space<vmem>>, vector<1x64x32xf32>
    %218 = vector.shape_cast %217 : vector<1x64x32xf32> to vector<64x32xf32>
    %219 = tpu.concatenate %216, %218 in 0 : vector<64x32xf32>, vector<64x32xf32> -> vector<128x32xf32>
    %220 = tpu.concatenate %214, %219, %201 in 1 : vector<128x32xf32>, vector<128x32xf32>, vector<128x32xf32> -> vector<128x96xf32>
    %221 = arith.truncf %220 : vector<128x96xf32> to vector<128x96xbf16>
    %c0_188 = arith.constant 0 : index
    %c0_189 = arith.constant 0 : index
    %c0_190 = arith.constant 0 : index
    %222 = vector.load %arg8[%c0_188, %c0_189, %c0_190] : memref<6x96x32xbf16, #tpu.memory_space<vmem>>, vector<1x96x32xbf16>
    %223 = vector.shape_cast %222 : vector<1x96x32xbf16> to vector<96x32xbf16>
    %cst_191 = arith.constant dense<0.000000e+00> : vector<128x32xf32>
    %224 = tpu.matmul %221, %223, %cst_191 {dimension_numbers = #tpu.dot_dimension_numbers<[1], [0], [0], [1], [0, 0, 1, 1], [], []>} : vector<128x96xbf16>, vector<96x32xbf16>, vector<128x32xf32> -> vector<128x32xf32>
    %c0_192 = arith.constant 0 : index
    %c0_193 = arith.constant 0 : index
    %c0_194 = arith.constant 0 : index
    %225 = vector.load %arg9[%c0_192, %c0_193, %c0_194] : memref<6x1x32xf32, #tpu.memory_space<vmem>>, vector<1x1x32xf32>
    %226 = vector.shape_cast %225 : vector<1x1x32xf32> to vector<1x32xf32>
    %227 = vector.broadcast %226 : vector<1x32xf32> to vector<128x32xf32>
    %228 = arith.addf %224, %227 : vector<128x32xf32>
    %cst_195 = arith.constant 0.000000e+00 : f32
    %229 = vector.broadcast %cst_195 : f32 to vector<128x32xf32>
    %230 = arith.maximumf %228, %229 : vector<128x32xf32>
    %231 = arith.truncf %230 : vector<128x32xf32> to vector<128x32xbf16>
    %c0_196 = arith.constant 0 : index
    %c0_197 = arith.constant 0 : index
    %c0_198 = arith.constant 0 : index
    %232 = vector.load %arg10[%c0_196, %c0_197, %c0_198] : memref<6x32x32xbf16, #tpu.memory_space<vmem>>, vector<1x32x32xbf16>
    %233 = vector.shape_cast %232 : vector<1x32x32xbf16> to vector<32x32xbf16>
    %cst_199 = arith.constant dense<0.000000e+00> : vector<128x32xf32>
    %234 = tpu.matmul %231, %233, %cst_199 {dimension_numbers = #tpu.dot_dimension_numbers<[1], [0], [0], [1], [0, 0, 1, 1], [], []>} : vector<128x32xbf16>, vector<32x32xbf16>, vector<128x32xf32> -> vector<128x32xf32>
    %c0_200 = arith.constant 0 : index
    %c0_201 = arith.constant 0 : index
    %c0_202 = arith.constant 0 : index
    %235 = vector.load %arg11[%c0_200, %c0_201, %c0_202] : memref<6x1x32xf32, #tpu.memory_space<vmem>>, vector<1x1x32xf32>
    %236 = vector.shape_cast %235 : vector<1x1x32xf32> to vector<1x32xf32>
    %237 = vector.broadcast %236 : vector<1x32xf32> to vector<128x32xf32>
    %238 = arith.addf %234, %237 : vector<128x32xf32>
    %239 = arith.addf %201, %238 : vector<128x32xf32>
    %240 = vector.extract_strided_slice %239 {offsets = [0, 0], sizes = [64, 32], strides = [1, 1]} : vector<128x32xf32> to vector<64x32xf32>
    %c0_203 = arith.constant 0 : index
    %c16_204 = arith.constant 16 : index
    %c0_205 = arith.constant 0 : index
    %241 = vector.load %arg15[%c0_203, %c16_204, %c0_205] : memref<2x80x32xf32, #tpu.memory_space<vmem>>, vector<1x64x32xf32>
    %242 = vector.shape_cast %241 : vector<1x64x32xf32> to vector<64x32xf32>
    %243 = vector.shape_cast %240 : vector<64x32xf32> to vector<1x64x32xf32>
    tpu.vector_store %arg15[%c0_203, %c16_204, %c0_205], %243 {strides = array<i32>} : memref<2x80x32xf32, #tpu.memory_space<vmem>>, vector<1x64x32xf32>,
    %244 = vector.extract_strided_slice %239 {offsets = [64, 0], sizes = [64, 32], strides = [1, 1]} : vector<128x32xf32> to vector<64x32xf32>
    %c1_206 = arith.constant 1 : index
    %c16_207 = arith.constant 16 : index
    %c0_208 = arith.constant 0 : index
    %245 = vector.load %arg15[%c1_206, %c16_207, %c0_208] : memref<2x80x32xf32, #tpu.memory_space<vmem>>, vector<1x64x32xf32>
    %246 = vector.shape_cast %245 : vector<1x64x32xf32> to vector<64x32xf32>
    %247 = vector.shape_cast %244 : vector<64x32xf32> to vector<1x64x32xf32>
    tpu.vector_store %arg15[%c1_206, %c16_207, %c0_208], %247 {strides = array<i32>} : memref<2x80x32xf32, #tpu.memory_space<vmem>>, vector<1x64x32xf32>,
    %c0_209 = arith.constant 0 : index
    %c12_210 = arith.constant 12 : index
    %c0_211 = arith.constant 0 : index
    %248 = vector.load %arg15[%c0_209, %c12_210, %c0_211] : memref<2x80x32xf32, #tpu.memory_space<vmem>>, vector<1x64x32xf32>
    %249 = vector.shape_cast %248 : vector<1x64x32xf32> to vector<64x32xf32>
    %c1_212 = arith.constant 1 : index
    %c12_213 = arith.constant 12 : index
    %c0_214 = arith.constant 0 : index
    %250 = vector.load %arg15[%c1_212, %c12_213, %c0_214] : memref<2x80x32xf32, #tpu.memory_space<vmem>>, vector<1x64x32xf32>
    %251 = vector.shape_cast %250 : vector<1x64x32xf32> to vector<64x32xf32>
    %252 = tpu.concatenate %249, %251 in 0 : vector<64x32xf32>, vector<64x32xf32> -> vector<128x32xf32>
    %c0_215 = arith.constant 0 : index
    %c14_216 = arith.constant 14 : index
    %c0_217 = arith.constant 0 : index
    %253 = vector.load %arg15[%c0_215, %c14_216, %c0_217] : memref<2x80x32xf32, #tpu.memory_space<vmem>>, vector<1x64x32xf32>
    %254 = vector.shape_cast %253 : vector<1x64x32xf32> to vector<64x32xf32>
    %c1_218 = arith.constant 1 : index
    %c14_219 = arith.constant 14 : index
    %c0_220 = arith.constant 0 : index
    %255 = vector.load %arg15[%c1_218, %c14_219, %c0_220] : memref<2x80x32xf32, #tpu.memory_space<vmem>>, vector<1x64x32xf32>
    %256 = vector.shape_cast %255 : vector<1x64x32xf32> to vector<64x32xf32>
    %257 = tpu.concatenate %254, %256 in 0 : vector<64x32xf32>, vector<64x32xf32> -> vector<128x32xf32>
    %258 = tpu.concatenate %252, %257, %239 in 1 : vector<128x32xf32>, vector<128x32xf32>, vector<128x32xf32> -> vector<128x96xf32>
    %259 = arith.truncf %258 : vector<128x96xf32> to vector<128x96xbf16>
    %c1_221 = arith.constant 1 : index
    %c0_222 = arith.constant 0 : index
    %c0_223 = arith.constant 0 : index
    %260 = vector.load %arg8[%c1_221, %c0_222, %c0_223] : memref<6x96x32xbf16, #tpu.memory_space<vmem>>, vector<1x96x32xbf16>
    %261 = vector.shape_cast %260 : vector<1x96x32xbf16> to vector<96x32xbf16>
    %cst_224 = arith.constant dense<0.000000e+00> : vector<128x32xf32>
    %262 = tpu.matmul %259, %261, %cst_224 {dimension_numbers = #tpu.dot_dimension_numbers<[1], [0], [0], [1], [0, 0, 1, 1], [], []>} : vector<128x96xbf16>, vector<96x32xbf16>, vector<128x32xf32> -> vector<128x32xf32>
    %c1_225 = arith.constant 1 : index
    %c0_226 = arith.constant 0 : index
    %c0_227 = arith.constant 0 : index
    %263 = vector.load %arg9[%c1_225, %c0_226, %c0_227] : memref<6x1x32xf32, #tpu.memory_space<vmem>>, vector<1x1x32xf32>
    %264 = vector.shape_cast %263 : vector<1x1x32xf32> to vector<1x32xf32>
    %265 = vector.broadcast %264 : vector<1x32xf32> to vector<128x32xf32>
    %266 = arith.addf %262, %265 : vector<128x32xf32>
    %cst_228 = arith.constant 0.000000e+00 : f32
    %267 = vector.broadcast %cst_228 : f32 to vector<128x32xf32>
    %268 = arith.maximumf %266, %267 : vector<128x32xf32>
    %269 = arith.truncf %268 : vector<128x32xf32> to vector<128x32xbf16>
    %c1_229 = arith.constant 1 : index
    %c0_230 = arith.constant 0 : index
    %c0_231 = arith.constant 0 : index
    %270 = vector.load %arg10[%c1_229, %c0_230, %c0_231] : memref<6x32x32xbf16, #tpu.memory_space<vmem>>, vector<1x32x32xbf16>
    %271 = vector.shape_cast %270 : vector<1x32x32xbf16> to vector<32x32xbf16>
    %cst_232 = arith.constant dense<0.000000e+00> : vector<128x32xf32>
    %272 = tpu.matmul %269, %271, %cst_232 {dimension_numbers = #tpu.dot_dimension_numbers<[1], [0], [0], [1], [0, 0, 1, 1], [], []>} : vector<128x32xbf16>, vector<32x32xbf16>, vector<128x32xf32> -> vector<128x32xf32>
    %c1_233 = arith.constant 1 : index
    %c0_234 = arith.constant 0 : index
    %c0_235 = arith.constant 0 : index
    %273 = vector.load %arg11[%c1_233, %c0_234, %c0_235] : memref<6x1x32xf32, #tpu.memory_space<vmem>>, vector<1x1x32xf32>
    %274 = vector.shape_cast %273 : vector<1x1x32xf32> to vector<1x32xf32>
    %275 = vector.broadcast %274 : vector<1x32xf32> to vector<128x32xf32>
    %276 = arith.addf %272, %275 : vector<128x32xf32>
    %277 = arith.addf %239, %276 : vector<128x32xf32>
    %278 = vector.extract_strided_slice %277 {offsets = [0, 0], sizes = [64, 32], strides = [1, 1]} : vector<128x32xf32> to vector<64x32xf32>
    %c0_236 = arith.constant 0 : index
    %c16_237 = arith.constant 16 : index
    %c0_238 = arith.constant 0 : index
    %279 = vector.load %arg15[%c0_236, %c16_237, %c0_238] : memref<2x80x32xf32, #tpu.memory_space<vmem>>, vector<1x64x32xf32>
    %280 = vector.shape_cast %279 : vector<1x64x32xf32> to vector<64x32xf32>
    %281 = vector.shape_cast %278 : vector<64x32xf32> to vector<1x64x32xf32>
    tpu.vector_store %arg15[%c0_236, %c16_237, %c0_238], %281 {strides = array<i32>} : memref<2x80x32xf32, #tpu.memory_space<vmem>>, vector<1x64x32xf32>,
    %282 = vector.extract_strided_slice %277 {offsets = [64, 0], sizes = [64, 32], strides = [1, 1]} : vector<128x32xf32> to vector<64x32xf32>
    %c1_239 = arith.constant 1 : index
    %c16_240 = arith.constant 16 : index
    %c0_241 = arith.constant 0 : index
    %283 = vector.load %arg15[%c1_239, %c16_240, %c0_241] : memref<2x80x32xf32, #tpu.memory_space<vmem>>, vector<1x64x32xf32>
    %284 = vector.shape_cast %283 : vector<1x64x32xf32> to vector<64x32xf32>
    %285 = vector.shape_cast %282 : vector<64x32xf32> to vector<1x64x32xf32>
    tpu.vector_store %arg15[%c1_239, %c16_240, %c0_241], %285 {strides = array<i32>} : memref<2x80x32xf32, #tpu.memory_space<vmem>>, vector<1x64x32xf32>,
    %c0_242 = arith.constant 0 : index
    %c8_243 = arith.constant 8 : index
    %c0_244 = arith.constant 0 : index
    %286 = vector.load %arg15[%c0_242, %c8_243, %c0_244] : memref<2x80x32xf32, #tpu.memory_space<vmem>>, vector<1x64x32xf32>
    %287 = vector.shape_cast %286 : vector<1x64x32xf32> to vector<64x32xf32>
    %c1_245 = arith.constant 1 : index
    %c8_246 = arith.constant 8 : index
    %c0_247 = arith.constant 0 : index
    %288 = vector.load %arg15[%c1_245, %c8_246, %c0_247] : memref<2x80x32xf32, #tpu.memory_space<vmem>>, vector<1x64x32xf32>
    %289 = vector.shape_cast %288 : vector<1x64x32xf32> to vector<64x32xf32>
    %290 = tpu.concatenate %287, %289 in 0 : vector<64x32xf32>, vector<64x32xf32> -> vector<128x32xf32>
    %c0_248 = arith.constant 0 : index
    %c12_249 = arith.constant 12 : index
    %c0_250 = arith.constant 0 : index
    %291 = vector.load %arg15[%c0_248, %c12_249, %c0_250] : memref<2x80x32xf32, #tpu.memory_space<vmem>>, vector<1x64x32xf32>
    %292 = vector.shape_cast %291 : vector<1x64x32xf32> to vector<64x32xf32>
    %c1_251 = arith.constant 1 : index
    %c12_252 = arith.constant 12 : index
    %c0_253 = arith.constant 0 : index
    %293 = vector.load %arg15[%c1_251, %c12_252, %c0_253] : memref<2x80x32xf32, #tpu.memory_space<vmem>>, vector<1x64x32xf32>
    %294 = vector.shape_cast %293 : vector<1x64x32xf32> to vector<64x32xf32>
    %295 = tpu.concatenate %292, %294 in 0 : vector<64x32xf32>, vector<64x32xf32> -> vector<128x32xf32>
    %296 = tpu.concatenate %290, %295, %277 in 1 : vector<128x32xf32>, vector<128x32xf32>, vector<128x32xf32> -> vector<128x96xf32>
    %297 = arith.truncf %296 : vector<128x96xf32> to vector<128x96xbf16>
    %c2_254 = arith.constant 2 : index
    %c0_255 = arith.constant 0 : index
    %c0_256 = arith.constant 0 : index
    %298 = vector.load %arg8[%c2_254, %c0_255, %c0_256] : memref<6x96x32xbf16, #tpu.memory_space<vmem>>, vector<1x96x32xbf16>
    %299 = vector.shape_cast %298 : vector<1x96x32xbf16> to vector<96x32xbf16>
    %cst_257 = arith.constant dense<0.000000e+00> : vector<128x32xf32>
    %300 = tpu.matmul %297, %299, %cst_257 {dimension_numbers = #tpu.dot_dimension_numbers<[1], [0], [0], [1], [0, 0, 1, 1], [], []>} : vector<128x96xbf16>, vector<96x32xbf16>, vector<128x32xf32> -> vector<128x32xf32>
    %c2_258 = arith.constant 2 : index
    %c0_259 = arith.constant 0 : index
    %c0_260 = arith.constant 0 : index
    %301 = vector.load %arg9[%c2_258, %c0_259, %c0_260] : memref<6x1x32xf32, #tpu.memory_space<vmem>>, vector<1x1x32xf32>
    %302 = vector.shape_cast %301 : vector<1x1x32xf32> to vector<1x32xf32>
    %303 = vector.broadcast %302 : vector<1x32xf32> to vector<128x32xf32>
    %304 = arith.addf %300, %303 : vector<128x32xf32>
    %cst_261 = arith.constant 0.000000e+00 : f32
    %305 = vector.broadcast %cst_261 : f32 to vector<128x32xf32>
    %306 = arith.maximumf %304, %305 : vector<128x32xf32>
    %307 = arith.truncf %306 : vector<128x32xf32> to vector<128x32xbf16>
    %c2_262 = arith.constant 2 : index
    %c0_263 = arith.constant 0 : index
    %c0_264 = arith.constant 0 : index
    %308 = vector.load %arg10[%c2_262, %c0_263, %c0_264] : memref<6x32x32xbf16, #tpu.memory_space<vmem>>, vector<1x32x32xbf16>
    %309 = vector.shape_cast %308 : vector<1x32x32xbf16> to vector<32x32xbf16>
    %cst_265 = arith.constant dense<0.000000e+00> : vector<128x32xf32>
    %310 = tpu.matmul %307, %309, %cst_265 {dimension_numbers = #tpu.dot_dimension_numbers<[1], [0], [0], [1], [0, 0, 1, 1], [], []>} : vector<128x32xbf16>, vector<32x32xbf16>, vector<128x32xf32> -> vector<128x32xf32>
    %c2_266 = arith.constant 2 : index
    %c0_267 = arith.constant 0 : index
    %c0_268 = arith.constant 0 : index
    %311 = vector.load %arg11[%c2_266, %c0_267, %c0_268] : memref<6x1x32xf32, #tpu.memory_space<vmem>>, vector<1x1x32xf32>
    %312 = vector.shape_cast %311 : vector<1x1x32xf32> to vector<1x32xf32>
    %313 = vector.broadcast %312 : vector<1x32xf32> to vector<128x32xf32>
    %314 = arith.addf %310, %313 : vector<128x32xf32>
    %315 = arith.addf %277, %314 : vector<128x32xf32>
    %316 = arith.truncf %315 : vector<128x32xf32> to vector<128x32xbf16>
    %c0_269 = arith.constant 0 : index
    %c0_270 = arith.constant 0 : index
    %c0_271 = arith.constant 0 : index
    %317 = vector.load %arg12[%c0_269, %c0_270, %c0_271] : memref<2x32x128xbf16, #tpu.memory_space<vmem>>, vector<1x32x128xbf16>
    %318 = vector.shape_cast %317 : vector<1x32x128xbf16> to vector<32x128xbf16>
    %cst_272 = arith.constant dense<0.000000e+00> : vector<128x128xf32>
    %319 = tpu.matmul %316, %318, %cst_272 {dimension_numbers = #tpu.dot_dimension_numbers<[1], [0], [0], [1], [0, 0, 1, 1], [], []>} : vector<128x32xbf16>, vector<32x128xbf16>, vector<128x128xf32> -> vector<128x128xf32>
    %c0_273 = arith.constant 0 : index
    %c0_274 = arith.constant 0 : index
    %c0_275 = arith.constant 0 : index
    %320 = vector.load %arg13[%c0_273, %c0_274, %c0_275] : memref<2x1x128xf32, #tpu.memory_space<vmem>>, vector<1x1x128xf32>
    %321 = vector.shape_cast %320 : vector<1x1x128xf32> to vector<1x128xf32>
    %322 = vector.broadcast %321 : vector<1x128xf32> to vector<128x128xf32>
    %323 = arith.addf %319, %322 : vector<128x128xf32>
    %324 = arith.truncf %323 : vector<128x128xf32> to vector<128x128xbf16>
    %c1_276 = arith.constant 1 : index
    %c0_277 = arith.constant 0 : index
    %c0_278 = arith.constant 0 : index
    %325 = vector.load %arg14[%c1_276, %c0_277, %c0_278] : memref<3x128x128xbf16, #tpu.memory_space<vmem>>, vector<1x128x128xbf16>
    %326 = vector.shape_cast %325 : vector<1x128x128xbf16> to vector<128x128xbf16>
    %327 = vector.shape_cast %324 : vector<128x128xbf16> to vector<1x128x128xbf16>
    tpu.vector_store %arg14[%c1_276, %c0_277, %c0_278], %327 {strides = array<i32>} : memref<3x128x128xbf16, #tpu.memory_space<vmem>>, vector<1x128x128xbf16>,
    %cst_279 = arith.constant 0xFF800000 : f32
    %328 = vector.broadcast %cst_279 : f32 to vector<128x128xf32>
    %329 = arith.select %181, %323, %328 : vector<128x128xi1>, vector<128x128xf32>
    %cst_280 = arith.constant dense<0xFF800000> : vector<128xf32>
    %330 = vector.multi_reduction <maximumf>, %329, %cst_280 [1] : vector<128x128xf32> to vector<128xf32>
    %331 = vector.shape_cast %330 : vector<128xf32> to vector<128x1xf32>
    %332 = vector.broadcast %331 : vector<128x1xf32> to vector<128x128xf32>
    %333 = arith.subf %329, %332 : vector<128x128xf32>
    %334 = math.exp %333 : vector<128x128xf32>
    %cst_281 = arith.constant dense<0.000000e+00> : vector<128xf32>
    %335 = vector.multi_reduction <add>, %334, %cst_281 [1] : vector<128x128xf32> to vector<128xf32>
    %336 = vector.shape_cast %335 : vector<128xf32> to vector<128x1xf32>
    %337 = tpu.reciprocal %336 {approx = true} : vector<128x1xf32> -> vector<128x1xf32>
    %338 = vector.broadcast %337 : vector<128x1xf32> to vector<128x128xf32>
    %339 = arith.mulf %334, %338 : vector<128x128xf32>
    %340 = arith.truncf %339 : vector<128x128xf32> to vector<128x128xbf16>
    %c1_282 = arith.constant 1 : index
    %c0_283 = arith.constant 0 : index
    %c0_284 = arith.constant 0 : index
    %341 = vector.load %arg6[%c1_282, %c0_283, %c0_284] : memref<2x128x32xbf16, #tpu.memory_space<vmem>>, vector<1x128x32xbf16>
    %342 = vector.shape_cast %341 : vector<1x128x32xbf16> to vector<128x32xbf16>
    %cst_285 = arith.constant dense<0.000000e+00> : vector<128x32xf32>
    %343 = tpu.matmul %340, %342, %cst_285 {dimension_numbers = #tpu.dot_dimension_numbers<[1], [0], [0], [1], [0, 0, 1, 1], [], []>} : vector<128x128xbf16>, vector<128x32xbf16>, vector<128x32xf32> -> vector<128x32xf32>
    %c1_286 = arith.constant 1 : index
    %c0_287 = arith.constant 0 : index
    %c0_288 = arith.constant 0 : index
    %344 = vector.load %arg7[%c1_286, %c0_287, %c0_288] : memref<2x1x32xf32, #tpu.memory_space<vmem>>, vector<1x1x32xf32>
    %345 = vector.shape_cast %344 : vector<1x1x32xf32> to vector<1x32xf32>
    %346 = vector.broadcast %345 : vector<1x32xf32> to vector<128x32xf32>
    %347 = arith.addf %343, %346 : vector<128x32xf32>
    %348 = vector.extract_strided_slice %347 {offsets = [0, 0], sizes = [64, 32], strides = [1, 1]} : vector<128x32xf32> to vector<64x32xf32>
    %c0_289 = arith.constant 0 : index
    %c16_290 = arith.constant 16 : index
    %c0_291 = arith.constant 0 : index
    %349 = vector.load %arg15[%c0_289, %c16_290, %c0_291] : memref<2x80x32xf32, #tpu.memory_space<vmem>>, vector<1x64x32xf32>
    %350 = vector.shape_cast %349 : vector<1x64x32xf32> to vector<64x32xf32>
    %351 = vector.shape_cast %348 : vector<64x32xf32> to vector<1x64x32xf32>
    tpu.vector_store %arg15[%c0_289, %c16_290, %c0_291], %351 {strides = array<i32>} : memref<2x80x32xf32, #tpu.memory_space<vmem>>, vector<1x64x32xf32>,
    %352 = vector.extract_strided_slice %347 {offsets = [64, 0], sizes = [64, 32], strides = [1, 1]} : vector<128x32xf32> to vector<64x32xf32>
    %c1_292 = arith.constant 1 : index
    %c16_293 = arith.constant 16 : index
    %c0_294 = arith.constant 0 : index
    %353 = vector.load %arg15[%c1_292, %c16_293, %c0_294] : memref<2x80x32xf32, #tpu.memory_space<vmem>>, vector<1x64x32xf32>
    %354 = vector.shape_cast %353 : vector<1x64x32xf32> to vector<64x32xf32>
    %355 = vector.shape_cast %352 : vector<64x32xf32> to vector<1x64x32xf32>
    tpu.vector_store %arg15[%c1_292, %c16_293, %c0_294], %355 {strides = array<i32>} : memref<2x80x32xf32, #tpu.memory_space<vmem>>, vector<1x64x32xf32>,
    %c0_295 = arith.constant 0 : index
    %c14_296 = arith.constant 14 : index
    %c0_297 = arith.constant 0 : index
    %356 = vector.load %arg15[%c0_295, %c14_296, %c0_297] : memref<2x80x32xf32, #tpu.memory_space<vmem>>, vector<1x64x32xf32>
    %357 = vector.shape_cast %356 : vector<1x64x32xf32> to vector<64x32xf32>
    %c1_298 = arith.constant 1 : index
    %c14_299 = arith.constant 14 : index
    %c0_300 = arith.constant 0 : index
    %358 = vector.load %arg15[%c1_298, %c14_299, %c0_300] : memref<2x80x32xf32, #tpu.memory_space<vmem>>, vector<1x64x32xf32>
    %359 = vector.shape_cast %358 : vector<1x64x32xf32> to vector<64x32xf32>
    %360 = tpu.concatenate %357, %359 in 0 : vector<64x32xf32>, vector<64x32xf32> -> vector<128x32xf32>
    %c0_301 = arith.constant 0 : index
    %c15_302 = arith.constant 15 : index
    %c0_303 = arith.constant 0 : index
    %361 = vector.load %arg15[%c0_301, %c15_302, %c0_303] : memref<2x80x32xf32, #tpu.memory_space<vmem>>, vector<1x64x32xf32>
    %362 = vector.shape_cast %361 : vector<1x64x32xf32> to vector<64x32xf32>
    %c1_304 = arith.constant 1 : index
    %c15_305 = arith.constant 15 : index
    %c0_306 = arith.constant 0 : index
    %363 = vector.load %arg15[%c1_304, %c15_305, %c0_306] : memref<2x80x32xf32, #tpu.memory_space<vmem>>, vector<1x64x32xf32>
    %364 = vector.shape_cast %363 : vector<1x64x32xf32> to vector<64x32xf32>
    %365 = tpu.concatenate %362, %364 in 0 : vector<64x32xf32>, vector<64x32xf32> -> vector<128x32xf32>
    %366 = tpu.concatenate %360, %365, %347 in 1 : vector<128x32xf32>, vector<128x32xf32>, vector<128x32xf32> -> vector<128x96xf32>
    %367 = arith.truncf %366 : vector<128x96xf32> to vector<128x96xbf16>
    %c3_307 = arith.constant 3 : index
    %c0_308 = arith.constant 0 : index
    %c0_309 = arith.constant 0 : index
    %368 = vector.load %arg8[%c3_307, %c0_308, %c0_309] : memref<6x96x32xbf16, #tpu.memory_space<vmem>>, vector<1x96x32xbf16>
    %369 = vector.shape_cast %368 : vector<1x96x32xbf16> to vector<96x32xbf16>
    %cst_310 = arith.constant dense<0.000000e+00> : vector<128x32xf32>
    %370 = tpu.matmul %367, %369, %cst_310 {dimension_numbers = #tpu.dot_dimension_numbers<[1], [0], [0], [1], [0, 0, 1, 1], [], []>} : vector<128x96xbf16>, vector<96x32xbf16>, vector<128x32xf32> -> vector<128x32xf32>
    %c3_311 = arith.constant 3 : index
    %c0_312 = arith.constant 0 : index
    %c0_313 = arith.constant 0 : index
    %371 = vector.load %arg9[%c3_311, %c0_312, %c0_313] : memref<6x1x32xf32, #tpu.memory_space<vmem>>, vector<1x1x32xf32>
    %372 = vector.shape_cast %371 : vector<1x1x32xf32> to vector<1x32xf32>
    %373 = vector.broadcast %372 : vector<1x32xf32> to vector<128x32xf32>
    %374 = arith.addf %370, %373 : vector<128x32xf32>
    %cst_314 = arith.constant 0.000000e+00 : f32
    %375 = vector.broadcast %cst_314 : f32 to vector<128x32xf32>
    %376 = arith.maximumf %374, %375 : vector<128x32xf32>
    %377 = arith.truncf %376 : vector<128x32xf32> to vector<128x32xbf16>
    %c3_315 = arith.constant 3 : index
    %c0_316 = arith.constant 0 : index
    %c0_317 = arith.constant 0 : index
    %378 = vector.load %arg10[%c3_315, %c0_316, %c0_317] : memref<6x32x32xbf16, #tpu.memory_space<vmem>>, vector<1x32x32xbf16>
    %379 = vector.shape_cast %378 : vector<1x32x32xbf16> to vector<32x32xbf16>
    %cst_318 = arith.constant dense<0.000000e+00> : vector<128x32xf32>
    %380 = tpu.matmul %377, %379, %cst_318 {dimension_numbers = #tpu.dot_dimension_numbers<[1], [0], [0], [1], [0, 0, 1, 1], [], []>} : vector<128x32xbf16>, vector<32x32xbf16>, vector<128x32xf32> -> vector<128x32xf32>
    %c3_319 = arith.constant 3 : index
    %c0_320 = arith.constant 0 : index
    %c0_321 = arith.constant 0 : index
    %381 = vector.load %arg11[%c3_319, %c0_320, %c0_321] : memref<6x1x32xf32, #tpu.memory_space<vmem>>, vector<1x1x32xf32>
    %382 = vector.shape_cast %381 : vector<1x1x32xf32> to vector<1x32xf32>
    %383 = vector.broadcast %382 : vector<1x32xf32> to vector<128x32xf32>
    %384 = arith.addf %380, %383 : vector<128x32xf32>
    %385 = arith.addf %347, %384 : vector<128x32xf32>
    %386 = vector.extract_strided_slice %385 {offsets = [0, 0], sizes = [64, 32], strides = [1, 1]} : vector<128x32xf32> to vector<64x32xf32>
    %c0_322 = arith.constant 0 : index
    %c16_323 = arith.constant 16 : index
    %c0_324 = arith.constant 0 : index
    %387 = vector.load %arg15[%c0_322, %c16_323, %c0_324] : memref<2x80x32xf32, #tpu.memory_space<vmem>>, vector<1x64x32xf32>
    %388 = vector.shape_cast %387 : vector<1x64x32xf32> to vector<64x32xf32>
    %389 = vector.shape_cast %386 : vector<64x32xf32> to vector<1x64x32xf32>
    tpu.vector_store %arg15[%c0_322, %c16_323, %c0_324], %389 {strides = array<i32>} : memref<2x80x32xf32, #tpu.memory_space<vmem>>, vector<1x64x32xf32>,
    %390 = vector.extract_strided_slice %385 {offsets = [64, 0], sizes = [64, 32], strides = [1, 1]} : vector<128x32xf32> to vector<64x32xf32>
    %c1_325 = arith.constant 1 : index
    %c16_326 = arith.constant 16 : index
    %c0_327 = arith.constant 0 : index
    %391 = vector.load %arg15[%c1_325, %c16_326, %c0_327] : memref<2x80x32xf32, #tpu.memory_space<vmem>>, vector<1x64x32xf32>
    %392 = vector.shape_cast %391 : vector<1x64x32xf32> to vector<64x32xf32>
    %393 = vector.shape_cast %390 : vector<64x32xf32> to vector<1x64x32xf32>
    tpu.vector_store %arg15[%c1_325, %c16_326, %c0_327], %393 {strides = array<i32>} : memref<2x80x32xf32, #tpu.memory_space<vmem>>, vector<1x64x32xf32>,
    %c0_328 = arith.constant 0 : index
    %c12_329 = arith.constant 12 : index
    %c0_330 = arith.constant 0 : index
    %394 = vector.load %arg15[%c0_328, %c12_329, %c0_330] : memref<2x80x32xf32, #tpu.memory_space<vmem>>, vector<1x64x32xf32>
    %395 = vector.shape_cast %394 : vector<1x64x32xf32> to vector<64x32xf32>
    %c1_331 = arith.constant 1 : index
    %c12_332 = arith.constant 12 : index
    %c0_333 = arith.constant 0 : index
    %396 = vector.load %arg15[%c1_331, %c12_332, %c0_333] : memref<2x80x32xf32, #tpu.memory_space<vmem>>, vector<1x64x32xf32>
    %397 = vector.shape_cast %396 : vector<1x64x32xf32> to vector<64x32xf32>
    %398 = tpu.concatenate %395, %397 in 0 : vector<64x32xf32>, vector<64x32xf32> -> vector<128x32xf32>
    %c0_334 = arith.constant 0 : index
    %c14_335 = arith.constant 14 : index
    %c0_336 = arith.constant 0 : index
    %399 = vector.load %arg15[%c0_334, %c14_335, %c0_336] : memref<2x80x32xf32, #tpu.memory_space<vmem>>, vector<1x64x32xf32>
    %400 = vector.shape_cast %399 : vector<1x64x32xf32> to vector<64x32xf32>
    %c1_337 = arith.constant 1 : index
    %c14_338 = arith.constant 14 : index
    %c0_339 = arith.constant 0 : index
    %401 = vector.load %arg15[%c1_337, %c14_338, %c0_339] : memref<2x80x32xf32, #tpu.memory_space<vmem>>, vector<1x64x32xf32>
    %402 = vector.shape_cast %401 : vector<1x64x32xf32> to vector<64x32xf32>
    %403 = tpu.concatenate %400, %402 in 0 : vector<64x32xf32>, vector<64x32xf32> -> vector<128x32xf32>
    %404 = tpu.concatenate %398, %403, %385 in 1 : vector<128x32xf32>, vector<128x32xf32>, vector<128x32xf32> -> vector<128x96xf32>
    %405 = arith.truncf %404 : vector<128x96xf32> to vector<128x96xbf16>
    %c4 = arith.constant 4 : index
    %c0_340 = arith.constant 0 : index
    %c0_341 = arith.constant 0 : index
    %406 = vector.load %arg8[%c4, %c0_340, %c0_341] : memref<6x96x32xbf16, #tpu.memory_space<vmem>>, vector<1x96x32xbf16>
    %407 = vector.shape_cast %406 : vector<1x96x32xbf16> to vector<96x32xbf16>
    %cst_342 = arith.constant dense<0.000000e+00> : vector<128x32xf32>
    %408 = tpu.matmul %405, %407, %cst_342 {dimension_numbers = #tpu.dot_dimension_numbers<[1], [0], [0], [1], [0, 0, 1, 1], [], []>} : vector<128x96xbf16>, vector<96x32xbf16>, vector<128x32xf32> -> vector<128x32xf32>
    %c4_343 = arith.constant 4 : index
    %c0_344 = arith.constant 0 : index
    %c0_345 = arith.constant 0 : index
    %409 = vector.load %arg9[%c4_343, %c0_344, %c0_345] : memref<6x1x32xf32, #tpu.memory_space<vmem>>, vector<1x1x32xf32>
    %410 = vector.shape_cast %409 : vector<1x1x32xf32> to vector<1x32xf32>
    %411 = vector.broadcast %410 : vector<1x32xf32> to vector<128x32xf32>
    %412 = arith.addf %408, %411 : vector<128x32xf32>
    %cst_346 = arith.constant 0.000000e+00 : f32
    %413 = vector.broadcast %cst_346 : f32 to vector<128x32xf32>
    %414 = arith.maximumf %412, %413 : vector<128x32xf32>
    %415 = arith.truncf %414 : vector<128x32xf32> to vector<128x32xbf16>
    %c4_347 = arith.constant 4 : index
    %c0_348 = arith.constant 0 : index
    %c0_349 = arith.constant 0 : index
    %416 = vector.load %arg10[%c4_347, %c0_348, %c0_349] : memref<6x32x32xbf16, #tpu.memory_space<vmem>>, vector<1x32x32xbf16>
    %417 = vector.shape_cast %416 : vector<1x32x32xbf16> to vector<32x32xbf16>
    %cst_350 = arith.constant dense<0.000000e+00> : vector<128x32xf32>
    %418 = tpu.matmul %415, %417, %cst_350 {dimension_numbers = #tpu.dot_dimension_numbers<[1], [0], [0], [1], [0, 0, 1, 1], [], []>} : vector<128x32xbf16>, vector<32x32xbf16>, vector<128x32xf32> -> vector<128x32xf32>
    %c4_351 = arith.constant 4 : index
    %c0_352 = arith.constant 0 : index
    %c0_353 = arith.constant 0 : index
    %419 = vector.load %arg11[%c4_351, %c0_352, %c0_353] : memref<6x1x32xf32, #tpu.memory_space<vmem>>, vector<1x1x32xf32>
    %420 = vector.shape_cast %419 : vector<1x1x32xf32> to vector<1x32xf32>
    %421 = vector.broadcast %420 : vector<1x32xf32> to vector<128x32xf32>
    %422 = arith.addf %418, %421 : vector<128x32xf32>
    %423 = arith.addf %385, %422 : vector<128x32xf32>
    %424 = vector.extract_strided_slice %423 {offsets = [0, 0], sizes = [64, 32], strides = [1, 1]} : vector<128x32xf32> to vector<64x32xf32>
    %c0_354 = arith.constant 0 : index
    %c16_355 = arith.constant 16 : index
    %c0_356 = arith.constant 0 : index
    %425 = vector.load %arg15[%c0_354, %c16_355, %c0_356] : memref<2x80x32xf32, #tpu.memory_space<vmem>>, vector<1x64x32xf32>
    %426 = vector.shape_cast %425 : vector<1x64x32xf32> to vector<64x32xf32>
    %427 = vector.shape_cast %424 : vector<64x32xf32> to vector<1x64x32xf32>
    tpu.vector_store %arg15[%c0_354, %c16_355, %c0_356], %427 {strides = array<i32>} : memref<2x80x32xf32, #tpu.memory_space<vmem>>, vector<1x64x32xf32>,
    %428 = vector.extract_strided_slice %423 {offsets = [64, 0], sizes = [64, 32], strides = [1, 1]} : vector<128x32xf32> to vector<64x32xf32>
    %c1_357 = arith.constant 1 : index
    %c16_358 = arith.constant 16 : index
    %c0_359 = arith.constant 0 : index
    %429 = vector.load %arg15[%c1_357, %c16_358, %c0_359] : memref<2x80x32xf32, #tpu.memory_space<vmem>>, vector<1x64x32xf32>
    %430 = vector.shape_cast %429 : vector<1x64x32xf32> to vector<64x32xf32>
    %431 = vector.shape_cast %428 : vector<64x32xf32> to vector<1x64x32xf32>
    tpu.vector_store %arg15[%c1_357, %c16_358, %c0_359], %431 {strides = array<i32>} : memref<2x80x32xf32, #tpu.memory_space<vmem>>, vector<1x64x32xf32>,
    %c0_360 = arith.constant 0 : index
    %c8_361 = arith.constant 8 : index
    %c0_362 = arith.constant 0 : index
    %432 = vector.load %arg15[%c0_360, %c8_361, %c0_362] : memref<2x80x32xf32, #tpu.memory_space<vmem>>, vector<1x64x32xf32>
    %433 = vector.shape_cast %432 : vector<1x64x32xf32> to vector<64x32xf32>
    %c1_363 = arith.constant 1 : index
    %c8_364 = arith.constant 8 : index
    %c0_365 = arith.constant 0 : index
    %434 = vector.load %arg15[%c1_363, %c8_364, %c0_365] : memref<2x80x32xf32, #tpu.memory_space<vmem>>, vector<1x64x32xf32>
    %435 = vector.shape_cast %434 : vector<1x64x32xf32> to vector<64x32xf32>
    %436 = tpu.concatenate %433, %435 in 0 : vector<64x32xf32>, vector<64x32xf32> -> vector<128x32xf32>
    %c0_366 = arith.constant 0 : index
    %c12_367 = arith.constant 12 : index
    %c0_368 = arith.constant 0 : index
    %437 = vector.load %arg15[%c0_366, %c12_367, %c0_368] : memref<2x80x32xf32, #tpu.memory_space<vmem>>, vector<1x64x32xf32>
    %438 = vector.shape_cast %437 : vector<1x64x32xf32> to vector<64x32xf32>
    %c1_369 = arith.constant 1 : index
    %c12_370 = arith.constant 12 : index
    %c0_371 = arith.constant 0 : index
    %439 = vector.load %arg15[%c1_369, %c12_370, %c0_371] : memref<2x80x32xf32, #tpu.memory_space<vmem>>, vector<1x64x32xf32>
    %440 = vector.shape_cast %439 : vector<1x64x32xf32> to vector<64x32xf32>
    %441 = tpu.concatenate %438, %440 in 0 : vector<64x32xf32>, vector<64x32xf32> -> vector<128x32xf32>
    %442 = tpu.concatenate %436, %441, %423 in 1 : vector<128x32xf32>, vector<128x32xf32>, vector<128x32xf32> -> vector<128x96xf32>
    %443 = arith.truncf %442 : vector<128x96xf32> to vector<128x96xbf16>
    %c5 = arith.constant 5 : index
    %c0_372 = arith.constant 0 : index
    %c0_373 = arith.constant 0 : index
    %444 = vector.load %arg8[%c5, %c0_372, %c0_373] : memref<6x96x32xbf16, #tpu.memory_space<vmem>>, vector<1x96x32xbf16>
    %445 = vector.shape_cast %444 : vector<1x96x32xbf16> to vector<96x32xbf16>
    %cst_374 = arith.constant dense<0.000000e+00> : vector<128x32xf32>
    %446 = tpu.matmul %443, %445, %cst_374 {dimension_numbers = #tpu.dot_dimension_numbers<[1], [0], [0], [1], [0, 0, 1, 1], [], []>} : vector<128x96xbf16>, vector<96x32xbf16>, vector<128x32xf32> -> vector<128x32xf32>
    %c5_375 = arith.constant 5 : index
    %c0_376 = arith.constant 0 : index
    %c0_377 = arith.constant 0 : index
    %447 = vector.load %arg9[%c5_375, %c0_376, %c0_377] : memref<6x1x32xf32, #tpu.memory_space<vmem>>, vector<1x1x32xf32>
    %448 = vector.shape_cast %447 : vector<1x1x32xf32> to vector<1x32xf32>
    %449 = vector.broadcast %448 : vector<1x32xf32> to vector<128x32xf32>
    %450 = arith.addf %446, %449 : vector<128x32xf32>
    %cst_378 = arith.constant 0.000000e+00 : f32
    %451 = vector.broadcast %cst_378 : f32 to vector<128x32xf32>
    %452 = arith.maximumf %450, %451 : vector<128x32xf32>
    %453 = arith.truncf %452 : vector<128x32xf32> to vector<128x32xbf16>
    %c5_379 = arith.constant 5 : index
    %c0_380 = arith.constant 0 : index
    %c0_381 = arith.constant 0 : index
    %454 = vector.load %arg10[%c5_379, %c0_380, %c0_381] : memref<6x32x32xbf16, #tpu.memory_space<vmem>>, vector<1x32x32xbf16>
    %455 = vector.shape_cast %454 : vector<1x32x32xbf16> to vector<32x32xbf16>
    %cst_382 = arith.constant dense<0.000000e+00> : vector<128x32xf32>
    %456 = tpu.matmul %453, %455, %cst_382 {dimension_numbers = #tpu.dot_dimension_numbers<[1], [0], [0], [1], [0, 0, 1, 1], [], []>} : vector<128x32xbf16>, vector<32x32xbf16>, vector<128x32xf32> -> vector<128x32xf32>
    %c5_383 = arith.constant 5 : index
    %c0_384 = arith.constant 0 : index
    %c0_385 = arith.constant 0 : index
    %457 = vector.load %arg11[%c5_383, %c0_384, %c0_385] : memref<6x1x32xf32, #tpu.memory_space<vmem>>, vector<1x1x32xf32>
    %458 = vector.shape_cast %457 : vector<1x1x32xf32> to vector<1x32xf32>
    %459 = vector.broadcast %458 : vector<1x32xf32> to vector<128x32xf32>
    %460 = arith.addf %456, %459 : vector<128x32xf32>
    %461 = arith.addf %423, %460 : vector<128x32xf32>
    %462 = arith.truncf %461 : vector<128x32xf32> to vector<128x32xbf16>
    %c1_386 = arith.constant 1 : index
    %c0_387 = arith.constant 0 : index
    %c0_388 = arith.constant 0 : index
    %463 = vector.load %arg12[%c1_386, %c0_387, %c0_388] : memref<2x32x128xbf16, #tpu.memory_space<vmem>>, vector<1x32x128xbf16>
    %464 = vector.shape_cast %463 : vector<1x32x128xbf16> to vector<32x128xbf16>
    %cst_389 = arith.constant dense<0.000000e+00> : vector<128x128xf32>
    %465 = tpu.matmul %462, %464, %cst_389 {dimension_numbers = #tpu.dot_dimension_numbers<[1], [0], [0], [1], [0, 0, 1, 1], [], []>} : vector<128x32xbf16>, vector<32x128xbf16>, vector<128x128xf32> -> vector<128x128xf32>
    %c1_390 = arith.constant 1 : index
    %c0_391 = arith.constant 0 : index
    %c0_392 = arith.constant 0 : index
    %466 = vector.load %arg13[%c1_390, %c0_391, %c0_392] : memref<2x1x128xf32, #tpu.memory_space<vmem>>, vector<1x1x128xf32>
    %467 = vector.shape_cast %466 : vector<1x1x128xf32> to vector<1x128xf32>
    %468 = vector.broadcast %467 : vector<1x128xf32> to vector<128x128xf32>
    %469 = arith.addf %465, %468 : vector<128x128xf32>
    %470 = arith.truncf %469 : vector<128x128xf32> to vector<128x128xbf16>
    %c2_393 = arith.constant 2 : index
    %c0_394 = arith.constant 0 : index
    %c0_395 = arith.constant 0 : index
    %471 = vector.load %arg14[%c2_393, %c0_394, %c0_395] : memref<3x128x128xbf16, #tpu.memory_space<vmem>>, vector<1x128x128xbf16>
    %472 = vector.shape_cast %471 : vector<1x128x128xbf16> to vector<128x128xbf16>
    %473 = vector.shape_cast %470 : vector<128x128xbf16> to vector<1x128x128xbf16>
    tpu.vector_store %arg14[%c2_393, %c0_394, %c0_395], %473 {strides = array<i32>} : memref<3x128x128xbf16, #tpu.memory_space<vmem>>, vector<1x128x128xbf16>,
    return
  }
  func.func @transform_0(%arg0: i32) -> (i32, i32) {
    %c0_i32 = arith.constant 0 : i32
    %c0_i32_0 = arith.constant 0 : i32
    %c0_i32_1 = arith.constant 0 : i32
    return %c0_i32, %c0_i32_0 : i32, i32
  }
  func.func @transform_1(%arg0: i32) -> (i32, i32, i32) {
    %c0_i32 = arith.constant 0 : i32
    %c0_i32_0 = arith.constant 0 : i32
    %c0_i32_1 = arith.constant 0 : i32
    %c0_i32_2 = arith.constant 0 : i32
    return %c0_i32, %c0_i32_0, %c0_i32_1 : i32, i32, i32
  }
  func.func @transform_2(%arg0: i32) -> (i32, i32, i32) {
    %c0_i32 = arith.constant 0 : i32
    %c0_i32_0 = arith.constant 0 : i32
    %c0_i32_1 = arith.constant 0 : i32
    %c0_i32_2 = arith.constant 0 : i32
    return %c0_i32, %c0_i32_0, %c0_i32_1 : i32, i32, i32
  }
  func.func @transform_3(%arg0: i32) -> (i32, i32) {
    %c0_i32 = arith.constant 0 : i32
    %c0_i32_0 = arith.constant 0 : i32
    %c0_i32_1 = arith.constant 0 : i32
    return %c0_i32, %c0_i32_0 : i32, i32
  }
  func.func @transform_4(%arg0: i32) -> (i32, i32) {
    %c0_i32 = arith.constant 0 : i32
    %c0_i32_0 = arith.constant 0 : i32
    %c0_i32_1 = arith.constant 0 : i32
    return %c0_i32, %c0_i32_0 : i32, i32
  }
  func.func @transform_5(%arg0: i32) -> (i32, i32, i32) {
    %c0_i32 = arith.constant 0 : i32
    %c0_i32_0 = arith.constant 0 : i32
    %c0_i32_1 = arith.constant 0 : i32
    %c0_i32_2 = arith.constant 0 : i32
    return %c0_i32, %c0_i32_0, %c0_i32_1 : i32, i32, i32
  }
  func.func @transform_6(%arg0: i32) -> (i32, i32, i32) {
    %c0_i32 = arith.constant 0 : i32
    %c0_i32_0 = arith.constant 0 : i32
    %c0_i32_1 = arith.constant 0 : i32
    %c0_i32_2 = arith.constant 0 : i32
    return %c0_i32, %c0_i32_0, %c0_i32_1 : i32, i32, i32
  }
  func.func @transform_7(%arg0: i32) -> (i32, i32, i32) {
    %c0_i32 = arith.constant 0 : i32
    %c0_i32_0 = arith.constant 0 : i32
    %c0_i32_1 = arith.constant 0 : i32
    %c0_i32_2 = arith.constant 0 : i32
    return %c0_i32, %c0_i32_0, %c0_i32_1 : i32, i32, i32
  }
  func.func @transform_8(%arg0: i32) -> (i32, i32, i32) {
    %c0_i32 = arith.constant 0 : i32
    %c0_i32_0 = arith.constant 0 : i32
    %c0_i32_1 = arith.constant 0 : i32
    %c0_i32_2 = arith.constant 0 : i32
    return %c0_i32, %c0_i32_0, %c0_i32_1 : i32, i32, i32
  }
  func.func @transform_9(%arg0: i32) -> (i32, i32, i32) {
    %c0_i32 = arith.constant 0 : i32
    %c0_i32_0 = arith.constant 0 : i32
    %c0_i32_1 = arith.constant 0 : i32
    %c0_i32_2 = arith.constant 0 : i32
    return %c0_i32, %c0_i32_0, %c0_i32_1 : i32, i32, i32
  }
  func.func @transform_10(%arg0: i32) -> (i32, i32, i32) {
    %c0_i32 = arith.constant 0 : i32
    %c0_i32_0 = arith.constant 0 : i32
    %c0_i32_1 = arith.constant 0 : i32
    %c0_i32_2 = arith.constant 0 : i32
    return %c0_i32, %c0_i32_0, %c0_i32_1 : i32, i32, i32
  }
  func.func @transform_11(%arg0: i32) -> (i32, i32, i32) {
    %c0_i32 = arith.constant 0 : i32
    %c0_i32_0 = arith.constant 0 : i32
    %c0_i32_1 = arith.constant 0 : i32
    %c0_i32_2 = arith.constant 0 : i32
    return %c0_i32, %c0_i32_0, %c0_i32_1 : i32, i32, i32
  }
  func.func @transform_12(%arg0: i32) -> (i32, i32, i32) {
    %c0_i32 = arith.constant 0 : i32
    %c0_i32_0 = arith.constant 0 : i32
    %c0_i32_1 = arith.constant 0 : i32
    %c0_i32_2 = arith.constant 0 : i32
    return %c0_i32, %c0_i32_0, %c0_i32_1 : i32, i32, i32
  }
  func.func @transform_13(%arg0: i32) -> (i32, i32, i32) {
    %c0_i32 = arith.constant 0 : i32
    %c0_i32_0 = arith.constant 0 : i32
    %c0_i32_1 = arith.constant 0 : i32
    %c0_i32_2 = arith.constant 0 : i32
    return %c0_i32, %c0_i32_0, %c0_i32_1 : i32, i32, i32
  }
}

</mosaic_0001>

<bundles_post_ra>
// kernel: mst_tcn2_forward.1
= control target key start
LH: loop header
LB: loop body
LE: loop exit
PB: predicated region body
PF: predicated region fallthrough
CT: control target
= control target key end

     0   :  { %vm45_vm0 = vcmask 261120   ;;  %v9708_v0 = vmov 0.0   ;;  %v9709_v4 = vmov 0   ;;  %s9711_s27 = smov 96   ;;  %s9712_s28 = smov 64   ;;  %vm341_vm1 = vcmask 523264   ;;  %s12699_s0 = inlined_call_operand.vmem [shape: f32[128,32], index: 0, kind: input, shape index: {}]   ;;  %s12700_s1 = inlined_call_operand.vmem [shape: bf16[4,160,32], index: 1, kind: input, shape index: {}]   ;;  %s12701_s2 = inlined_call_operand.vmem [shape: f32[4,1,32], index: 2, kind: input, shape index: {}]   ;;  %s12702_s3 = inlined_call_operand.vmem [shape: bf16[32,128], index: 3, kind: input, shape index: {}]   ;;  %s12703_s4 = inlined_call_operand.vmem [shape: f32[1,128], index: 4, kind: input, shape index: {}]   ;;  %s12704_s13 = inlined_call_operand.vmem [shape: bf16[3,128,128], index: 13, kind: output, shape index: {}]   ;;  %s12705_s5 = inlined_call_operand.vmem [shape: bf16[2,128,32], index: 5, kind: input, shape index: {}]   ;;  %s12706_s7 = inlined_call_operand.vmem [shape: bf16[6,96,32], index: 7, kind: input, shape index: {}]   ;;  %s12707_s6 = inlined_call_operand.vmem [shape: f32[2,1,32], index: 6, kind: input, shape index: {}]   ;;  %s12708_s9 = inlined_call_operand.vmem [shape: bf16[6,32,32], index: 9, kind: input, shape index: {}]   ;;  %s12709_s8 = inlined_call_operand.vmem [shape: f32[6,1,32], index: 8, kind: input, shape index: {}]   ;;  %s12710_s10 = inlined_call_operand.vmem [shape: f32[6,1,32], index: 10, kind: input, shape index: {}]   ;;  %s12711_s11 = inlined_call_operand.vmem [shape: bf16[2,32,128], index: 11, kind: input, shape index: {}]   ;;  %s12712_s12 = inlined_call_operand.vmem [shape: f32[2,1,128], index: 12, kind: input, shape index: {}]  }
   0x1   :  { %47 = vst.msk [vmem:[#allocation2 + $0x8] sm:$0xff] %vm45_vm0, %v9708_v0  ;;  %v9787_v1 = vld [vmem:[%s12699_s0] sm:$0xff]  ;;  %v9792_v2 = vld [vmem:[%s12699_s0 + $0x8] sm:$0xff]  ;;  %46 = vst.msk [vmem:[#allocation2] sm:$0xff] %vm45_vm0, %v9708_v0  ;;  %502 = vmatprep.subr.bf16.mxu0 %v9709_v4  ;;  %1048 = vmatprep.subr.bf16.mxu1 %v9709_v4  ;;  %vm358_vm2 = vcmask 785408  }
   0x2   :  { %49 = vst.msk [vmem:[#allocation2 + $0x50] sm:$0xff] %vm45_vm0, %v9708_v0  ;;  %50 = vst.msk [vmem:[#allocation2 + $0x58] sm:$0xff] %vm45_vm0, %v9708_v0  ;;  %v9800_v3 = vld [vmem:[%s12699_s0 + $0x10] sm:$0xff]  ;;  %v9811_v5 = vld [vmem:[%s12699_s0 + $0x18] sm:$0xff]  ;;  %v376_v18 = vpack.c.bf16 %v9792_v2, %v9787_v1 }
   0x3   :  { %67 = vst.msk [vmem:[#allocation2 + $0x10] sm:$0xff] %vm45_vm0, %v9787_v1  ;;  %68 = vst.msk [vmem:[#allocation2 + $0x18] sm:$0xff] %vm45_vm0, %v9792_v2  ;;  %v9818_v6 = vld [vmem:[%s12699_s0 + $0x20] sm:$0xff]  ;;  %v9823_v7 = vld [vmem:[%s12699_s0 + $0x28] sm:$0xff] }
   0x4   :  { %69 = vst.msk [vmem:[#allocation2 + $0x20] sm:$0xff] %vm45_vm0, %v9800_v3  ;;  %70 = vst.msk [vmem:[#allocation2 + $0x28] sm:$0xff] %vm45_vm0, %v9811_v5  ;;  %v9834_v8 = vld [vmem:[%s12699_s0 + $0x30] sm:$0xff]  ;;  %v9839_v9 = vld [vmem:[%s12699_s0 + $0x38] sm:$0xff]  ;;  %7157 = vmatprep.mubr.msk.bf16.mxu0 %vm45_vm0, %v376_v18 }
   0x5   :  { %71 = vst.msk [vmem:[#allocation2 + $0x30] sm:$0xff] %vm45_vm0, %v9818_v6  ;;  %72 = vst.msk [vmem:[#allocation2 + $0x38] sm:$0xff] %vm45_vm0, %v9823_v7  ;;  %v9844_v10 = vld [vmem:[%s12699_s0 + $0x40] sm:$0xff]  ;;  %v9853_v11 = vld [vmem:[%s12699_s0 + $0x48] sm:$0xff] }
   0x6   :  { %73 = vst.msk [vmem:[#allocation2 + $0x40] sm:$0xff] %vm45_vm0, %v9834_v8  ;;  %74 = vst.msk [vmem:[#allocation2 + $0x48] sm:$0xff] %vm45_vm0, %v9839_v9  ;;  %v9860_v12 = vld [vmem:[%s12699_s0 + $0x50] sm:$0xff]  ;;  %v9865_v13 = vld [vmem:[%s12699_s0 + $0x58] sm:$0xff] }
   0x7   :  { %75 = vst.msk [vmem:[#allocation2 + $0x60] sm:$0xff] %vm45_vm0, %v9844_v10  ;;  %76 = vst.msk [vmem:[#allocation2 + $0x68] sm:$0xff] %vm45_vm0, %v9853_v11  ;;  %v9876_v14 = vld [vmem:[%s12699_s0 + $0x60] sm:$0xff]  ;;  %v9881_v15 = vld [vmem:[%s12699_s0 + $0x68] sm:$0xff] }
   0x8   :  { %77 = vst.msk [vmem:[#allocation2 + $0x70] sm:$0xff] %vm45_vm0, %v9860_v12  ;;  %78 = vst.msk [vmem:[#allocation2 + $0x78] sm:$0xff] %vm45_vm0, %v9865_v13  ;;  %v9886_v16 = vld [vmem:[%s12699_s0 + $0x70] sm:$0xff]  ;;  %v9895_v17 = vld [vmem:[%s12699_s0 + $0x78] sm:$0xff]  ;;  %s9710_s0 = smov 32  }
   0x9   :  { %79 = vst.msk [vmem:[#allocation2 + $0x80] sm:$0xff] %vm45_vm0, %v9876_v14  ;;  %80 = vst.msk [vmem:[#allocation2 + $0x88] sm:$0xff] %vm45_vm0, %v9881_v15  ;;  %v9470_v19 = vld [vmem:[%s12700_s1 + $0x38] sm:$0xff]   ;;  %v9906_v20 = vld [vmem:[#allocation2 + $0x8] sm:$0xff] }
   0xa   :  { %81 = vst.msk [vmem:[#allocation2 + $0x90] sm:$0xff] %vm45_vm0, %v9886_v16  ;;  %82 = vst.msk [vmem:[#allocation2 + $0x98] sm:$0xff] %vm45_vm0, %v9895_v17  ;;  %v9471_v21 = vld [vmem:[%s12700_s1 + $0x30] sm:$0xff]   ;;  %503 = vmatpush1.bf16.msra.mxu0 %v9470_v19  ;;  %v9916_v28 = vld [vmem:[#allocation2 + $0x18] sm:$0xff] }
   0xb   :  { %v9912_v22 = vld [vmem:[#allocation2 + $0x10] sm:$0xff]  ;;  %504 = vmatprep.subr.bf16.mxu0 %v9709_v4  ;;  %v9919_v30 = vld [vmem:[#allocation2 + $0x20] sm:$0xff]  ;;  %v9928_v39 = vld [vmem:[#allocation2 + $0x28] sm:$0xff] }
   0xc   :  { %v102_v23 = vld [vmem:[#allocation2 + $0x16] sm:$0xff]  ;;  %v8510_v25 = vpack.i.bf16 %v9912_v22, %v9906_v20  ;;  %v101_v27 = vld [vmem:[#allocation2 + $0xe] sm:$0xff]  ;;  %v103_v32 = vld [vmem:[#allocation2 + $0x1e] sm:$0xff]  ;;  %v8525_v34 = vpack.i.bf16 %v9919_v30, %v9916_v28 }
   0xd   :  { %v118_v24 = vld [vmem:[#allocation2 + $0x17] sm:$0xff]  ;;  %v117_v26 = vld [vmem:[#allocation2 + $0xf] sm:$0xff]  ;;  %v8515_v31 = vpack.i.bf16 %v102_v23, %v101_v27  ;;  %v104_v33 = vld [vmem:[#allocation2 + $0x26] sm:$0xff] }
   0xe   :  { %v8520_v29 = vpack.i.bf16 %v118_v24, %v117_v26  ;;  %8511 = vrot.lane.b32.xlu0 %v8510_v25, %s9710_s0  ;;  %505 = vmatpush1.bf16.msra.mxu0 %v9471_v21  ;;  %v119_v35 = vld [vmem:[#allocation2 + $0x1f] sm:$0xff]  ;;  %v120_v36 = vld [vmem:[#allocation2 + $0x27] sm:$0xff]  ;;  %v8530_v37 = vpack.i.bf16 %v104_v33, %v103_v32  ;;  %v9930_v40 = vld [vmem:[#allocation2 + $0x30] sm:$0xff] }
   0xf   :  { %506 = vmatprep.subr.bf16.mxu0 %v9709_v4  ;;  %v8535_v38 = vpack.i.bf16 %v120_v36, %v119_v35  ;;  %v105_v41 = vld [vmem:[#allocation2 + $0x2e] sm:$0xff]  ;;  %v106_v42 = vld [vmem:[#allocation2 + $0x36] sm:$0xff]  ;;  %v8540_v43 = vpack.i.bf16 %v9930_v40, %v9928_v39  ;;  %v99_v48 = vld [vmem:[#allocation2 + $0x40] sm:$0xff] }
  0x10   :  { %8521 = vrot.lane.b32.xlu1 %v8520_v29, %s9711_s27  ;;  %v121_v44 = vld [vmem:[#allocation2 + $0x2f] sm:$0xff]  ;;  %v122_v45 = vld [vmem:[#allocation2 + $0x37] sm:$0xff]  ;;  %v8545_v46 = vpack.i.bf16 %v106_v42, %v105_v41  ;;  %v108_v50 = vld [vmem:[#allocation2 + $0x46] sm:$0xff] }
  0x11   :  { %v9936_v47 = vld [vmem:[#allocation2 + $0x38] sm:$0xff]  ;;  %v8550_v51 = vpack.i.bf16 %v122_v45, %v121_v44  ;;  %v9472_v54 = vld [vmem:[%s12700_s1 + $0x28] sm:$0xff]   ;;  %v9473_v56 = vld [vmem:[%s12700_s1 + $0x20] sm:$0xff]  }
  0x12   :  { %8516 = vrot.lane.b32.xlu0 %v8515_v31, %s9712_s28  ;;  %v107_v49 = vld [vmem:[#allocation2 + $0x3e] sm:$0xff]  ;;  %v8555_v53 = vpack.i.bf16 %v99_v48, %v9936_v47  ;;  %v124_v55 = vld [vmem:[#allocation2 + $0x47] sm:$0xff]  ;;  %507 = vmatpush1.bf16.msra.mxu0 %v9472_v54  ;;  %v9962_v23 = vld [vmem:[#allocation2 + $0x70] sm:$0xff] }
  0x13   :  { %v123_v52 = vld [vmem:[#allocation2 + $0x3f] sm:$0xff]  ;;  %v8560_v57 = vpack.i.bf16 %v108_v50, %v107_v49  ;;  %508 = vmatprep.subr.bf16.mxu0 %v9709_v4  ;;  %v126_v63 = vld [vmem:[#allocation2 + $0x67] sm:$0xff]  ;;  %v9475_v25 = vld [vmem:[%s12700_s1 + $0x10] sm:$0xff]  }
  0x14   :  { %8526 = vrot.lane.b32.xlu1 %v8525_v34, %s9710_s0  ;;  %v9948_v58 = vld [vmem:[#allocation2 + $0x58] sm:$0xff]  ;;  %v8565_v59 = vpack.i.bf16 %v124_v55, %v123_v52  ;;  %v9952_v60 = vld [vmem:[#allocation2 + $0x60] sm:$0xff]  ;;  %v9960_v21 = vld [vmem:[#allocation2 + $0x68] sm:$0xff] }
  0x15   :  { %v110_v61 = vld [vmem:[#allocation2 + $0x66] sm:$0xff]  ;;  %v109_v62 = vld [vmem:[#allocation2 + $0x5e] sm:$0xff]  ;;  %v8570_v19 = vpack.i.bf16 %v9952_v60, %v9948_v58  ;;  %v111_v26 = vld [vmem:[#allocation2 + $0x6e] sm:$0xff]  ;;  %v8585_v33 = vpack.i.bf16 %v9962_v23, %v9960_v21 }
  0x16   :  { %8531 = vrot.lane.b32.xlu0 %v8530_v37, %s9712_s28  ;;  %v125_v0 = vld [vmem:[#allocation2 + $0x5f] sm:$0xff]  ;;  %509 = vmatpush1.bf16.msra.mxu0 %v9473_v56  ;;  %v8575_v24 = vpack.i.bf16 %v110_v61, %v109_v62  ;;  %v112_v27 = vld [vmem:[#allocation2 + $0x76] sm:$0xff]  ;;  %v9476_v34 = vld [vmem:[%s12700_s1 + $0x8] sm:$0xff]  }
  0x17   :  { %v9474_v18 = vld [vmem:[%s12700_s1 + $0x18] sm:$0xff]   ;;  %510 = vmatprep.subr.bf16.mxu0 %v9709_v4  ;;  %v8580_v29 = vpack.i.bf16 %v126_v63, %v125_v0  ;;  %v127_v31 = vld [vmem:[#allocation2 + $0x6f] sm:$0xff]  ;;  %v9979_v36 = vld [vmem:[#allocation2 + $0x80] sm:$0xff]  ;;  %v8590_v37 = vpack.i.bf16 %v112_v27, %v111_v26 }
  0x18   :  { %8536 = vrot.lane.b32.xlu1 %v8535_v38, %s9711_s27  ;;  %v128_v32 = vld [vmem:[#allocation2 + $0x77] sm:$0xff]  ;;  %v114_v41 = vld [vmem:[#allocation2 + $0x86] sm:$0xff]  ;;  %v115_v52 = vld [vmem:[#allocation2 + $0x8e] sm:$0xff] }
  0x19   :  { %v9977_v35 = vld [vmem:[#allocation2 + $0x78] sm:$0xff]  ;;  %v8595_v42 = vpack.i.bf16 %v128_v32, %v127_v31  ;;  %v130_v45 = vld [vmem:[#allocation2 + $0x87] sm:$0xff]  ;;  %v100_v49 = vld [vmem:[#allocation2 + $0x90] sm:$0xff] }
  0x1a   :  { %8541 = vrot.lane.b32.xlu0 %v8540_v43, %s9710_s0  ;;  %511 = vmatpush1.bf16.msra.mxu0 %v9474_v18  ;;  %v113_v38 = vld [vmem:[#allocation2 + $0x7e] sm:$0xff]  ;;  %v9990_v48 = vld [vmem:[#allocation2 + $0x88] sm:$0xff] }
  0x1b   :  { %512 = vmatprep.subr.bf16.mxu0 %v9709_v4  ;;  %v9477_v43 = vld [vmem:[%s12700_s1] sm:$0xff]   ;;  %v8605_v50 = vpack.i.bf16 %v114_v41, %v113_v38  ;;  %v131_v55 = vld [vmem:[#allocation2 + $0x8f] sm:$0xff]  ;;  %v132_v56 = vld [vmem:[#allocation2 + $0x97] sm:$0xff] }
  0x1c   :  { %8546 = vrot.lane.b32.xlu1 %v8545_v46, %s9712_s28  ;;  %v129_v44 = vld [vmem:[#allocation2 + $0x7f] sm:$0xff]  ;;  %v8600_v46 = vpack.i.bf16 %v9979_v36, %v9977_v35  ;;  %v8625_v62 = vpack.i.bf16 %v132_v56, %v131_v55 }
  0x1d   :  { %v8610_v54 = vpack.i.bf16 %v130_v45, %v129_v44 }
  0x1e   :  { %8551 = vrot.lane.b32.xlu0 %v8550_v51, %s9711_s27  ;;  %513 = vmatpush1.bf16.msra.mxu0 %v9475_v25  ;;  %v9478_v51 = vld [vmem:[%s12700_s1 + $0x48] sm:$0xff]  }
  0x1f   :  { %514 = vmatprep.subr.bf16.mxu0 %v9709_v4 }
  0x20   :  { %8556 = vrot.lane.b32.xlu1 %v8555_v53, %s9710_s0  ;;  %v116_v53 = vld [vmem:[#allocation2 + $0x96] sm:$0xff] }
  0x21   :  { %v8620_v61 = vpack.i.bf16 %v116_v53, %v115_v52 }
  0x22   :  { %8561 = vrot.lane.b32.xlu0 %v8560_v57, %s9712_s28  ;;  %515 = vmatpush1.bf16.msra.mxu0 %v9476_v34  ;;  %v8615_v57 = vpack.i.bf16 %v100_v49, %v9990_v48 }
  0x23   :  { %516 = vmatprep.subr.bf16.mxu0 %v9709_v4 }
  0x24   :  { %8566 = vrot.lane.b32.xlu1 %v8565_v59, %s9711_s27  ;;  %v9479_v59 = vld [vmem:[%s12700_s1 + $0x40] sm:$0xff]  }
  0x26   :  { %8571 = vrot.lane.b32.xlu0 %v8570_v19, %s9710_s0  ;;  %517 = vmatpush1.bf16.msra.mxu0 %v9477_v43  ;;  %v378_v43 = vpack.c.bf16 %v9811_v5, %v9800_v3 }
  0x27   :  { %530 = vmatprep.subr.bf16.mxu0 %v9709_v4 }
  0x28   :  { %8576 = vrot.lane.b32.xlu1 %v8575_v24, %s9712_s28  ;;  %v83_v24 = vld [vmem:[#allocation2] sm:$0xff] }
  0x2a   :  { %8581 = vrot.lane.b32.xlu0 %v8580_v29, %s9711_s27  ;;  %531 = vmatpush2.bf16.msra.mxu0 %v9478_v51 }
  0x2b   :  { %532 = vmatprep.subr.bf16.mxu0 %v9709_v4 }
  0x2c   :  { %8586 = vrot.lane.b32.xlu1 %v8585_v33, %s9710_s0 }
  0x2e   :  { %8591 = vrot.lane.b32.xlu0 %v8590_v37, %s9712_s28  ;;  %533 = vmatpush2.bf16.msra.mxu0 %v9479_v59 }
  0x2f   :  { %1610 = vmatprep.subr.bf16.mxu0 %v9709_v4 }
  0x30   :  { %8596 = vrot.lane.b32.xlu1 %v8595_v42, %s9711_s27 }
  0x32   :  { %8601 = vrot.lane.b32.xlu0 %v8600_v46, %s9710_s0 }
  0x34   :  { %8606 = vrot.lane.b32.xlu1 %v8605_v50, %s9712_s28 }
  0x36   :  { %8611 = vrot.lane.b32.xlu0 %v8610_v54, %s9711_s27 }
  0x38   :  { %8616 = vrot.lane.b32.xlu1 %v8615_v57, %s9710_s0 }
  0x3a   :  { %8621 = vrot.lane.b32.xlu0 %v8620_v61, %s9712_s28 }
  0x3c   :  { %8626 = vrot.lane.b32.xlu1 %v8625_v62, %s9711_s27 }
  0x80   :  { %v8512_v63 = vpop.permute.xlu0 %8511 }
  0x81   :  { %v8514_v18 = vunpack.i.h.bf16 %v8512_v63  ;;  %v8513_v19 = vunpack.i.l.bf16 %v8512_v63 }
  0x82   :  { %v8522_v0 = vpop.permute.xlu1 %8521 }
  0x83   :  { %v8524_v25 = vunpack.i.h.bf16 %v8522_v0  ;;  %v8523_v26 = vunpack.i.l.bf16 %v8522_v0  ;;  %v326_v33 = vsel %vm45_vm0, %v9906_v20, %v8514_v18  ;;  %v325_v34 = vsel %vm45_vm0, %v83_v24, %v8513_v19 }
  0x84   :  { %v8517_v27 = vpop.permute.xlu0 %8516 }
  0x85   :  { %v8519_v29 = vunpack.i.h.bf16 %v8517_v27  ;;  %v8518_v31 = vunpack.i.l.bf16 %v8517_v27 }
  0x86   :  { %v8527_v32 = vpop.permute.xlu1 %8526 }
  0x87   :  { %v8529_v37 = vunpack.i.h.bf16 %v8527_v32  ;;  %v8528_v38 = vunpack.i.l.bf16 %v8527_v32  ;;  %v342_v41 = vsel %vm341_vm1, %v325_v34, %v8518_v31  ;;  %v343_v42 = vsel %vm341_vm1, %v326_v33, %v8519_v29 }
  0x88   :  { %v8532_v46 = vpop.permute.xlu0 %8531  ;;  %v359_v20 = vsel %vm358_vm2, %v342_v41, %v8523_v26  ;;  %v360_v49 = vsel %vm358_vm2, %v343_v42, %v8524_v25  ;;  %v380_v26 = vpack.c.bf16 %v9823_v7, %v9818_v6 }
  0x89   :  { %v328_v44 = vsel %vm45_vm0, %v9916_v28, %v8529_v37  ;;  %v327_v45 = vsel %vm45_vm0, %v9912_v22, %v8528_v38  ;;  %v8534_v50 = vunpack.i.h.bf16 %v8532_v46  ;;  %v8533_v51 = vunpack.i.l.bf16 %v8532_v46 }
  0x8a   :  { %v8537_v52 = vpop.permute.xlu1 %8536  ;;  %v375_v53 = vpack.c.bf16 %v360_v49, %v359_v20  ;;  %v382_v20 = vpack.c.bf16 %v9839_v9, %v9834_v8 }
  0x8b   :  { %v8539_v54 = vunpack.i.h.bf16 %v8537_v52  ;;  %v8538_v55 = vunpack.i.l.bf16 %v8537_v52  ;;  %v344_v56 = vsel %vm341_vm1, %v327_v45, %v8533_v51  ;;  %v345_v57 = vsel %vm341_vm1, %v328_v44, %v8534_v50 }
  0x8c   :  { %535 = vmatmul.mubr.bf16.vlgmr.msra.gmra.mxu0 %v375_v53  ;;  %v8542_v28 = vpop.permute.xlu0 %8541 }
  0x8d   :  { %7158 = vmatprep.mubr.msk.bf16.mxu0 %vm45_vm0, %v378_v43  ;;  %v8544_v22 = vunpack.i.h.bf16 %v8542_v28  ;;  %v8543_v59 = vunpack.i.l.bf16 %v8542_v28  ;;  %v361_v62 = vsel %vm358_vm2, %v344_v56, %v8538_v55  ;;  %v362_v63 = vsel %vm358_vm2, %v345_v57, %v8539_v54 }
  0x8e   :  { %v8547_v61 = vpop.permute.xlu1 %8546  ;;  %v377_v27 = vpack.c.bf16 %v362_v63, %v361_v62 }
  0x8f   :  { %v8549_v0 = vunpack.i.h.bf16 %v8547_v61  ;;  %v8548_v18 = vunpack.i.l.bf16 %v8547_v61  ;;  %v330_v19 = vsel %vm45_vm0, %v9928_v39, %v8544_v22  ;;  %v329_v24 = vsel %vm45_vm0, %v9919_v30, %v8543_v59 }
  0x90   :  { %v8552_v25 = vpop.permute.xlu0 %8551 }
  0x91   :  { %v8554_v31 = vunpack.i.h.bf16 %v8552_v25  ;;  %v8553_v32 = vunpack.i.l.bf16 %v8552_v25  ;;  %v346_v33 = vsel %vm341_vm1, %v329_v24, %v8548_v18  ;;  %v347_v34 = vsel %vm341_vm1, %v330_v19, %v8549_v0 }
  0x92   :  { %v8557_v29 = vpop.permute.xlu1 %8556  ;;  %v384_v0 = vpack.c.bf16 %v9853_v11, %v9844_v10 }
  0x93   :  { %v8559_v37 = vunpack.i.h.bf16 %v8557_v29  ;;  %v8558_v38 = vunpack.i.l.bf16 %v8557_v29  ;;  %v363_v30 = vsel %vm358_vm2, %v346_v33, %v8553_v32  ;;  %v364_v39 = vsel %vm358_vm2, %v347_v34, %v8554_v31 }
  0x94   :  { %543 = vmatmul.mubr.bf16.gmra.mxu0 %v377_v27  ;;  %v8562_v41 = vpop.permute.xlu0 %8561  ;;  %v379_v49 = vpack.c.bf16 %v364_v39, %v363_v30  ;;  %v386_v39 = vpack.c.bf16 %v9865_v13, %v9860_v12 }
  0x95   :  { %7159 = vmatprep.mubr.msk.bf16.mxu0 %vm45_vm0, %v380_v26  ;;  %v8564_v42 = vunpack.i.h.bf16 %v8562_v41  ;;  %v8563_v43 = vunpack.i.l.bf16 %v8562_v41  ;;  %v332_v45 = vsel %vm45_vm0, %v9936_v47, %v8559_v37  ;;  %v331_v46 = vsel %vm45_vm0, %v9930_v40, %v8558_v38  ;;  %v91_v47 = vld [vmem:[#allocation2 + $0x50] sm:$0xff] }
  0x96   :  { %v8567_v44 = vpop.permute.xlu1 %8566 }
  0x97   :  { %v8569_v51 = vunpack.i.h.bf16 %v8567_v44  ;;  %v8568_v52 = vunpack.i.l.bf16 %v8567_v44  ;;  %v348_v54 = vsel %vm341_vm1, %v331_v46, %v8563_v43  ;;  %v349_v55 = vsel %vm341_vm1, %v332_v45, %v8564_v42 }
  0x98   :  { %v8572_v50 = vpop.permute.xlu0 %8571 }
  0x99   :  { %v8574_v56 = vunpack.i.h.bf16 %v8572_v50  ;;  %v8573_v57 = vunpack.i.l.bf16 %v8572_v50  ;;  %v365_v40 = vsel %vm358_vm2, %v348_v54, %v8568_v52  ;;  %v366_v28 = vsel %vm358_vm2, %v349_v55, %v8569_v51 }
  0x9a   :  { %v8577_v53 = vpop.permute.xlu1 %8576  ;;  %v381_v18 = vpack.c.bf16 %v366_v28, %v365_v40 }
  0x9b   :  { %v8579_v22 = vunpack.i.h.bf16 %v8577_v53  ;;  %v8578_v59 = vunpack.i.l.bf16 %v8577_v53  ;;  %v334_v62 = vsel %vm45_vm0, %v9948_v58, %v8574_v56  ;;  %v333_v63 = vsel %vm45_vm0, %v91_v47, %v8573_v57 }
  0x9c   :  { %551 = vmatmul.mubr.bf16.gmra.mxu0 %v379_v49  ;;  %v8582_v61 = vpop.permute.xlu0 %8581  ;;  %v388_v57 = vpack.c.bf16 %v9881_v15, %v9876_v14 }
  0x9d   :  { %7160 = vmatprep.mubr.msk.bf16.mxu0 %vm45_vm0, %v382_v20  ;;  %v8584_v24 = vunpack.i.h.bf16 %v8582_v61  ;;  %v8583_v25 = vunpack.i.l.bf16 %v8582_v61  ;;  %v350_v27 = vsel %vm341_vm1, %v333_v63, %v8578_v59  ;;  %v351_v29 = vsel %vm341_vm1, %v334_v62, %v8579_v22 }
  0x9e   :  { %v8587_v19 = vpop.permute.xlu1 %8586 }
  0x9f   :  { %v8589_v31 = vunpack.i.h.bf16 %v8587_v19  ;;  %v8588_v32 = vunpack.i.l.bf16 %v8587_v19  ;;  %v367_v58 = vsel %vm358_vm2, %v350_v27, %v8583_v25  ;;  %v368_v33 = vsel %vm358_vm2, %v351_v29, %v8584_v24 }
  0xa0   :  { %v8592_v26 = vpop.permute.xlu0 %8591  ;;  %v383_v42 = vpack.c.bf16 %v368_v33, %v367_v58  ;;  %v390_v27 = vpack.c.bf16 %v9895_v17, %v9886_v16 }
  0xa1   :  { %v8594_v34 = vunpack.i.h.bf16 %v8592_v26  ;;  %v8593_v37 = vunpack.i.l.bf16 %v8592_v26  ;;  %v336_v41 = vsel %vm45_vm0, %v9960_v21, %v8589_v31  ;;  %v335_v30 = vsel %vm45_vm0, %v9952_v60, %v8588_v32 }
  0xa2   :  { %v8597_v38 = vpop.permute.xlu1 %8596 }
  0xa3   :  { %v8599_v44 = vunpack.i.h.bf16 %v8597_v38  ;;  %v8598_v45 = vunpack.i.l.bf16 %v8597_v38  ;;  %v352_v20 = vsel %vm341_vm1, %v335_v30, %v8593_v37  ;;  %v353_v49 = vsel %vm341_vm1, %v336_v41, %v8594_v34  ;;  %v9481_v38 = vld [vmem:[%s12700_s1 + $0x80] sm:$0xff]   ;;  %v9482_v41 = vld [vmem:[%s12700_s1 + $0x78] sm:$0xff]   ;;  %v9483_v30 = vld [vmem:[%s12700_s1 + $0x70] sm:$0xff]  }
  0xa4   :  { %559 = vmatmul.mubr.bf16.gmra.mxu0 %v381_v18  ;;  %v8602_v43 = vpop.permute.xlu0 %8601 }
  0xa5   :  { %7161 = vmatprep.mubr.msk.bf16.mxu0 %vm45_vm0, %v384_v0  ;;  %v8604_v50 = vunpack.i.h.bf16 %v8602_v43  ;;  %v8603_v51 = vunpack.i.l.bf16 %v8602_v43  ;;  %v369_v21 = vsel %vm358_vm2, %v352_v20, %v8598_v45  ;;  %v370_v60 = vsel %vm358_vm2, %v353_v49, %v8599_v44  ;;  %v9486_v43 = vld [vmem:[%s12700_s1 + $0x58] sm:$0xff]   ;;  %v9487_v44 = vld [vmem:[%s12700_s1 + $0x50] sm:$0xff]   ;;  %v10128_v45 = vld [vmem:[%s12701_s2] ss:$0 sm:$0xff] }
  0xa6   :  { %v8607_v46 = vpop.permute.xlu1 %8606  ;;  %v385_v47 = vpack.c.bf16 %v370_v60, %v369_v21 }
  0xa7   :  { %v8609_v52 = vunpack.i.h.bf16 %v8607_v46  ;;  %v8608_v53 = vunpack.i.l.bf16 %v8607_v46  ;;  %v338_v55 = vsel %vm45_vm0, %v9977_v35, %v8604_v50  ;;  %v337_v56 = vsel %vm45_vm0, %v9962_v23, %v8603_v51 }
  0xa8   :  { %v8612_v54 = vpop.permute.xlu0 %8611 }
  0xa9   :  { %v8614_v28 = vunpack.i.h.bf16 %v8612_v54  ;;  %v8613_v22 = vunpack.i.l.bf16 %v8612_v54  ;;  %v354_v59 = vsel %vm341_vm1, %v337_v56, %v8608_v53  ;;  %v355_v61 = vsel %vm341_vm1, %v338_v55, %v8609_v52  ;;  %v9488_v55 = vld [vmem:[%s12700_s1 + $0x98] sm:$0xff]  }
  0xaa   :  { %v8617_v40 = vpop.permute.xlu1 %8616 }
  0xab   :  { %v8619_v62 = vunpack.i.h.bf16 %v8617_v40  ;;  %v8618_v63 = vunpack.i.l.bf16 %v8617_v40  ;;  %v371_v35 = vsel %vm358_vm2, %v354_v59, %v8613_v22  ;;  %v372_v23 = vsel %vm358_vm2, %v355_v61, %v8614_v28  ;;  %v9489_v22 = vld [vmem:[%s12700_s1 + $0x90] sm:$0xff]  }
  0xac   :  { %567 = vmatmul.mubr.bf16.gmra.mxu0 %v383_v42  ;;  %v8622_v0 = vpop.permute.xlu0 %8621  ;;  %v387_v29 = vpack.c.bf16 %v372_v23, %v371_v35  ;;  %v9485_v42 = vld [vmem:[%s12700_s1 + $0x60] sm:$0xff]  }
  0xad   :  { %7162 = vmatprep.mubr.msk.bf16.mxu0 %vm45_vm0, %v386_v39  ;;  %v8624_v18 = vunpack.i.h.bf16 %v8622_v0  ;;  %v8623_v19 = vunpack.i.l.bf16 %v8622_v0  ;;  %v340_v25 = vsel %vm45_vm0, %v9990_v48, %v8619_v62  ;;  %v339_v26 = vsel %vm45_vm0, %v9979_v36, %v8618_v63  ;;  %v9480_v36 = vld [vmem:[%s12700_s1 + $0x88] sm:$0xff]  }
  0xae   :  { %v8627_v24 = vpop.permute.xlu1 %8626  ;;  %1049 = vmatpush1.bf16.msra.mxu1 %v9480_v36  ;;  %v9484_v39 = vld [vmem:[%s12700_s1 + $0x68] sm:$0xff]  }
  0xaf   :  { %v8629_v31 = vunpack.i.h.bf16 %v8627_v24  ;;  %v8628_v32 = vunpack.i.l.bf16 %v8627_v24  ;;  %v356_v58 = vsel %vm341_vm1, %v339_v26, %v8623_v19  ;;  %v357_v33 = vsel %vm341_vm1, %v340_v25, %v8624_v18  ;;  %1050 = vmatprep.subr.bf16.mxu1 %v9709_v4 }
  0xb1   :  { %v373_v34 = vsel %vm358_vm2, %v356_v58, %v8628_v32  ;;  %v374_v48 = vsel %vm358_vm2, %v357_v33, %v8629_v31 }
  0xb2   :  { %v389_v37 = vpack.c.bf16 %v374_v48, %v373_v34  ;;  %1051 = vmatpush1.bf16.msra.mxu1 %v9481_v38 }
  0xb3   :  { %1052 = vmatprep.subr.bf16.mxu1 %v9709_v4 }
  0xb4   :  { %575 = vmatmul.mubr.bf16.gmra.mxu0 %v385_v47 }
  0xb5   :  { %7163 = vmatprep.mubr.msk.bf16.mxu0 %vm45_vm0, %v388_v57 }
  0xb6   :  { %1053 = vmatpush1.bf16.msra.mxu1 %v9482_v41 }
  0xb7   :  { %1054 = vmatprep.subr.bf16.mxu1 %v9709_v4 }
  0xba   :  { %1055 = vmatpush1.bf16.msra.mxu1 %v9483_v30 }
  0xbb   :  { %1056 = vmatprep.subr.bf16.mxu1 %v9709_v4 }
  0xbc   :  { %583 = vmatmul.mubr.bf16.gmra.mxu0 %v387_v29 }
  0xbd   :  { %7164 = vmatprep.mubr.msk.bf16.mxu0 %vm45_vm0, %v390_v27 }
  0xbe   :  { %1057 = vmatpush1.bf16.msra.mxu1 %v9484_v39 }
  0xbf   :  { %1058 = vmatprep.subr.bf16.mxu1 %v9709_v4 }
  0xc2   :  { %1059 = vmatpush1.bf16.msra.mxu1 %v9485_v42 }
  0xc3   :  { %1060 = vmatprep.subr.bf16.mxu1 %v9709_v4 }
  0xc4   :  { %591 = vmatmul.mubr.bf16.gmra.mxu0 %v389_v37 }
  0xc6   :  { %1061 = vmatpush1.bf16.msra.mxu1 %v9486_v43 }
  0xc7   :  { %1062 = vmatprep.subr.bf16.mxu1 %v9709_v4 }
  0xca   :  { %1063 = vmatpush1.bf16.msra.mxu1 %v9487_v44 }
  0xcb   :  { %1076 = vmatprep.subr.bf16.mxu1 %v9709_v4 }
  0xce   :  { %1077 = vmatpush2.bf16.msra.mxu1 %v9488_v55 }
  0xcf   :  { %1078 = vmatprep.subr.bf16.mxu1 %v9709_v4 }
  0xd2   :  { %1079 = vmatpush2.bf16.msra.mxu1 %v9489_v22 }
  0xd3   :  { %2160 = vmatprep.subr.bf16.mxu1 %v9709_v4 }
 0x14c   :  { %v536_v46 = vpop.f32.mrf.mxu0 }
 0x14d   :  { %v537_v20 = vadd.f32 %v10128_v45, %v536_v46 }
 0x14e   :  { %v538_v49 = vpop.f32.mrf.mxu0 }
 0x14f   :  { %v599_v50 = vmax.f32 %v537_v20, 0.0 }
 0x150   :  { %v539_v51 = vpop.f32.mrf.mxu0 }
 0x151   :  { %v10132_v21 = vadd.f32 %v599_v50, %v9787_v1  ;;  %v540_v60 = vadd.f32 %v10128_v45, %v539_v51 }
 0x152   :  { %v541_v52 = vpop.f32.mrf.mxu0 }
 0x153   :  { %631 = vst.msk [vmem:[#allocation2 + $0x10] sm:$0xff] %vm45_vm0, %v10132_v21  ;;  %v600_v53 = vmax.f32 %v540_v60, 0.0 }
 0x154   :  { %v544_v54 = vpop.f32.mrf.mxu0 }
 0x155   :  { %v10141_v56 = vadd.f32 %v600_v53, %v9792_v2  ;;  %v545_v57 = vadd.f32 %v10128_v45, %v544_v54 }
 0x156   :  { %v546_v47 = vpop.f32.mrf.mxu0 }
 0x157   :  { %632 = vst.msk [vmem:[#allocation2 + $0x18] sm:$0xff] %vm45_vm0, %v10141_v56  ;;  %v601_v1 = vmax.f32 %v545_v57, 0.0  ;;  %v920_v40 = vpack.c.bf16 %v10141_v56, %v10132_v21 }
 0x158   :  { %v547_v28 = vpop.f32.mrf.mxu0 }
 0x159   :  { %v10153_v2 = vadd.f32 %v601_v1, %v9800_v3  ;;  %v548_v59 = vadd.f32 %v10128_v45, %v547_v28  ;;  %7197 = vmatprep.mubr.msk.bf16.mxu1 %vm45_vm0, %v920_v40 }
 0x15a   :  { %v549_v61 = vpop.f32.mrf.mxu0  ;;  %v663_v18 = vld [vmem:[#allocation2 + $0xc] sm:$0xff] }
 0x15b   :  { %633 = vst.msk [vmem:[#allocation2 + $0x20] sm:$0xff] %vm45_vm0, %v10153_v2  ;;  %v602_v62 = vmax.f32 %v548_v59, 0.0  ;;  %v679_v31 = vld [vmem:[#allocation2 + $0xe] sm:$0xff] }
 0x15c   :  { %v552_v63 = vpop.f32.mrf.mxu0 }
 0x15d   :  { %v10161_v0 = vadd.f32 %v602_v62, %v9811_v5  ;;  %v553_v35 = vadd.f32 %v10128_v45, %v552_v63 }
 0x15e   :  { %v664_v3 = vld [vmem:[#allocation2 + $0x14] sm:$0xff]  ;;  %v554_v23 = vpop.f32.mrf.mxu0 }
 0x15f   :  { %634 = vst.msk [vmem:[#allocation2 + $0x28] sm:$0xff] %vm45_vm0, %v10161_v0  ;;  %v603_v19 = vmax.f32 %v553_v35, 0.0  ;;  %v8635_v24 = vpack.i.bf16 %v664_v3, %v663_v18  ;;  %v680_v25 = vld [vmem:[#allocation2 + $0x16] sm:$0xff] }
 0x160   :  { %v555_v26 = vpop.f32.mrf.mxu0  ;;  %v8640_v58 = vpack.i.bf16 %v680_v25, %v679_v31 }
 0x161   :  { %v10167_v27 = vadd.f32 %v603_v19, %v9818_v6  ;;  %v556_v29 = vadd.f32 %v10128_v45, %v555_v26  ;;  %8636 = vrot.lane.b32.xlu1 %v8635_v24, %s9712_s28  ;;  %8631 = vrot.lane.b32.xlu0 %v8635_v24, %s9710_s0 }
 0x162   :  { %v557_v5 = vpop.f32.mrf.mxu0  ;;  %v665_v48 = vld [vmem:[#allocation2 + $0x1c] sm:$0xff] }
 0x163   :  { %635 = vst.msk [vmem:[#allocation2 + $0x30] sm:$0xff] %vm45_vm0, %v10167_v27  ;;  %v604_v32 = vmax.f32 %v556_v29, 0.0  ;;  %v681_v43 = vld [vmem:[#allocation2 + $0x1e] sm:$0xff] }
 0x164   :  { %v560_v33 = vpop.f32.mrf.mxu0 }
 0x165   :  { %v10175_v34 = vadd.f32 %v604_v32, %v9823_v7  ;;  %v561_v6 = vadd.f32 %v10128_v45, %v560_v33  ;;  %8641 = vrot.lane.b32.xlu0 %v8640_v58, %s9711_s27 }
 0x166   :  { %v666_v37 = vld [vmem:[#allocation2 + $0x24] sm:$0xff]  ;;  %v562_v36 = vpop.f32.mrf.mxu0 }
 0x167   :  { %636 = vst.msk [vmem:[#allocation2 + $0x38] sm:$0xff] %vm45_vm0, %v10175_v34  ;;  %v605_v38 = vmax.f32 %v561_v6, 0.0  ;;  %v8650_v41 = vpack.i.bf16 %v666_v37, %v665_v48  ;;  %v682_v30 = vld [vmem:[#allocation2 + $0x26] sm:$0xff] }
 0x168   :  { %v563_v39 = vpop.f32.mrf.mxu0  ;;  %v8655_v20 = vpack.i.bf16 %v682_v30, %v681_v43 }
 0x169   :  { %v10182_v42 = vadd.f32 %v605_v38, %v9834_v8  ;;  %v564_v7 = vadd.f32 %v10128_v45, %v563_v39  ;;  %8651 = vrot.lane.b32.xlu0 %v8650_v41, %s9712_s28  ;;  %8646 = vrot.lane.b32.xlu1 %v8650_v41, %s9710_s0 }
 0x16a   :  { %v565_v44 = vpop.f32.mrf.mxu0  ;;  %v667_v51 = vld [vmem:[#allocation2 + $0x2c] sm:$0xff] }
 0x16b   :  { %637 = vst.msk [vmem:[#allocation2 + $0x40] sm:$0xff] %vm45_vm0, %v10182_v42  ;;  %v606_v46 = vmax.f32 %v564_v7, 0.0  ;;  %v683_v1 = vld [vmem:[#allocation2 + $0x2e] sm:$0xff] }
 0x16c   :  { %v568_v49 = vpop.f32.mrf.mxu0 }
 0x16d   :  { %v10190_v50 = vadd.f32 %v606_v46, %v9839_v9  ;;  %v569_v8 = vadd.f32 %v10128_v45, %v568_v49  ;;  %8656 = vrot.lane.b32.xlu1 %v8655_v20, %s9711_s27 }
 0x16e   :  { %v668_v60 = vld [vmem:[#allocation2 + $0x34] sm:$0xff]  ;;  %v570_v52 = vpop.f32.mrf.mxu0 }
 0x16f   :  { %638 = vst.msk [vmem:[#allocation2 + $0x48] sm:$0xff] %vm45_vm0, %v10190_v50  ;;  %v607_v53 = vmax.f32 %v569_v8, 0.0  ;;  %v8660_v54 = vpack.i.bf16 %v668_v60, %v667_v51  ;;  %v684_v55 = vld [vmem:[#allocation2 + $0x36] sm:$0xff] }
 0x170   :  { %v571_v57 = vpop.f32.mrf.mxu0  ;;  %v8670_v22 = vpack.i.bf16 %v684_v55, %v683_v1 }
 0x171   :  { %v10197_v47 = vadd.f32 %v607_v53, %v9844_v10  ;;  %v572_v9 = vadd.f32 %v10128_v45, %v571_v57  ;;  %8661 = vrot.lane.b32.xlu0 %v8660_v54, %s9710_s0  ;;  %8666 = vrot.lane.b32.xlu1 %v8660_v54, %s9712_s28 }
 0x172   :  { %v573_v40 = vpop.f32.mrf.mxu0  ;;  %v669_v62 = vld [vmem:[#allocation2 + $0x3c] sm:$0xff] }
 0x173   :  { %639 = vst.msk [vmem:[#allocation2 + $0x60] sm:$0xff] %vm45_vm0, %v10197_v47  ;;  %v608_v28 = vmax.f32 %v572_v9, 0.0  ;;  %v685_v25 = vld [vmem:[#allocation2 + $0x3e] sm:$0xff] }
 0x174   :  { %v576_v59 = vpop.f32.mrf.mxu0 }
 0x175   :  { %v10205_v61 = vadd.f32 %v608_v28, %v9853_v11  ;;  %v577_v10 = vadd.f32 %v10128_v45, %v576_v59  ;;  %8671 = vrot.lane.b32.xlu0 %v8670_v22, %s9711_s27 }
 0x176   :  { %v670_v63 = vld [vmem:[#allocation2 + $0x44] sm:$0xff]  ;;  %v578_v35 = vpop.f32.mrf.mxu0 }
 0x177   :  { %640 = vst.msk [vmem:[#allocation2 + $0x68] sm:$0xff] %vm45_vm0, %v10205_v61  ;;  %v609_v3 = vmax.f32 %v577_v10, 0.0  ;;  %v8680_v23 = vpack.i.bf16 %v670_v63, %v669_v62  ;;  %v686_v18 = vld [vmem:[#allocation2 + $0x46] sm:$0xff] }
 0x178   :  { %v579_v19 = vpop.f32.mrf.mxu0  ;;  %v8685_v5 = vpack.i.bf16 %v686_v18, %v685_v25 }
 0x179   :  { %v10212_v24 = vadd.f32 %v609_v3, %v9860_v12  ;;  %v580_v11 = vadd.f32 %v10128_v45, %v579_v19  ;;  %8681 = vrot.lane.b32.xlu0 %v8680_v23, %s9712_s28  ;;  %8676 = vrot.lane.b32.xlu1 %v8680_v23, %s9710_s0  ;;  %v10261_v19 = vld [vmem:[#allocation2 + $0x8] sm:$0xff] }
 0x17a   :  { %v581_v26 = vpop.f32.mrf.mxu0  ;;  %v671_v6 = vld [vmem:[#allocation2 + $0x5c] sm:$0xff] }
 0x17b   :  { %641 = vst.msk [vmem:[#allocation2 + $0x70] sm:$0xff] %vm45_vm0, %v10212_v24  ;;  %v610_v29 = vmax.f32 %v580_v11, 0.0  ;;  %v687_v39 = vld [vmem:[#allocation2 + $0x5e] sm:$0xff] }
 0x17c   :  { %v584_v31 = vpop.f32.mrf.mxu0 }
 0x17d   :  { %v10220_v32 = vadd.f32 %v610_v29, %v9865_v13  ;;  %v585_v12 = vadd.f32 %v10128_v45, %v584_v31  ;;  %8686 = vrot.lane.b32.xlu1 %v8685_v5, %s9711_s27  ;;  %v648_v31 = vld [vmem:[#allocation2 + $0x10] sm:$0xff] }
 0x17e   :  { %v672_v58 = vld [vmem:[#allocation2 + $0x64] sm:$0xff]  ;;  %v586_v33 = vpop.f32.mrf.mxu0 }
 0x17f   :  { %642 = vst.msk [vmem:[#allocation2 + $0x78] sm:$0xff] %vm45_vm0, %v10220_v32  ;;  %v611_v48 = vmax.f32 %v585_v12, 0.0  ;;  %v8690_v37 = vpack.i.bf16 %v672_v58, %v671_v6  ;;  %v688_v36 = vld [vmem:[#allocation2 + $0x66] sm:$0xff] }
 0x180   :  { %v587_v38 = vpop.f32.mrf.mxu0  ;;  %v8700_v43 = vpack.i.bf16 %v688_v36, %v687_v39 }
 0x181   :  { %v10227_v41 = vadd.f32 %v611_v48, %v9876_v14  ;;  %v588_v13 = vadd.f32 %v10128_v45, %v587_v38  ;;  %8691 = vrot.lane.b32.xlu0 %v8690_v37, %s9710_s0  ;;  %8696 = vrot.lane.b32.xlu1 %v8690_v37, %s9712_s28 }
 0x182   :  { %v589_v30 = vpop.f32.mrf.mxu0  ;;  %v673_v20 = vld [vmem:[#allocation2 + $0x6c] sm:$0xff] }
 0x183   :  { %643 = vst.msk [vmem:[#allocation2 + $0x80] sm:$0xff] %vm45_vm0, %v10227_v41  ;;  %v612_v7 = vmax.f32 %v588_v13, 0.0  ;;  %v689_v55 = vld [vmem:[#allocation2 + $0x6e] sm:$0xff] }
 0x184   :  { %v592_v44 = vpop.f32.mrf.mxu0 }
 0x185   :  { %v10235_v46 = vadd.f32 %v612_v7, %v9881_v15  ;;  %v593_v14 = vadd.f32 %v10128_v45, %v592_v44  ;;  %8701 = vrot.lane.b32.xlu0 %v8700_v43, %s9711_s27 }
 0x186   :  { %v674_v49 = vld [vmem:[#allocation2 + $0x74] sm:$0xff]  ;;  %v594_v8 = vpop.f32.mrf.mxu0 }
 0x187   :  { %644 = vst.msk [vmem:[#allocation2 + $0x88] sm:$0xff] %vm45_vm0, %v10235_v46  ;;  %v613_v51 = vmax.f32 %v593_v14, 0.0  ;;  %v8710_v60 = vpack.i.bf16 %v674_v49, %v673_v20  ;;  %v690_v52 = vld [vmem:[#allocation2 + $0x76] sm:$0xff]  ;;  %v922_v14 = vpack.c.bf16 %v10161_v0, %v10153_v2 }
 0x188   :  { %v595_v53 = vpop.f32.mrf.mxu0  ;;  %v8715_v1 = vpack.i.bf16 %v690_v52, %v689_v55  ;;  %v649_v8 = vld [vmem:[#allocation2 + $0x18] sm:$0xff] }
 0x189   :  { %v10242_v54 = vadd.f32 %v613_v51, %v9886_v16  ;;  %v596_v15 = vadd.f32 %v10128_v45, %v595_v53  ;;  %8711 = vrot.lane.b32.xlu0 %v8710_v60, %s9712_s28  ;;  %8706 = vrot.lane.b32.xlu1 %v8710_v60, %s9710_s0  ;;  %v650_v51 = vld [vmem:[#allocation2 + $0x20] sm:$0xff] }
 0x18a   :  { %v597_v57 = vpop.f32.mrf.mxu0  ;;  %v675_v16 = vld [vmem:[#allocation2 + $0x7c] sm:$0xff] }
 0x18b   :  { %645 = vst.msk [vmem:[#allocation2 + $0x90] sm:$0xff] %vm45_vm0, %v10242_v54  ;;  %v614_v9 = vmax.f32 %v596_v15, 0.0  ;;  %v691_v59 = vld [vmem:[#allocation2 + $0x7e] sm:$0xff] }
 0x18d   :  { %v10250_v40 = vadd.f32 %v614_v9, %v9895_v17  ;;  %8716 = vrot.lane.b32.xlu1 %v8715_v1, %s9711_s27 }
 0x18e   :  { %v676_v28 = vld [vmem:[#allocation2 + $0x84] sm:$0xff] }
 0x18f   :  { %646 = vst.msk [vmem:[#allocation2 + $0x98] sm:$0xff] %vm45_vm0, %v10250_v40  ;;  %v8720_v45 = vpack.i.bf16 %v676_v28, %v675_v16  ;;  %v692_v22 = vld [vmem:[#allocation2 + $0x86] sm:$0xff] }
 0x190   :  { %v8730_v10 = vpack.i.bf16 %v692_v22, %v691_v59 }
 0x191   :  { %8721 = vrot.lane.b32.xlu0 %v8720_v45, %s9710_s0  ;;  %8726 = vrot.lane.b32.xlu1 %v8720_v45, %s9712_s28 }
 0x192   :  { %v677_v62 = vld [vmem:[#allocation2 + $0x8c] sm:$0xff] }
 0x193   :  { %v693_v3 = vld [vmem:[#allocation2 + $0x8e] sm:$0xff] }
 0x195   :  { %8731 = vrot.lane.b32.xlu0 %v8730_v10, %s9711_s27 }
 0x196   :  { %v678_v17 = vld [vmem:[#allocation2 + $0x94] sm:$0xff] }
 0x197   :  { %v8740_v63 = vpack.i.bf16 %v678_v17, %v677_v62  ;;  %v694_v35 = vld [vmem:[#allocation2 + $0x96] sm:$0xff]  ;;  %v924_v62 = vpack.c.bf16 %v10175_v34, %v10167_v27  ;;  %v651_v17 = vld [vmem:[#allocation2 + $0x28] sm:$0xff] }
 0x198   :  { %v8745_v23 = vpack.i.bf16 %v694_v35, %v693_v3 }
 0x199   :  { %8741 = vrot.lane.b32.xlu0 %v8740_v63, %s9712_s28  ;;  %8736 = vrot.lane.b32.xlu1 %v8740_v63, %s9710_s0  ;;  %v652_v63 = vld [vmem:[#allocation2 + $0x30] sm:$0xff] }
 0x19d   :  { %8746 = vrot.lane.b32.xlu1 %v8745_v23, %s9711_s27 }
 0x1d3   :  { %v8637_v18 = vpop.permute.xlu1 %8636  ;;  %v8632_v11 = vpop.permute.xlu0 %8631 }
 0x1d4   :  { %v8634_v25 = vunpack.i.h.bf16 %v8632_v11  ;;  %v8633_v26 = vunpack.i.l.bf16 %v8632_v11  ;;  %v8639_v29 = vunpack.i.h.bf16 %v8637_v18  ;;  %v8638_v5 = vunpack.i.l.bf16 %v8637_v18 }
 0x1d6   :  { %v871_v12 = vsel %vm45_vm0, %v10261_v19, %v8633_v26  ;;  %v872_v58 = vsel %vm45_vm0, %v648_v31, %v8634_v25 }
 0x1d7   :  { %v8642_v33 = vpop.permute.xlu0 %8641  ;;  %v887_v37 = vsel %vm341_vm1, %v871_v12, %v8638_v5  ;;  %v888_v36 = vsel %vm341_vm1, %v872_v58, %v8639_v29 }
 0x1d8   :  { %v8644_v6 = vunpack.i.h.bf16 %v8642_v33  ;;  %v8643_v48 = vunpack.i.l.bf16 %v8642_v33 }
 0x1da   :  { %v903_v38 = vsel %vm358_vm2, %v887_v37, %v8643_v48  ;;  %v904_v13 = vsel %vm358_vm2, %v888_v36, %v8644_v6  ;;  %v926_v36 = vpack.c.bf16 %v10190_v50, %v10182_v42 }
 0x1db   :  { %v8652_v30 = vpop.permute.xlu0 %8651  ;;  %v8647_v39 = vpop.permute.xlu1 %8646  ;;  %v919_v7 = vpack.c.bf16 %v904_v13, %v903_v38 }
 0x1dc   :  { %v8649_v43 = vunpack.i.h.bf16 %v8647_v39  ;;  %v8648_v44 = vunpack.i.l.bf16 %v8647_v39  ;;  %v8654_v20 = vunpack.i.h.bf16 %v8652_v30  ;;  %v8653_v49 = vunpack.i.l.bf16 %v8652_v30  ;;  %v653_v30 = vld [vmem:[#allocation2 + $0x38] sm:$0xff]  ;;  %v654_v39 = vld [vmem:[#allocation2 + $0x40] sm:$0xff] }
 0x1dd   :  { %1081 = vmatmul.mubr.bf16.vlgmr.msra.gmra.mxu1 %v919_v7 }
 0x1de   :  { %v873_v60 = vsel %vm45_vm0, %v649_v8, %v8648_v44  ;;  %v874_v52 = vsel %vm45_vm0, %v650_v51, %v8649_v43  ;;  %7198 = vmatprep.mubr.msk.bf16.mxu1 %vm45_vm0, %v922_v14 }
 0x1df   :  { %v8657_v53 = vpop.permute.xlu1 %8656  ;;  %v889_v57 = vsel %vm341_vm1, %v873_v60, %v8653_v49  ;;  %v890_v9 = vsel %vm341_vm1, %v874_v52, %v8654_v20  ;;  %v10297_v52 = vld [vmem:[#allocation2 + $0x58] sm:$0xff] }
 0x1e0   :  { %v8659_v15 = vunpack.i.h.bf16 %v8657_v53  ;;  %v8658_v55 = vunpack.i.l.bf16 %v8657_v53 }
 0x1e2   :  { %v905_v1 = vsel %vm358_vm2, %v889_v57, %v8658_v55  ;;  %v906_v16 = vsel %vm358_vm2, %v890_v9, %v8659_v15 }
 0x1e3   :  { %v8662_v28 = vpop.permute.xlu0 %8661  ;;  %v8667_v45 = vpop.permute.xlu1 %8666  ;;  %v921_v22 = vpack.c.bf16 %v906_v16, %v905_v1  ;;  %v928_v1 = vpack.c.bf16 %v10205_v61, %v10197_v47  ;;  %v656_v16 = vld [vmem:[#allocation2 + $0x60] sm:$0xff] }
 0x1e4   :  { %v8664_v59 = vunpack.i.h.bf16 %v8662_v28  ;;  %v8663_v10 = vunpack.i.l.bf16 %v8662_v28  ;;  %v8669_v35 = vunpack.i.h.bf16 %v8667_v45  ;;  %v8668_v3 = vunpack.i.l.bf16 %v8667_v45 }
 0x1e5   :  { %1089 = vmatmul.mubr.bf16.gmra.mxu1 %v921_v22 }
 0x1e6   :  { %v876_v23 = vsel %vm45_vm0, %v652_v63, %v8664_v59  ;;  %v875_v18 = vsel %vm45_vm0, %v651_v17, %v8663_v10  ;;  %7199 = vmatprep.mubr.msk.bf16.mxu1 %vm45_vm0, %v924_v62 }
 0x1e7   :  { %v8672_v11 = vpop.permute.xlu0 %8671  ;;  %v891_v29 = vsel %vm341_vm1, %v875_v18, %v8668_v3  ;;  %v892_v5 = vsel %vm341_vm1, %v876_v23, %v8669_v35 }
 0x1e8   :  { %v8674_v25 = vunpack.i.h.bf16 %v8672_v11  ;;  %v8673_v26 = vunpack.i.l.bf16 %v8672_v11 }
 0x1ea   :  { %v907_v31 = vsel %vm358_vm2, %v891_v29, %v8673_v26  ;;  %v908_v12 = vsel %vm358_vm2, %v892_v5, %v8674_v25  ;;  %v930_v5 = vpack.c.bf16 %v10220_v32, %v10212_v24 }
 0x1eb   :  { %v8682_v58 = vpop.permute.xlu0 %8681  ;;  %v8677_v33 = vpop.permute.xlu1 %8676  ;;  %v923_v6 = vpack.c.bf16 %v908_v12, %v907_v31 }
 0x1ec   :  { %v8679_v48 = vunpack.i.h.bf16 %v8677_v33  ;;  %v8678_v37 = vunpack.i.l.bf16 %v8677_v33  ;;  %v8684_v38 = vunpack.i.h.bf16 %v8682_v58  ;;  %v8683_v13 = vunpack.i.l.bf16 %v8682_v58  ;;  %v657_v58 = vld [vmem:[#allocation2 + $0x68] sm:$0xff]  ;;  %v658_v33 = vld [vmem:[#allocation2 + $0x70] sm:$0xff] }
 0x1ed   :  { %1097 = vmatmul.mubr.bf16.gmra.mxu1 %v923_v6 }
 0x1ee   :  { %v878_v7 = vsel %vm45_vm0, %v654_v39, %v8679_v48  ;;  %v877_v43 = vsel %vm45_vm0, %v653_v30, %v8678_v37  ;;  %7200 = vmatprep.mubr.msk.bf16.mxu1 %vm45_vm0, %v926_v36 }
 0x1ef   :  { %v8687_v44 = vpop.permute.xlu1 %8686  ;;  %v893_v49 = vsel %vm341_vm1, %v877_v43, %v8683_v13  ;;  %v894_v8 = vsel %vm341_vm1, %v878_v7, %v8684_v38 }
 0x1f0   :  { %v8689_v14 = vunpack.i.h.bf16 %v8687_v44  ;;  %v8688_v20 = vunpack.i.l.bf16 %v8687_v44 }
 0x1f2   :  { %v909_v51 = vsel %vm358_vm2, %v893_v49, %v8688_v20  ;;  %v910_v60 = vsel %vm358_vm2, %v894_v8, %v8689_v14  ;;  %v932_v8 = vpack.c.bf16 %v10235_v46, %v10227_v41 }
 0x1f3   :  { %v8692_v53 = vpop.permute.xlu0 %8691  ;;  %v8697_v15 = vpop.permute.xlu1 %8696  ;;  %v925_v55 = vpack.c.bf16 %v910_v60, %v909_v51  ;;  %v659_v51 = vld [vmem:[#allocation2 + $0x78] sm:$0xff]  ;;  %v660_v60 = vld [vmem:[#allocation2 + $0x80] sm:$0xff] }
 0x1f4   :  { %v8694_v57 = vunpack.i.h.bf16 %v8692_v53  ;;  %v8693_v9 = vunpack.i.l.bf16 %v8692_v53  ;;  %v8699_v28 = vunpack.i.h.bf16 %v8697_v15  ;;  %v8698_v45 = vunpack.i.l.bf16 %v8697_v15 }
 0x1f5   :  { %1105 = vmatmul.mubr.bf16.gmra.mxu1 %v925_v55 }
 0x1f6   :  { %v880_v22 = vsel %vm45_vm0, %v656_v16, %v8694_v57  ;;  %v879_v59 = vsel %vm45_vm0, %v10297_v52, %v8693_v9  ;;  %7201 = vmatprep.mubr.msk.bf16.mxu1 %vm45_vm0, %v928_v1 }
 0x1f7   :  { %v8702_v10 = vpop.permute.xlu0 %8701  ;;  %v895_v63 = vsel %vm341_vm1, %v879_v59, %v8698_v45  ;;  %v896_v35 = vsel %vm341_vm1, %v880_v22, %v8699_v28 }
 0x1f8   :  { %v8704_v62 = vunpack.i.h.bf16 %v8702_v10  ;;  %v8703_v17 = vunpack.i.l.bf16 %v8702_v10 }
 0x1fa   :  { %v911_v3 = vsel %vm358_vm2, %v895_v63, %v8703_v17  ;;  %v912_v23 = vsel %vm358_vm2, %v896_v35, %v8704_v62 }
 0x1fb   :  { %v8712_v18 = vpop.permute.xlu0 %8711  ;;  %v8707_v11 = vpop.permute.xlu1 %8706  ;;  %v927_v25 = vpack.c.bf16 %v912_v23, %v911_v3  ;;  %v934_v3 = vpack.c.bf16 %v10250_v40, %v10242_v54 }
 0x1fc   :  { %v8709_v26 = vunpack.i.h.bf16 %v8707_v11  ;;  %v8708_v29 = vunpack.i.l.bf16 %v8707_v11  ;;  %v8714_v31 = vunpack.i.h.bf16 %v8712_v18  ;;  %v8713_v12 = vunpack.i.l.bf16 %v8712_v18  ;;  %v661_v11 = vld [vmem:[#allocation2 + $0x88] sm:$0xff] }
 0x1fd   :  { %1113 = vmatmul.mubr.bf16.gmra.mxu1 %v927_v25  ;;  %v662_v25 = vld [vmem:[#allocation2 + $0x90] sm:$0xff] }
 0x1fe   :  { %v882_v6 = vsel %vm45_vm0, %v658_v33, %v8709_v26  ;;  %v881_v48 = vsel %vm45_vm0, %v657_v58, %v8708_v29  ;;  %7202 = vmatprep.mubr.msk.bf16.mxu1 %vm45_vm0, %v930_v5 }
 0x1ff   :  { %v8717_v37 = vpop.permute.xlu1 %8716  ;;  %v897_v13 = vsel %vm341_vm1, %v881_v48, %v8713_v12  ;;  %v898_v30 = vsel %vm341_vm1, %v882_v6, %v8714_v31 }
 0x200   :  { %v8719_v36 = vunpack.i.h.bf16 %v8717_v37  ;;  %v8718_v38 = vunpack.i.l.bf16 %v8717_v37 }
 0x202   :  { %v913_v39 = vsel %vm358_vm2, %v897_v13, %v8718_v38  ;;  %v914_v7 = vsel %vm358_vm2, %v898_v30, %v8719_v36  ;;  %v9490_v36 = vld [vmem:[%s12700_s1 + $0xd8] sm:$0xff]   ;;  %v9491_v38 = vld [vmem:[%s12700_s1 + $0xd0] sm:$0xff]   ;;  %v9492_v13 = vld [vmem:[%s12700_s1 + $0xc8] sm:$0xff]  }
 0x203   :  { %v8722_v43 = vpop.permute.xlu0 %8721  ;;  %v8727_v44 = vpop.permute.xlu1 %8726  ;;  %v929_v14 = vpack.c.bf16 %v914_v7, %v913_v39  ;;  %1611 = vmatpush1.bf16.msra.mxu0 %v9490_v36  ;;  %v9493_v30 = vld [vmem:[%s12700_s1 + $0xc0] sm:$0xff]   ;;  %v9494_v39 = vld [vmem:[%s12700_s1 + $0xb8] sm:$0xff]   ;;  %v9495_v7 = vld [vmem:[%s12700_s1 + $0xb0] sm:$0xff]  }
 0x204   :  { %v8724_v20 = vunpack.i.h.bf16 %v8722_v43  ;;  %v8723_v49 = vunpack.i.l.bf16 %v8722_v43  ;;  %v8729_v53 = vunpack.i.h.bf16 %v8727_v44  ;;  %v8728_v15 = vunpack.i.l.bf16 %v8727_v44  ;;  %1612 = vmatprep.subr.bf16.mxu0 %v9709_v4  ;;  %v9496_v43 = vld [vmem:[%s12700_s1 + $0xa8] sm:$0xff]   ;;  %v9497_v44 = vld [vmem:[%s12700_s1 + $0xa0] sm:$0xff]  }
 0x205   :  { %1121 = vmatmul.mubr.bf16.gmra.mxu1 %v929_v14  ;;  %v10371_v14 = vld [vmem:[%s12701_s2 + $0x1] ss:$0 sm:$0xff] }
 0x206   :  { %v884_v55 = vsel %vm45_vm0, %v660_v60, %v8724_v20  ;;  %v883_v57 = vsel %vm45_vm0, %v659_v51, %v8723_v49  ;;  %7203 = vmatprep.mubr.msk.bf16.mxu1 %vm45_vm0, %v932_v8 }
 0x207   :  { %v8732_v9 = vpop.permute.xlu0 %8731  ;;  %v899_v28 = vsel %vm341_vm1, %v883_v57, %v8728_v15  ;;  %v900_v45 = vsel %vm341_vm1, %v884_v55, %v8729_v53  ;;  %1613 = vmatpush1.bf16.msra.mxu0 %v9491_v38  ;;  %v9498_v53 = vld [vmem:[%s12700_s1 + $0xe8] sm:$0xff]  }
 0x208   :  { %v8734_v1 = vunpack.i.h.bf16 %v8732_v9  ;;  %v8733_v16 = vunpack.i.l.bf16 %v8732_v9  ;;  %1614 = vmatprep.subr.bf16.mxu0 %v9709_v4 }
 0x20a   :  { %v915_v22 = vsel %vm358_vm2, %v899_v28, %v8733_v16  ;;  %v916_v59 = vsel %vm358_vm2, %v900_v45, %v8734_v1 }
 0x20b   :  { %v8742_v10 = vpop.permute.xlu0 %8741  ;;  %v8737_v62 = vpop.permute.xlu1 %8736  ;;  %v931_v17 = vpack.c.bf16 %v916_v59, %v915_v22  ;;  %1615 = vmatpush1.bf16.msra.mxu0 %v9492_v13 }
 0x20c   :  { %v8739_v63 = vunpack.i.h.bf16 %v8737_v62  ;;  %v8738_v35 = vunpack.i.l.bf16 %v8737_v62  ;;  %v8744_v23 = vunpack.i.h.bf16 %v8742_v10  ;;  %v8743_v18 = vunpack.i.l.bf16 %v8742_v10  ;;  %1616 = vmatprep.subr.bf16.mxu0 %v9709_v4 }
 0x20d   :  { %1129 = vmatmul.mubr.bf16.gmra.mxu1 %v931_v17 }
 0x20e   :  { %v886_v26 = vsel %vm45_vm0, %v662_v25, %v8739_v63  ;;  %v885_v29 = vsel %vm45_vm0, %v661_v11, %v8738_v35  ;;  %7204 = vmatprep.mubr.msk.bf16.mxu1 %vm45_vm0, %v934_v3 }
 0x20f   :  { %v8747_v5 = vpop.permute.xlu1 %8746  ;;  %v901_v58 = vsel %vm341_vm1, %v885_v29, %v8743_v18  ;;  %v902_v33 = vsel %vm341_vm1, %v886_v26, %v8744_v23  ;;  %1617 = vmatpush1.bf16.msra.mxu0 %v9493_v30 }
 0x210   :  { %v8749_v31 = vunpack.i.h.bf16 %v8747_v5  ;;  %v8748_v12 = vunpack.i.l.bf16 %v8747_v5  ;;  %1618 = vmatprep.subr.bf16.mxu0 %v9709_v4 }
 0x212   :  { %v917_v6 = vsel %vm358_vm2, %v901_v58, %v8748_v12  ;;  %v918_v48 = vsel %vm358_vm2, %v902_v33, %v8749_v31 }
 0x213   :  { %v933_v37 = vpack.c.bf16 %v918_v48, %v917_v6  ;;  %1619 = vmatpush1.bf16.msra.mxu0 %v9494_v39 }
 0x214   :  { %1620 = vmatprep.subr.bf16.mxu0 %v9709_v4 }
 0x215   :  { %1137 = vmatmul.mubr.bf16.gmra.mxu1 %v933_v37 }
 0x217   :  { %1621 = vmatpush1.bf16.msra.mxu0 %v9495_v7 }
 0x218   :  { %1622 = vmatprep.subr.bf16.mxu0 %v9709_v4 }
 0x21b   :  { %1623 = vmatpush1.bf16.msra.mxu0 %v9496_v43 }
 0x21c   :  { %1624 = vmatprep.subr.bf16.mxu0 %v9709_v4 }
 0x21f   :  { %1625 = vmatpush1.bf16.msra.mxu0 %v9497_v44 }
 0x220   :  { %1638 = vmatprep.subr.bf16.mxu0 %v9709_v4 }
 0x223   :  { %1639 = vmatpush2.bf16.msra.mxu0 %v9498_v53 }
 0x224   :  { %1640 = vmatprep.subr.bf16.mxu0 %v9709_v4 }
 0x29d   :  { %v1082_v20 = vpop.f32.mrf.mxu1 }
 0x29e   :  { %v1083_v49 = vadd.f32 %v10371_v14, %v1082_v20 }
 0x29f   :  { %v1084_v8 = vpop.f32.mrf.mxu1 }
 0x2a0   :  { %v1145_v51 = vmax.f32 %v1083_v49, 0.0 }
 0x2a1   :  { %v1085_v60 = vpop.f32.mrf.mxu1 }
 0x2a2   :  { %v10378_v15 = vadd.f32 %v1145_v51, %v10132_v21  ;;  %v1086_v55 = vadd.f32 %v10371_v14, %v1085_v60  ;;  %v9499_v21 = vld [vmem:[%s12700_s1 + $0xe0] sm:$0xff]  }
 0x2a3   :  { %v1087_v57 = vpop.f32.mrf.mxu1  ;;  %1641 = vmatpush2.bf16.msra.mxu0 %v9499_v21 }
 0x2a4   :  { %1177 = vst.msk [vmem:[#allocation2 + $0x10] sm:$0xff] %vm45_vm0, %v10378_v15  ;;  %v1146_v9 = vmax.f32 %v1086_v55, 0.0 }
 0x2a5   :  { %v1090_v1 = vpop.f32.mrf.mxu1 }
 0x2a6   :  { %v10385_v16 = vadd.f32 %v1146_v9, %v10141_v56  ;;  %v1091_v28 = vadd.f32 %v10371_v14, %v1090_v1 }
 0x2a7   :  { %v1092_v45 = vpop.f32.mrf.mxu1 }
 0x2a8   :  { %1178 = vst.msk [vmem:[#allocation2 + $0x18] sm:$0xff] %vm45_vm0, %v10385_v16  ;;  %v1147_v22 = vmax.f32 %v1091_v28, 0.0  ;;  %v1482_v59 = vpack.c.bf16 %v10385_v16, %v10378_v15 }
 0x2a9   :  { %v1093_v10 = vpop.f32.mrf.mxu1 }
 0x2aa   :  { %v10396_v62 = vadd.f32 %v1147_v22, %v10153_v2  ;;  %v1094_v56 = vadd.f32 %v10371_v14, %v1093_v10  ;;  %7237 = vmatprep.mubr.msk.bf16.mxu0 %vm45_vm0, %v1482_v59 }
 0x2ab   :  { %v1095_v17 = vpop.f32.mrf.mxu1  ;;  %v1226_v63 = vld [vmem:[#allocation2 + $0x10] sm:$0xff] }
 0x2ac   :  { %1179 = vst.msk [vmem:[#allocation2 + $0x20] sm:$0xff] %vm45_vm0, %v10396_v62  ;;  %v1148_v35 = vmax.f32 %v1094_v56, 0.0  ;;  %v8750_v3 = vpack.i.bf16 %v1226_v63, %v10261_v19  ;;  %v1209_v25 = vld [vmem:[#allocation2 + $0xe] sm:$0xff] }
 0x2ad   :  { %v1098_v23 = vpop.f32.mrf.mxu1  ;;  %v10417_v33 = vld [vmem:[#allocation2 + $0xc] sm:$0xff] }
 0x2ae   :  { %v10404_v18 = vadd.f32 %v1148_v35, %v10161_v0  ;;  %v1099_v11 = vadd.f32 %v10371_v14, %v1098_v23  ;;  %8751 = vrot.lane.b32.xlu1 %v8750_v3, %s9712_s28 }
 0x2af   :  { %v1100_v2 = vpop.f32.mrf.mxu1  ;;  %v1210_v26 = vld [vmem:[#allocation2 + $0x16] sm:$0xff] }
 0x2b0   :  { %1180 = vst.msk [vmem:[#allocation2 + $0x28] sm:$0xff] %vm45_vm0, %v10404_v18  ;;  %v1149_v29 = vmax.f32 %v1099_v11, 0.0  ;;  %v8755_v5 = vpack.i.bf16 %v1210_v26, %v1209_v25  ;;  %v10410_v12 = vld [vmem:[#allocation2 + $0x14] sm:$0xff] }
 0x2b1   :  { %v1101_v31 = vpop.f32.mrf.mxu1  ;;  %v8760_v48 = vpack.i.bf16 %v10410_v12, %v10417_v33  ;;  %v1227_v30 = vld [vmem:[#allocation2 + $0x18] sm:$0xff] }
 0x2b2   :  { %v10413_v19 = vadd.f32 %v1149_v29, %v10167_v27  ;;  %v1102_v0 = vadd.f32 %v10371_v14, %v1101_v31  ;;  %8756 = vrot.lane.b32.xlu0 %v8755_v5, %s9710_s0 }
 0x2b3   :  { %v1103_v58 = vpop.f32.mrf.mxu1  ;;  %v1228_v36 = vld [vmem:[#allocation2 + $0x20] sm:$0xff] }
 0x2b4   :  { %1181 = vst.msk [vmem:[#allocation2 + $0x30] sm:$0xff] %vm45_vm0, %v10413_v19  ;;  %v1150_v6 = vmax.f32 %v1102_v0, 0.0  ;;  %v1211_v39 = vld [vmem:[#allocation2 + $0x1e] sm:$0xff]  ;;  %v8765_v44 = vpack.i.bf16 %v1228_v36, %v1227_v30 }
 0x2b5   :  { %v1106_v37 = vpop.f32.mrf.mxu1  ;;  %v10438_v53 = vld [vmem:[#allocation2 + $0x1c] sm:$0xff] }
 0x2b6   :  { %v10424_v38 = vadd.f32 %v1150_v6, %v10175_v34  ;;  %v1107_v27 = vadd.f32 %v10371_v14, %v1106_v37  ;;  %8761 = vrot.lane.b32.xlu0 %v8760_v48, %s9711_s27 }
 0x2b7   :  { %v1108_v13 = vpop.f32.mrf.mxu1  ;;  %v1212_v7 = vld [vmem:[#allocation2 + $0x26] sm:$0xff] }
 0x2b8   :  { %1182 = vst.msk [vmem:[#allocation2 + $0x38] sm:$0xff] %vm45_vm0, %v10424_v38  ;;  %v1151_v43 = vmax.f32 %v1107_v27, 0.0  ;;  %v8770_v20 = vpack.i.bf16 %v1212_v7, %v1211_v39  ;;  %v10430_v8 = vld [vmem:[#allocation2 + $0x24] sm:$0xff] }
 0x2b9   :  { %v1109_v49 = vpop.f32.mrf.mxu1  ;;  %v8775_v57 = vpack.i.bf16 %v10430_v8, %v10438_v53  ;;  %v1229_v59 = vld [vmem:[#allocation2 + $0x28] sm:$0xff] }
 0x2ba   :  { %v10433_v34 = vadd.f32 %v1151_v43, %v10182_v42  ;;  %v1110_v51 = vadd.f32 %v10371_v14, %v1109_v49  ;;  %8766 = vrot.lane.b32.xlu0 %v8765_v44, %s9712_s28  ;;  %8771 = vrot.lane.b32.xlu1 %v8770_v20, %s9710_s0 }
 0x2bb   :  { %v1111_v60 = vpop.f32.mrf.mxu1  ;;  %v1230_v1 = vld [vmem:[#allocation2 + $0x30] sm:$0xff] }
 0x2bc   :  { %1183 = vst.msk [vmem:[#allocation2 + $0x40] sm:$0xff] %vm45_vm0, %v10433_v34  ;;  %v1152_v55 = vmax.f32 %v1110_v51, 0.0  ;;  %v1213_v21 = vld [vmem:[#allocation2 + $0x2e] sm:$0xff]  ;;  %v8780_v17 = vpack.i.bf16 %v1230_v1, %v1229_v59 }
 0x2bd   :  { %v1114_v9 = vpop.f32.mrf.mxu1  ;;  %v10459_v11 = vld [vmem:[#allocation2 + $0x2c] sm:$0xff] }
 0x2be   :  { %v10445_v42 = vadd.f32 %v1152_v55, %v10190_v50  ;;  %v1115_v28 = vadd.f32 %v10371_v14, %v1114_v9  ;;  %8776 = vrot.lane.b32.xlu1 %v8775_v57, %s9711_s27 }
 0x2bf   :  { %v1116_v45 = vpop.f32.mrf.mxu1  ;;  %v1214_v22 = vld [vmem:[#allocation2 + $0x36] sm:$0xff] }
 0x2c0   :  { %1184 = vst.msk [vmem:[#allocation2 + $0x48] sm:$0xff] %vm45_vm0, %v10445_v42  ;;  %v1153_v10 = vmax.f32 %v1115_v28, 0.0  ;;  %v8785_v56 = vpack.i.bf16 %v1214_v22, %v1213_v21  ;;  %v10451_v35 = vld [vmem:[#allocation2 + $0x34] sm:$0xff] }
 0x2c1   :  { %v1117_v63 = vpop.f32.mrf.mxu1  ;;  %v8790_v25 = vpack.i.bf16 %v10451_v35, %v10459_v11  ;;  %v1231_v0 = vld [vmem:[#allocation2 + $0x38] sm:$0xff] }
 0x2c2   :  { %v10454_v50 = vadd.f32 %v1153_v10, %v10197_v47  ;;  %v1118_v3 = vadd.f32 %v10371_v14, %v1117_v63  ;;  %8786 = vrot.lane.b32.xlu0 %v8785_v56, %s9710_s0  ;;  %8781 = vrot.lane.b32.xlu1 %v8780_v17, %s9712_s28 }
 0x2c3   :  { %v1119_v23 = vpop.f32.mrf.mxu1  ;;  %v1232_v29 = vld [vmem:[#allocation2 + $0x40] sm:$0xff] }
 0x2c4   :  { %1185 = vst.msk [vmem:[#allocation2 + $0x60] sm:$0xff] %vm45_vm0, %v10454_v50  ;;  %v1154_v2 = vmax.f32 %v1118_v3, 0.0  ;;  %v1215_v58 = vld [vmem:[#allocation2 + $0x3e] sm:$0xff]  ;;  %v8795_v37 = vpack.i.bf16 %v1232_v29, %v1231_v0 }
 0x2c5   :  { %v1122_v26 = vpop.f32.mrf.mxu1  ;;  %v10480_v7 = vld [vmem:[#allocation2 + $0x3c] sm:$0xff] }
 0x2c6   :  { %v10466_v47 = vadd.f32 %v1154_v2, %v10205_v61  ;;  %v1123_v5 = vadd.f32 %v10371_v14, %v1122_v26  ;;  %8791 = vrot.lane.b32.xlu0 %v8790_v25, %s9711_s27 }
 0x2c7   :  { %v1124_v31 = vpop.f32.mrf.mxu1  ;;  %v1216_v6 = vld [vmem:[#allocation2 + $0x46] sm:$0xff] }
 0x2c8   :  { %1186 = vst.msk [vmem:[#allocation2 + $0x68] sm:$0xff] %vm45_vm0, %v10466_v47  ;;  %v1155_v48 = vmax.f32 %v1123_v5, 0.0  ;;  %v8800_v36 = vpack.i.bf16 %v1216_v6, %v1215_v58  ;;  %v10472_v13 = vld [vmem:[#allocation2 + $0x44] sm:$0xff] }
 0x2c9   :  { %v1125_v27 = vpop.f32.mrf.mxu1  ;;  %v8805_v44 = vpack.i.bf16 %v10472_v13, %v10480_v7 }
 0x2ca   :  { %v10475_v61 = vadd.f32 %v1155_v48, %v10212_v24  ;;  %v1126_v30 = vadd.f32 %v10371_v14, %v1125_v27  ;;  %8796 = vrot.lane.b32.xlu0 %v8795_v37, %s9712_s28  ;;  %8801 = vrot.lane.b32.xlu1 %v8800_v36, %s9710_s0 }
 0x2cb   :  { %v1127_v39 = vpop.f32.mrf.mxu1  ;;  %v1234_v49 = vld [vmem:[#allocation2 + $0x60] sm:$0xff] }
 0x2cc   :  { %1187 = vst.msk [vmem:[#allocation2 + $0x70] sm:$0xff] %vm45_vm0, %v10475_v61  ;;  %v1156_v43 = vmax.f32 %v1126_v30, 0.0  ;;  %v1217_v55 = vld [vmem:[#allocation2 + $0x5e] sm:$0xff]  ;;  %v8810_v28 = vpack.i.bf16 %v1234_v49, %v10297_v52 }
 0x2cd   :  { %v1130_v20 = vpop.f32.mrf.mxu1  ;;  %v10502_v10 = vld [vmem:[#allocation2 + $0x5c] sm:$0xff] }
 0x2ce   :  { %v10487_v24 = vadd.f32 %v1156_v43, %v10220_v32  ;;  %v1131_v51 = vadd.f32 %v10371_v14, %v1130_v20  ;;  %8806 = vrot.lane.b32.xlu1 %v8805_v44, %s9711_s27 }
 0x2cf   :  { %v1132_v60 = vpop.f32.mrf.mxu1  ;;  %v1218_v57 = vld [vmem:[#allocation2 + $0x66] sm:$0xff] }
 0x2d0   :  { %1188 = vst.msk [vmem:[#allocation2 + $0x78] sm:$0xff] %vm45_vm0, %v10487_v24  ;;  %v1157_v9 = vmax.f32 %v1131_v51, 0.0  ;;  %v8815_v1 = vpack.i.bf16 %v1218_v57, %v1217_v55  ;;  %v10494_v21 = vld [vmem:[#allocation2 + $0x64] sm:$0xff] }
 0x2d1   :  { %v1133_v45 = vpop.f32.mrf.mxu1  ;;  %v8820_v52 = vpack.i.bf16 %v10494_v21, %v10502_v10  ;;  %v1235_v2 = vld [vmem:[#allocation2 + $0x68] sm:$0xff] }
 0x2d2   :  { %v10497_v32 = vadd.f32 %v1157_v9, %v10227_v41  ;;  %v1134_v22 = vadd.f32 %v10371_v14, %v1133_v45  ;;  %8816 = vrot.lane.b32.xlu0 %v8815_v1, %s9710_s0  ;;  %8811 = vrot.lane.b32.xlu1 %v8810_v28, %s9712_s28 }
 0x2d3   :  { %v1135_v59 = vpop.f32.mrf.mxu1  ;;  %v1236_v63 = vld [vmem:[#allocation2 + $0x70] sm:$0xff] }
 0x2d4   :  { %1189 = vst.msk [vmem:[#allocation2 + $0x80] sm:$0xff] %vm45_vm0, %v10497_v32  ;;  %v1158_v56 = vmax.f32 %v1134_v22, 0.0  ;;  %v1219_v25 = vld [vmem:[#allocation2 + $0x6e] sm:$0xff]  ;;  %v8825_v5 = vpack.i.bf16 %v1236_v63, %v1235_v2 }
 0x2d5   :  { %v1138_v17 = vpop.f32.mrf.mxu1  ;;  %v10523_v37 = vld [vmem:[#allocation2 + $0x6c] sm:$0xff] }
 0x2d6   :  { %v10509_v41 = vadd.f32 %v1158_v56, %v10235_v46  ;;  %v1139_v3 = vadd.f32 %v10371_v14, %v1138_v17  ;;  %8821 = vrot.lane.b32.xlu0 %v8820_v52, %s9711_s27 }
 0x2d7   :  { %v1140_v23 = vpop.f32.mrf.mxu1  ;;  %v1220_v26 = vld [vmem:[#allocation2 + $0x76] sm:$0xff] }
 0x2d8   :  { %1190 = vst.msk [vmem:[#allocation2 + $0x88] sm:$0xff] %vm45_vm0, %v10509_v41  ;;  %v1159_v29 = vmax.f32 %v1139_v3, 0.0  ;;  %v8830_v31 = vpack.i.bf16 %v1220_v26, %v1219_v25  ;;  %v10515_v58 = vld [vmem:[#allocation2 + $0x74] sm:$0xff] }
 0x2d9   :  { %v1141_v0 = vpop.f32.mrf.mxu1  ;;  %v8835_v27 = vpack.i.bf16 %v10515_v58, %v10523_v37  ;;  %v1237_v43 = vld [vmem:[#allocation2 + $0x78] sm:$0xff] }
 0x2da   :  { %v10518_v46 = vadd.f32 %v1159_v29, %v10242_v54  ;;  %v1142_v6 = vadd.f32 %v10371_v14, %v1141_v0  ;;  %8826 = vrot.lane.b32.xlu0 %v8825_v5, %s9712_s28  ;;  %8831 = vrot.lane.b32.xlu1 %v8830_v31, %s9710_s0 }
 0x2db   :  { %v1143_v48 = vpop.f32.mrf.mxu1  ;;  %v1238_v30 = vld [vmem:[#allocation2 + $0x80] sm:$0xff] }
 0x2dc   :  { %1191 = vst.msk [vmem:[#allocation2 + $0x90] sm:$0xff] %vm45_vm0, %v10518_v46  ;;  %v1160_v36 = vmax.f32 %v1142_v6, 0.0  ;;  %v1221_v14 = vld [vmem:[#allocation2 + $0x7e] sm:$0xff]  ;;  %v8840_v20 = vpack.i.bf16 %v1238_v30, %v1237_v43 }
 0x2dd   :  { %v10539_v51 = vld [vmem:[#allocation2 + $0x7c] sm:$0xff] }
 0x2de   :  { %v10530_v54 = vadd.f32 %v1160_v36, %v10250_v40  ;;  %8836 = vrot.lane.b32.xlu1 %v8835_v27, %s9711_s27 }
 0x2df   :  { %v1222_v39 = vld [vmem:[#allocation2 + $0x86] sm:$0xff] }
 0x2e0   :  { %1192 = vst.msk [vmem:[#allocation2 + $0x98] sm:$0xff] %vm45_vm0, %v10530_v54  ;;  %v8845_v44 = vpack.i.bf16 %v1222_v39, %v1221_v14  ;;  %v10535_v49 = vld [vmem:[#allocation2 + $0x84] sm:$0xff] }
 0x2e1   :  { %v8850_v40 = vpack.i.bf16 %v10535_v49, %v10539_v51  ;;  %v1239_v55 = vld [vmem:[#allocation2 + $0x88] sm:$0xff] }
 0x2e2   :  { %8846 = vrot.lane.b32.xlu0 %v8845_v44, %s9710_s0  ;;  %8841 = vrot.lane.b32.xlu1 %v8840_v20, %s9712_s28 }
 0x2e3   :  { %v1240_v60 = vld [vmem:[#allocation2 + $0x90] sm:$0xff] }
 0x2e4   :  { %v1223_v57 = vld [vmem:[#allocation2 + $0x8e] sm:$0xff]  ;;  %v8855_v1 = vpack.i.bf16 %v1240_v60, %v1239_v55 }
 0x2e5   :  { %v10548_v22 = vld [vmem:[#allocation2 + $0x8c] sm:$0xff] }
 0x2e6   :  { %8851 = vrot.lane.b32.xlu0 %v8850_v40, %s9711_s27 }
 0x2e7   :  { %v1224_v9 = vld [vmem:[#allocation2 + $0x96] sm:$0xff] }
 0x2e8   :  { %v8860_v28 = vpack.i.bf16 %v1224_v9, %v1223_v57  ;;  %v10544_v45 = vld [vmem:[#allocation2 + $0x94] sm:$0xff] }
 0x2e9   :  { %v8865_v59 = vpack.i.bf16 %v10544_v45, %v10548_v22 }
 0x2ea   :  { %8856 = vrot.lane.b32.xlu0 %v8855_v1, %s9712_s28  ;;  %8861 = vrot.lane.b32.xlu1 %v8860_v28, %s9710_s0 }
 0x2ee   :  { %8866 = vrot.lane.b32.xlu1 %v8865_v59, %s9711_s27 }
 0x320   :  { %v8752_v52 = vpop.permute.xlu1 %8751 }
 0x321   :  { %v8754_v2 = vunpack.i.h.bf16 %v8752_v52  ;;  %v8753_v25 = vunpack.i.l.bf16 %v8752_v52 }
 0x324   :  { %v8757_v56 = vpop.permute.xlu0 %8756 }
 0x325   :  { %v8759_v17 = vunpack.i.h.bf16 %v8757_v56  ;;  %v8758_v63 = vunpack.i.l.bf16 %v8757_v56 }
 0x327   :  { %v1433_v3 = vsel %vm45_vm0, %v10417_v33, %v8758_v63  ;;  %v1434_v23 = vsel %vm45_vm0, %v10410_v12, %v8759_v17  ;;  %v1484_v12 = vpack.c.bf16 %v10404_v18, %v10396_v62 }
 0x328   :  { %v8762_v26 = vpop.permute.xlu0 %8761  ;;  %v1449_v31 = vsel %vm341_vm1, %v1433_v3, %v8753_v25  ;;  %v1450_v0 = vsel %vm341_vm1, %v1434_v23, %v8754_v2 }
 0x329   :  { %v8764_v29 = vunpack.i.h.bf16 %v8762_v26  ;;  %v8763_v5 = vunpack.i.l.bf16 %v8762_v26 }
 0x32b   :  { %v1465_v6 = vsel %vm358_vm2, %v1449_v31, %v8763_v5  ;;  %v1466_v48 = vsel %vm358_vm2, %v1450_v0, %v8764_v29 }
 0x32c   :  { %v1481_v36 = vpack.c.bf16 %v1466_v48, %v1465_v6  ;;  %v8767_v27 = vpop.permute.xlu0 %8766  ;;  %v8772_v30 = vpop.permute.xlu1 %8771 }
 0x32d   :  { %v8774_v33 = vunpack.i.h.bf16 %v8772_v30  ;;  %v8773_v14 = vunpack.i.l.bf16 %v8772_v30  ;;  %v8769_v39 = vunpack.i.h.bf16 %v8767_v27  ;;  %v8768_v43 = vunpack.i.l.bf16 %v8767_v27 }
 0x32e   :  { %1643 = vmatmul.mubr.bf16.vlgmr.msra.gmra.mxu0 %v1481_v36 }
 0x32f   :  { %v1435_v44 = vsel %vm45_vm0, %v10438_v53, %v8773_v14  ;;  %v1436_v20 = vsel %vm45_vm0, %v10430_v8, %v8774_v33  ;;  %7238 = vmatprep.mubr.msk.bf16.mxu0 %vm45_vm0, %v1484_v12  ;;  %v1486_v8 = vpack.c.bf16 %v10424_v38, %v10413_v19 }
 0x330   :  { %v8777_v40 = vpop.permute.xlu1 %8776  ;;  %v1451_v57 = vsel %vm341_vm1, %v1435_v44, %v8768_v43  ;;  %v1452_v9 = vsel %vm341_vm1, %v1436_v20, %v8769_v39 }
 0x331   :  { %v8779_v60 = vunpack.i.h.bf16 %v8777_v40  ;;  %v8778_v55 = vunpack.i.l.bf16 %v8777_v40 }
 0x333   :  { %v1467_v1 = vsel %vm358_vm2, %v1451_v57, %v8778_v55  ;;  %v1468_v28 = vsel %vm358_vm2, %v1452_v9, %v8779_v60 }
 0x334   :  { %v8787_v59 = vpop.permute.xlu0 %8786  ;;  %v8782_v56 = vpop.permute.xlu1 %8781  ;;  %v1483_v52 = vpack.c.bf16 %v1468_v28, %v1467_v1 }
 0x335   :  { %v8789_v53 = vunpack.i.h.bf16 %v8787_v59  ;;  %v8788_v17 = vunpack.i.l.bf16 %v8787_v59  ;;  %v8784_v63 = vunpack.i.h.bf16 %v8782_v56  ;;  %v8783_v3 = vunpack.i.l.bf16 %v8782_v56 }
 0x336   :  { %1651 = vmatmul.mubr.bf16.gmra.mxu0 %v1483_v52 }
 0x337   :  { %v1438_v23 = vsel %vm45_vm0, %v10451_v35, %v8789_v53  ;;  %v1437_v2 = vsel %vm45_vm0, %v10459_v11, %v8788_v17  ;;  %7239 = vmatprep.mubr.msk.bf16.mxu0 %vm45_vm0, %v1486_v8  ;;  %v1488_v11 = vpack.c.bf16 %v10445_v42, %v10433_v34 }
 0x338   :  { %v8792_v25 = vpop.permute.xlu0 %8791  ;;  %v1453_v5 = vsel %vm341_vm1, %v1437_v2, %v8783_v3  ;;  %v1454_v31 = vsel %vm341_vm1, %v1438_v23, %v8784_v63 }
 0x339   :  { %v8794_v26 = vunpack.i.h.bf16 %v8792_v25  ;;  %v8793_v29 = vunpack.i.l.bf16 %v8792_v25 }
 0x33b   :  { %v1469_v0 = vsel %vm358_vm2, %v1453_v5, %v8793_v29  ;;  %v1470_v6 = vsel %vm358_vm2, %v1454_v31, %v8794_v26 }
 0x33c   :  { %v8797_v48 = vpop.permute.xlu0 %8796  ;;  %v8802_v36 = vpop.permute.xlu1 %8801  ;;  %v1485_v27 = vpack.c.bf16 %v1470_v6, %v1469_v0 }
 0x33d   :  { %v8804_v35 = vunpack.i.h.bf16 %v8802_v36  ;;  %v8803_v30 = vunpack.i.l.bf16 %v8802_v36  ;;  %v8799_v33 = vunpack.i.h.bf16 %v8797_v48  ;;  %v8798_v14 = vunpack.i.l.bf16 %v8797_v48 }
 0x33e   :  { %1659 = vmatmul.mubr.bf16.gmra.mxu0 %v1485_v27 }
 0x33f   :  { %v1440_v12 = vsel %vm45_vm0, %v10472_v13, %v8804_v35  ;;  %v1439_v39 = vsel %vm45_vm0, %v10480_v7, %v8803_v30  ;;  %7240 = vmatprep.mubr.msk.bf16.mxu0 %vm45_vm0, %v1488_v11  ;;  %v1490_v7 = vpack.c.bf16 %v10466_v47, %v10454_v50 }
 0x340   :  { %v8807_v43 = vpop.permute.xlu1 %8806  ;;  %v1455_v40 = vsel %vm341_vm1, %v1439_v39, %v8798_v14  ;;  %v1456_v60 = vsel %vm341_vm1, %v1440_v12, %v8799_v33 }
 0x341   :  { %v8809_v44 = vunpack.i.h.bf16 %v8807_v43  ;;  %v8808_v20 = vunpack.i.l.bf16 %v8807_v43 }
 0x343   :  { %v1471_v55 = vsel %vm358_vm2, %v1455_v40, %v8808_v20  ;;  %v1472_v57 = vsel %vm358_vm2, %v1456_v60, %v8809_v44 }
 0x344   :  { %v8817_v9 = vpop.permute.xlu0 %8816  ;;  %v8812_v1 = vpop.permute.xlu1 %8811  ;;  %v1487_v28 = vpack.c.bf16 %v1472_v57, %v1471_v55 }
 0x345   :  { %v8819_v13 = vunpack.i.h.bf16 %v8817_v9  ;;  %v8818_v59 = vunpack.i.l.bf16 %v8817_v9  ;;  %v8814_v56 = vunpack.i.h.bf16 %v8812_v1  ;;  %v8813_v52 = vunpack.i.l.bf16 %v8812_v1 }
 0x346   :  { %1667 = vmatmul.mubr.bf16.gmra.mxu0 %v1487_v28 }
 0x347   :  { %v1442_v53 = vsel %vm45_vm0, %v10494_v21, %v8819_v13  ;;  %v1441_v17 = vsel %vm45_vm0, %v10502_v10, %v8818_v59  ;;  %7241 = vmatprep.mubr.msk.bf16.mxu0 %vm45_vm0, %v1490_v7  ;;  %v1492_v10 = vpack.c.bf16 %v10487_v24, %v10475_v61 }
 0x348   :  { %v8822_v8 = vpop.permute.xlu0 %8821  ;;  %v1457_v23 = vsel %vm341_vm1, %v1441_v17, %v8813_v52  ;;  %v1458_v2 = vsel %vm341_vm1, %v1442_v53, %v8814_v56 }
 0x349   :  { %v8824_v63 = vunpack.i.h.bf16 %v8822_v8  ;;  %v8823_v3 = vunpack.i.l.bf16 %v8822_v8 }
 0x34b   :  { %v1473_v25 = vsel %vm358_vm2, %v1457_v23, %v8823_v3  ;;  %v1474_v26 = vsel %vm358_vm2, %v1458_v2, %v8824_v63 }
 0x34c   :  { %v8827_v29 = vpop.permute.xlu0 %8826  ;;  %v8832_v5 = vpop.permute.xlu1 %8831  ;;  %v1489_v31 = vpack.c.bf16 %v1474_v26, %v1473_v25 }
 0x34d   :  { %v8834_v21 = vunpack.i.h.bf16 %v8832_v5  ;;  %v8833_v0 = vunpack.i.l.bf16 %v8832_v5  ;;  %v8829_v6 = vunpack.i.h.bf16 %v8827_v29  ;;  %v8828_v48 = vunpack.i.l.bf16 %v8827_v29 }
 0x34e   :  { %1675 = vmatmul.mubr.bf16.gmra.mxu0 %v1489_v31 }
 0x34f   :  { %v1444_v36 = vsel %vm45_vm0, %v10515_v58, %v8834_v21  ;;  %v1443_v27 = vsel %vm45_vm0, %v10523_v37, %v8833_v0  ;;  %7242 = vmatprep.mubr.msk.bf16.mxu0 %vm45_vm0, %v1492_v10  ;;  %v1494_v37 = vpack.c.bf16 %v10509_v41, %v10497_v32 }
 0x350   :  { %v8837_v35 = vpop.permute.xlu1 %8836  ;;  %v1459_v33 = vsel %vm341_vm1, %v1443_v27, %v8828_v48  ;;  %v1460_v14 = vsel %vm341_vm1, %v1444_v36, %v8829_v6  ;;  %v1787_v48 = vld [vmem:[#allocation2] sm:$0xff]  ;;  %v9500_v36 = vld [vmem:[%s12700_s1 + $0x128] sm:$0xff]  }
 0x351   :  { %v8839_v30 = vunpack.i.h.bf16 %v8837_v35  ;;  %v8838_v11 = vunpack.i.l.bf16 %v8837_v35  ;;  %2161 = vmatpush1.bf16.msra.mxu1 %v9500_v36  ;;  %v9501_v27 = vld [vmem:[%s12700_s1 + $0x120] sm:$0xff]   ;;  %v9502_v35 = vld [vmem:[%s12700_s1 + $0x118] sm:$0xff]  }
 0x352   :  { %2162 = vmatprep.subr.bf16.mxu1 %v9709_v4 }
 0x353   :  { %v1475_v12 = vsel %vm358_vm2, %v1459_v33, %v8838_v11  ;;  %v1476_v39 = vsel %vm358_vm2, %v1460_v14, %v8839_v30  ;;  %v9503_v30 = vld [vmem:[%s12700_s1 + $0x110] sm:$0xff]   ;;  %v9504_v11 = vld [vmem:[%s12700_s1 + $0x108] sm:$0xff]   ;;  %v9505_v33 = vld [vmem:[%s12700_s1 + $0x100] sm:$0xff]  }
 0x354   :  { %v8847_v43 = vpop.permute.xlu0 %8846  ;;  %v8842_v44 = vpop.permute.xlu1 %8841  ;;  %v1491_v20 = vpack.c.bf16 %v1476_v39, %v1475_v12  ;;  %v9506_v14 = vld [vmem:[%s12700_s1 + $0xf8] sm:$0xff]   ;;  %v9507_v12 = vld [vmem:[%s12700_s1 + $0xf0] sm:$0xff]  }
 0x355   :  { %v8849_v58 = vunpack.i.h.bf16 %v8847_v43  ;;  %v8848_v40 = vunpack.i.l.bf16 %v8847_v43  ;;  %v8844_v60 = vunpack.i.h.bf16 %v8842_v44  ;;  %v8843_v55 = vunpack.i.l.bf16 %v8842_v44  ;;  %2163 = vmatpush1.bf16.msra.mxu1 %v9501_v27  ;;  %v9508_v39 = vld [vmem:[%s12700_s1 + $0x138] sm:$0xff]   ;;  %v10681_v43 = vld [vmem:[%s12701_s2 + $0x2] ss:$0 sm:$0xff] }
 0x356   :  { %1683 = vmatmul.mubr.bf16.gmra.mxu0 %v1491_v20  ;;  %2164 = vmatprep.subr.bf16.mxu1 %v9709_v4 }
 0x357   :  { %v1446_v57 = vsel %vm45_vm0, %v10535_v49, %v8849_v58  ;;  %v1445_v9 = vsel %vm45_vm0, %v10539_v51, %v8848_v40  ;;  %7243 = vmatprep.mubr.msk.bf16.mxu0 %vm45_vm0, %v1494_v37  ;;  %v1496_v51 = vpack.c.bf16 %v10530_v54, %v10518_v46 }
 0x358   :  { %v8852_v1 = vpop.permute.xlu0 %8851  ;;  %v1461_v59 = vsel %vm341_vm1, %v1445_v9, %v8843_v55  ;;  %v1462_v7 = vsel %vm341_vm1, %v1446_v57, %v8844_v60 }
 0x359   :  { %v8854_v28 = vunpack.i.h.bf16 %v8852_v1  ;;  %v8853_v13 = vunpack.i.l.bf16 %v8852_v1  ;;  %2165 = vmatpush1.bf16.msra.mxu1 %v9502_v35 }
 0x35a   :  { %2166 = vmatprep.subr.bf16.mxu1 %v9709_v4 }
 0x35b   :  { %v1477_v56 = vsel %vm358_vm2, %v1461_v59, %v8853_v13  ;;  %v1478_v52 = vsel %vm358_vm2, %v1462_v7, %v8854_v28  ;;  %v9509_v7 = vld [vmem:[%s12700_s1 + $0x130] sm:$0xff]  }
 0x35c   :  { %v8857_v53 = vpop.permute.xlu0 %8856  ;;  %v8862_v17 = vpop.permute.xlu1 %8861  ;;  %v1493_v8 = vpack.c.bf16 %v1478_v52, %v1477_v56 }
 0x35d   :  { %v8864_v49 = vunpack.i.h.bf16 %v8862_v17  ;;  %v8863_v63 = vunpack.i.l.bf16 %v8862_v17  ;;  %v8859_v3 = vunpack.i.h.bf16 %v8857_v53  ;;  %v8858_v23 = vunpack.i.l.bf16 %v8857_v53  ;;  %2167 = vmatpush1.bf16.msra.mxu1 %v9503_v30 }
 0x35e   :  { %1691 = vmatmul.mubr.bf16.gmra.mxu0 %v1493_v8  ;;  %2168 = vmatprep.subr.bf16.mxu1 %v9709_v4 }
 0x35f   :  { %v1448_v2 = vsel %vm45_vm0, %v10544_v45, %v8864_v49  ;;  %v1447_v25 = vsel %vm45_vm0, %v10548_v22, %v8863_v63  ;;  %7244 = vmatprep.mubr.msk.bf16.mxu0 %vm45_vm0, %v1496_v51  ;;  %v10638_v45 = vld [vmem:[#allocation2 + $0x8] sm:$0xff] }
 0x360   :  { %v8867_v26 = vpop.permute.xlu1 %8866  ;;  %v1463_v31 = vsel %vm341_vm1, %v1447_v25, %v8858_v23  ;;  %v1464_v21 = vsel %vm341_vm1, %v1448_v2, %v8859_v3  ;;  %v8870_v22 = vpack.i.bf16 %v10638_v45, %v1787_v48 }
 0x361   :  { %v8869_v29 = vunpack.i.h.bf16 %v8867_v26  ;;  %v8868_v5 = vunpack.i.l.bf16 %v8867_v26  ;;  %2169 = vmatpush1.bf16.msra.mxu1 %v9504_v11 }
 0x362   :  { %8871 = vrot.lane.b32.xlu1 %v8870_v22, %s9712_s28  ;;  %2170 = vmatprep.subr.bf16.mxu1 %v9709_v4 }
 0x363   :  { %v1479_v0 = vsel %vm358_vm2, %v1463_v31, %v8868_v5  ;;  %v1480_v10 = vsel %vm358_vm2, %v1464_v21, %v8869_v29 }
 0x364   :  { %v1495_v6 = vpack.c.bf16 %v1480_v10, %v1479_v0 }
 0x365   :  { %2171 = vmatpush1.bf16.msra.mxu1 %v9505_v33 }
 0x366   :  { %1699 = vmatmul.mubr.bf16.gmra.mxu0 %v1495_v6  ;;  %2172 = vmatprep.subr.bf16.mxu1 %v9709_v4 }
 0x369   :  { %2173 = vmatpush1.bf16.msra.mxu1 %v9506_v14 }
 0x36a   :  { %2174 = vmatprep.subr.bf16.mxu1 %v9709_v4 }
 0x36d   :  { %2175 = vmatpush1.bf16.msra.mxu1 %v9507_v12 }
 0x36e   :  { %2188 = vmatprep.subr.bf16.mxu1 %v9709_v4 }
 0x371   :  { %2189 = vmatpush2.bf16.msra.mxu1 %v9508_v39 }
 0x372   :  { %2190 = vmatprep.subr.bf16.mxu1 %v9709_v4 }
 0x375   :  { %2191 = vmatpush2.bf16.msra.mxu1 %v9509_v7 }
 0x3ee   :  { %v1644_v44 = vpop.f32.mrf.mxu0 }
 0x3ef   :  { %v1645_v20 = vadd.f32 %v10681_v43, %v1644_v44 }
 0x3f0   :  { %v1646_v58 = vpop.f32.mrf.mxu0 }
 0x3f1   :  { %v1707_v40 = vmax.f32 %v1645_v20, 0.0 }
 0x3f2   :  { %v1647_v37 = vpop.f32.mrf.mxu0 }
 0x3f3   :  { %v10685_v60 = vadd.f32 %v1707_v40, %v10378_v15  ;;  %v1648_v55 = vadd.f32 %v10681_v43, %v1647_v37 }
 0x3f4   :  { %v1649_v57 = vpop.f32.mrf.mxu0 }
 0x3f5   :  { %1739 = vst.msk [vmem:[#allocation2 + $0x10] sm:$0xff] %vm45_vm0, %v10685_v60  ;;  %v1708_v4 = vmax.f32 %v1648_v55, 0.0 }
 0x3f6   :  { %v1652_v9 = vpop.f32.mrf.mxu0 }
 0x3f7   :  { %v10691_v1 = vadd.f32 %v1708_v4, %v10385_v16  ;;  %v1653_v28 = vadd.f32 %v10681_v43, %v1652_v9 }
 0x3f8   :  { %v1654_v13 = vpop.f32.mrf.mxu0 }
 0x3f9   :  { %1740 = vst.msk [vmem:[#allocation2 + $0x18] sm:$0xff] %vm45_vm0, %v10691_v1  ;;  %v1709_v59 = vmax.f32 %v1653_v28, 0.0  ;;  %v2032_v15 = vpack.c.bf16 %v10691_v1, %v10685_v60 }
 0x3fa   :  { %v1655_v56 = vpop.f32.mrf.mxu0 }
 0x3fb   :  { %v10702_v52 = vadd.f32 %v1709_v59, %v10396_v62  ;;  %v1656_v16 = vadd.f32 %v10681_v43, %v1655_v56  ;;  %7277 = vmatprep.mubr.msk.bf16.mxu1 %vm45_vm0, %v2032_v15 }
 0x3fc   :  { %v1657_v53 = vpop.f32.mrf.mxu0  ;;  %v1771_v3 = vld [vmem:[#allocation2 + $0xf] sm:$0xff] }
 0x3fd   :  { %1741 = vst.msk [vmem:[#allocation2 + $0x20] sm:$0xff] %vm45_vm0, %v10702_v52  ;;  %v1710_v17 = vmax.f32 %v1656_v16, 0.0  ;;  %v1789_v26 = vld [vmem:[#allocation2 + $0x10] sm:$0xff] }
 0x3fe   :  { %v1660_v8 = vpop.f32.mrf.mxu0  ;;  %v8880_v21 = vpack.i.bf16 %v1789_v26, %v10638_v45 }
 0x3ff   :  { %v10709_v49 = vadd.f32 %v1710_v17, %v10404_v18  ;;  %v1661_v63 = vadd.f32 %v10681_v43, %v1660_v8 }
 0x400   :  { %v1662_v51 = vpop.f32.mrf.mxu0  ;;  %v1772_v62 = vld [vmem:[#allocation2 + $0x17] sm:$0xff] }
 0x401   :  { %1742 = vst.msk [vmem:[#allocation2 + $0x28] sm:$0xff] %vm45_vm0, %v10709_v49  ;;  %v1711_v23 = vmax.f32 %v1661_v63, 0.0  ;;  %v8875_v2 = vpack.i.bf16 %v1772_v62, %v1771_v3  ;;  %v1790_v10 = vld [vmem:[#allocation2 + $0x18] sm:$0xff] }
 0x402   :  { %v1663_v25 = vpop.f32.mrf.mxu0  ;;  %v8885_v35 = vpack.i.bf16 %v1790_v10, %v1789_v26 }
 0x403   :  { %v10715_v29 = vadd.f32 %v1711_v23, %v10413_v19  ;;  %v1664_v5 = vadd.f32 %v10681_v43, %v1663_v25  ;;  %8876 = vrot.lane.b32.xlu0 %v8875_v2, %s9710_s0 }
 0x404   :  { %v1665_v18 = vpop.f32.mrf.mxu0  ;;  %v1773_v22 = vld [vmem:[#allocation2 + $0x1f] sm:$0xff] }
 0x405   :  { %1743 = vst.msk [vmem:[#allocation2 + $0x30] sm:$0xff] %vm45_vm0, %v10715_v29  ;;  %v1712_v31 = vmax.f32 %v1664_v5, 0.0  ;;  %v1791_v45 = vld [vmem:[#allocation2 + $0x20] sm:$0xff]  ;;  %v1795_v18 = vld [vmem:[#allocation2 + $0x50] sm:$0xff] }
 0x406   :  { %v1668_v0 = vpop.f32.mrf.mxu0  ;;  %v8895_v39 = vpack.i.bf16 %v1791_v45, %v1790_v10  ;;  %v1796_v10 = vld [vmem:[#allocation2 + $0x58] sm:$0xff] }
 0x407   :  { %v10723_v6 = vadd.f32 %v1712_v31, %v10424_v38  ;;  %v1669_v48 = vadd.f32 %v10681_v43, %v1668_v0  ;;  %8881 = vrot.lane.b32.xlu0 %v8880_v21, %s9711_s27 }
 0x408   :  { %v1670_v19 = vpop.f32.mrf.mxu0  ;;  %v1774_v36 = vld [vmem:[#allocation2 + $0x27] sm:$0xff] }
 0x409   :  { %1744 = vst.msk [vmem:[#allocation2 + $0x38] sm:$0xff] %vm45_vm0, %v10723_v6  ;;  %v1713_v27 = vmax.f32 %v1669_v48, 0.0  ;;  %v8890_v30 = vpack.i.bf16 %v1774_v36, %v1773_v22  ;;  %v1792_v20 = vld [vmem:[#allocation2 + $0x28] sm:$0xff]  ;;  %v8930_v19 = vpack.i.bf16 %v1796_v10, %v1795_v18  ;;  %v8872_v18 = vpop.permute.xlu1 %8871 }
 0x40a   :  { %v1671_v11 = vpop.f32.mrf.mxu0  ;;  %v8900_v9 = vpack.i.bf16 %v1792_v20, %v1791_v45 }
 0x40b   :  { %v10730_v33 = vadd.f32 %v1713_v27, %v10433_v34  ;;  %v1672_v38 = vadd.f32 %v10681_v43, %v1671_v11  ;;  %8886 = vrot.lane.b32.xlu0 %v8885_v35, %s9712_s28  ;;  %8891 = vrot.lane.b32.xlu1 %v8890_v30, %s9710_s0 }
 0x40c   :  { %v1673_v14 = vpop.f32.mrf.mxu0  ;;  %v1775_v37 = vld [vmem:[#allocation2 + $0x2f] sm:$0xff] }
 0x40d   :  { %1745 = vst.msk [vmem:[#allocation2 + $0x40] sm:$0xff] %vm45_vm0, %v10730_v33  ;;  %v1714_v12 = vmax.f32 %v1672_v38, 0.0  ;;  %v1793_v13 = vld [vmem:[#allocation2 + $0x30] sm:$0xff] }
 0x40e   :  { %v1676_v44 = vpop.f32.mrf.mxu0  ;;  %v8910_v56 = vpack.i.bf16 %v1793_v13, %v1792_v20 }
 0x40f   :  { %v10738_v58 = vadd.f32 %v1714_v12, %v10445_v42  ;;  %v1677_v34 = vadd.f32 %v10681_v43, %v1676_v44  ;;  %8896 = vrot.lane.b32.xlu1 %v8895_v39, %s9711_s27 }
 0x410   :  { %v1678_v40 = vpop.f32.mrf.mxu0  ;;  %v1776_v55 = vld [vmem:[#allocation2 + $0x37] sm:$0xff] }
 0x411   :  { %1746 = vst.msk [vmem:[#allocation2 + $0x48] sm:$0xff] %vm45_vm0, %v10738_v58  ;;  %v1715_v57 = vmax.f32 %v1677_v34, 0.0  ;;  %v8905_v4 = vpack.i.bf16 %v1776_v55, %v1775_v37  ;;  %v1794_v53 = vld [vmem:[#allocation2 + $0x38] sm:$0xff] }
 0x412   :  { %v1679_v28 = vpop.f32.mrf.mxu0  ;;  %v8915_v62 = vpack.i.bf16 %v1794_v53, %v1793_v13 }
 0x413   :  { %v10745_v59 = vadd.f32 %v1715_v57, %v10454_v50  ;;  %v1680_v42 = vadd.f32 %v10681_v43, %v1679_v28  ;;  %8906 = vrot.lane.b32.xlu0 %v8905_v4, %s9710_s0  ;;  %8901 = vrot.lane.b32.xlu1 %v8900_v9, %s9712_s28 }
 0x414   :  { %v1681_v15 = vpop.f32.mrf.mxu0  ;;  %v1777_v63 = vld [vmem:[#allocation2 + $0x3f] sm:$0xff] }
 0x415   :  { %1747 = vst.msk [vmem:[#allocation2 + $0x60] sm:$0xff] %vm45_vm0, %v10745_v59  ;;  %v1716_v7 = vmax.f32 %v1680_v42, 0.0  ;;  %v1803_v25 = vld [vmem:[#allocation2 + $0x40] sm:$0xff] }
 0x416   :  { %v1684_v16 = vpop.f32.mrf.mxu0  ;;  %v8925_v21 = vpack.i.bf16 %v1803_v25, %v1794_v53  ;;  %v9510_v25 = vld [vmem:[%s12702_s3 + $0x8] sm:$0xff]  }
 0x417   :  { %v10753_v17 = vadd.f32 %v1716_v7, %v10466_v47  ;;  %v1685_v50 = vadd.f32 %v10681_v43, %v1684_v16  ;;  %8911 = vrot.lane.b32.xlu0 %v8910_v56, %s9711_s27  ;;  %8081 = vmatprep.subr.bf16.mxu0 %v9510_v25 }
 0x418   :  { %v1686_v8 = vpop.f32.mrf.mxu0  ;;  %v1778_v51 = vld [vmem:[#allocation2 + $0x47] sm:$0xff]  ;;  %8082 = vmatpush3.bf16.msra.mxu0 %v9510_v25 }
 0x419   :  { %1748 = vst.msk [vmem:[#allocation2 + $0x68] sm:$0xff] %vm45_vm0, %v10753_v17  ;;  %v1717_v3 = vmax.f32 %v1685_v50, 0.0  ;;  %v8920_v23 = vpack.i.bf16 %v1778_v51, %v1777_v63 }
 0x41a   :  { %v1687_v2 = vpop.f32.mrf.mxu0 }
 0x41b   :  { %v10760_v26 = vadd.f32 %v1717_v3, %v10475_v61  ;;  %v1688_v47 = vadd.f32 %v10681_v43, %v1687_v2  ;;  %8916 = vrot.lane.b32.xlu0 %v8915_v62, %s9712_s28  ;;  %8921 = vrot.lane.b32.xlu1 %v8920_v23, %s9710_s0 }
 0x41c   :  { %v1689_v5 = vpop.f32.mrf.mxu0  ;;  %v1779_v36 = vld [vmem:[#allocation2 + $0x5f] sm:$0xff] }
 0x41d   :  { %1749 = vst.msk [vmem:[#allocation2 + $0x70] sm:$0xff] %vm45_vm0, %v10760_v26  ;;  %v1718_v31 = vmax.f32 %v1688_v47, 0.0  ;;  %v1797_v45 = vld [vmem:[#allocation2 + $0x60] sm:$0xff] }
 0x41e   :  { %v1692_v0 = vpop.f32.mrf.mxu0  ;;  %v8940_v39 = vpack.i.bf16 %v1797_v45, %v1796_v10  ;;  %v1755_v10 = vld [vmem:[#allocation2 + $0xe] sm:$0xff] }
 0x41f   :  { %v10768_v48 = vadd.f32 %v1718_v31, %v10487_v24  ;;  %v1693_v61 = vadd.f32 %v10681_v43, %v1692_v0  ;;  %8926 = vrot.lane.b32.xlu1 %v8925_v21, %s9711_s27 }
 0x420   :  { %v1694_v22 = vpop.f32.mrf.mxu0  ;;  %v1780_v27 = vld [vmem:[#allocation2 + $0x67] sm:$0xff] }
 0x421   :  { %1750 = vst.msk [vmem:[#allocation2 + $0x78] sm:$0xff] %vm45_vm0, %v10768_v48  ;;  %v1719_v35 = vmax.f32 %v1693_v61, 0.0  ;;  %v8935_v30 = vpack.i.bf16 %v1780_v27, %v1779_v36  ;;  %v1798_v20 = vld [vmem:[#allocation2 + $0x68] sm:$0xff]  ;;  %v1756_v61 = vld [vmem:[#allocation2 + $0x16] sm:$0xff]  ;;  %v8873_v22 = vunpack.i.l.bf16 %v8872_v18 }
 0x422   :  { %v1695_v11 = vpop.f32.mrf.mxu0  ;;  %v8945_v4 = vpack.i.bf16 %v1798_v20, %v1797_v45 }
 0x423   :  { %v10775_v38 = vadd.f32 %v1719_v35, %v10497_v32  ;;  %v1696_v24 = vadd.f32 %v10681_v43, %v1695_v11  ;;  %8936 = vrot.lane.b32.xlu0 %v8935_v30, %s9710_s0  ;;  %8931 = vrot.lane.b32.xlu1 %v8930_v19, %s9712_s28  ;;  %v8874_v19 = vunpack.i.h.bf16 %v8872_v18 }
 0x424   :  { %v1697_v14 = vpop.f32.mrf.mxu0  ;;  %v1781_v37 = vld [vmem:[#allocation2 + $0x6f] sm:$0xff] }
 0x425   :  { %1751 = vst.msk [vmem:[#allocation2 + $0x80] sm:$0xff] %vm45_vm0, %v10775_v38  ;;  %v1720_v12 = vmax.f32 %v1696_v24, 0.0  ;;  %v1799_v13 = vld [vmem:[#allocation2 + $0x70] sm:$0xff] }
 0x426   :  { %v1700_v44 = vpop.f32.mrf.mxu0  ;;  %v8955_v56 = vpack.i.bf16 %v1799_v13, %v1798_v20 }
 0x427   :  { %v10783_v34 = vadd.f32 %v1720_v12, %v10509_v41  ;;  %v1701_v32 = vadd.f32 %v10681_v43, %v1700_v44  ;;  %8941 = vrot.lane.b32.xlu0 %v8940_v39, %s9711_s27 }
 0x428   :  { %v1702_v40 = vpop.f32.mrf.mxu0  ;;  %v1782_v55 = vld [vmem:[#allocation2 + $0x77] sm:$0xff] }
 0x429   :  { %1752 = vst.msk [vmem:[#allocation2 + $0x88] sm:$0xff] %vm45_vm0, %v10783_v34  ;;  %v1721_v57 = vmax.f32 %v1701_v32, 0.0  ;;  %v8950_v9 = vpack.i.bf16 %v1782_v55, %v1781_v37  ;;  %v1800_v16 = vld [vmem:[#allocation2 + $0x78] sm:$0xff]  ;;  %v2034_v37 = vpack.c.bf16 %v10709_v49, %v10702_v52 }
 0x42a   :  { %v1703_v28 = vpop.f32.mrf.mxu0  ;;  %v8960_v8 = vpack.i.bf16 %v1800_v16, %v1799_v13 }
 0x42b   :  { %v10790_v42 = vadd.f32 %v1721_v57, %v10518_v46  ;;  %v1704_v41 = vadd.f32 %v10681_v43, %v1703_v28  ;;  %8946 = vrot.lane.b32.xlu0 %v8945_v4, %s9712_s28  ;;  %8951 = vrot.lane.b32.xlu1 %v8950_v9, %s9710_s0  ;;  %v1757_v4 = vld [vmem:[#allocation2 + $0x1e] sm:$0xff]  ;;  %v1758_v9 = vld [vmem:[#allocation2 + $0x26] sm:$0xff] }
 0x42c   :  { %v1705_v15 = vpop.f32.mrf.mxu0  ;;  %v1783_v46 = vld [vmem:[#allocation2 + $0x7f] sm:$0xff] }
 0x42d   :  { %1753 = vst.msk [vmem:[#allocation2 + $0x90] sm:$0xff] %vm45_vm0, %v10790_v42  ;;  %v1722_v7 = vmax.f32 %v1704_v41, 0.0  ;;  %v1801_v63 = vld [vmem:[#allocation2 + $0x80] sm:$0xff] }
 0x42e   :  { %v8970_v51 = vpack.i.bf16 %v1801_v63, %v1800_v16 }
 0x42f   :  { %v10798_v53 = vadd.f32 %v1722_v7, %v10530_v54  ;;  %8956 = vrot.lane.b32.xlu1 %v8955_v56, %s9711_s27 }
 0x430   :  { %v1784_v50 = vld [vmem:[#allocation2 + $0x87] sm:$0xff] }
 0x431   :  { %1754 = vst.msk [vmem:[#allocation2 + $0x98] sm:$0xff] %vm45_vm0, %v10798_v53  ;;  %v8965_v43 = vpack.i.bf16 %v1784_v50, %v1783_v46  ;;  %v1802_v3 = vld [vmem:[#allocation2 + $0x88] sm:$0xff] }
 0x432   :  { %v8975_v23 = vpack.i.bf16 %v1802_v3, %v1801_v63 }
 0x433   :  { %8966 = vrot.lane.b32.xlu0 %v8965_v43, %s9710_s0  ;;  %8961 = vrot.lane.b32.xlu1 %v8960_v8, %s9712_s28 }
 0x434   :  { %v1785_v54 = vld [vmem:[#allocation2 + $0x8f] sm:$0xff] }
 0x435   :  { %v1804_v47 = vld [vmem:[#allocation2 + $0x90] sm:$0xff] }
 0x436   :  { %v8985_v5 = vpack.i.bf16 %v1804_v47, %v1802_v3 }
 0x437   :  { %8971 = vrot.lane.b32.xlu0 %v8970_v51, %s9711_s27 }
 0x438   :  { %v1786_v62 = vld [vmem:[#allocation2 + $0x97] sm:$0xff] }
 0x439   :  { %v8980_v2 = vpack.i.bf16 %v1786_v62, %v1785_v54  ;;  %v2036_v54 = vpack.c.bf16 %v10723_v6, %v10715_v29  ;;  %v1760_v62 = vld [vmem:[#allocation2 + $0x36] sm:$0xff] }
 0x43b   :  { %8976 = vrot.lane.b32.xlu0 %v8975_v23, %s9712_s28  ;;  %8981 = vrot.lane.b32.xlu1 %v8980_v2, %s9710_s0  ;;  %v1759_v23 = vld [vmem:[#allocation2 + $0x2e] sm:$0xff] }
 0x43f   :  { %8986 = vrot.lane.b32.xlu1 %v8985_v5, %s9711_s27 }
 0x475   :  { %v8877_v31 = vpop.permute.xlu0 %8876 }
 0x476   :  { %v8879_v21 = vunpack.i.h.bf16 %v8877_v31  ;;  %v8878_v0 = vunpack.i.l.bf16 %v8877_v31 }
 0x478   :  { %v1983_v36 = vsel %vm45_vm0, %v1755_v10, %v8878_v0  ;;  %v1984_v27 = vsel %vm45_vm0, %v1756_v61, %v8879_v21 }
 0x479   :  { %v8882_v35 = vpop.permute.xlu0 %8881  ;;  %v1999_v45 = vsel %vm341_vm1, %v1983_v36, %v8873_v22  ;;  %v2000_v24 = vsel %vm341_vm1, %v1984_v27, %v8874_v19 }
 0x47a   :  { %v8884_v30 = vunpack.i.h.bf16 %v8882_v35  ;;  %v8883_v11 = vunpack.i.l.bf16 %v8882_v35 }
 0x47c   :  { %v2015_v14 = vsel %vm358_vm2, %v1999_v45, %v8883_v11  ;;  %v2016_v12 = vsel %vm358_vm2, %v2000_v24, %v8884_v30  ;;  %v2038_v11 = vpack.c.bf16 %v10738_v58, %v10730_v33 }
 0x47d   :  { %v2031_v39 = vpack.c.bf16 %v2016_v12, %v2015_v14  ;;  %v8887_v44 = vpop.permute.xlu0 %8886  ;;  %v8892_v20 = vpop.permute.xlu1 %8891  ;;  %v1761_v14 = vld [vmem:[#allocation2 + $0x3e] sm:$0xff]  ;;  %v1762_v12 = vld [vmem:[#allocation2 + $0x46] sm:$0xff] }
 0x47e   :  { %v8894_v32 = vunpack.i.h.bf16 %v8892_v20  ;;  %v8893_v40 = vunpack.i.l.bf16 %v8892_v20  ;;  %v8889_v55 = vunpack.i.h.bf16 %v8887_v44  ;;  %v8888_v57 = vunpack.i.l.bf16 %v8887_v44 }
 0x47f   :  { %2193 = vmatmul.mubr.bf16.vlgmr.msra.gmra.mxu1 %v2031_v39 }
 0x480   :  { %v1985_v28 = vsel %vm45_vm0, %v1757_v4, %v8893_v40  ;;  %v1986_v13 = vsel %vm45_vm0, %v1758_v9, %v8894_v32  ;;  %7278 = vmatprep.mubr.msk.bf16.mxu1 %vm45_vm0, %v2034_v37 }
 0x481   :  { %v8897_v41 = vpop.permute.xlu1 %8896  ;;  %v2001_v56 = vsel %vm341_vm1, %v1985_v28, %v8888_v57  ;;  %v2002_v16 = vsel %vm341_vm1, %v1986_v13, %v8889_v55 }
 0x482   :  { %v8899_v15 = vunpack.i.h.bf16 %v8897_v41  ;;  %v8898_v7 = vunpack.i.l.bf16 %v8897_v41 }
 0x484   :  { %v2017_v46 = vsel %vm358_vm2, %v2001_v56, %v8898_v7  ;;  %v2018_v50 = vsel %vm358_vm2, %v2002_v16, %v8899_v15  ;;  %v2040_v7 = vpack.c.bf16 %v10753_v17, %v10745_v59  ;;  %v1763_v56 = vld [vmem:[#allocation2 + $0x5e] sm:$0xff]  ;;  %v1764_v16 = vld [vmem:[#allocation2 + $0x66] sm:$0xff] }
 0x485   :  { %v8907_v43 = vpop.permute.xlu0 %8906  ;;  %v8902_v8 = vpop.permute.xlu1 %8901  ;;  %v2033_v63 = vpack.c.bf16 %v2018_v50, %v2017_v46 }
 0x486   :  { %v8909_v51 = vunpack.i.h.bf16 %v8907_v43  ;;  %v8908_v3 = vunpack.i.l.bf16 %v8907_v43  ;;  %v8904_v2 = vunpack.i.h.bf16 %v8902_v8  ;;  %v8903_v25 = vunpack.i.l.bf16 %v8902_v8 }
 0x487   :  { %2201 = vmatmul.mubr.bf16.gmra.mxu1 %v2033_v63 }
 0x488   :  { %v1988_v47 = vsel %vm45_vm0, %v1760_v62, %v8909_v51  ;;  %v1987_v5 = vsel %vm45_vm0, %v1759_v23, %v8908_v3  ;;  %7279 = vmatprep.mubr.msk.bf16.mxu1 %vm45_vm0, %v2036_v54 }
 0x489   :  { %v8912_v18 = vpop.permute.xlu0 %8911  ;;  %v2003_v0 = vsel %vm341_vm1, %v1987_v5, %v8903_v25  ;;  %v2004_v10 = vsel %vm341_vm1, %v1988_v47, %v8904_v2 }
 0x48a   :  { %v8914_v31 = vunpack.i.h.bf16 %v8912_v18  ;;  %v8913_v21 = vunpack.i.l.bf16 %v8912_v18 }
 0x48c   :  { %v2019_v61 = vsel %vm358_vm2, %v2003_v0, %v8913_v21  ;;  %v2020_v19 = vsel %vm358_vm2, %v2004_v10, %v8914_v31  ;;  %v2042_v21 = vpack.c.bf16 %v10768_v48, %v10760_v26 }
 0x48d   :  { %v8917_v22 = vpop.permute.xlu0 %8916  ;;  %v8922_v36 = vpop.permute.xlu1 %8921  ;;  %v2035_v27 = vpack.c.bf16 %v2020_v19, %v2019_v61  ;;  %v1765_v61 = vld [vmem:[#allocation2 + $0x6e] sm:$0xff]  ;;  %v1766_v19 = vld [vmem:[#allocation2 + $0x76] sm:$0xff] }
 0x48e   :  { %v8924_v35 = vunpack.i.h.bf16 %v8922_v36  ;;  %v8923_v30 = vunpack.i.l.bf16 %v8922_v36  ;;  %v8919_v45 = vunpack.i.h.bf16 %v8917_v22  ;;  %v8918_v24 = vunpack.i.l.bf16 %v8917_v22 }
 0x48f   :  { %2209 = vmatmul.mubr.bf16.gmra.mxu1 %v2035_v27 }
 0x490   :  { %v1990_v39 = vsel %vm45_vm0, %v1762_v12, %v8924_v35  ;;  %v1989_v44 = vsel %vm45_vm0, %v1761_v14, %v8923_v30  ;;  %7280 = vmatprep.mubr.msk.bf16.mxu1 %vm45_vm0, %v2038_v11 }
 0x491   :  { %v8927_v20 = vpop.permute.xlu1 %8926  ;;  %v2005_v37 = vsel %vm341_vm1, %v1989_v44, %v8918_v24  ;;  %v2006_v55 = vsel %vm341_vm1, %v1990_v39, %v8919_v45 }
 0x492   :  { %v8929_v32 = vunpack.i.h.bf16 %v8927_v20  ;;  %v8928_v40 = vunpack.i.l.bf16 %v8927_v20 }
 0x494   :  { %v2021_v57 = vsel %vm358_vm2, %v2005_v37, %v8928_v40  ;;  %v2022_v4 = vsel %vm358_vm2, %v2006_v55, %v8929_v32  ;;  %v2044_v40 = vpack.c.bf16 %v10783_v34, %v10775_v38  ;;  %v1767_v37 = vld [vmem:[#allocation2 + $0x7e] sm:$0xff]  ;;  %v1768_v55 = vld [vmem:[#allocation2 + $0x86] sm:$0xff] }
 0x495   :  { %v8937_v9 = vpop.permute.xlu0 %8936  ;;  %v8932_v28 = vpop.permute.xlu1 %8931  ;;  %v2037_v13 = vpack.c.bf16 %v2022_v4, %v2021_v57 }
 0x496   :  { %v8939_v41 = vunpack.i.h.bf16 %v8937_v9  ;;  %v8938_v15 = vunpack.i.l.bf16 %v8937_v9  ;;  %v8934_v46 = vunpack.i.h.bf16 %v8932_v28  ;;  %v8933_v50 = vunpack.i.l.bf16 %v8932_v28 }
 0x497   :  { %2217 = vmatmul.mubr.bf16.gmra.mxu1 %v2037_v13 }
 0x498   :  { %v1992_v43 = vsel %vm45_vm0, %v1764_v16, %v8939_v41  ;;  %v1991_v8 = vsel %vm45_vm0, %v1763_v56, %v8938_v15  ;;  %7281 = vmatprep.mubr.msk.bf16.mxu1 %vm45_vm0, %v2040_v7 }
 0x499   :  { %v8942_v63 = vpop.permute.xlu0 %8941  ;;  %v2007_v54 = vsel %vm341_vm1, %v1991_v8, %v8933_v50  ;;  %v2008_v62 = vsel %vm341_vm1, %v1992_v43, %v8934_v46 }
 0x49a   :  { %v8944_v51 = vunpack.i.h.bf16 %v8942_v63  ;;  %v8943_v3 = vunpack.i.l.bf16 %v8942_v63 }
 0x49c   :  { %v2023_v23 = vsel %vm358_vm2, %v2007_v54, %v8943_v3  ;;  %v2024_v2 = vsel %vm358_vm2, %v2008_v62, %v8944_v51  ;;  %v2046_v3 = vpack.c.bf16 %v10798_v53, %v10790_v42 }
 0x49d   :  { %v8947_v25 = vpop.permute.xlu0 %8946  ;;  %v8952_v47 = vpop.permute.xlu1 %8951  ;;  %v2039_v5 = vpack.c.bf16 %v2024_v2, %v2023_v23  ;;  %v1769_v23 = vld [vmem:[#allocation2 + $0x8e] sm:$0xff]  ;;  %v1770_v2 = vld [vmem:[#allocation2 + $0x96] sm:$0xff] }
 0x49e   :  { %v8954_v18 = vunpack.i.h.bf16 %v8952_v47  ;;  %v8953_v31 = vunpack.i.l.bf16 %v8952_v47  ;;  %v8949_v0 = vunpack.i.h.bf16 %v8947_v25  ;;  %v8948_v10 = vunpack.i.l.bf16 %v8947_v25 }
 0x49f   :  { %2225 = vmatmul.mubr.bf16.gmra.mxu1 %v2039_v5 }
 0x4a0   :  { %v1994_v22 = vsel %vm45_vm0, %v1766_v19, %v8954_v18  ;;  %v1993_v36 = vsel %vm45_vm0, %v1765_v61, %v8953_v31  ;;  %7282 = vmatprep.mubr.msk.bf16.mxu1 %vm45_vm0, %v2042_v21 }
 0x4a1   :  { %v8957_v27 = vpop.permute.xlu1 %8956  ;;  %v2009_v11 = vsel %vm341_vm1, %v1993_v36, %v8948_v10  ;;  %v2010_v45 = vsel %vm341_vm1, %v1994_v22, %v8949_v0  ;;  %v9511_v22 = vld [vmem:[%s12702_s3] sm:$0xff]  }
 0x4a2   :  { %v8959_v35 = vunpack.i.h.bf16 %v8957_v27  ;;  %v8958_v30 = vunpack.i.l.bf16 %v8957_v27  ;;  %8083 = vmatprep.subr.bf16.mxu0 %v9511_v22  ;;  %v10887_v36 = vld [vmem:[%s12701_s2 + $0x3] ss:$0 sm:$0xff] }
 0x4a3   :  { %8084 = vmatpush3.bf16.msra.mxu0 %v9511_v22 }
 0x4a4   :  { %v2025_v24 = vsel %vm358_vm2, %v2009_v11, %v8958_v30  ;;  %v2026_v14 = vsel %vm358_vm2, %v2010_v45, %v8959_v35 }
 0x4a5   :  { %v8967_v12 = vpop.permute.xlu0 %8966  ;;  %v8962_v39 = vpop.permute.xlu1 %8961  ;;  %v2041_v44 = vpack.c.bf16 %v2026_v14, %v2025_v24 }
 0x4a6   :  { %v8969_v20 = vunpack.i.h.bf16 %v8967_v12  ;;  %v8968_v32 = vunpack.i.l.bf16 %v8967_v12  ;;  %v8964_v57 = vunpack.i.h.bf16 %v8962_v39  ;;  %v8963_v4 = vunpack.i.l.bf16 %v8962_v39 }
 0x4a7   :  { %2233 = vmatmul.mubr.bf16.gmra.mxu1 %v2041_v44 }
 0x4a8   :  { %v1996_v9 = vsel %vm45_vm0, %v1768_v55, %v8969_v20  ;;  %v1995_v28 = vsel %vm45_vm0, %v1767_v37, %v8968_v32  ;;  %7283 = vmatprep.mubr.msk.bf16.mxu1 %vm45_vm0, %v2044_v40 }
 0x4a9   :  { %v8972_v13 = vpop.permute.xlu0 %8971  ;;  %v2011_v7 = vsel %vm341_vm1, %v1995_v28, %v8963_v4  ;;  %v2012_v56 = vsel %vm341_vm1, %v1996_v9, %v8964_v57 }
 0x4aa   :  { %v8974_v41 = vunpack.i.h.bf16 %v8972_v13  ;;  %v8973_v15 = vunpack.i.l.bf16 %v8972_v13 }
 0x4ac   :  { %v2027_v16 = vsel %vm358_vm2, %v2011_v7, %v8973_v15  ;;  %v2028_v46 = vsel %vm358_vm2, %v2012_v56, %v8974_v41 }
 0x4ad   :  { %v8977_v50 = vpop.permute.xlu0 %8976  ;;  %v8982_v43 = vpop.permute.xlu1 %8981  ;;  %v2043_v8 = vpack.c.bf16 %v2028_v46, %v2027_v16 }
 0x4ae   :  { %v8984_v63 = vunpack.i.h.bf16 %v8982_v43  ;;  %v8983_v51 = vunpack.i.l.bf16 %v8982_v43  ;;  %v8979_v54 = vunpack.i.h.bf16 %v8977_v50  ;;  %v8978_v62 = vunpack.i.l.bf16 %v8977_v50 }
 0x4af   :  { %2241 = vmatmul.mubr.bf16.gmra.mxu1 %v2043_v8 }
 0x4b0   :  { %v1998_v25 = vsel %vm45_vm0, %v1770_v2, %v8984_v63  ;;  %v1997_v47 = vsel %vm45_vm0, %v1769_v23, %v8983_v51  ;;  %7284 = vmatprep.mubr.msk.bf16.mxu1 %vm45_vm0, %v2046_v3 }
 0x4b1   :  { %v8987_v5 = vpop.permute.xlu1 %8986  ;;  %v2013_v21 = vsel %vm341_vm1, %v1997_v47, %v8978_v62  ;;  %v2014_v0 = vsel %vm341_vm1, %v1998_v25, %v8979_v54 }
 0x4b2   :  { %v8989_v18 = vunpack.i.h.bf16 %v8987_v5  ;;  %v8988_v31 = vunpack.i.l.bf16 %v8987_v5 }
 0x4b4   :  { %v2029_v10 = vsel %vm358_vm2, %v2013_v21, %v8988_v31  ;;  %v2030_v61 = vsel %vm358_vm2, %v2014_v0, %v8989_v18 }
 0x4b5   :  { %v2045_v19 = vpack.c.bf16 %v2030_v61, %v2029_v10 }
 0x4b7   :  { %2249 = vmatmul.mubr.bf16.gmra.mxu1 %v2045_v19 }
 0x53f   :  { %v2194_v27 = vpop.f32.mrf.mxu1 }
 0x540   :  { %v2195_v35 = vadd.f32 %v10887_v36, %v2194_v27 }
 0x541   :  { %v2196_v30 = vpop.f32.mrf.mxu1 }
 0x542   :  { %v2257_v45 = vmax.f32 %v2195_v35, 0.0 }
 0x543   :  { %v2197_v11 = vpop.f32.mrf.mxu1 }
 0x544   :  { %v2198_v24 = vadd.f32 %v10887_v36, %v2197_v11  ;;  %v2273_v44 = vadd.f32 %v2257_v45, %v10685_v60 }
 0x545   :  { %v2199_v14 = vpop.f32.mrf.mxu1 }
 0x546   :  { %v2258_v12 = vmax.f32 %v2198_v24, 0.0 }
 0x547   :  { %v2202_v39 = vpop.f32.mrf.mxu1 }
 0x548   :  { %v2274_v20 = vadd.f32 %v2258_v12, %v10691_v1  ;;  %v2203_v32 = vadd.f32 %v10887_v36, %v2202_v39 }
 0x549   :  { %v2204_v40 = vpop.f32.mrf.mxu1 }
 0x54a   :  { %v2289_v37 = vpack.c.bf16 %v2274_v20, %v2273_v44  ;;  %v2259_v57 = vmax.f32 %v2203_v32, 0.0 }
 0x54b   :  { %v2205_v55 = vpop.f32.mrf.mxu1 }
 0x54c   :  { %v2206_v4 = vadd.f32 %v10887_v36, %v2205_v55  ;;  %8085 = vmatprep.mubr.msk.bf16.mxu0 %vm45_vm0, %v2289_v37  ;;  %v2275_v41 = vadd.f32 %v2259_v57, %v10702_v52 }
 0x54d   :  { %v2207_v9 = vpop.f32.mrf.mxu1 }
 0x54e   :  { %v2260_v28 = vmax.f32 %v2206_v4, 0.0 }
 0x54f   :  { %v2210_v13 = vpop.f32.mrf.mxu1 }
 0x550   :  { %v2276_v15 = vadd.f32 %v2260_v28, %v10709_v49  ;;  %v2211_v60 = vadd.f32 %v10887_v36, %v2210_v13 }
 0x551   :  { %v2212_v1 = vpop.f32.mrf.mxu1 }
 0x552   :  { %v2290_v7 = vpack.c.bf16 %v2276_v15, %v2275_v41  ;;  %v2261_v16 = vmax.f32 %v2211_v60, 0.0 }
 0x553   :  { %v2213_v56 = vpop.f32.mrf.mxu1 }
 0x554   :  { %v2214_v46 = vadd.f32 %v10887_v36, %v2213_v56  ;;  %8086 = vmatmul.mubr.msk.bf16.vlgmr.msra.gmra.mxu0 %vm45_vm0, %v2290_v7  ;;  %v2277_v63 = vadd.f32 %v2261_v16, %v10715_v29 }
 0x555   :  { %v2215_v50 = vpop.f32.mrf.mxu1 }
 0x556   :  { %v2262_v43 = vmax.f32 %v2214_v46, 0.0 }
 0x557   :  { %v2218_v8 = vpop.f32.mrf.mxu1 }
 0x558   :  { %v2278_v51 = vadd.f32 %v2262_v43, %v10723_v6  ;;  %v2219_v52 = vadd.f32 %v10887_v36, %v2218_v8  ;;  %v10934_v8 = vld [vmem:[%s12703_s4] ss:$0 sm:$0xff] }
 0x559   :  { %v2220_v49 = vpop.f32.mrf.mxu1 }
 0x55a   :  { %v2291_v3 = vpack.c.bf16 %v2278_v51, %v2277_v63  ;;  %v2263_v62 = vmax.f32 %v2219_v52, 0.0 }
 0x55b   :  { %v2221_v54 = vpop.f32.mrf.mxu1 }
 0x55c   :  { %v2222_v23 = vadd.f32 %v10887_v36, %v2221_v54  ;;  %8089 = vmatprep.mubr.msk.bf16.mxu0 %vm45_vm0, %v2291_v3  ;;  %v2279_v5 = vadd.f32 %v2263_v62, %v10730_v33 }
 0x55d   :  { %v2223_v2 = vpop.f32.mrf.mxu1 }
 0x55e   :  { %v2264_v25 = vmax.f32 %v2222_v23, 0.0 }
 0x55f   :  { %v2226_v47 = vpop.f32.mrf.mxu1 }
 0x560   :  { %v2280_v18 = vadd.f32 %v2264_v25, %v10738_v58  ;;  %v2227_v29 = vadd.f32 %v10887_v36, %v2226_v47 }
 0x561   :  { %v2228_v6 = vpop.f32.mrf.mxu1 }
 0x562   :  { %v2292_v31 = vpack.c.bf16 %v2280_v18, %v2279_v5  ;;  %v2265_v0 = vmax.f32 %v2227_v29, 0.0 }
 0x563   :  { %v2229_v21 = vpop.f32.mrf.mxu1 }
 0x564   :  { %v2230_v10 = vadd.f32 %v10887_v36, %v2229_v21  ;;  %8090 = vmatmul.mubr.msk.bf16.gmra.mxu0 %vm45_vm0, %v2292_v31  ;;  %v2281_v27 = vadd.f32 %v2265_v0, %v10745_v59 }
 0x565   :  { %v2231_v61 = vpop.f32.mrf.mxu1 }
 0x566   :  { %v2266_v19 = vmax.f32 %v2230_v10, 0.0 }
 0x567   :  { %v2234_v22 = vpop.f32.mrf.mxu1 }
 0x568   :  { %v2282_v35 = vadd.f32 %v2266_v19, %v10753_v17  ;;  %v2235_v33 = vadd.f32 %v10887_v36, %v2234_v22 }
 0x569   :  { %v2236_v58 = vpop.f32.mrf.mxu1 }
 0x56a   :  { %v2293_v30 = vpack.c.bf16 %v2282_v35, %v2281_v27  ;;  %v2267_v45 = vmax.f32 %v2235_v33, 0.0 }
 0x56b   :  { %v2237_v11 = vpop.f32.mrf.mxu1 }
 0x56c   :  { %v2238_v24 = vadd.f32 %v10887_v36, %v2237_v11  ;;  %8093 = vmatprep.mubr.msk.bf16.mxu0 %vm45_vm0, %v2293_v30  ;;  %v2283_v44 = vadd.f32 %v2267_v45, %v10760_v26 }
 0x56d   :  { %v2239_v14 = vpop.f32.mrf.mxu1 }
 0x56e   :  { %v2268_v12 = vmax.f32 %v2238_v24, 0.0 }
 0x56f   :  { %v2242_v39 = vpop.f32.mrf.mxu1 }
 0x570   :  { %v2284_v20 = vadd.f32 %v2268_v12, %v10768_v48  ;;  %v2243_v59 = vadd.f32 %v10887_v36, %v2242_v39 }
 0x571   :  { %v2244_v17 = vpop.f32.mrf.mxu1 }
 0x572   :  { %v2294_v32 = vpack.c.bf16 %v2284_v20, %v2283_v44  ;;  %v2269_v37 = vmax.f32 %v2243_v59, 0.0 }
 0x573   :  { %v2245_v40 = vpop.f32.mrf.mxu1 }
 0x574   :  { %v2246_v55 = vadd.f32 %v10887_v36, %v2245_v40  ;;  %8094 = vmatmul.mubr.msk.bf16.gmra.mxu0 %vm45_vm0, %v2294_v32  ;;  %v2285_v28 = vadd.f32 %v2269_v37, %v10775_v38  ;;  %v2521_v38 = vlaneseq }
 0x575   :  { %v2247_v57 = vpop.f32.mrf.mxu1 }
 0x576   :  { %v2270_v4 = vmax.f32 %v2246_v55, 0.0  ;;  %v10929_v43 = vand.u32 127, %v2521_v38 }
 0x577   :  { %v2250_v9 = vpop.f32.mrf.mxu1 }
 0x578   :  { %v2286_v13 = vadd.f32 %v2270_v4, %v10783_v34  ;;  %v2251_v26 = vadd.f32 %v10887_v36, %v2250_v9  ;;  %vm2523_vm3 = vcmp.lt.s32.totalorder %v10929_v43, 12 }
 0x579   :  { %v2252_v48 = vpop.f32.mrf.mxu1 }
 0x57a   :  { %v2295_v41 = vpack.c.bf16 %v2286_v13, %v2285_v28  ;;  %v2271_v60 = vmax.f32 %v2251_v26, 0.0 }
 0x57b   :  { %v2253_v15 = vpop.f32.mrf.mxu1 }
 0x57c   :  { %v2254_v1 = vadd.f32 %v10887_v36, %v2253_v15  ;;  %8097 = vmatprep.mubr.msk.bf16.mxu0 %vm45_vm0, %v2295_v41  ;;  %v2287_v16 = vadd.f32 %v2271_v60, %v10790_v42 }
 0x57d   :  { %v2255_v7 = vpop.f32.mrf.mxu1 }
 0x57e   :  { %v2272_v56 = vmax.f32 %v2254_v1, 0.0  ;;  %v9512_v7 = vld [vmem:[%s12705_s5 + $0x38] sm:$0xff]  }
 0x57f   :  { %8101 = vmatprep.subr.bf16.mxu1 %v9512_v7 }
 0x580   :  { %v2288_v46 = vadd.f32 %v2272_v56, %v10798_v53  ;;  %v9513_v56 = vld [vmem:[%s12705_s5 + $0x30] sm:$0xff]   ;;  %8102 = vmatpush3.bf16.msra.mxu1 %v9512_v7 }
 0x581   :  { %8103 = vmatprep.subr.bf16.mxu1 %v9513_v56 }
 0x582   :  { %v2296_v50 = vpack.c.bf16 %v2288_v46, %v2287_v16 }
 0x584   :  { %8098 = vmatmul.mubr.msk.bf16.gmra.mxu0 %vm45_vm0, %v2296_v50  ;;  %8104 = vmatpush3.bf16.msra.mxu1 %v9513_v56 }
 0x614   :  { %v8087_v34 = vpop.f32.mrf.mxu0 }
 0x615   :  { %v2387_v42 = vadd.f32 %v8087_v34, %v10934_v8 }
 0x616   :  { %v2378_v36 = vpop.f32.mrf.mxu0 }
 0x617   :  { %v2379_v63 = vadd.f32 %v10934_v8, %v2378_v36  ;;  %v10955_v2 = vsel %vm2523_vm3, %v2387_v42, -inf }
 0x618   :  { %v8088_v51 = vpop.f32.mrf.mxu0 }
 0x619   :  { %v2390_v53 = vadd.f32 %v8088_v51, %v10934_v8  ;;  %v10942_v52 = vsel %vm2523_vm3, %v2379_v63, -inf }
 0x61a   :  { %v2381_v49 = vpop.f32.mrf.mxu0  ;;  %2540 = vmax.xlane.f32.xlu0 %v10942_v52 }
 0x61b   :  { %v7740_v3 = vpack.c.bf16 %v2390_v53, %v2387_v42  ;;  %v2382_v54 = vadd.f32 %v10934_v8, %v2381_v49  ;;  %v10964_v25 = vsel %vm2523_vm3, %v2390_v53, -inf }
 0x61d   :  { %7852 = vst [vmem:[%s12704_s13 + $0x8] sm:$0xff] %v7740_v3   ;;  %v7735_v62 = vpack.c.bf16 %v2382_v54, %v2379_v63  ;;  %v10951_v23 = vsel %vm2523_vm3, %v2382_v54, -inf }
 0x61e   :  { %2542 = vmax.xlane.f32.xlu1 %v10951_v23  ;;  %2544 = vmax.xlane.f32.xlu0 %v10955_v2 }
 0x61f   :  { %7736 = vst [vmem:[%s12704_s13] sm:$0xff] %v7735_v62  }
 0x622   :  { %2546 = vmax.xlane.f32.xlu0 %v10964_v25 }
 0x624   :  { %v8091_v47 = vpop.f32.mrf.mxu0 }
 0x625   :  { %v2403_v6 = vadd.f32 %v8091_v47, %v10934_v8 }
 0x626   :  { %v2394_v5 = vpop.f32.mrf.mxu0 }
 0x627   :  { %v2395_v18 = vadd.f32 %v10934_v8, %v2394_v5  ;;  %v10981_v22 = vsel %vm2523_vm3, %v2403_v6, -inf }
 0x628   :  { %v8092_v29 = vpop.f32.mrf.mxu0 }
 0x629   :  { %v2406_v31 = vadd.f32 %v8092_v29, %v10934_v8  ;;  %v10972_v21 = vsel %vm2523_vm3, %v2395_v18, -inf }
 0x62a   :  { %v2397_v0 = vpop.f32.mrf.mxu0  ;;  %2548 = vmax.xlane.f32.xlu1 %v10972_v21 }
 0x62b   :  { %v7750_v10 = vpack.c.bf16 %v2406_v31, %v2403_v6  ;;  %v2398_v61 = vadd.f32 %v10934_v8, %v2397_v0  ;;  %v10994_v35 = vsel %vm2523_vm3, %v2406_v31, -inf }
 0x62d   :  { %7854 = vst [vmem:[%s12704_s13 + $0x18] sm:$0xff] %v7750_v10   ;;  %v7745_v19 = vpack.c.bf16 %v2398_v61, %v2395_v18  ;;  %v10985_v27 = vsel %vm2523_vm3, %v2398_v61, -inf  ;;  %v9514_v61 = vld [vmem:[%s12705_s5 + $0x28] sm:$0xff]  }
 0x62e   :  { %2552 = vmax.xlane.f32.xlu1 %v10981_v22  ;;  %2550 = vmax.xlane.f32.xlu0 %v10985_v27 }
 0x62f   :  { %7853 = vst [vmem:[%s12704_s13 + $0x10] sm:$0xff] %v7745_v19   ;;  %8105 = vmatprep.subr.bf16.mxu1 %v9514_v61 }
 0x630   :  { %8106 = vmatpush3.bf16.msra.mxu1 %v9514_v61 }
 0x632   :  { %2554 = vmax.xlane.f32.xlu0 %v10994_v35 }
 0x634   :  { %v8095_v33 = vpop.f32.mrf.mxu0 }
 0x635   :  { %v2419_v45 = vadd.f32 %v8095_v33, %v10934_v8 }
 0x636   :  { %v2410_v58 = vpop.f32.mrf.mxu0 }
 0x637   :  { %v2411_v30 = vadd.f32 %v10934_v8, %v2410_v58  ;;  %v11011_v59 = vsel %vm2523_vm3, %v2419_v45, -inf }
 0x638   :  { %v8096_v11 = vpop.f32.mrf.mxu0 }
 0x639   :  { %v2422_v24 = vadd.f32 %v8096_v11, %v10934_v8  ;;  %v11002_v14 = vsel %vm2523_vm3, %v2411_v30, -inf }
 0x63a   :  { %v2413_v12 = vpop.f32.mrf.mxu0  ;;  %2556 = vmax.xlane.f32.xlu1 %v11002_v14 }
 0x63b   :  { %v7760_v39 = vpack.c.bf16 %v2422_v24, %v2419_v45  ;;  %v2414_v44 = vadd.f32 %v10934_v8, %v2413_v12  ;;  %v11024_v32 = vsel %vm2523_vm3, %v2422_v24, -inf  ;;  %v9516_v24 = vld [vmem:[%s12705_s5 + $0x18] sm:$0xff]   ;;  %v9517_v12 = vld [vmem:[%s12705_s5 + $0x10] sm:$0xff]  }
 0x63d   :  { %7856 = vst [vmem:[%s12704_s13 + $0x28] sm:$0xff] %v7760_v39   ;;  %v7755_v20 = vpack.c.bf16 %v2414_v44, %v2411_v30  ;;  %v11015_v17 = vsel %vm2523_vm3, %v2414_v44, -inf }
 0x63e   :  { %2560 = vmax.xlane.f32.xlu1 %v11011_v59  ;;  %2558 = vmax.xlane.f32.xlu0 %v11015_v17 }
 0x63f   :  { %7855 = vst [vmem:[%s12704_s13 + $0x20] sm:$0xff] %v7755_v20  }
 0x642   :  { %2562 = vmax.xlane.f32.xlu0 %v11024_v32 }
 0x644   :  { %v8099_v40 = vpop.f32.mrf.mxu0 }
 0x645   :  { %v2435_v4 = vadd.f32 %v8099_v40, %v10934_v8 }
 0x646   :  { %v2426_v37 = vpop.f32.mrf.mxu0 }
 0x647   :  { %v2427_v55 = vadd.f32 %v10934_v8, %v2426_v37  ;;  %v11041_v15 = vsel %vm2523_vm3, %v2435_v4, -inf }
 0x648   :  { %v8100_v57 = vpop.f32.mrf.mxu0 }
 0x649   :  { %v2438_v9 = vadd.f32 %v8100_v57, %v10934_v8  ;;  %v11032_v28 = vsel %vm2523_vm3, %v2427_v55, -inf }
 0x64a   :  { %v2429_v13 = vpop.f32.mrf.mxu0  ;;  %2564 = vmax.xlane.f32.xlu1 %v11032_v28 }
 0x64b   :  { %v7770_v26 = vpack.c.bf16 %v2438_v9, %v2435_v4  ;;  %v2430_v48 = vadd.f32 %v10934_v8, %v2429_v13  ;;  %v11054_v1 = vsel %vm2523_vm3, %v2438_v9, -inf  ;;  %v9519_v9 = vld [vmem:[%s12705_s5] sm:$0xff]  }
 0x64d   :  { %7858 = vst [vmem:[%s12704_s13 + $0x38] sm:$0xff] %v7770_v26   ;;  %v7765_v41 = vpack.c.bf16 %v2430_v48, %v2427_v55  ;;  %v11045_v60 = vsel %vm2523_vm3, %v2430_v48, -inf  ;;  %v9518_v55 = vld [vmem:[%s12705_s5 + $0x8] sm:$0xff]  }
 0x64e   :  { %2568 = vmax.xlane.f32.xlu1 %v11041_v15  ;;  %2566 = vmax.xlane.f32.xlu0 %v11045_v60 }
 0x64f   :  { %7857 = vst [vmem:[%s12704_s13 + $0x30] sm:$0xff] %v7765_v41  }
 0x652   :  { %2570 = vmax.xlane.f32.xlu0 %v11054_v1 }
 0x6a3   :  { %v2541_v16 = vpop.xlane.xlu0 %2540 }
 0x6a4   :  { %v2572_v46 = vsub.f32 %v10942_v52, %v2541_v16 }
 0x6a6   :  { %v2588_v50 = vmul.f32 1.442695, %v2572_v46 }
 0x6a7   :  { %v2543_v38 = vpop.xlane.xlu1 %2542  ;;  %v2545_v34 = vpop.xlane.xlu0 %2544 }
 0x6a8   :  { %9580 = vpow2.f32 %v2588_v50  ;;  %v2573_v8 = vsub.f32 %v10951_v23, %v2543_v38  ;;  %v2574_v36 = vsub.f32 %v10955_v2, %v2545_v34 }
 0x6aa   :  { %v2590_v63 = vmul.f32 1.442695, %v2573_v8  ;;  %v2592_v51 = vmul.f32 1.442695, %v2574_v36 }
 0x6ab   :  { %v2547_v42 = vpop.xlane.xlu0 %2546 }
 0x6ac   :  { %9582 = vpow2.f32 %v2590_v63  ;;  %v2575_v53 = vsub.f32 %v10964_v25, %v2547_v42 }
 0x6ad   :  { %9584 = vpow2.f32 %v2592_v51 }
 0x6ae   :  { %v2594_v49 = vmul.f32 1.442695, %v2575_v53 }
 0x6b0   :  { %9586 = vpow2.f32 %v2594_v49 }
 0x6b3   :  { %v2549_v3 = vpop.xlane.xlu1 %2548 }
 0x6b4   :  { %v2576_v52 = vsub.f32 %v10972_v21, %v2549_v3 }
 0x6b5   :  { %v11068_v54 = vpop.eup %9580 }
 0x6b6   :  { %v2596_v62 = vmul.f32 1.442695, %v2576_v52  ;;  %2620 = vadd.xlane.f32.xlu1 %v11068_v54 }
 0x6b7   :  { %v2553_v23 = vpop.xlane.xlu1 %2552  ;;  %v2551_v47 = vpop.xlane.xlu0 %2550 }
 0x6b8   :  { %9588 = vpow2.f32 %v2596_v62  ;;  %v2578_v2 = vsub.f32 %v10981_v22, %v2553_v23  ;;  %v2577_v5 = vsub.f32 %v10985_v27, %v2551_v47 }
 0x6b9   :  { %v11073_v18 = vpop.eup %9582 }
 0x6ba   :  { %v11075_v25 = vpop.eup %9584  ;;  %v2600_v29 = vmul.f32 1.442695, %v2578_v2  ;;  %v2598_v6 = vmul.f32 1.442695, %v2577_v5  ;;  %2622 = vadd.xlane.f32.xlu0 %v11073_v18 }
 0x6bb   :  { %2624 = vadd.xlane.f32.xlu1 %v11075_v25  ;;  %v2555_v31 = vpop.xlane.xlu0 %2554 }
 0x6bc   :  { %9590 = vpow2.f32 %v2600_v29  ;;  %v2579_v21 = vsub.f32 %v10994_v35, %v2555_v31  ;;  %v9515_v35 = vld [vmem:[%s12705_s5 + $0x20] sm:$0xff]  }
 0x6bd   :  { %v11080_v0 = vpop.eup %9586  ;;  %9592 = vpow2.f32 %v2598_v6  ;;  %8107 = vmatprep.subr.bf16.mxu1 %v9515_v35 }
 0x6be   :  { %v2602_v10 = vmul.f32 1.442695, %v2579_v21  ;;  %2626 = vadd.xlane.f32.xlu0 %v11080_v0  ;;  %8108 = vmatpush3.bf16.msra.mxu1 %v9515_v35 }
 0x6bf   :  { %8109 = vmatprep.subr.bf16.mxu1 %v9516_v24 }
 0x6c0   :  { %9594 = vpow2.f32 %v2602_v10 }
 0x6c2   :  { %8110 = vmatpush3.bf16.msra.mxu1 %v9516_v24 }
 0x6c3   :  { %v2557_v19 = vpop.xlane.xlu1 %2556  ;;  %8111 = vmatprep.subr.bf16.mxu1 %v9517_v12 }
 0x6c4   :  { %v2580_v22 = vsub.f32 %v11002_v14, %v2557_v19 }
 0x6c5   :  { %v11087_v27 = vpop.eup %9588 }
 0x6c6   :  { %v2604_v33 = vmul.f32 1.442695, %v2580_v22  ;;  %2628 = vadd.xlane.f32.xlu1 %v11087_v27  ;;  %8112 = vmatpush3.bf16.msra.mxu1 %v9517_v12 }
 0x6c7   :  { %v2561_v58 = vpop.xlane.xlu1 %2560  ;;  %v2559_v30 = vpop.xlane.xlu0 %2558  ;;  %8113 = vmatprep.subr.bf16.mxu1 %v9518_v55 }
 0x6c8   :  { %9596 = vpow2.f32 %v2604_v33  ;;  %v2582_v11 = vsub.f32 %v11011_v59, %v2561_v58  ;;  %v2581_v45 = vsub.f32 %v11015_v17, %v2559_v30 }
 0x6c9   :  { %v11098_v14 = vpop.eup %9590 }
 0x6ca   :  { %v11103_v39 = vpop.eup %9592  ;;  %v2608_v44 = vmul.f32 1.442695, %v2582_v11  ;;  %v2606_v20 = vmul.f32 1.442695, %v2581_v45  ;;  %2632 = vadd.xlane.f32.xlu1 %v11098_v14  ;;  %8114 = vmatpush3.bf16.msra.mxu1 %v9518_v55 }
 0x6cb   :  { %2630 = vadd.xlane.f32.xlu0 %v11103_v39  ;;  %v2563_v59 = vpop.xlane.xlu0 %2562  ;;  %8115 = vmatprep.subr.bf16.mxu1 %v9519_v9 }
 0x6cc   :  { %9598 = vpow2.f32 %v2608_v44  ;;  %v2583_v17 = vsub.f32 %v11024_v32, %v2563_v59 }
 0x6cd   :  { %v11108_v40 = vpop.eup %9594  ;;  %9600 = vpow2.f32 %v2606_v20 }
 0x6ce   :  { %v2610_v37 = vmul.f32 1.442695, %v2583_v17  ;;  %8116 = vmatpush3.bf16.msra.mxu1 %v9519_v9 }
 0x6cf   :  { %2634 = vadd.xlane.f32.xlu0 %v11108_v40 }
 0x6d0   :  { %9602 = vpow2.f32 %v2610_v37 }
 0x6d3   :  { %v2565_v57 = vpop.xlane.xlu1 %2564 }
 0x6d4   :  { %v2584_v4 = vsub.f32 %v11032_v28, %v2565_v57 }
 0x6d5   :  { %v11115_v32 = vpop.eup %9596 }
 0x6d6   :  { %v2612_v13 = vmul.f32 1.442695, %v2584_v4  ;;  %2636 = vadd.xlane.f32.xlu1 %v11115_v32 }
 0x6d7   :  { %v2569_v26 = vpop.xlane.xlu1 %2568  ;;  %v2567_v48 = vpop.xlane.xlu0 %2566 }
 0x6d8   :  { %9604 = vpow2.f32 %v2612_v13  ;;  %v2586_v41 = vsub.f32 %v11041_v15, %v2569_v26  ;;  %v2585_v7 = vsub.f32 %v11045_v60, %v2567_v48 }
 0x6d9   :  { %v11123_v28 = vpop.eup %9598 }
 0x6da   :  { %v11125_v56 = vpop.eup %9600  ;;  %v2616_v16 = vmul.f32 1.442695, %v2586_v41  ;;  %v2614_v46 = vmul.f32 1.442695, %v2585_v7  ;;  %2640 = vadd.xlane.f32.xlu1 %v11123_v28 }
 0x6db   :  { %2638 = vadd.xlane.f32.xlu0 %v11125_v56  ;;  %v2571_v50 = vpop.xlane.xlu0 %2570 }
 0x6dc   :  { %9606 = vpow2.f32 %v2616_v16  ;;  %v2587_v38 = vsub.f32 %v11054_v1, %v2571_v50 }
 0x6dd   :  { %v11130_v34 = vpop.eup %9602  ;;  %9608 = vpow2.f32 %v2614_v46 }
 0x6de   :  { %v2618_v15 = vmul.f32 1.442695, %v2587_v38  ;;  %v9520_v38 = vld [vmem:[%s12706_s7 + $0x28] sm:$0xff]  }
 0x6df   :  { %2642 = vadd.xlane.f32.xlu0 %v11130_v34  ;;  %8133 = vmatprep.subr.bf16.mxu0 %v9520_v38 }
 0x6e0   :  { %9610 = vpow2.f32 %v2618_v15  ;;  %8134 = vmatpush3.bf16.msra.mxu0 %v9520_v38  ;;  %v11170_v15 = vld [vmem:[%s12707_s6] ss:$0 sm:$0xff] }
 0x6e5   :  { %v11133_v60 = vpop.eup %9604 }
 0x6e6   :  { %2644 = vadd.xlane.f32.xlu1 %v11133_v60 }
 0x6e9   :  { %v11136_v8 = vpop.eup %9606 }
 0x6ea   :  { %v11138_v36 = vpop.eup %9608  ;;  %2648 = vadd.xlane.f32.xlu1 %v11136_v8 }
 0x6eb   :  { %2646 = vadd.xlane.f32.xlu0 %v11138_v36 }
 0x6ed   :  { %v11142_v1 = vpop.eup %9610 }
 0x6ef   :  { %2650 = vadd.xlane.f32.xlu0 %v11142_v1 }
 0x73f   :  { %v2621_v63 = vpop.xlane.xlu1 %2620 }
 0x740   :  { %9612 = vrcp.f32 %v2621_v63 }
 0x743   :  { %v2623_v51 = vpop.xlane.xlu0 %2622 }
 0x744   :  { %v2625_v42 = vpop.xlane.xlu1 %2624  ;;  %9614 = vrcp.f32 %v2623_v51 }
 0x745   :  { %9616 = vrcp.f32 %v2625_v42 }
 0x747   :  { %v2627_v53 = vpop.xlane.xlu0 %2626 }
 0x748   :  { %9618 = vrcp.f32 %v2627_v53 }
 0x74d   :  { %v9613_v49 = vpop.eup %9612 }
 0x74e   :  { %v2668_v62 = vmul.f32 %v9613_v49, %v11068_v54 }
 0x74f   :  { %v2629_v3 = vpop.xlane.xlu1 %2628 }
 0x750   :  { %9620 = vrcp.f32 %v2629_v3  ;;  %v9524_v3 = vld [vmem:[%s12706_s7 + $0x8] sm:$0xff]  }
 0x751   :  { %v9615_v52 = vpop.eup %9614 }
 0x752   :  { %v2669_v23 = vmul.f32 %v9615_v52, %v11073_v18  ;;  %v9617_v47 = vpop.eup %9616 }
 0x753   :  { %v2633_v2 = vpop.xlane.xlu1 %2632  ;;  %v2670_v31 = vmul.f32 %v9617_v47, %v11075_v25 }
 0x754   :  { %v2631_v5 = vpop.xlane.xlu0 %2630  ;;  %v2684_v29 = vpack.c.bf16 %v2669_v23, %v2668_v62  ;;  %v9525_v23 = vld [vmem:[%s12706_s7] sm:$0xff]  }
 0x755   :  { %v9619_v6 = vpop.eup %9618  ;;  %9622 = vrcp.f32 %v2631_v5 }
 0x756   :  { %8117 = vmatprep.mubr.bf16.mxu1 %v2684_v29  ;;  %v2671_v21 = vmul.f32 %v9619_v6, %v11080_v0  ;;  %9624 = vrcp.f32 %v2633_v2 }
 0x758   :  { %v2635_v10 = vpop.xlane.xlu0 %2634  ;;  %v2685_v61 = vpack.c.bf16 %v2671_v21, %v2670_v31 }
 0x759   :  { %9626 = vrcp.f32 %v2635_v10 }
 0x75a   :  { %8118 = vmatmul.mubr.bf16.vlgmr.msra.gmra.mxu1 %v2685_v61 }
 0x75d   :  { %v9621_v19 = vpop.eup %9620 }
 0x75e   :  { %v2672_v22 = vmul.f32 %v9621_v19, %v11087_v27 }
 0x75f   :  { %v2637_v54 = vpop.xlane.xlu1 %2636 }
 0x760   :  { %9628 = vrcp.f32 %v2637_v54 }
 0x762   :  { %v9623_v18 = vpop.eup %9622 }
 0x763   :  { %v2673_v35 = vmul.f32 %v9623_v18, %v11103_v39  ;;  %v9625_v33 = vpop.eup %9624  ;;  %v2641_v58 = vpop.xlane.xlu1 %2640 }
 0x764   :  { %v2639_v30 = vpop.xlane.xlu0 %2638  ;;  %v2674_v0 = vmul.f32 %v9625_v33, %v11098_v14 }
 0x765   :  { %9630 = vrcp.f32 %v2639_v30  ;;  %v2686_v25 = vpack.c.bf16 %v2673_v35, %v2672_v22 }
 0x766   :  { %v9627_v11 = vpop.eup %9626  ;;  %9632 = vrcp.f32 %v2641_v58 }
 0x767   :  { %8121 = vmatprep.mubr.bf16.mxu1 %v2686_v25  ;;  %v2675_v45 = vmul.f32 %v9627_v11, %v11108_v40 }
 0x768   :  { %v2643_v24 = vpop.xlane.xlu0 %2642 }
 0x769   :  { %9634 = vrcp.f32 %v2643_v24  ;;  %v2687_v12 = vpack.c.bf16 %v2675_v45, %v2674_v0 }
 0x76b   :  { %8122 = vmatmul.mubr.bf16.gmra.mxu1 %v2687_v12 }
 0x76d   :  { %v9629_v27 = vpop.eup %9628 }
 0x76e   :  { %v2676_v39 = vmul.f32 %v9629_v27, %v11115_v32 }
 0x76f   :  { %v2645_v44 = vpop.xlane.xlu1 %2644 }
 0x770   :  { %9636 = vrcp.f32 %v2645_v44 }
 0x772   :  { %v9631_v20 = vpop.eup %9630 }
 0x773   :  { %v2677_v59 = vmul.f32 %v9631_v20, %v11125_v56  ;;  %v9633_v17 = vpop.eup %9632  ;;  %v2649_v37 = vpop.xlane.xlu1 %2648 }
 0x774   :  { %v2647_v55 = vpop.xlane.xlu0 %2646  ;;  %v2678_v40 = vmul.f32 %v9633_v17, %v11123_v28 }
 0x775   :  { %9638 = vrcp.f32 %v2647_v55  ;;  %v2688_v57 = vpack.c.bf16 %v2677_v59, %v2676_v39 }
 0x776   :  { %v9635_v14 = vpop.eup %9634  ;;  %9640 = vrcp.f32 %v2649_v37 }
 0x777   :  { %8125 = vmatprep.mubr.bf16.mxu1 %v2688_v57  ;;  %v2679_v4 = vmul.f32 %v9635_v14, %v11130_v34  ;;  %v9521_v34 = vld [vmem:[%s12706_s7 + $0x20] sm:$0xff]  }
 0x778   :  { %v2651_v9 = vpop.xlane.xlu0 %2650  ;;  %8135 = vmatprep.subr.bf16.mxu0 %v9521_v34 }
 0x779   :  { %9642 = vrcp.f32 %v2651_v9  ;;  %v2689_v13 = vpack.c.bf16 %v2679_v4, %v2678_v40  ;;  %8136 = vmatpush3.bf16.msra.mxu0 %v9521_v34 }
 0x77b   :  { %8126 = vmatmul.mubr.bf16.gmra.mxu1 %v2689_v13 }
 0x77d   :  { %v9637_v26 = vpop.eup %9636 }
 0x77e   :  { %v2680_v48 = vmul.f32 %v9637_v26, %v11133_v60  ;;  %v9522_v60 = vld [vmem:[%s12706_s7 + $0x18] sm:$0xff]  }
 0x77f   :  { %8137 = vmatprep.subr.bf16.mxu0 %v9522_v60 }
 0x780   :  { %8138 = vmatpush3.bf16.msra.mxu0 %v9522_v60 }
 0x782   :  { %v9639_v32 = vpop.eup %9638 }
 0x783   :  { %v2681_v41 = vmul.f32 %v9639_v32, %v11138_v36  ;;  %v9641_v7 = vpop.eup %9640 }
 0x784   :  { %v2682_v46 = vmul.f32 %v9641_v7, %v11136_v8  ;;  %v9523_v8 = vld [vmem:[%s12706_s7 + $0x10] sm:$0xff]  }
 0x785   :  { %v2690_v56 = vpack.c.bf16 %v2681_v41, %v2680_v48  ;;  %8139 = vmatprep.subr.bf16.mxu0 %v9523_v8 }
 0x786   :  { %v9643_v16 = vpop.eup %9642  ;;  %8140 = vmatpush3.bf16.msra.mxu0 %v9523_v8 }
 0x787   :  { %8129 = vmatprep.mubr.bf16.mxu1 %v2690_v56  ;;  %v2683_v28 = vmul.f32 %v9643_v16, %v11142_v1  ;;  %8141 = vmatprep.subr.bf16.mxu0 %v9524_v3 }
 0x789   :  { %v2691_v50 = vpack.c.bf16 %v2683_v28, %v2682_v46 }
 0x78a   :  { %8142 = vmatpush3.bf16.msra.mxu0 %v9524_v3 }
 0x78b   :  { %8130 = vmatmul.mubr.bf16.gmra.mxu1 %v2691_v50  ;;  %8143 = vmatprep.subr.bf16.mxu0 %v9525_v23 }
 0x78e   :  { %8144 = vmatpush3.bf16.msra.mxu0 %v9525_v23 }
 0x81a   :  { %v8119_v36 = vpop.f32.mrf.mxu1 }
 0x81b   :  { %v11179_v1 = vadd.f32 %v8119_v36, %v11170_v15 }
 0x81c   :  { %v2797_v63 = vpop.f32.mrf.mxu1 }
 0x81d   :  { %2862 = vst.msk [vmem:[#allocation2 + $0x20] sm:$0xff] %vm45_vm0, %v11179_v1  ;;  %v11184_v51 = vadd.f32 %v11170_v15, %v2797_v63 }
 0x81e   :  { %v8120_v42 = vpop.f32.mrf.mxu1 }
 0x81f   :  { %2860 = vst.msk [vmem:[#allocation2 + $0x10] sm:$0xff] %vm45_vm0, %v11184_v51  ;;  %v11189_v53 = vadd.f32 %v8120_v42, %v11170_v15 }
 0x820   :  { %v2800_v49 = vpop.f32.mrf.mxu1 }
 0x821   :  { %2863 = vst.msk [vmem:[#allocation2 + $0x28] sm:$0xff] %vm45_vm0, %v11189_v53  ;;  %v11197_v52 = vadd.f32 %v11170_v15, %v2800_v49  ;;  %v9000_v19 = vpack.i.bf16 %v11189_v53, %v11179_v1 }
 0x823   :  { %v8990_v62 = vpack.i.bf16 %v11197_v52, %v11184_v51  ;;  %2861 = vst.msk [vmem:[#allocation2 + $0x18] sm:$0xff] %vm45_vm0, %v11197_v52 }
 0x825   :  { %8991 = vrot.lane.b32.xlu1 %v8990_v62, %s9712_s28 }
 0x826   :  { %v2892_v47 = vld [vmem:[#allocation2 + $0xf] sm:$0xff] }
 0x828   :  { %v2895_v5 = vld [vmem:[#allocation2 + $0x27] sm:$0xff] }
 0x82a   :  { %v2894_v2 = vld [vmem:[#allocation2 + $0x1f] sm:$0xff]  ;;  %v2893_v29 = vld [vmem:[#allocation2 + $0x17] sm:$0xff] }
 0x82b   :  { %v8123_v6 = vpop.f32.mrf.mxu1  ;;  %v9005_v31 = vpack.i.bf16 %v2895_v5, %v2894_v2  ;;  %v8995_v21 = vpack.i.bf16 %v2893_v29, %v2892_v47  ;;  %v2876_v29 = vld [vmem:[#allocation2 + $0xe] sm:$0xff] }
 0x82c   :  { %v11208_v10 = vadd.f32 %v8123_v6, %v11170_v15  ;;  %v2877_v6 = vld [vmem:[#allocation2 + $0x16] sm:$0xff] }
 0x82d   :  { %v2813_v61 = vpop.f32.mrf.mxu1  ;;  %9006 = vrot.lane.b32.xlu0 %v9005_v31, %s9710_s0  ;;  %8996 = vrot.lane.b32.xlu1 %v8995_v21, %s9710_s0 }
 0x82e   :  { %2866 = vst.msk [vmem:[#allocation2 + $0x40] sm:$0xff] %vm45_vm0, %v11208_v10  ;;  %v11215_v54 = vadd.f32 %v11170_v15, %v2813_v61 }
 0x82f   :  { %v8124_v18 = vpop.f32.mrf.mxu1 }
 0x830   :  { %2864 = vst.msk [vmem:[#allocation2 + $0x30] sm:$0xff] %vm45_vm0, %v11215_v54  ;;  %v11222_v22 = vadd.f32 %v8124_v18, %v11170_v15 }
 0x831   :  { %v2816_v35 = vpop.f32.mrf.mxu1  ;;  %9001 = vrot.lane.b32.xlu1 %v9000_v19, %s9712_s28 }
 0x832   :  { %2867 = vst.msk [vmem:[#allocation2 + $0x48] sm:$0xff] %vm45_vm0, %v11222_v22  ;;  %v11228_v33 = vadd.f32 %v11170_v15, %v2816_v35  ;;  %v9025_v39 = vpack.i.bf16 %v11222_v22, %v11208_v10 }
 0x834   :  { %2865 = vst.msk [vmem:[#allocation2 + $0x38] sm:$0xff] %vm45_vm0, %v11228_v33  ;;  %v9015_v59 = vpack.i.bf16 %v11228_v33, %v11215_v54 }
 0x837   :  { %v2896_v58 = vld [vmem:[#allocation2 + $0x2f] sm:$0xff] }
 0x839   :  { %v2899_v11 = vld [vmem:[#allocation2 + $0x47] sm:$0xff] }
 0x83b   :  { %v8127_v30 = vpop.f32.mrf.mxu1  ;;  %v2898_v25 = vld [vmem:[#allocation2 + $0x3f] sm:$0xff]  ;;  %v2897_v0 = vld [vmem:[#allocation2 + $0x37] sm:$0xff] }
 0x83c   :  { %v11233_v45 = vadd.f32 %v8127_v30, %v11170_v15  ;;  %v9020_v24 = vpack.i.bf16 %v2899_v11, %v2898_v25  ;;  %v9010_v12 = vpack.i.bf16 %v2897_v0, %v2896_v58  ;;  %v2878_v30 = vld [vmem:[#allocation2 + $0x1e] sm:$0xff]  ;;  %v2879_v25 = vld [vmem:[#allocation2 + $0x26] sm:$0xff] }
 0x83d   :  { %v2829_v44 = vpop.f32.mrf.mxu1 }
 0x83e   :  { %2870 = vst.msk [vmem:[#allocation2 + $0x70] sm:$0xff] %vm45_vm0, %v11233_v45  ;;  %v11238_v27 = vadd.f32 %v11170_v15, %v2829_v44  ;;  %9021 = vrot.lane.b32.xlu1 %v9020_v24, %s9710_s0  ;;  %9011 = vrot.lane.b32.xlu0 %v9010_v12, %s9710_s0 }
 0x83f   :  { %v8128_v20 = vpop.f32.mrf.mxu1 }
 0x840   :  { %2868 = vst.msk [vmem:[#allocation2 + $0x60] sm:$0xff] %vm45_vm0, %v11238_v27  ;;  %v11249_v17 = vadd.f32 %v8128_v20, %v11170_v15 }
 0x841   :  { %v2832_v37 = vpop.f32.mrf.mxu1 }
 0x842   :  { %2871 = vst.msk [vmem:[#allocation2 + $0x78] sm:$0xff] %vm45_vm0, %v11249_v17  ;;  %v11254_v55 = vadd.f32 %v11170_v15, %v2832_v37  ;;  %9026 = vrot.lane.b32.xlu1 %v9025_v39, %s9712_s28  ;;  %9016 = vrot.lane.b32.xlu0 %v9015_v59, %s9712_s28  ;;  %v9045_v56 = vpack.i.bf16 %v11249_v17, %v11233_v45 }
 0x844   :  { %2869 = vst.msk [vmem:[#allocation2 + $0x68] sm:$0xff] %vm45_vm0, %v11254_v55  ;;  %v9035_v16 = vpack.i.bf16 %v11254_v55, %v11238_v27 }
 0x847   :  { %v2900_v57 = vld [vmem:[#allocation2 + $0x5f] sm:$0xff] }
 0x849   :  { %v2903_v4 = vld [vmem:[#allocation2 + $0x77] sm:$0xff] }
 0x84b   :  { %v8131_v14 = vpop.f32.mrf.mxu1  ;;  %v2902_v40 = vld [vmem:[#allocation2 + $0x6f] sm:$0xff]  ;;  %v2901_v9 = vld [vmem:[#allocation2 + $0x67] sm:$0xff] }
 0x84c   :  { %v11261_v13 = vadd.f32 %v8131_v14, %v11170_v15  ;;  %v9040_v26 = vpack.i.bf16 %v2903_v4, %v2902_v40  ;;  %v9030_v32 = vpack.i.bf16 %v2901_v9, %v2900_v57 }
 0x84d   :  { %v2845_v48 = vpop.f32.mrf.mxu1 }
 0x84e   :  { %2874 = vst.msk [vmem:[#allocation2 + $0x90] sm:$0xff] %vm45_vm0, %v11261_v13  ;;  %v11266_v41 = vadd.f32 %v11170_v15, %v2845_v48  ;;  %9041 = vrot.lane.b32.xlu1 %v9040_v26, %s9710_s0  ;;  %9031 = vrot.lane.b32.xlu0 %v9030_v32, %s9710_s0  ;;  %v2880_v26 = vld [vmem:[#allocation2 + $0x2e] sm:$0xff] }
 0x84f   :  { %v8132_v7 = vpop.f32.mrf.mxu1 }
 0x850   :  { %2872 = vst.msk [vmem:[#allocation2 + $0x80] sm:$0xff] %vm45_vm0, %v11266_v41  ;;  %v11277_v46 = vadd.f32 %v8132_v7, %v11170_v15  ;;  %v2883_v7 = vld [vmem:[#allocation2 + $0x46] sm:$0xff] }
 0x851   :  { %v2848_v28 = vpop.f32.mrf.mxu1 }
 0x852   :  { %2875 = vst.msk [vmem:[#allocation2 + $0x98] sm:$0xff] %vm45_vm0, %v11277_v46  ;;  %v11282_v50 = vadd.f32 %v11170_v15, %v2848_v28  ;;  %9046 = vrot.lane.b32.xlu1 %v9045_v56, %s9712_s28  ;;  %9036 = vrot.lane.b32.xlu0 %v9035_v16, %s9712_s28  ;;  %v9065_v15 = vpack.i.bf16 %v11277_v46, %v11261_v13  ;;  %v2882_v56 = vld [vmem:[#allocation2 + $0x3e] sm:$0xff]  ;;  %v2881_v16 = vld [vmem:[#allocation2 + $0x36] sm:$0xff] }
 0x854   :  { %2873 = vst.msk [vmem:[#allocation2 + $0x88] sm:$0xff] %vm45_vm0, %v11282_v50  ;;  %v9055_v42 = vpack.i.bf16 %v11282_v50, %v11266_v41 }
 0x857   :  { %v2904_v38 = vld [vmem:[#allocation2 + $0x7f] sm:$0xff] }
 0x859   :  { %v2907_v60 = vld [vmem:[#allocation2 + $0x97] sm:$0xff] }
 0x85b   :  { %v2906_v34 = vld [vmem:[#allocation2 + $0x8f] sm:$0xff]  ;;  %v2905_v8 = vld [vmem:[#allocation2 + $0x87] sm:$0xff] }
 0x85c   :  { %v9060_v36 = vpack.i.bf16 %v2907_v60, %v2906_v34  ;;  %v9050_v63 = vpack.i.bf16 %v2905_v8, %v2904_v38 }
 0x85e   :  { %9061 = vrot.lane.b32.xlu1 %v9060_v36, %s9710_s0  ;;  %9051 = vrot.lane.b32.xlu0 %v9050_v63, %s9710_s0 }
 0x862   :  { %9066 = vrot.lane.b32.xlu1 %v9065_v15, %s9712_s28  ;;  %9056 = vrot.lane.b32.xlu0 %v9055_v42, %s9712_s28 }
 0x897   :  { %v8992_v49 = vpop.permute.xlu1 %8991 }
 0x898   :  { %v8994_v2 = vunpack.i.h.bf16 %v8992_v49  ;;  %v8993_v5 = vunpack.i.l.bf16 %v8992_v49 }
 0x89f   :  { %v8997_v3 = vpop.permute.xlu1 %8996  ;;  %v9007_v62 = vpop.permute.xlu0 %9006 }
 0x8a0   :  { %v8999_v23 = vunpack.i.h.bf16 %v8997_v3  ;;  %v8998_v47 = vunpack.i.l.bf16 %v8997_v3  ;;  %v9009_v31 = vunpack.i.h.bf16 %v9007_v62  ;;  %v9008_v21 = vunpack.i.l.bf16 %v9007_v62 }
 0x8a2   :  { %v3036_v61 = vsel %vm45_vm0, %v2876_v29, %v8998_v47  ;;  %v3037_v19 = vsel %vm45_vm0, %v2877_v6, %v8999_v23  ;;  %v3039_v12 = vsel %vm45_vm0, %v2879_v25, %v9009_v31  ;;  %v3038_v44 = vsel %vm45_vm0, %v2878_v30, %v9008_v21  ;;  %v2885_v30 = vld [vmem:[#allocation2 + $0x66] sm:$0xff] }
 0x8a3   :  { %v9002_v18 = vpop.permute.xlu1 %9001  ;;  %v3052_v35 = vsel %vm341_vm1, %v3036_v61, %v8993_v5  ;;  %v3053_v58 = vsel %vm341_vm1, %v3037_v19, %v8994_v2  ;;  %v2884_v61 = vld [vmem:[#allocation2 + $0x5e] sm:$0xff] }
 0x8a4   :  { %v9004_v11 = vunpack.i.h.bf16 %v9002_v18  ;;  %v9003_v0 = vunpack.i.l.bf16 %v9002_v18  ;;  %v3068_v24 = vpack.c.bf16 %v3053_v58, %v3052_v35  ;;  %v2887_v35 = vld [vmem:[#allocation2 + $0x76] sm:$0xff]  ;;  %v2886_v58 = vld [vmem:[#allocation2 + $0x6e] sm:$0xff] }
 0x8a6   :  { %v3054_v20 = vsel %vm341_vm1, %v3038_v44, %v9003_v0  ;;  %v3055_v39 = vsel %vm341_vm1, %v3039_v12, %v9004_v11  ;;  %8145 = vmatprep.mubr.msk.bf16.mxu0 %vm358_vm2, %v3068_v24 }
 0x8a7   :  { %v3069_v59 = vpack.c.bf16 %v3055_v39, %v3054_v20 }
 0x8a9   :  { %8146 = vmatmul.mubr.msk.bf16.vlgmr.msra.gmra.mxu0 %vm358_vm2, %v3069_v59 }
 0x8b0   :  { %v9022_v37 = vpop.permute.xlu1 %9021  ;;  %v9012_v57 = vpop.permute.xlu0 %9011 }
 0x8b1   :  { %v9024_v14 = vunpack.i.h.bf16 %v9022_v37  ;;  %v9023_v40 = vunpack.i.l.bf16 %v9022_v37  ;;  %v9014_v4 = vunpack.i.h.bf16 %v9012_v57  ;;  %v9013_v9 = vunpack.i.l.bf16 %v9012_v57 }
 0x8b3   :  { %v3043_v8 = vsel %vm45_vm0, %v2883_v7, %v9024_v14  ;;  %v3042_v36 = vsel %vm45_vm0, %v2882_v56, %v9023_v40  ;;  %v3041_v63 = vsel %vm45_vm0, %v2881_v16, %v9014_v4  ;;  %v3040_v15 = vsel %vm45_vm0, %v2880_v26, %v9013_v9  ;;  %v2888_v16 = vld [vmem:[#allocation2 + $0x7e] sm:$0xff] }
 0x8b4   :  { %v9027_v32 = vpop.permute.xlu1 %9026  ;;  %v9017_v48 = vpop.permute.xlu0 %9016 }
 0x8b5   :  { %v9029_v28 = vunpack.i.h.bf16 %v9027_v32  ;;  %v9028_v38 = vunpack.i.l.bf16 %v9027_v32  ;;  %v9019_v34 = vunpack.i.h.bf16 %v9017_v48  ;;  %v9018_v60 = vunpack.i.l.bf16 %v9017_v48 }
 0x8b7   :  { %v3058_v42 = vsel %vm341_vm1, %v3042_v36, %v9028_v38  ;;  %v3059_v49 = vsel %vm341_vm1, %v3043_v8, %v9029_v28  ;;  %v3056_v3 = vsel %vm341_vm1, %v3040_v15, %v9018_v60  ;;  %v3057_v62 = vsel %vm341_vm1, %v3041_v63, %v9019_v34  ;;  %v2891_v34 = vld [vmem:[#allocation2 + $0x96] sm:$0xff]  ;;  %v2890_v60 = vld [vmem:[#allocation2 + $0x8e] sm:$0xff]  ;;  %v2889_v8 = vld [vmem:[#allocation2 + $0x86] sm:$0xff] }
 0x8b8   :  { %v3070_v23 = vpack.c.bf16 %v3057_v62, %v3056_v3  ;;  %v3071_v47 = vpack.c.bf16 %v3059_v49, %v3058_v42 }
 0x8ba   :  { %8149 = vmatprep.mubr.msk.bf16.mxu0 %vm358_vm2, %v3070_v23 }
 0x8bb   :  { %8150 = vmatmul.mubr.msk.bf16.gmra.mxu0 %vm358_vm2, %v3071_v47 }
 0x8c0   :  { %v9042_v2 = vpop.permute.xlu1 %9041  ;;  %v9032_v5 = vpop.permute.xlu0 %9031 }
 0x8c1   :  { %v9044_v29 = vunpack.i.h.bf16 %v9042_v2  ;;  %v9043_v6 = vunpack.i.l.bf16 %v9042_v2  ;;  %v9034_v31 = vunpack.i.h.bf16 %v9032_v5  ;;  %v9033_v21 = vunpack.i.l.bf16 %v9032_v5 }
 0x8c3   :  { %v3047_v12 = vsel %vm45_vm0, %v2887_v35, %v9044_v29  ;;  %v3046_v44 = vsel %vm45_vm0, %v2886_v58, %v9043_v6  ;;  %v3045_v20 = vsel %vm45_vm0, %v2885_v30, %v9034_v31  ;;  %v3044_v39 = vsel %vm45_vm0, %v2884_v61, %v9033_v21  ;;  %v9526_v21 = vld [vmem:[%s12708_s9 + $0x8] sm:$0xff]   ;;  %v9527_v61 = vld [vmem:[%s12708_s9] sm:$0xff]  }
 0x8c4   :  { %v9047_v19 = vpop.permute.xlu1 %9046  ;;  %v9037_v18 = vpop.permute.xlu0 %9036  ;;  %8161 = vmatprep.subr.bf16.mxu1 %v9526_v21  ;;  %v7321_v35 = vld [vmem:[%s12709_s8] ss:$0 sm:$0xff] }
 0x8c5   :  { %v9049_v25 = vunpack.i.h.bf16 %v9047_v19  ;;  %v9048_v11 = vunpack.i.l.bf16 %v9047_v19  ;;  %v9039_v0 = vunpack.i.h.bf16 %v9037_v18  ;;  %v9038_v24 = vunpack.i.l.bf16 %v9037_v18  ;;  %8162 = vmatpush3.bf16.msra.mxu1 %v9526_v21 }
 0x8c6   :  { %8163 = vmatprep.subr.bf16.mxu1 %v9527_v61 }
 0x8c7   :  { %v3062_v59 = vsel %vm341_vm1, %v3046_v44, %v9048_v11  ;;  %v3063_v37 = vsel %vm341_vm1, %v3047_v12, %v9049_v25  ;;  %v3060_v57 = vsel %vm341_vm1, %v3044_v39, %v9038_v24  ;;  %v3061_v14 = vsel %vm341_vm1, %v3045_v20, %v9039_v0 }
 0x8c8   :  { %v3072_v40 = vpack.c.bf16 %v3061_v14, %v3060_v57  ;;  %v3073_v4 = vpack.c.bf16 %v3063_v37, %v3062_v59 }
 0x8c9   :  { %8164 = vmatpush3.bf16.msra.mxu1 %v9527_v61 }
 0x8ca   :  { %8153 = vmatprep.mubr.msk.bf16.mxu0 %vm358_vm2, %v3072_v40 }
 0x8cb   :  { %8154 = vmatmul.mubr.msk.bf16.gmra.mxu0 %vm358_vm2, %v3073_v4 }
 0x8d0   :  { %v9062_v9 = vpop.permute.xlu1 %9061  ;;  %v9052_v26 = vpop.permute.xlu0 %9051 }
 0x8d1   :  { %v9064_v32 = vunpack.i.h.bf16 %v9062_v9  ;;  %v9063_v48 = vunpack.i.l.bf16 %v9062_v9  ;;  %v9054_v7 = vunpack.i.h.bf16 %v9052_v26  ;;  %v9053_v56 = vunpack.i.l.bf16 %v9052_v26 }
 0x8d3   :  { %v3051_v49 = vsel %vm45_vm0, %v2891_v34, %v9064_v32  ;;  %v3050_v3 = vsel %vm45_vm0, %v2890_v60, %v9063_v48  ;;  %v3049_v62 = vsel %vm45_vm0, %v2889_v8, %v9054_v7  ;;  %v3048_v23 = vsel %vm45_vm0, %v2888_v16, %v9053_v56 }
 0x8d4   :  { %v9067_v28 = vpop.permute.xlu1 %9066  ;;  %v9057_v38 = vpop.permute.xlu0 %9056 }
 0x8d5   :  { %v9069_v36 = vunpack.i.h.bf16 %v9067_v28  ;;  %v9068_v63 = vunpack.i.l.bf16 %v9067_v28  ;;  %v9059_v15 = vunpack.i.h.bf16 %v9057_v38  ;;  %v9058_v42 = vunpack.i.l.bf16 %v9057_v38 }
 0x8d7   :  { %v3066_v47 = vsel %vm341_vm1, %v3050_v3, %v9068_v63  ;;  %v3067_v2 = vsel %vm341_vm1, %v3051_v49, %v9069_v36  ;;  %v3064_v5 = vsel %vm341_vm1, %v3048_v23, %v9058_v42  ;;  %v3065_v29 = vsel %vm341_vm1, %v3049_v62, %v9059_v15 }
 0x8d8   :  { %v3074_v6 = vpack.c.bf16 %v3065_v29, %v3064_v5  ;;  %v3075_v31 = vpack.c.bf16 %v3067_v2, %v3066_v47 }
 0x8da   :  { %8157 = vmatprep.mubr.msk.bf16.mxu0 %vm358_vm2, %v3074_v6 }
 0x8db   :  { %8158 = vmatmul.mubr.msk.bf16.gmra.mxu0 %vm358_vm2, %v3075_v31 }
 0x969   :  { %v8147_v19 = vpop.f32.mrf.mxu0 }
 0x96a   :  { %v3198_v11 = vadd.f32 %v8147_v19, %v7321_v35 }
 0x96b   :  { %v3189_v18 = vpop.f32.mrf.mxu0 }
 0x96c   :  { %v3190_v30 = vadd.f32 %v7321_v35, %v3189_v18  ;;  %v3254_v39 = vmax.f32 %v3198_v11, 0.0 }
 0x96d   :  { %v8148_v58 = vpop.f32.mrf.mxu0 }
 0x96e   :  { %v3201_v25 = vadd.f32 %v8148_v58, %v7321_v35  ;;  %v3252_v44 = vmax.f32 %v3190_v30, 0.0 }
 0x96f   :  { %v3192_v0 = vpop.f32.mrf.mxu0 }
 0x970   :  { %v3193_v24 = vadd.f32 %v7321_v35, %v3192_v0  ;;  %v3255_v12 = vmax.f32 %v3201_v25, 0.0 }
 0x972   :  { %v3253_v20 = vmax.f32 %v3193_v24, 0.0  ;;  %v3269_v37 = vpack.c.bf16 %v3255_v12, %v3254_v39  ;;  %v9529_v39 = vld [vmem:[%s12706_s7 + $0x50] sm:$0xff]  }
 0x974   :  { %v3268_v59 = vpack.c.bf16 %v3253_v20, %v3252_v44  ;;  %v9528_v20 = vld [vmem:[%s12706_s7 + $0x58] sm:$0xff]  }
 0x975   :  { %8181 = vmatprep.subr.bf16.mxu0 %v9528_v20 }
 0x976   :  { %8165 = vmatprep.mubr.msk.bf16.mxu1 %vm45_vm0, %v3268_v59  ;;  %8182 = vmatpush3.bf16.msra.mxu0 %v9528_v20  ;;  %v9531_v59 = vld [vmem:[%s12706_s7 + $0x40] sm:$0xff]  }
 0x977   :  { %8166 = vmatmul.mubr.msk.bf16.vlgmr.msra.gmra.mxu1 %vm45_vm0, %v3269_v37  ;;  %8183 = vmatprep.subr.bf16.mxu0 %v9529_v39  ;;  %v11368_v37 = vld [vmem:[%s12710_s10] ss:$0 sm:$0xff] }
 0x97a   :  { %8184 = vmatpush3.bf16.msra.mxu0 %v9529_v39 }
 0x97b   :  { %v8151_v57 = vpop.f32.mrf.mxu0 }
 0x97c   :  { %v3214_v26 = vadd.f32 %v8151_v57, %v7321_v35 }
 0x97d   :  { %v3205_v14 = vpop.f32.mrf.mxu0 }
 0x97e   :  { %v3206_v4 = vadd.f32 %v7321_v35, %v3205_v14  ;;  %v3258_v28 = vmax.f32 %v3214_v26, 0.0 }
 0x97f   :  { %v8152_v40 = vpop.f32.mrf.mxu0 }
 0x980   :  { %v3217_v9 = vadd.f32 %v8152_v40, %v7321_v35  ;;  %v3256_v56 = vmax.f32 %v3206_v4, 0.0 }
 0x981   :  { %v3208_v32 = vpop.f32.mrf.mxu0 }
 0x982   :  { %v3209_v48 = vadd.f32 %v7321_v35, %v3208_v32  ;;  %v3259_v7 = vmax.f32 %v3217_v9, 0.0 }
 0x984   :  { %v3257_v16 = vmax.f32 %v3209_v48, 0.0  ;;  %v3271_v34 = vpack.c.bf16 %v3259_v7, %v3258_v28 }
 0x986   :  { %v3270_v38 = vpack.c.bf16 %v3257_v16, %v3256_v56 }
 0x988   :  { %8169 = vmatprep.mubr.msk.bf16.mxu1 %vm45_vm0, %v3270_v38 }
 0x989   :  { %8170 = vmatmul.mubr.msk.bf16.gmra.mxu1 %vm45_vm0, %v3271_v34 }
 0x98b   :  { %v8155_v60 = vpop.f32.mrf.mxu0 }
 0x98c   :  { %v3230_v42 = vadd.f32 %v8155_v60, %v7321_v35 }
 0x98d   :  { %v3221_v8 = vpop.f32.mrf.mxu0 }
 0x98e   :  { %v3222_v63 = vadd.f32 %v7321_v35, %v3221_v8  ;;  %v3262_v2 = vmax.f32 %v3230_v42, 0.0 }
 0x98f   :  { %v8156_v36 = vpop.f32.mrf.mxu0 }
 0x990   :  { %v3233_v15 = vadd.f32 %v8156_v36, %v7321_v35  ;;  %v3260_v23 = vmax.f32 %v3222_v63, 0.0 }
 0x991   :  { %v3224_v49 = vpop.f32.mrf.mxu0 }
 0x992   :  { %v3225_v3 = vadd.f32 %v7321_v35, %v3224_v49  ;;  %v3263_v62 = vmax.f32 %v3233_v15, 0.0 }
 0x994   :  { %v3261_v47 = vmax.f32 %v3225_v3, 0.0  ;;  %v3273_v29 = vpack.c.bf16 %v3263_v62, %v3262_v2 }
 0x996   :  { %v3272_v5 = vpack.c.bf16 %v3261_v47, %v3260_v23 }
 0x998   :  { %8173 = vmatprep.mubr.msk.bf16.mxu1 %vm45_vm0, %v3272_v5 }
 0x999   :  { %8174 = vmatmul.mubr.msk.bf16.gmra.mxu1 %vm45_vm0, %v3273_v29 }
 0x99b   :  { %v8159_v6 = vpop.f32.mrf.mxu0 }
 0x99c   :  { %v3246_v18 = vadd.f32 %v8159_v6, %v7321_v35 }
 0x99d   :  { %v3237_v31 = vpop.f32.mrf.mxu0 }
 0x99e   :  { %v3238_v61 = vadd.f32 %v7321_v35, %v3237_v31  ;;  %v3266_v24 = vmax.f32 %v3246_v18, 0.0 }
 0x99f   :  { %v8160_v21 = vpop.f32.mrf.mxu0 }
 0x9a0   :  { %v3249_v19 = vadd.f32 %v8160_v21, %v7321_v35  ;;  %v3264_v11 = vmax.f32 %v3238_v61, 0.0 }
 0x9a1   :  { %v3240_v58 = vpop.f32.mrf.mxu0 }
 0x9a2   :  { %v3241_v30 = vadd.f32 %v7321_v35, %v3240_v58  ;;  %v3267_v25 = vmax.f32 %v3249_v19, 0.0  ;;  %v9530_v35 = vld [vmem:[%s12706_s7 + $0x48] sm:$0xff]  }
 0x9a3   :  { %8185 = vmatprep.subr.bf16.mxu0 %v9530_v35 }
 0x9a4   :  { %v3265_v0 = vmax.f32 %v3241_v30, 0.0  ;;  %v3275_v44 = vpack.c.bf16 %v3267_v25, %v3266_v24  ;;  %8186 = vmatpush3.bf16.msra.mxu0 %v9530_v35 }
 0x9a5   :  { %8187 = vmatprep.subr.bf16.mxu0 %v9531_v59 }
 0x9a6   :  { %v3274_v12 = vpack.c.bf16 %v3265_v0, %v3264_v11 }
 0x9a8   :  { %8177 = vmatprep.mubr.msk.bf16.mxu1 %vm45_vm0, %v3274_v12  ;;  %8188 = vmatpush3.bf16.msra.mxu0 %v9531_v59 }
 0x9a9   :  { %8178 = vmatmul.mubr.msk.bf16.gmra.mxu1 %vm45_vm0, %v3275_v44 }
 0xa37   :  { %v8167_v57 = vpop.f32.mrf.mxu1 }
 0xa38   :  { %v3366_v14 = vadd.f32 %v8167_v57, %v11368_v37 }
 0xa39   :  { %v3357_v40 = vpop.f32.mrf.mxu1 }
 0xa3a   :  { %v11372_v4 = vadd.f32 %v3366_v14, %v11179_v1  ;;  %v3358_v9 = vadd.f32 %v11368_v37, %v3357_v40 }
 0xa3b   :  { %v8168_v26 = vpop.f32.mrf.mxu1 }
 0xa3c   :  { %3438 = vst.msk [vmem:[#allocation2 + $0x20] sm:$0xff] %vm45_vm0, %v11372_v4  ;;  %v11378_v32 = vadd.f32 %v3358_v9, %v11184_v51  ;;  %v3369_v48 = vadd.f32 %v8168_v26, %v11368_v37  ;;  %v9532_v51 = vld [vmem:[%s12706_s7 + $0x38] sm:$0xff]  }
 0xa3d   :  { %v3360_v7 = vpop.f32.mrf.mxu1  ;;  %8189 = vmatprep.subr.bf16.mxu0 %v9532_v51 }
 0xa3e   :  { %3436 = vst.msk [vmem:[#allocation2 + $0x10] sm:$0xff] %vm45_vm0, %v11378_v32  ;;  %v11384_v56 = vadd.f32 %v3369_v48, %v11189_v53  ;;  %v3361_v1 = vadd.f32 %v11368_v37, %v3360_v7  ;;  %8190 = vmatpush3.bf16.msra.mxu0 %v9532_v51  ;;  %v9533_v53 = vld [vmem:[%s12706_s7 + $0x30] sm:$0xff]  }
 0xa3f   :  { %8191 = vmatprep.subr.bf16.mxu0 %v9533_v53 }
 0xa40   :  { %3439 = vst.msk [vmem:[#allocation2 + $0x28] sm:$0xff] %vm45_vm0, %v11384_v56  ;;  %v11390_v16 = vadd.f32 %v3361_v1, %v11197_v52  ;;  %v9085_v62 = vpack.i.bf16 %v11384_v56, %v11372_v4 }
 0xa42   :  { %3437 = vst.msk [vmem:[#allocation2 + $0x18] sm:$0xff] %vm45_vm0, %v11390_v16  ;;  %8192 = vmatpush3.bf16.msra.mxu0 %v9533_v53 }
 0xa45   :  { %v3468_v28 = vld [vmem:[#allocation2 + $0xe] sm:$0xff] }
 0xa47   :  { %v3471_v52 = vld [vmem:[#allocation2 + $0x26] sm:$0xff] }
 0xa49   :  { %v8171_v38 = vpop.f32.mrf.mxu1  ;;  %v3470_v34 = vld [vmem:[#allocation2 + $0x1e] sm:$0xff]  ;;  %v3469_v60 = vld [vmem:[#allocation2 + $0x16] sm:$0xff] }
 0xa4a   :  { %v3382_v8 = vadd.f32 %v8171_v38, %v11368_v37  ;;  %v9080_v36 = vpack.i.bf16 %v3471_v52, %v3470_v34  ;;  %v9070_v63 = vpack.i.bf16 %v3469_v60, %v3468_v28 }
 0xa4b   :  { %v3373_v15 = vpop.f32.mrf.mxu1 }
 0xa4c   :  { %v11402_v42 = vadd.f32 %v3382_v8, %v11208_v10  ;;  %v3374_v49 = vadd.f32 %v11368_v37, %v3373_v15  ;;  %9081 = vrot.lane.b32.xlu1 %v9080_v36, %s9710_s0  ;;  %9071 = vrot.lane.b32.xlu0 %v9070_v63, %s9710_s0  ;;  %v9075_v10 = vpack.i.bf16 %v11390_v16, %v11378_v32 }
 0xa4d   :  { %v8172_v3 = vpop.f32.mrf.mxu1 }
 0xa4e   :  { %3442 = vst.msk [vmem:[#allocation2 + $0x40] sm:$0xff] %vm45_vm0, %v11402_v42  ;;  %v11412_v23 = vadd.f32 %v3374_v49, %v11215_v54  ;;  %v3385_v47 = vadd.f32 %v8172_v3, %v11368_v37 }
 0xa4f   :  { %v3376_v2 = vpop.f32.mrf.mxu1 }
 0xa50   :  { %3440 = vst.msk [vmem:[#allocation2 + $0x30] sm:$0xff] %vm45_vm0, %v11412_v23  ;;  %v11420_v5 = vadd.f32 %v3385_v47, %v11222_v22  ;;  %v3377_v29 = vadd.f32 %v11368_v37, %v3376_v2  ;;  %9086 = vrot.lane.b32.xlu1 %v9085_v62, %s9712_s28  ;;  %9076 = vrot.lane.b32.xlu0 %v9075_v10, %s9712_s28 }
 0xa52   :  { %3443 = vst.msk [vmem:[#allocation2 + $0x48] sm:$0xff] %vm45_vm0, %v11420_v5  ;;  %v11428_v54 = vadd.f32 %v3377_v29, %v11228_v33  ;;  %v3452_v29 = vld [vmem:[#allocation2 + $0xc] sm:$0xff] }
 0xa54   :  { %3441 = vst.msk [vmem:[#allocation2 + $0x38] sm:$0xff] %vm45_vm0, %v11428_v54 }
 0xa57   :  { %v3472_v22 = vld [vmem:[#allocation2 + $0x2e] sm:$0xff] }
 0xa59   :  { %v8175_v6 = vpop.f32.mrf.mxu1  ;;  %v3475_v19 = vld [vmem:[#allocation2 + $0x46] sm:$0xff] }
 0xa5a   :  { %v3398_v31 = vadd.f32 %v8175_v6, %v11368_v37 }
 0xa5b   :  { %v3389_v21 = vpop.f32.mrf.mxu1  ;;  %v3474_v61 = vld [vmem:[#allocation2 + $0x3e] sm:$0xff]  ;;  %v3473_v18 = vld [vmem:[#allocation2 + $0x36] sm:$0xff] }
 0xa5c   :  { %v11434_v58 = vadd.f32 %v3398_v31, %v11233_v45  ;;  %v3390_v30 = vadd.f32 %v11368_v37, %v3389_v21  ;;  %v9100_v25 = vpack.i.bf16 %v3475_v19, %v3474_v61  ;;  %v9090_v11 = vpack.i.bf16 %v3473_v18, %v3472_v22  ;;  %v3455_v22 = vld [vmem:[#allocation2 + $0x24] sm:$0xff]  ;;  %v3454_v21 = vld [vmem:[#allocation2 + $0x1c] sm:$0xff]  ;;  %v3453_v61 = vld [vmem:[#allocation2 + $0x14] sm:$0xff] }
 0xa5d   :  { %v8176_v33 = vpop.f32.mrf.mxu1  ;;  %v9105_v45 = vpack.i.bf16 %v11420_v5, %v11402_v42 }
 0xa5e   :  { %3446 = vst.msk [vmem:[#allocation2 + $0x70] sm:$0xff] %vm45_vm0, %v11434_v58  ;;  %v11440_v0 = vadd.f32 %v3390_v30, %v11238_v27  ;;  %v3401_v24 = vadd.f32 %v8176_v33, %v11368_v37  ;;  %9101 = vrot.lane.b32.xlu1 %v9100_v25, %s9710_s0  ;;  %9091 = vrot.lane.b32.xlu0 %v9090_v11, %s9710_s0 }
 0xa5f   :  { %v3392_v12 = vpop.f32.mrf.mxu1  ;;  %v9095_v27 = vpack.i.bf16 %v11428_v54, %v11412_v23 }
 0xa60   :  { %3444 = vst.msk [vmem:[#allocation2 + $0x60] sm:$0xff] %vm45_vm0, %v11440_v0  ;;  %v11450_v44 = vadd.f32 %v3401_v24, %v11249_v17  ;;  %v3393_v20 = vadd.f32 %v11368_v37, %v3392_v12 }
 0xa62   :  { %3447 = vst.msk [vmem:[#allocation2 + $0x78] sm:$0xff] %vm45_vm0, %v11450_v44  ;;  %v11458_v39 = vadd.f32 %v3393_v20, %v11254_v55  ;;  %9106 = vrot.lane.b32.xlu1 %v9105_v45, %s9712_s28  ;;  %9096 = vrot.lane.b32.xlu0 %v9095_v27, %s9712_s28 }
 0xa64   :  { %3445 = vst.msk [vmem:[#allocation2 + $0x68] sm:$0xff] %vm45_vm0, %v11458_v39  ;;  %v9115_v38 = vpack.i.bf16 %v11458_v39, %v11440_v0 }
 0xa67   :  { %v3476_v59 = vld [vmem:[#allocation2 + $0x5e] sm:$0xff] }
 0xa69   :  { %v8179_v17 = vpop.f32.mrf.mxu1  ;;  %v3479_v40 = vld [vmem:[#allocation2 + $0x76] sm:$0xff] }
 0xa6a   :  { %v3414_v35 = vadd.f32 %v8179_v17, %v11368_v37 }
 0xa6b   :  { %v3405_v57 = vpop.f32.mrf.mxu1  ;;  %v3478_v14 = vld [vmem:[#allocation2 + $0x6e] sm:$0xff]  ;;  %v3477_v9 = vld [vmem:[#allocation2 + $0x66] sm:$0xff] }
 0xa6c   :  { %v11466_v26 = vadd.f32 %v3414_v35, %v11261_v13  ;;  %v3406_v55 = vadd.f32 %v11368_v37, %v3405_v57  ;;  %v9120_v48 = vpack.i.bf16 %v3479_v40, %v3478_v14  ;;  %v9110_v7 = vpack.i.bf16 %v3477_v9, %v3476_v59 }
 0xa6d   :  { %v8180_v1 = vpop.f32.mrf.mxu1  ;;  %v9125_v13 = vpack.i.bf16 %v11450_v44, %v11434_v58 }
 0xa6e   :  { %3450 = vst.msk [vmem:[#allocation2 + $0x90] sm:$0xff] %vm45_vm0, %v11466_v26  ;;  %v11472_v51 = vadd.f32 %v3406_v55, %v11266_v41  ;;  %v3417_v53 = vadd.f32 %v8180_v1, %v11368_v37  ;;  %9121 = vrot.lane.b32.xlu1 %v9120_v48, %s9710_s0  ;;  %9111 = vrot.lane.b32.xlu0 %v9110_v7, %s9710_s0  ;;  %v3456_v7 = vld [vmem:[#allocation2 + $0x2c] sm:$0xff] }
 0xa6f   :  { %v3408_v28 = vpop.f32.mrf.mxu1 }
 0xa70   :  { %3448 = vst.msk [vmem:[#allocation2 + $0x80] sm:$0xff] %vm45_vm0, %v11472_v51  ;;  %v11484_v34 = vadd.f32 %v3417_v53, %v11277_v46  ;;  %v3409_v41 = vadd.f32 %v11368_v37, %v3408_v28  ;;  %v3458_v28 = vld [vmem:[#allocation2 + $0x3c] sm:$0xff] }
 0xa72   :  { %3451 = vst.msk [vmem:[#allocation2 + $0x98] sm:$0xff] %vm45_vm0, %v11484_v34  ;;  %v11490_v52 = vadd.f32 %v3409_v41, %v11282_v50  ;;  %9126 = vrot.lane.b32.xlu1 %v9125_v13, %s9712_s28  ;;  %9116 = vrot.lane.b32.xlu0 %v9115_v38, %s9712_s28  ;;  %v9145_v50 = vpack.i.bf16 %v11484_v34, %v11466_v26  ;;  %v3459_v13 = vld [vmem:[#allocation2 + $0x44] sm:$0xff]  ;;  %v3457_v38 = vld [vmem:[#allocation2 + $0x34] sm:$0xff] }
 0xa74   :  { %3449 = vst.msk [vmem:[#allocation2 + $0x88] sm:$0xff] %vm45_vm0, %v11490_v52  ;;  %v9135_v37 = vpack.i.bf16 %v11490_v52, %v11472_v51 }
 0xa77   :  { %v3480_v60 = vld [vmem:[#allocation2 + $0x7e] sm:$0xff] }
 0xa79   :  { %v3483_v36 = vld [vmem:[#allocation2 + $0x96] sm:$0xff] }
 0xa7b   :  { %v3482_v8 = vld [vmem:[#allocation2 + $0x8e] sm:$0xff]  ;;  %v3481_v46 = vld [vmem:[#allocation2 + $0x86] sm:$0xff] }
 0xa7c   :  { %v9140_v63 = vpack.i.bf16 %v3483_v36, %v3482_v8  ;;  %v9130_v15 = vpack.i.bf16 %v3481_v46, %v3480_v60 }
 0xa7e   :  { %9141 = vrot.lane.b32.xlu1 %v9140_v63, %s9710_s0  ;;  %9131 = vrot.lane.b32.xlu0 %v9130_v15, %s9710_s0 }
 0xa82   :  { %9146 = vrot.lane.b32.xlu1 %v9145_v50, %s9712_s28  ;;  %9136 = vrot.lane.b32.xlu0 %v9135_v37, %s9712_s28 }
 0xabe   :  { %v9082_v49 = vpop.permute.xlu1 %9081  ;;  %v9072_v3 = vpop.permute.xlu0 %9071 }
 0xabf   :  { %v9084_v62 = vunpack.i.h.bf16 %v9082_v49  ;;  %v9083_v47 = vunpack.i.l.bf16 %v9082_v49  ;;  %v9074_v10 = vunpack.i.h.bf16 %v9072_v3  ;;  %v9073_v2 = vunpack.i.l.bf16 %v9072_v3 }
 0xac1   :  { %v3615_v11 = vsel %vm45_vm0, %v3455_v22, %v9084_v62  ;;  %v3614_v33 = vsel %vm45_vm0, %v3454_v21, %v9083_v47  ;;  %v3612_v24 = vsel %vm45_vm0, %v3452_v29, %v9073_v2  ;;  %v3613_v12 = vsel %vm45_vm0, %v3453_v61, %v9074_v10  ;;  %v3460_v61 = vld [vmem:[#allocation2 + $0x5c] sm:$0xff] }
 0xac2   :  { %v9087_v6 = vpop.permute.xlu1 %9086  ;;  %v9077_v31 = vpop.permute.xlu0 %9076 }
 0xac3   :  { %v9089_v19 = vunpack.i.h.bf16 %v9087_v6  ;;  %v9088_v18 = vunpack.i.l.bf16 %v9087_v6  ;;  %v9079_v30 = vunpack.i.h.bf16 %v9077_v31  ;;  %v9078_v25 = vunpack.i.l.bf16 %v9077_v31 }
 0xac5   :  { %v3630_v45 = vsel %vm341_vm1, %v3614_v33, %v9088_v18  ;;  %v3631_v20 = vsel %vm341_vm1, %v3615_v11, %v9089_v19  ;;  %v3628_v27 = vsel %vm341_vm1, %v3612_v24, %v9078_v25  ;;  %v3629_v17 = vsel %vm341_vm1, %v3613_v12, %v9079_v30  ;;  %v3462_v30 = vld [vmem:[#allocation2 + $0x6c] sm:$0xff]  ;;  %v3463_v25 = vld [vmem:[#allocation2 + $0x74] sm:$0xff]  ;;  %v3461_v11 = vld [vmem:[#allocation2 + $0x64] sm:$0xff] }
 0xac6   :  { %v3645_v35 = vpack.c.bf16 %v3631_v20, %v3630_v45  ;;  %v3644_v59 = vpack.c.bf16 %v3629_v17, %v3628_v27 }
 0xac8   :  { %8193 = vmatprep.mubr.msk.bf16.mxu0 %vm358_vm2, %v3644_v59 }
 0xac9   :  { %8194 = vmatmul.mubr.msk.bf16.vlgmr.msra.gmra.mxu0 %vm358_vm2, %v3645_v35 }
 0xad0   :  { %v9102_v57 = vpop.permute.xlu1 %9101  ;;  %v9092_v14 = vpop.permute.xlu0 %9091 }
 0xad1   :  { %v9104_v40 = vunpack.i.h.bf16 %v9102_v57  ;;  %v9103_v9 = vunpack.i.l.bf16 %v9102_v57  ;;  %v9094_v55 = vunpack.i.h.bf16 %v9092_v14  ;;  %v9093_v48 = vunpack.i.l.bf16 %v9092_v14 }
 0xad3   :  { %v3619_v46 = vsel %vm45_vm0, %v3459_v13, %v9104_v40  ;;  %v3618_v63 = vsel %vm45_vm0, %v3458_v28, %v9103_v9  ;;  %v3617_v15 = vsel %vm45_vm0, %v3457_v38, %v9094_v55  ;;  %v3616_v50 = vsel %vm45_vm0, %v3456_v7, %v9093_v48  ;;  %v3464_v38 = vld [vmem:[#allocation2 + $0x7c] sm:$0xff] }
 0xad4   :  { %v9107_v1 = vpop.permute.xlu1 %9106  ;;  %v9097_v53 = vpop.permute.xlu0 %9096 }
 0xad5   :  { %v9109_v41 = vunpack.i.h.bf16 %v9107_v1  ;;  %v9108_v60 = vunpack.i.l.bf16 %v9107_v1  ;;  %v9099_v8 = vunpack.i.h.bf16 %v9097_v53  ;;  %v9098_v36 = vunpack.i.l.bf16 %v9097_v53 }
 0xad7   :  { %v3634_v37 = vsel %vm341_vm1, %v3618_v63, %v9108_v60  ;;  %v3635_v49 = vsel %vm341_vm1, %v3619_v46, %v9109_v41  ;;  %v3632_v3 = vsel %vm341_vm1, %v3616_v50, %v9098_v36  ;;  %v3633_v62 = vsel %vm341_vm1, %v3617_v15, %v9099_v8  ;;  %v3466_v8 = vld [vmem:[#allocation2 + $0x8c] sm:$0xff]  ;;  %v3467_v36 = vld [vmem:[#allocation2 + $0x94] sm:$0xff]  ;;  %v3465_v46 = vld [vmem:[#allocation2 + $0x84] sm:$0xff] }
 0xad8   :  { %v3646_v47 = vpack.c.bf16 %v3633_v62, %v3632_v3  ;;  %v3647_v10 = vpack.c.bf16 %v3635_v49, %v3634_v37 }
 0xada   :  { %8197 = vmatprep.mubr.msk.bf16.mxu0 %vm358_vm2, %v3646_v47 }
 0xadb   :  { %8198 = vmatmul.mubr.msk.bf16.gmra.mxu0 %vm358_vm2, %v3647_v10 }
 0xae0   :  { %v9122_v2 = vpop.permute.xlu1 %9121  ;;  %v9112_v29 = vpop.permute.xlu0 %9111 }
 0xae1   :  { %v9124_v6 = vunpack.i.h.bf16 %v9122_v2  ;;  %v9123_v31 = vunpack.i.l.bf16 %v9122_v2  ;;  %v9114_v22 = vunpack.i.h.bf16 %v9112_v29  ;;  %v9113_v21 = vunpack.i.l.bf16 %v9112_v29 }
 0xae3   :  { %v3623_v20 = vsel %vm45_vm0, %v3463_v25, %v9124_v6  ;;  %v3622_v27 = vsel %vm45_vm0, %v3462_v30, %v9123_v31  ;;  %v3621_v17 = vsel %vm45_vm0, %v3461_v11, %v9114_v22  ;;  %v3620_v35 = vsel %vm45_vm0, %v3460_v61, %v9113_v21  ;;  %v9534_v21 = vld [vmem:[%s12708_s9 + $0x18] sm:$0xff]   ;;  %v9535_v61 = vld [vmem:[%s12708_s9 + $0x10] sm:$0xff]   ;;  %v7360_v30 = vld [vmem:[%s12709_s8 + $0x1] ss:$0 sm:$0xff] }
 0xae4   :  { %v9127_v19 = vpop.permute.xlu1 %9126  ;;  %v9117_v18 = vpop.permute.xlu0 %9116  ;;  %8209 = vmatprep.subr.bf16.mxu1 %v9534_v21 }
 0xae5   :  { %v9129_v33 = vunpack.i.h.bf16 %v9127_v19  ;;  %v9128_v24 = vunpack.i.l.bf16 %v9127_v19  ;;  %v9119_v12 = vunpack.i.h.bf16 %v9117_v18  ;;  %v9118_v45 = vunpack.i.l.bf16 %v9117_v18  ;;  %8210 = vmatpush3.bf16.msra.mxu1 %v9534_v21 }
 0xae6   :  { %8211 = vmatprep.subr.bf16.mxu1 %v9535_v61 }
 0xae7   :  { %v3638_v59 = vsel %vm341_vm1, %v3622_v27, %v9128_v24  ;;  %v3639_v57 = vsel %vm341_vm1, %v3623_v20, %v9129_v33  ;;  %v3636_v14 = vsel %vm341_vm1, %v3620_v35, %v9118_v45  ;;  %v3637_v40 = vsel %vm341_vm1, %v3621_v17, %v9119_v12 }
 0xae8   :  { %v3648_v9 = vpack.c.bf16 %v3637_v40, %v3636_v14  ;;  %v3649_v55 = vpack.c.bf16 %v3639_v57, %v3638_v59 }
 0xae9   :  { %8212 = vmatpush3.bf16.msra.mxu1 %v9535_v61 }
 0xaea   :  { %8201 = vmatprep.mubr.msk.bf16.mxu0 %vm358_vm2, %v3648_v9 }
 0xaeb   :  { %8202 = vmatmul.mubr.msk.bf16.gmra.mxu0 %vm358_vm2, %v3649_v55 }
 0xaf0   :  { %v9142_v48 = vpop.permute.xlu1 %9141  ;;  %v9132_v7 = vpop.permute.xlu0 %9131 }
 0xaf1   :  { %v9144_v1 = vunpack.i.h.bf16 %v9142_v48  ;;  %v9143_v53 = vunpack.i.l.bf16 %v9142_v48  ;;  %v9134_v28 = vunpack.i.h.bf16 %v9132_v7  ;;  %v9133_v13 = vunpack.i.l.bf16 %v9132_v7 }
 0xaf3   :  { %v3627_v49 = vsel %vm45_vm0, %v3467_v36, %v9144_v1  ;;  %v3626_v3 = vsel %vm45_vm0, %v3466_v8, %v9143_v53  ;;  %v3625_v62 = vsel %vm45_vm0, %v3465_v46, %v9134_v28  ;;  %v3624_v47 = vsel %vm45_vm0, %v3464_v38, %v9133_v13 }
 0xaf4   :  { %v9147_v41 = vpop.permute.xlu1 %9146  ;;  %v9137_v60 = vpop.permute.xlu0 %9136 }
 0xaf5   :  { %v9149_v63 = vunpack.i.h.bf16 %v9147_v41  ;;  %v9148_v15 = vunpack.i.l.bf16 %v9147_v41  ;;  %v9139_v50 = vunpack.i.h.bf16 %v9137_v60  ;;  %v9138_v37 = vunpack.i.l.bf16 %v9137_v60 }
 0xaf7   :  { %v3642_v10 = vsel %vm341_vm1, %v3626_v3, %v9148_v15  ;;  %v3643_v2 = vsel %vm341_vm1, %v3627_v49, %v9149_v63  ;;  %v3640_v29 = vsel %vm341_vm1, %v3624_v47, %v9138_v37  ;;  %v3641_v6 = vsel %vm341_vm1, %v3625_v62, %v9139_v50 }
 0xaf8   :  { %v3651_v31 = vpack.c.bf16 %v3643_v2, %v3642_v10  ;;  %v3650_v22 = vpack.c.bf16 %v3641_v6, %v3640_v29 }
 0xafa   :  { %8205 = vmatprep.mubr.msk.bf16.mxu0 %vm358_vm2, %v3650_v22 }
 0xafb   :  { %8206 = vmatmul.mubr.msk.bf16.gmra.mxu0 %vm358_vm2, %v3651_v31 }
 0xb89   :  { %v8195_v19 = vpop.f32.mrf.mxu0 }
 0xb8a   :  { %v3776_v24 = vadd.f32 %v8195_v19, %v7360_v30 }
 0xb8b   :  { %v3767_v18 = vpop.f32.mrf.mxu0 }
 0xb8c   :  { %v3768_v11 = vadd.f32 %v7360_v30, %v3767_v18  ;;  %v3832_v35 = vmax.f32 %v3776_v24, 0.0 }
 0xb8d   :  { %v8196_v25 = vpop.f32.mrf.mxu0 }
 0xb8e   :  { %v3779_v33 = vadd.f32 %v8196_v25, %v7360_v30  ;;  %v3830_v27 = vmax.f32 %v3768_v11, 0.0 }
 0xb8f   :  { %v3770_v12 = vpop.f32.mrf.mxu0 }
 0xb90   :  { %v3771_v45 = vadd.f32 %v7360_v30, %v3770_v12  ;;  %v3833_v20 = vmax.f32 %v3779_v33, 0.0 }
 0xb92   :  { %v3831_v17 = vmax.f32 %v3771_v45, 0.0  ;;  %v3847_v57 = vpack.c.bf16 %v3833_v20, %v3832_v35  ;;  %v9537_v35 = vld [vmem:[%s12706_s7 + $0x80] sm:$0xff]  }
 0xb94   :  { %v3846_v59 = vpack.c.bf16 %v3831_v17, %v3830_v27  ;;  %v9536_v17 = vld [vmem:[%s12706_s7 + $0x88] sm:$0xff]  }
 0xb95   :  { %8229 = vmatprep.subr.bf16.mxu0 %v9536_v17  ;;  %8493 = vmatprep.subr.bf16.mxu1 %v9536_v17 }
 0xb96   :  { %8213 = vmatprep.mubr.msk.bf16.mxu1 %vm45_vm0, %v3846_v59  ;;  %8230 = vmatpush3.bf16.msra.mxu0 %v9536_v17  ;;  %v9539_v59 = vld [vmem:[%s12706_s7 + $0x70] sm:$0xff]  }
 0xb97   :  { %8214 = vmatmul.mubr.msk.bf16.vlgmr.msra.gmra.mxu1 %vm45_vm0, %v3847_v57  ;;  %8231 = vmatprep.subr.bf16.mxu0 %v9537_v35  ;;  %v11576_v57 = vld [vmem:[%s12710_s10 + $0x1] ss:$0 sm:$0xff] }
 0xb98   :  { %8499 = vmatpush3.bf16.msra.mxu1 %v9536_v17 }
 0xb99   :  { %8494 = vmatprep.subr.bf16.mxu1 %v9537_v35 }
 0xb9a   :  { %8232 = vmatpush3.bf16.msra.mxu0 %v9537_v35 }
 0xb9b   :  { %v8199_v14 = vpop.f32.mrf.mxu0 }
 0xb9c   :  { %v3792_v7 = vadd.f32 %v8199_v14, %v7360_v30  ;;  %8500 = vmatpush3.bf16.msra.mxu1 %v9537_v35 }
 0xb9d   :  { %v3783_v40 = vpop.f32.mrf.mxu0 }
 0xb9e   :  { %v3784_v55 = vadd.f32 %v7360_v30, %v3783_v40  ;;  %v3836_v41 = vmax.f32 %v3792_v7, 0.0 }
 0xb9f   :  { %v8200_v9 = vpop.f32.mrf.mxu0 }
 0xba0   :  { %v3795_v48 = vadd.f32 %v8200_v9, %v7360_v30  ;;  %v3834_v13 = vmax.f32 %v3784_v55, 0.0 }
 0xba1   :  { %v3786_v1 = vpop.f32.mrf.mxu0 }
 0xba2   :  { %v3787_v53 = vadd.f32 %v7360_v30, %v3786_v1  ;;  %v3837_v28 = vmax.f32 %v3795_v48, 0.0 }
 0xba4   :  { %v3835_v38 = vmax.f32 %v3787_v53, 0.0  ;;  %v3849_v8 = vpack.c.bf16 %v3837_v28, %v3836_v41 }
 0xba6   :  { %v3848_v60 = vpack.c.bf16 %v3835_v38, %v3834_v13 }
 0xba8   :  { %8217 = vmatprep.mubr.msk.bf16.mxu1 %vm45_vm0, %v3848_v60 }
 0xba9   :  { %8218 = vmatmul.mubr.msk.bf16.gmra.mxu1 %vm45_vm0, %v3849_v8 }
 0xbab   :  { %v8203_v36 = vpop.f32.mrf.mxu0 }
 0xbac   :  { %v3808_v37 = vadd.f32 %v8203_v36, %v7360_v30 }
 0xbad   :  { %v3799_v46 = vpop.f32.mrf.mxu0 }
 0xbae   :  { %v3800_v15 = vadd.f32 %v7360_v30, %v3799_v46  ;;  %v3840_v2 = vmax.f32 %v3808_v37, 0.0 }
 0xbaf   :  { %v8204_v63 = vpop.f32.mrf.mxu0 }
 0xbb0   :  { %v3811_v50 = vadd.f32 %v8204_v63, %v7360_v30  ;;  %v3838_v47 = vmax.f32 %v3800_v15, 0.0 }
 0xbb1   :  { %v3802_v49 = vpop.f32.mrf.mxu0 }
 0xbb2   :  { %v3803_v3 = vadd.f32 %v7360_v30, %v3802_v49  ;;  %v3841_v62 = vmax.f32 %v3811_v50, 0.0 }
 0xbb4   :  { %v3839_v10 = vmax.f32 %v3803_v3, 0.0  ;;  %v3851_v6 = vpack.c.bf16 %v3841_v62, %v3840_v2 }
 0xbb6   :  { %v3850_v29 = vpack.c.bf16 %v3839_v10, %v3838_v47 }
 0xbb8   :  { %8221 = vmatprep.mubr.msk.bf16.mxu1 %vm45_vm0, %v3850_v29 }
 0xbb9   :  { %8222 = vmatmul.mubr.msk.bf16.gmra.mxu1 %vm45_vm0, %v3851_v6 }
 0xbbb   :  { %v8207_v31 = vpop.f32.mrf.mxu0 }
 0xbbc   :  { %v3824_v18 = vadd.f32 %v8207_v31, %v7360_v30 }
 0xbbd   :  { %v3815_v22 = vpop.f32.mrf.mxu0 }
 0xbbe   :  { %v3816_v61 = vadd.f32 %v7360_v30, %v3815_v22  ;;  %v3844_v45 = vmax.f32 %v3824_v18, 0.0 }
 0xbbf   :  { %v8208_v21 = vpop.f32.mrf.mxu0 }
 0xbc0   :  { %v3827_v19 = vadd.f32 %v8208_v21, %v7360_v30  ;;  %v3842_v24 = vmax.f32 %v3816_v61, 0.0 }
 0xbc1   :  { %v3818_v25 = vpop.f32.mrf.mxu0 }
 0xbc2   :  { %v3819_v11 = vadd.f32 %v7360_v30, %v3818_v25  ;;  %v3845_v33 = vmax.f32 %v3827_v19, 0.0  ;;  %v9538_v30 = vld [vmem:[%s12706_s7 + $0x78] sm:$0xff]  }
 0xbc3   :  { %8233 = vmatprep.subr.bf16.mxu0 %v9538_v30  ;;  %8495 = vmatprep.subr.bf16.mxu1 %v9538_v30 }
 0xbc4   :  { %v3843_v12 = vmax.f32 %v3819_v11, 0.0  ;;  %v3853_v27 = vpack.c.bf16 %v3845_v33, %v3844_v45  ;;  %8234 = vmatpush3.bf16.msra.mxu0 %v9538_v30  ;;  %8501 = vmatpush3.bf16.msra.mxu1 %v9538_v30 }
 0xbc5   :  { %8235 = vmatprep.subr.bf16.mxu0 %v9539_v59  ;;  %8496 = vmatprep.subr.bf16.mxu1 %v9539_v59 }
 0xbc6   :  { %v3852_v20 = vpack.c.bf16 %v3843_v12, %v3842_v24 }
 0xbc8   :  { %8225 = vmatprep.mubr.msk.bf16.mxu1 %vm45_vm0, %v3852_v20  ;;  %8236 = vmatpush3.bf16.msra.mxu0 %v9539_v59 }
 0xbc9   :  { %8226 = vmatmul.mubr.msk.bf16.gmra.mxu1 %vm45_vm0, %v3853_v27 }
 0xbca   :  { %8502 = vmatpush3.bf16.msra.mxu1 %v9539_v59 }
 0xc57   :  { %v8215_v14 = vpop.f32.mrf.mxu1 }
 0xc58   :  { %v3946_v40 = vadd.f32 %v8215_v14, %v11576_v57 }
 0xc59   :  { %v3937_v9 = vpop.f32.mrf.mxu1 }
 0xc5a   :  { %v11580_v55 = vadd.f32 %v3946_v40, %v11372_v4  ;;  %v3938_v48 = vadd.f32 %v11576_v57, %v3937_v9 }
 0xc5b   :  { %v8216_v7 = vpop.f32.mrf.mxu1 }
 0xc5c   :  { %4018 = vst.msk [vmem:[#allocation2 + $0x20] sm:$0xff] %vm45_vm0, %v11580_v55  ;;  %v11586_v1 = vadd.f32 %v3938_v48, %v11378_v32  ;;  %v3949_v53 = vadd.f32 %v8216_v7, %v11576_v57  ;;  %v9540_v32 = vld [vmem:[%s12706_s7 + $0x68] sm:$0xff]  }
 0xc5d   :  { %v3940_v28 = vpop.f32.mrf.mxu1  ;;  %8237 = vmatprep.subr.bf16.mxu0 %v9540_v32  ;;  %8497 = vmatprep.subr.bf16.mxu1 %v9540_v32 }
 0xc5e   :  { %4016 = vst.msk [vmem:[#allocation2 + $0x10] sm:$0xff] %vm45_vm0, %v11586_v1  ;;  %v11592_v13 = vadd.f32 %v3949_v53, %v11384_v56  ;;  %v3941_v4 = vadd.f32 %v11576_v57, %v3940_v28  ;;  %8238 = vmatpush3.bf16.msra.mxu0 %v9540_v32  ;;  %8503 = vmatpush3.bf16.msra.mxu1 %v9540_v32  ;;  %v9541_v56 = vld [vmem:[%s12706_s7 + $0x60] sm:$0xff]  }
 0xc5f   :  { %8239 = vmatprep.subr.bf16.mxu0 %v9541_v56  ;;  %8498 = vmatprep.subr.bf16.mxu1 %v9541_v56 }
 0xc60   :  { %4019 = vst.msk [vmem:[#allocation2 + $0x28] sm:$0xff] %vm45_vm0, %v11592_v13  ;;  %v11598_v38 = vadd.f32 %v3941_v4, %v11390_v16  ;;  %v9165_v62 = vpack.i.bf16 %v11592_v13, %v11580_v55 }
 0xc62   :  { %4017 = vst.msk [vmem:[#allocation2 + $0x18] sm:$0xff] %vm45_vm0, %v11598_v38  ;;  %8240 = vmatpush3.bf16.msra.mxu0 %v9541_v56  ;;  %8504 = vmatpush3.bf16.msra.mxu1 %v9541_v56  ;;  %v9155_v47 = vpack.i.bf16 %v11598_v38, %v11586_v1 }
 0xc65   :  { %v4048_v41 = vld [vmem:[#allocation2 + $0xc] sm:$0xff] }
 0xc67   :  { %v4051_v8 = vld [vmem:[#allocation2 + $0x24] sm:$0xff] }
 0xc69   :  { %v8219_v16 = vpop.f32.mrf.mxu1  ;;  %v4050_v60 = vld [vmem:[#allocation2 + $0x1c] sm:$0xff]  ;;  %v4049_v36 = vld [vmem:[#allocation2 + $0x14] sm:$0xff] }
 0xc6a   :  { %v3962_v46 = vadd.f32 %v8219_v16, %v11576_v57  ;;  %v9160_v63 = vpack.i.bf16 %v4051_v8, %v4050_v60  ;;  %v9150_v15 = vpack.i.bf16 %v4049_v36, %v4048_v41 }
 0xc6b   :  { %v3953_v50 = vpop.f32.mrf.mxu1 }
 0xc6c   :  { %v11610_v37 = vadd.f32 %v3962_v46, %v11402_v42  ;;  %v3954_v49 = vadd.f32 %v11576_v57, %v3953_v50  ;;  %9161 = vrot.lane.b32.xlu1 %v9160_v63, %s9710_s0  ;;  %9151 = vrot.lane.b32.xlu0 %v9150_v15, %s9710_s0 }
 0xc6d   :  { %v8220_v3 = vpop.f32.mrf.mxu1 }
 0xc6e   :  { %4022 = vst.msk [vmem:[#allocation2 + $0x40] sm:$0xff] %vm45_vm0, %v11610_v37  ;;  %v11622_v10 = vadd.f32 %v3954_v49, %v11412_v23  ;;  %v3965_v42 = vadd.f32 %v8220_v3, %v11576_v57 }
 0xc6f   :  { %v3956_v2 = vpop.f32.mrf.mxu1 }
 0xc70   :  { %4020 = vst.msk [vmem:[#allocation2 + $0x30] sm:$0xff] %vm45_vm0, %v11622_v10  ;;  %v11628_v29 = vadd.f32 %v3965_v42, %v11420_v5  ;;  %v3957_v6 = vadd.f32 %v11576_v57, %v3956_v2  ;;  %9166 = vrot.lane.b32.xlu1 %v9165_v62, %s9712_s28  ;;  %9156 = vrot.lane.b32.xlu0 %v9155_v47, %s9712_s28 }
 0xc72   :  { %4023 = vst.msk [vmem:[#allocation2 + $0x48] sm:$0xff] %vm45_vm0, %v11628_v29  ;;  %v11636_v23 = vadd.f32 %v3957_v6, %v11428_v54  ;;  %v4032_v6 = vld [vmem:[#allocation2 + $0x8] sm:$0xff] }
 0xc74   :  { %4021 = vst.msk [vmem:[#allocation2 + $0x38] sm:$0xff] %vm45_vm0, %v11636_v23  ;;  %v9175_v27 = vpack.i.bf16 %v11636_v23, %v11622_v10 }
 0xc77   :  { %v4052_v5 = vld [vmem:[#allocation2 + $0x2c] sm:$0xff] }
 0xc79   :  { %v8223_v31 = vpop.f32.mrf.mxu1  ;;  %v4055_v19 = vld [vmem:[#allocation2 + $0x44] sm:$0xff] }
 0xc7a   :  { %v3978_v22 = vadd.f32 %v8223_v31, %v11576_v57 }
 0xc7b   :  { %v3969_v21 = vpop.f32.mrf.mxu1  ;;  %v4054_v61 = vld [vmem:[#allocation2 + $0x3c] sm:$0xff]  ;;  %v4053_v18 = vld [vmem:[#allocation2 + $0x34] sm:$0xff] }
 0xc7c   :  { %v11642_v25 = vadd.f32 %v3978_v22, %v11434_v58  ;;  %v3970_v11 = vadd.f32 %v11576_v57, %v3969_v21  ;;  %v9180_v33 = vpack.i.bf16 %v4055_v19, %v4054_v61  ;;  %v9170_v24 = vpack.i.bf16 %v4053_v18, %v4052_v5  ;;  %v4035_v5 = vld [vmem:[#allocation2 + $0x20] sm:$0xff]  ;;  %v4034_v21 = vld [vmem:[#allocation2 + $0x18] sm:$0xff]  ;;  %v4033_v61 = vld [vmem:[#allocation2 + $0x10] sm:$0xff] }
 0xc7d   :  { %v8224_v54 = vpop.f32.mrf.mxu1  ;;  %v9185_v58 = vpack.i.bf16 %v11628_v29, %v11610_v37 }
 0xc7e   :  { %4026 = vst.msk [vmem:[#allocation2 + $0x70] sm:$0xff] %vm45_vm0, %v11642_v25  ;;  %v11648_v12 = vadd.f32 %v3970_v11, %v11440_v0  ;;  %v3981_v45 = vadd.f32 %v8224_v54, %v11576_v57  ;;  %9181 = vrot.lane.b32.xlu1 %v9180_v33, %s9710_s0  ;;  %9171 = vrot.lane.b32.xlu0 %v9170_v24, %s9710_s0 }
 0xc7f   :  { %v3972_v20 = vpop.f32.mrf.mxu1 }
 0xc80   :  { %4024 = vst.msk [vmem:[#allocation2 + $0x60] sm:$0xff] %vm45_vm0, %v11648_v12  ;;  %v11660_v17 = vadd.f32 %v3981_v45, %v11450_v44  ;;  %v3973_v0 = vadd.f32 %v11576_v57, %v3972_v20 }
 0xc82   :  { %4027 = vst.msk [vmem:[#allocation2 + $0x78] sm:$0xff] %vm45_vm0, %v11660_v17  ;;  %v11666_v35 = vadd.f32 %v3973_v0, %v11458_v39  ;;  %9186 = vrot.lane.b32.xlu1 %v9185_v58, %s9712_s28  ;;  %9176 = vrot.lane.b32.xlu0 %v9175_v27, %s9712_s28 }
 0xc84   :  { %4025 = vst.msk [vmem:[#allocation2 + $0x68] sm:$0xff] %vm45_vm0, %v11666_v35  ;;  %v9195_v16 = vpack.i.bf16 %v11666_v35, %v11648_v12 }
 0xc87   :  { %v4056_v44 = vld [vmem:[#allocation2 + $0x5c] sm:$0xff] }
 0xc89   :  { %v8227_v30 = vpop.f32.mrf.mxu1  ;;  %v4059_v9 = vld [vmem:[#allocation2 + $0x74] sm:$0xff] }
 0xc8a   :  { %v3994_v59 = vadd.f32 %v8227_v30, %v11576_v57 }
 0xc8b   :  { %v3985_v14 = vpop.f32.mrf.mxu1  ;;  %v4058_v40 = vld [vmem:[#allocation2 + $0x6c] sm:$0xff]  ;;  %v4057_v48 = vld [vmem:[#allocation2 + $0x64] sm:$0xff] }
 0xc8c   :  { %v11674_v7 = vadd.f32 %v3994_v59, %v11466_v26  ;;  %v3986_v39 = vadd.f32 %v11576_v57, %v3985_v14  ;;  %v9200_v53 = vpack.i.bf16 %v4059_v9, %v4058_v40  ;;  %v9190_v28 = vpack.i.bf16 %v4057_v48, %v4056_v44 }
 0xc8d   :  { %v8228_v4 = vpop.f32.mrf.mxu1  ;;  %v9205_v26 = vpack.i.bf16 %v11660_v17, %v11642_v25 }
 0xc8e   :  { %4030 = vst.msk [vmem:[#allocation2 + $0x90] sm:$0xff] %vm45_vm0, %v11674_v7  ;;  %v11680_v32 = vadd.f32 %v3986_v39, %v11472_v51  ;;  %v3997_v56 = vadd.f32 %v8228_v4, %v11576_v57  ;;  %9201 = vrot.lane.b32.xlu1 %v9200_v53, %s9710_s0  ;;  %9191 = vrot.lane.b32.xlu0 %v9190_v28, %s9710_s0  ;;  %v4036_v28 = vld [vmem:[#allocation2 + $0x28] sm:$0xff] }
 0xc8f   :  { %v3988_v41 = vpop.f32.mrf.mxu1 }
 0xc90   :  { %4028 = vst.msk [vmem:[#allocation2 + $0x80] sm:$0xff] %vm45_vm0, %v11680_v32  ;;  %v11692_v60 = vadd.f32 %v3997_v56, %v11484_v34  ;;  %v3989_v51 = vadd.f32 %v11576_v57, %v3988_v41  ;;  %v4038_v41 = vld [vmem:[#allocation2 + $0x38] sm:$0xff] }
 0xc92   :  { %4031 = vst.msk [vmem:[#allocation2 + $0x98] sm:$0xff] %vm45_vm0, %v11692_v60  ;;  %v11698_v8 = vadd.f32 %v3989_v51, %v11490_v52  ;;  %9206 = vrot.lane.b32.xlu1 %v9205_v26, %s9712_s28  ;;  %9196 = vrot.lane.b32.xlu0 %v9195_v16, %s9712_s28  ;;  %v9225_v52 = vpack.i.bf16 %v11692_v60, %v11674_v7  ;;  %v4039_v26 = vld [vmem:[#allocation2 + $0x40] sm:$0xff]  ;;  %v4037_v16 = vld [vmem:[#allocation2 + $0x30] sm:$0xff] }
 0xc94   :  { %4029 = vst.msk [vmem:[#allocation2 + $0x88] sm:$0xff] %vm45_vm0, %v11698_v8  ;;  %v9215_v57 = vpack.i.bf16 %v11698_v8, %v11680_v32 }
 0xc97   :  { %v4060_v36 = vld [vmem:[#allocation2 + $0x7c] sm:$0xff] }
 0xc99   :  { %v4063_v63 = vld [vmem:[#allocation2 + $0x94] sm:$0xff] }
 0xc9b   :  { %v4062_v46 = vld [vmem:[#allocation2 + $0x8c] sm:$0xff]  ;;  %v4061_v34 = vld [vmem:[#allocation2 + $0x84] sm:$0xff] }
 0xc9c   :  { %v9220_v15 = vpack.i.bf16 %v4063_v63, %v4062_v46  ;;  %v9210_v50 = vpack.i.bf16 %v4061_v34, %v4060_v36 }
 0xc9e   :  { %9221 = vrot.lane.b32.xlu1 %v9220_v15, %s9710_s0  ;;  %9211 = vrot.lane.b32.xlu0 %v9210_v50, %s9710_s0 }
 0xca2   :  { %9226 = vrot.lane.b32.xlu1 %v9225_v52, %s9712_s28  ;;  %9216 = vrot.lane.b32.xlu0 %v9215_v57, %s9712_s28 }
 0xcde   :  { %v9162_v49 = vpop.permute.xlu1 %9161  ;;  %v9152_v3 = vpop.permute.xlu0 %9151 }
 0xcdf   :  { %v9164_v62 = vunpack.i.h.bf16 %v9162_v49  ;;  %v9163_v47 = vunpack.i.l.bf16 %v9162_v49  ;;  %v9154_v42 = vunpack.i.h.bf16 %v9152_v3  ;;  %v9153_v2 = vunpack.i.l.bf16 %v9152_v3 }
 0xce1   :  { %v4195_v24 = vsel %vm45_vm0, %v4035_v5, %v9164_v62  ;;  %v4194_v54 = vsel %vm45_vm0, %v4034_v21, %v9163_v47  ;;  %v4192_v45 = vsel %vm45_vm0, %v4032_v6, %v9153_v2  ;;  %v4193_v20 = vsel %vm45_vm0, %v4033_v61, %v9154_v42  ;;  %v4040_v61 = vld [vmem:[#allocation2 + $0x58] sm:$0xff] }
 0xce2   :  { %v9167_v31 = vpop.permute.xlu1 %9166  ;;  %v9157_v22 = vpop.permute.xlu0 %9156 }
 0xce3   :  { %v9169_v19 = vunpack.i.h.bf16 %v9167_v31  ;;  %v9168_v18 = vunpack.i.l.bf16 %v9167_v31  ;;  %v9159_v11 = vunpack.i.h.bf16 %v9157_v22  ;;  %v9158_v33 = vunpack.i.l.bf16 %v9157_v22 }
 0xce5   :  { %v4210_v58 = vsel %vm341_vm1, %v4194_v54, %v9168_v18  ;;  %v4211_v27 = vsel %vm341_vm1, %v4195_v24, %v9169_v19  ;;  %v4208_v0 = vsel %vm341_vm1, %v4192_v45, %v9158_v33  ;;  %v4209_v30 = vsel %vm341_vm1, %v4193_v20, %v9159_v11  ;;  %v4042_v11 = vld [vmem:[#allocation2 + $0x68] sm:$0xff]  ;;  %v4043_v33 = vld [vmem:[#allocation2 + $0x70] sm:$0xff]  ;;  %v4041_v24 = vld [vmem:[#allocation2 + $0x60] sm:$0xff] }
 0xce6   :  { %v4225_v59 = vpack.c.bf16 %v4211_v27, %v4210_v58  ;;  %v4224_v44 = vpack.c.bf16 %v4209_v30, %v4208_v0 }
 0xce8   :  { %8241 = vmatprep.mubr.msk.bf16.mxu0 %vm358_vm2, %v4224_v44 }
 0xce9   :  { %8242 = vmatmul.mubr.msk.bf16.vlgmr.msra.gmra.mxu0 %vm358_vm2, %v4225_v59 }
 0xcf0   :  { %v9182_v14 = vpop.permute.xlu1 %9181  ;;  %v9172_v40 = vpop.permute.xlu0 %9171 }
 0xcf1   :  { %v9184_v9 = vunpack.i.h.bf16 %v9182_v14  ;;  %v9183_v48 = vunpack.i.l.bf16 %v9182_v14  ;;  %v9174_v39 = vunpack.i.h.bf16 %v9172_v40  ;;  %v9173_v53 = vunpack.i.l.bf16 %v9172_v40 }
 0xcf3   :  { %v4199_v34 = vsel %vm45_vm0, %v4039_v26, %v9184_v9  ;;  %v4198_v15 = vsel %vm45_vm0, %v4038_v41, %v9183_v48  ;;  %v4197_v50 = vsel %vm45_vm0, %v4037_v16, %v9174_v39  ;;  %v4196_v52 = vsel %vm45_vm0, %v4036_v28, %v9173_v53  ;;  %v4044_v16 = vld [vmem:[#allocation2 + $0x78] sm:$0xff] }
 0xcf4   :  { %v9187_v4 = vpop.permute.xlu1 %9186  ;;  %v9177_v56 = vpop.permute.xlu0 %9176 }
 0xcf5   :  { %v9189_v51 = vunpack.i.h.bf16 %v9187_v4  ;;  %v9188_v36 = vunpack.i.l.bf16 %v9187_v4  ;;  %v9179_v46 = vunpack.i.h.bf16 %v9177_v56  ;;  %v9178_v63 = vunpack.i.l.bf16 %v9177_v56 }
 0xcf7   :  { %v4214_v57 = vsel %vm341_vm1, %v4198_v15, %v9188_v36  ;;  %v4215_v49 = vsel %vm341_vm1, %v4199_v34, %v9189_v51  ;;  %v4212_v3 = vsel %vm341_vm1, %v4196_v52, %v9178_v63  ;;  %v4213_v62 = vsel %vm341_vm1, %v4197_v50, %v9179_v46  ;;  %v4046_v46 = vld [vmem:[#allocation2 + $0x88] sm:$0xff]  ;;  %v4047_v63 = vld [vmem:[#allocation2 + $0x90] sm:$0xff]  ;;  %v4045_v34 = vld [vmem:[#allocation2 + $0x80] sm:$0xff] }
 0xcf8   :  { %v4227_v47 = vpack.c.bf16 %v4215_v49, %v4214_v57  ;;  %v4226_v42 = vpack.c.bf16 %v4213_v62, %v4212_v3 }
 0xcfa   :  { %8245 = vmatprep.mubr.msk.bf16.mxu0 %vm358_vm2, %v4226_v42 }
 0xcfb   :  { %8246 = vmatmul.mubr.msk.bf16.gmra.mxu0 %vm358_vm2, %v4227_v47 }
 0xd00   :  { %v9202_v2 = vpop.permute.xlu1 %9201  ;;  %v9192_v6 = vpop.permute.xlu0 %9191 }
 0xd01   :  { %v9204_v31 = vunpack.i.h.bf16 %v9202_v2  ;;  %v9203_v22 = vunpack.i.l.bf16 %v9202_v2  ;;  %v9194_v5 = vunpack.i.h.bf16 %v9192_v6  ;;  %v9193_v21 = vunpack.i.l.bf16 %v9192_v6 }
 0xd03   :  { %v4203_v27 = vsel %vm45_vm0, %v4043_v33, %v9204_v31  ;;  %v4202_v0 = vsel %vm45_vm0, %v4042_v11, %v9203_v22  ;;  %v4201_v30 = vsel %vm45_vm0, %v4041_v24, %v9194_v5  ;;  %v4200_v59 = vsel %vm45_vm0, %v4040_v61, %v9193_v21  ;;  %v9542_v21 = vld [vmem:[%s12708_s9 + $0x28] sm:$0xff]   ;;  %v9543_v61 = vld [vmem:[%s12708_s9 + $0x20] sm:$0xff]  }
 0xd04   :  { %v9207_v19 = vpop.permute.xlu1 %9206  ;;  %v9197_v18 = vpop.permute.xlu0 %9196  ;;  %8257 = vmatprep.subr.bf16.mxu1 %v9542_v21  ;;  %v7404_v11 = vld [vmem:[%s12709_s8 + $0x2] ss:$0 sm:$0xff] }
 0xd05   :  { %v9209_v54 = vunpack.i.h.bf16 %v9207_v19  ;;  %v9208_v45 = vunpack.i.l.bf16 %v9207_v19  ;;  %v9199_v20 = vunpack.i.h.bf16 %v9197_v18  ;;  %v9198_v58 = vunpack.i.l.bf16 %v9197_v18 }
 0xd07   :  { %v4218_v44 = vsel %vm341_vm1, %v4202_v0, %v9208_v45  ;;  %v4219_v14 = vsel %vm341_vm1, %v4203_v27, %v9209_v54  ;;  %v4216_v40 = vsel %vm341_vm1, %v4200_v59, %v9198_v58  ;;  %v4217_v9 = vsel %vm341_vm1, %v4201_v30, %v9199_v20 }
 0xd08   :  { %v4229_v48 = vpack.c.bf16 %v4219_v14, %v4218_v44  ;;  %v4228_v39 = vpack.c.bf16 %v4217_v9, %v4216_v40 }
 0xd0a   :  { %8249 = vmatprep.mubr.msk.bf16.mxu1 %vm358_vm2, %v4228_v39 }
 0xd0b   :  { %8250 = vmatmul.mubr.msk.bf16.vlgmr.msra.gmra.mxu1 %vm358_vm2, %v4229_v48 }
 0xd0c   :  { %8258 = vmatpush3.bf16.msra.mxu1 %v9542_v21 }
 0xd0d   :  { %8259 = vmatprep.subr.bf16.mxu1 %v9543_v61 }
 0xd10   :  { %v9222_v53 = vpop.permute.xlu1 %9221  ;;  %v9212_v28 = vpop.permute.xlu0 %9211  ;;  %8260 = vmatpush3.bf16.msra.mxu1 %v9543_v61 }
 0xd11   :  { %v9224_v4 = vunpack.i.h.bf16 %v9222_v53  ;;  %v9223_v56 = vunpack.i.l.bf16 %v9222_v53  ;;  %v9214_v41 = vunpack.i.h.bf16 %v9212_v28  ;;  %v9213_v26 = vunpack.i.l.bf16 %v9212_v28 }
 0xd13   :  { %v4207_v49 = vsel %vm45_vm0, %v4047_v63, %v9224_v4  ;;  %v4206_v3 = vsel %vm45_vm0, %v4046_v46, %v9223_v56  ;;  %v4205_v62 = vsel %vm45_vm0, %v4045_v34, %v9214_v41  ;;  %v4204_v47 = vsel %vm45_vm0, %v4044_v16, %v9213_v26 }
 0xd14   :  { %v9227_v51 = vpop.permute.xlu1 %9226  ;;  %v9217_v36 = vpop.permute.xlu0 %9216 }
 0xd15   :  { %v9229_v15 = vunpack.i.h.bf16 %v9227_v51  ;;  %v9228_v50 = vunpack.i.l.bf16 %v9227_v51  ;;  %v9219_v52 = vunpack.i.h.bf16 %v9217_v36  ;;  %v9218_v57 = vunpack.i.l.bf16 %v9217_v36 }
 0xd17   :  { %v4222_v42 = vsel %vm341_vm1, %v4206_v3, %v9228_v50  ;;  %v4223_v2 = vsel %vm341_vm1, %v4207_v49, %v9229_v15  ;;  %v4220_v6 = vsel %vm341_vm1, %v4204_v47, %v9218_v57  ;;  %v4221_v31 = vsel %vm341_vm1, %v4205_v62, %v9219_v52 }
 0xd18   :  { %v4231_v22 = vpack.c.bf16 %v4223_v2, %v4222_v42  ;;  %v4230_v5 = vpack.c.bf16 %v4221_v31, %v4220_v6 }
 0xd1a   :  { %8253 = vmatprep.mubr.msk.bf16.mxu1 %vm358_vm2, %v4230_v5 }
 0xd1b   :  { %8254 = vmatmul.mubr.msk.bf16.gmra.mxu1 %vm358_vm2, %v4231_v22 }
 0xda9   :  { %v8243_v19 = vpop.f32.mrf.mxu0 }
 0xdaa   :  { %v4356_v45 = vadd.f32 %v8243_v19, %v7404_v11 }
 0xdab   :  { %v4347_v18 = vpop.f32.mrf.mxu0 }
 0xdac   :  { %v4348_v24 = vadd.f32 %v7404_v11, %v4347_v18  ;;  %v4412_v59 = vmax.f32 %v4356_v45, 0.0 }
 0xdad   :  { %v8244_v33 = vpop.f32.mrf.mxu0 }
 0xdae   :  { %v4359_v54 = vadd.f32 %v8244_v33, %v7404_v11  ;;  %v4410_v0 = vmax.f32 %v4348_v24, 0.0 }
 0xdaf   :  { %v4350_v20 = vpop.f32.mrf.mxu0 }
 0xdb0   :  { %v4351_v58 = vadd.f32 %v7404_v11, %v4350_v20  ;;  %v4413_v27 = vmax.f32 %v4359_v54, 0.0 }
 0xdb2   :  { %v4411_v30 = vmax.f32 %v4351_v58, 0.0  ;;  %v4427_v14 = vpack.c.bf16 %v4413_v27, %v4412_v59 }
 0xdb4   :  { %v4426_v44 = vpack.c.bf16 %v4411_v30, %v4410_v0  ;;  %v9544_v30 = vld [vmem:[%s12711_s11 + $0x8] sm:$0xff]  }
 0xdb5   :  { %8277 = vmatprep.subr.bf16.mxu0 %v9544_v30 }
 0xdb6   :  { %8261 = vmatprep.mubr.msk.bf16.mxu1 %vm45_vm0, %v4426_v44  ;;  %8278 = vmatpush3.bf16.msra.mxu0 %v9544_v30 }
 0xdb7   :  { %8262 = vmatmul.mubr.msk.bf16.vlgmr.msra.gmra.mxu1 %vm45_vm0, %v4427_v14  ;;  %v7424_v14 = vld [vmem:[%s12710_s10 + $0x2] ss:$0 sm:$0xff] }
 0xdbb   :  { %v8247_v40 = vpop.f32.mrf.mxu0 }
 0xdbc   :  { %v4372_v28 = vadd.f32 %v8247_v40, %v7404_v11 }
 0xdbd   :  { %v4363_v9 = vpop.f32.mrf.mxu0 }
 0xdbe   :  { %v4364_v39 = vadd.f32 %v7404_v11, %v4363_v9  ;;  %v4416_v51 = vmax.f32 %v4372_v28, 0.0 }
 0xdbf   :  { %v8248_v48 = vpop.f32.mrf.mxu0 }
 0xdc0   :  { %v4375_v53 = vadd.f32 %v8248_v48, %v7404_v11  ;;  %v4414_v26 = vmax.f32 %v4364_v39, 0.0 }
 0xdc1   :  { %v4366_v4 = vpop.f32.mrf.mxu0 }
 0xdc2   :  { %v4367_v56 = vadd.f32 %v7404_v11, %v4366_v4  ;;  %v4417_v41 = vmax.f32 %v4375_v53, 0.0 }
 0xdc4   :  { %v4415_v16 = vmax.f32 %v4367_v56, 0.0  ;;  %v4429_v46 = vpack.c.bf16 %v4417_v41, %v4416_v51 }
 0xdc6   :  { %v4428_v36 = vpack.c.bf16 %v4415_v16, %v4414_v26 }
 0xdc8   :  { %8265 = vmatprep.mubr.msk.bf16.mxu1 %vm45_vm0, %v4428_v36 }
 0xdc9   :  { %8266 = vmatmul.mubr.msk.bf16.gmra.mxu1 %vm45_vm0, %v4429_v46 }
 0xdcb   :  { %v8251_v63 = vpop.f32.mrf.mxu1 }
 0xdcc   :  { %v4388_v57 = vadd.f32 %v8251_v63, %v7404_v11 }
 0xdcd   :  { %v4379_v34 = vpop.f32.mrf.mxu1 }
 0xdce   :  { %v4380_v50 = vadd.f32 %v7404_v11, %v4379_v34  ;;  %v4420_v2 = vmax.f32 %v4388_v57, 0.0 }
 0xdcf   :  { %v8252_v15 = vpop.f32.mrf.mxu1 }
 0xdd0   :  { %v4391_v52 = vadd.f32 %v8252_v15, %v7404_v11  ;;  %v4418_v47 = vmax.f32 %v4380_v50, 0.0 }
 0xdd1   :  { %v4382_v49 = vpop.f32.mrf.mxu1 }
 0xdd2   :  { %v4383_v3 = vadd.f32 %v7404_v11, %v4382_v49  ;;  %v4421_v62 = vmax.f32 %v4391_v52, 0.0 }
 0xdd4   :  { %v4419_v42 = vmax.f32 %v4383_v3, 0.0  ;;  %v4431_v31 = vpack.c.bf16 %v4421_v62, %v4420_v2 }
 0xdd6   :  { %v4430_v6 = vpack.c.bf16 %v4419_v42, %v4418_v47 }
 0xdd8   :  { %8269 = vmatprep.mubr.msk.bf16.mxu1 %vm45_vm0, %v4430_v6 }
 0xdd9   :  { %8270 = vmatmul.mubr.msk.bf16.gmra.mxu1 %vm45_vm0, %v4431_v31 }
 0xddb   :  { %v8255_v22 = vpop.f32.mrf.mxu1 }
 0xddc   :  { %v4404_v18 = vadd.f32 %v8255_v22, %v7404_v11 }
 0xddd   :  { %v4395_v5 = vpop.f32.mrf.mxu1 }
 0xdde   :  { %v4396_v61 = vadd.f32 %v7404_v11, %v4395_v5  ;;  %v4424_v58 = vmax.f32 %v4404_v18, 0.0 }
 0xddf   :  { %v8256_v21 = vpop.f32.mrf.mxu1 }
 0xde0   :  { %v4407_v19 = vadd.f32 %v8256_v21, %v7404_v11  ;;  %v4422_v45 = vmax.f32 %v4396_v61, 0.0 }
 0xde1   :  { %v4398_v33 = vpop.f32.mrf.mxu1 }
 0xde2   :  { %v4399_v24 = vadd.f32 %v7404_v11, %v4398_v33  ;;  %v4425_v54 = vmax.f32 %v4407_v19, 0.0  ;;  %v9545_v11 = vld [vmem:[%s12711_s11] sm:$0xff]  }
 0xde3   :  { %8279 = vmatprep.subr.bf16.mxu0 %v9545_v11 }
 0xde4   :  { %v4423_v20 = vmax.f32 %v4399_v24, 0.0  ;;  %v4433_v0 = vpack.c.bf16 %v4425_v54, %v4424_v58  ;;  %8280 = vmatpush3.bf16.msra.mxu0 %v9545_v11  ;;  %v11805_v11 = vld [vmem:[%s12712_s12] ss:$0 sm:$0xff] }
 0xde6   :  { %v4432_v27 = vpack.c.bf16 %v4423_v20, %v4422_v45 }
 0xde8   :  { %8273 = vmatprep.mubr.msk.bf16.mxu1 %vm45_vm0, %v4432_v27 }
 0xde9   :  { %8274 = vmatmul.mubr.msk.bf16.gmra.mxu1 %vm45_vm0, %v4433_v0 }
 0xe77   :  { %v8263_v59 = vpop.f32.mrf.mxu1 }
 0xe78   :  { %v4526_v39 = vadd.f32 %v8263_v59, %v7424_v14 }
 0xe79   :  { %v4517_v44 = vpop.f32.mrf.mxu1 }
 0xe7a   :  { %v4518_v9 = vadd.f32 %v7424_v14, %v4517_v44  ;;  %v4582_v26 = vadd.f32 %v4526_v39, %v11580_v55 }
 0xe7b   :  { %v8264_v40 = vpop.f32.mrf.mxu1 }
 0xe7c   :  { %v4529_v48 = vadd.f32 %v8264_v40, %v7424_v14  ;;  %v4580_v56 = vadd.f32 %v4518_v9, %v11586_v1 }
 0xe7d   :  { %v4520_v53 = vpop.f32.mrf.mxu1 }
 0xe7e   :  { %v4521_v28 = vadd.f32 %v7424_v14, %v4520_v53  ;;  %v4583_v4 = vadd.f32 %v4529_v48, %v11592_v13 }
 0xe80   :  { %v4581_v41 = vadd.f32 %v4521_v28, %v11598_v38  ;;  %v4597_v51 = vpack.c.bf16 %v4583_v4, %v4582_v26 }
 0xe82   :  { %v4596_v16 = vpack.c.bf16 %v4581_v41, %v4580_v56 }
 0xe84   :  { %8281 = vmatprep.mubr.msk.bf16.mxu0 %vm45_vm0, %v4596_v16 }
 0xe85   :  { %8282 = vmatmul.mubr.msk.bf16.vlgmr.msra.gmra.mxu0 %vm45_vm0, %v4597_v51 }
 0xe89   :  { %v8267_v36 = vpop.f32.mrf.mxu1 }
 0xe8a   :  { %v4542_v50 = vadd.f32 %v8267_v36, %v7424_v14 }
 0xe8b   :  { %v4533_v46 = vpop.f32.mrf.mxu1 }
 0xe8c   :  { %v4534_v34 = vadd.f32 %v7424_v14, %v4533_v46  ;;  %v4586_v57 = vadd.f32 %v4542_v50, %v11610_v37 }
 0xe8d   :  { %v8268_v63 = vpop.f32.mrf.mxu1 }
 0xe8e   :  { %v4545_v15 = vadd.f32 %v8268_v63, %v7424_v14  ;;  %v4584_v38 = vadd.f32 %v4534_v34, %v11622_v10 }
 0xe8f   :  { %v4536_v52 = vpop.f32.mrf.mxu1 }
 0xe90   :  { %v4537_v13 = vadd.f32 %v7424_v14, %v4536_v52  ;;  %v4587_v1 = vadd.f32 %v4545_v15, %v11628_v29 }
 0xe92   :  { %v4585_v55 = vadd.f32 %v4537_v13, %v11636_v23  ;;  %v4599_v3 = vpack.c.bf16 %v4587_v1, %v4586_v57 }
 0xe94   :  { %v4598_v49 = vpack.c.bf16 %v4585_v55, %v4584_v38 }
 0xe96   :  { %8285 = vmatprep.mubr.msk.bf16.mxu0 %vm45_vm0, %v4598_v49 }
 0xe97   :  { %8286 = vmatmul.mubr.msk.bf16.gmra.mxu0 %vm45_vm0, %v4599_v3 }
 0xe99   :  { %v8271_v62 = vpop.f32.mrf.mxu1 }
 0xe9a   :  { %v4558_v31 = vadd.f32 %v8271_v62, %v7424_v14 }
 0xe9b   :  { %v4549_v47 = vpop.f32.mrf.mxu1 }
 0xe9c   :  { %v4550_v2 = vadd.f32 %v7424_v14, %v4549_v47  ;;  %v4590_v5 = vadd.f32 %v4558_v31, %v11642_v25 }
 0xe9d   :  { %v8272_v42 = vpop.f32.mrf.mxu1 }
 0xe9e   :  { %v4561_v6 = vadd.f32 %v8272_v42, %v7424_v14  ;;  %v4588_v23 = vadd.f32 %v4550_v2, %v11648_v12 }
 0xe9f   :  { %v4552_v22 = vpop.f32.mrf.mxu1 }
 0xea0   :  { %v4553_v29 = vadd.f32 %v7424_v14, %v4552_v22  ;;  %v4591_v10 = vadd.f32 %v4561_v6, %v11660_v17 }
 0xea2   :  { %v4589_v37 = vadd.f32 %v4553_v29, %v11666_v35  ;;  %v4601_v61 = vpack.c.bf16 %v4591_v10, %v4590_v5 }
 0xea4   :  { %v4600_v21 = vpack.c.bf16 %v4589_v37, %v4588_v23 }
 0xea6   :  { %8289 = vmatprep.mubr.msk.bf16.mxu0 %vm45_vm0, %v4600_v21 }
 0xea7   :  { %8290 = vmatmul.mubr.msk.bf16.gmra.mxu0 %vm45_vm0, %v4601_v61 }
 0xea9   :  { %v8275_v19 = vpop.f32.mrf.mxu1 }
 0xeaa   :  { %v4574_v45 = vadd.f32 %v8275_v19, %v7424_v14 }
 0xeab   :  { %v4565_v18 = vpop.f32.mrf.mxu1 }
 0xeac   :  { %v4566_v24 = vadd.f32 %v7424_v14, %v4565_v18  ;;  %v4594_v58 = vadd.f32 %v4574_v45, %v11674_v7 }
 0xead   :  { %v8276_v33 = vpop.f32.mrf.mxu1 }
 0xeae   :  { %v4577_v54 = vadd.f32 %v8276_v33, %v7424_v14  ;;  %v4592_v35 = vadd.f32 %v4566_v24, %v11680_v32 }
 0xeaf   :  { %v4568_v20 = vpop.f32.mrf.mxu1 }
 0xeb0   :  { %v4569_v17 = vadd.f32 %v7424_v14, %v4568_v20  ;;  %v4595_v12 = vadd.f32 %v4577_v54, %v11692_v60 }
 0xeb2   :  { %v4593_v25 = vadd.f32 %v4569_v17, %v11698_v8  ;;  %v4603_v0 = vpack.c.bf16 %v4595_v12, %v4594_v58  ;;  %v9546_v12 = vld [vmem:[%s12705_s5 + $0x78] sm:$0xff]  }
 0xeb3   :  { %8297 = vmatprep.subr.bf16.mxu1 %v9546_v12 }
 0xeb4   :  { %v4602_v27 = vpack.c.bf16 %v4593_v25, %v4592_v35  ;;  %v9547_v35 = vld [vmem:[%s12705_s5 + $0x70] sm:$0xff]   ;;  %8298 = vmatpush3.bf16.msra.mxu1 %v9546_v12 }
 0xeb5   :  { %8299 = vmatprep.subr.bf16.mxu1 %v9547_v35 }
 0xeb6   :  { %8293 = vmatprep.mubr.msk.bf16.mxu0 %vm45_vm0, %v4602_v27 }
 0xeb7   :  { %8294 = vmatmul.mubr.msk.bf16.gmra.mxu0 %vm45_vm0, %v4603_v0 }
 0xeb8   :  { %8300 = vmatpush3.bf16.msra.mxu1 %v9547_v35 }
 0xf45   :  { %v8283_v30 = vpop.f32.mrf.mxu0 }
 0xf46   :  { %v4694_v8 = vadd.f32 %v8283_v30, %v11805_v11 }
 0xf47   :  { %v4685_v59 = vpop.f32.mrf.mxu0 }
 0xf48   :  { %v4686_v60 = vadd.f32 %v11805_v11, %v4685_v59  ;;  %v11825_v53 = vsel %vm2523_vm3, %v4694_v8, -inf }
 0xf49   :  { %v8284_v32 = vpop.f32.mrf.mxu0 }
 0xf4a   :  { %v4697_v7 = vadd.f32 %v8284_v32, %v11805_v11  ;;  %v11812_v44 = vsel %vm2523_vm3, %v4686_v60, -inf }
 0xf4b   :  { %v4688_v14 = vpop.f32.mrf.mxu0  ;;  %4845 = vmax.xlane.f32.xlu0 %v11812_v44 }
 0xf4c   :  { %v7780_v40 = vpack.c.bf16 %v4697_v7, %v4694_v8  ;;  %v4689_v9 = vadd.f32 %v11805_v11, %v4688_v14  ;;  %v11834_v28 = vsel %vm2523_vm3, %v4697_v7, -inf }
 0xf4e   :  { %7860 = vst [vmem:[%s12704_s13 + $0x48] sm:$0xff] %v7780_v40   ;;  %v7775_v48 = vpack.c.bf16 %v4689_v9, %v4686_v60  ;;  %v11821_v39 = vsel %vm2523_vm3, %v4689_v9, -inf }
 0xf4f   :  { %4847 = vmax.xlane.f32.xlu1 %v11821_v39  ;;  %4849 = vmax.xlane.f32.xlu0 %v11825_v53 }
 0xf50   :  { %7859 = vst [vmem:[%s12704_s13 + $0x40] sm:$0xff] %v7775_v48  }
 0xf53   :  { %4851 = vmax.xlane.f32.xlu0 %v11834_v28 }
 0xf57   :  { %v8287_v4 = vpop.f32.mrf.mxu0 }
 0xf58   :  { %v4710_v16 = vadd.f32 %v8287_v4, %v11805_v11 }
 0xf59   :  { %v4701_v56 = vpop.f32.mrf.mxu0 }
 0xf5a   :  { %v4702_v41 = vadd.f32 %v11805_v11, %v4701_v56  ;;  %v11851_v50 = vsel %vm2523_vm3, %v4710_v16, -inf }
 0xf5b   :  { %v8288_v26 = vpop.f32.mrf.mxu0 }
 0xf5c   :  { %v4713_v51 = vadd.f32 %v8288_v26, %v11805_v11  ;;  %v11842_v36 = vsel %vm2523_vm3, %v4702_v41, -inf }
 0xf5d   :  { %v4704_v46 = vpop.f32.mrf.mxu0  ;;  %4853 = vmax.xlane.f32.xlu1 %v11842_v36 }
 0xf5e   :  { %v7790_v63 = vpack.c.bf16 %v4713_v51, %v4710_v16  ;;  %v4705_v34 = vadd.f32 %v11805_v11, %v4704_v46  ;;  %v11864_v13 = vsel %vm2523_vm3, %v4713_v51, -inf }
 0xf60   :  { %7862 = vst [vmem:[%s12704_s13 + $0x58] sm:$0xff] %v7790_v63   ;;  %v7785_v15 = vpack.c.bf16 %v4705_v34, %v4702_v41  ;;  %v11855_v52 = vsel %vm2523_vm3, %v4705_v34, -inf  ;;  %v9548_v63 = vld [vmem:[%s12705_s5 + $0x68] sm:$0xff]  }
 0xf61   :  { %4857 = vmax.xlane.f32.xlu1 %v11851_v50  ;;  %4855 = vmax.xlane.f32.xlu0 %v11855_v52 }
 0xf62   :  { %7861 = vst [vmem:[%s12704_s13 + $0x50] sm:$0xff] %v7785_v15   ;;  %8301 = vmatprep.subr.bf16.mxu1 %v9548_v63 }
 0xf63   :  { %8302 = vmatpush3.bf16.msra.mxu1 %v9548_v63 }
 0xf65   :  { %4859 = vmax.xlane.f32.xlu0 %v11864_v13 }
 0xf67   :  { %v8291_v1 = vpop.f32.mrf.mxu0 }
 0xf68   :  { %v4726_v49 = vadd.f32 %v8291_v1, %v11805_v11 }
 0xf69   :  { %v4717_v38 = vpop.f32.mrf.mxu0 }
 0xf6a   :  { %v4718_v55 = vadd.f32 %v11805_v11, %v4717_v38  ;;  %v11881_v31 = vsel %vm2523_vm3, %v4726_v49, -inf }
 0xf6b   :  { %v8292_v57 = vpop.f32.mrf.mxu0 }
 0xf6c   :  { %v4729_v3 = vadd.f32 %v8292_v57, %v11805_v11  ;;  %v11872_v62 = vsel %vm2523_vm3, %v4718_v55, -inf }
 0xf6d   :  { %v4720_v47 = vpop.f32.mrf.mxu0  ;;  %4861 = vmax.xlane.f32.xlu1 %v11872_v62 }
 0xf6e   :  { %v7800_v42 = vpack.c.bf16 %v4729_v3, %v4726_v49  ;;  %v4721_v2 = vadd.f32 %v11805_v11, %v4720_v47  ;;  %v11894_v29 = vsel %vm2523_vm3, %v4729_v3, -inf  ;;  %v9550_v49 = vld [vmem:[%s12705_s5 + $0x58] sm:$0xff]  }
 0xf70   :  { %7864 = vst [vmem:[%s12704_s13 + $0x68] sm:$0xff] %v7800_v42   ;;  %v7795_v6 = vpack.c.bf16 %v4721_v2, %v4718_v55  ;;  %v11885_v22 = vsel %vm2523_vm3, %v4721_v2, -inf }
 0xf71   :  { %4865 = vmax.xlane.f32.xlu1 %v11881_v31  ;;  %4863 = vmax.xlane.f32.xlu0 %v11885_v22 }
 0xf72   :  { %7863 = vst [vmem:[%s12704_s13 + $0x60] sm:$0xff] %v7795_v6  }
 0xf75   :  { %4867 = vmax.xlane.f32.xlu0 %v11894_v29 }
 0xf77   :  { %v8295_v10 = vpop.f32.mrf.mxu0 }
 0xf78   :  { %v4742_v21 = vadd.f32 %v8295_v10, %v11805_v11 }
 0xf79   :  { %v4733_v23 = vpop.f32.mrf.mxu0 }
 0xf7a   :  { %v4734_v37 = vadd.f32 %v11805_v11, %v4733_v23  ;;  %v11911_v45 = vsel %vm2523_vm3, %v4742_v21, -inf  ;;  %v9552_v23 = vld [vmem:[%s12705_s5 + $0x48] sm:$0xff]  }
 0xf7b   :  { %v8296_v5 = vpop.f32.mrf.mxu0 }
 0xf7c   :  { %v4745_v61 = vadd.f32 %v8296_v5, %v11805_v11  ;;  %v11902_v19 = vsel %vm2523_vm3, %v4734_v37, -inf  ;;  %v9553_v5 = vld [vmem:[%s12705_s5 + $0x40] sm:$0xff]  }
 0xf7d   :  { %v4736_v18 = vpop.f32.mrf.mxu0  ;;  %4869 = vmax.xlane.f32.xlu1 %v11902_v19 }
 0xf7e   :  { %v7810_v33 = vpack.c.bf16 %v4745_v61, %v4742_v21  ;;  %v4737_v24 = vadd.f32 %v11805_v11, %v4736_v18  ;;  %v11924_v17 = vsel %vm2523_vm3, %v4745_v61, -inf }
 0xf80   :  { %7866 = vst [vmem:[%s12704_s13 + $0x78] sm:$0xff] %v7810_v33   ;;  %v7805_v54 = vpack.c.bf16 %v4737_v24, %v4734_v37  ;;  %v11915_v20 = vsel %vm2523_vm3, %v4737_v24, -inf }
 0xf81   :  { %4873 = vmax.xlane.f32.xlu1 %v11911_v45  ;;  %4871 = vmax.xlane.f32.xlu0 %v11915_v20 }
 0xf82   :  { %7865 = vst [vmem:[%s12704_s13 + $0x70] sm:$0xff] %v7805_v54  }
 0xf85   :  { %4875 = vmax.xlane.f32.xlu0 %v11924_v17 }
 0xfd4   :  { %v4846_v25 = vpop.xlane.xlu0 %4845 }
 0xfd5   :  { %v4877_v58 = vsub.f32 %v11812_v44, %v4846_v25 }
 0xfd7   :  { %v4893_v43 = vmul.f32 1.442695, %v4877_v58 }
 0xfd8   :  { %v4848_v27 = vpop.xlane.xlu1 %4847  ;;  %v4850_v0 = vpop.xlane.xlu0 %4849 }
 0xfd9   :  { %9644 = vpow2.f32 %v4893_v43  ;;  %v4878_v30 = vsub.f32 %v11821_v39, %v4848_v27  ;;  %v4879_v11 = vsub.f32 %v11825_v53, %v4850_v0 }
 0xfdb   :  { %v4895_v59 = vmul.f32 1.442695, %v4878_v30  ;;  %v4897_v60 = vmul.f32 1.442695, %v4879_v11 }
 0xfdc   :  { %v4852_v32 = vpop.xlane.xlu0 %4851 }
 0xfdd   :  { %9646 = vpow2.f32 %v4895_v59  ;;  %v4880_v8 = vsub.f32 %v11834_v28, %v4852_v32 }
 0xfde   :  { %9648 = vpow2.f32 %v4897_v60 }
 0xfdf   :  { %v4899_v7 = vmul.f32 1.442695, %v4880_v8 }
 0xfe1   :  { %9650 = vpow2.f32 %v4899_v7 }
 0xfe6   :  { %v11937_v14 = vpop.eup %9644  ;;  %v4854_v44 = vpop.xlane.xlu1 %4853 }
 0xfe7   :  { %v4881_v40 = vsub.f32 %v11842_v36, %v4854_v44  ;;  %4925 = vadd.xlane.f32.xlu1 %v11937_v14 }
 0xfe9   :  { %v4901_v9 = vmul.f32 1.442695, %v4881_v40 }
 0xfea   :  { %v11941_v48 = vpop.eup %9646  ;;  %v4858_v39 = vpop.xlane.xlu1 %4857 }
 0xfeb   :  { %v4856_v53 = vpop.xlane.xlu0 %4855  ;;  %v11943_v4 = vpop.eup %9648  ;;  %9652 = vpow2.f32 %v4901_v9  ;;  %v4883_v28 = vsub.f32 %v11851_v50, %v4858_v39  ;;  %4927 = vadd.xlane.f32.xlu0 %v11941_v48  ;;  %v9549_v50 = vld [vmem:[%s12705_s5 + $0x60] sm:$0xff]  }
 0xfec   :  { %v4882_v56 = vsub.f32 %v11855_v52, %v4856_v53  ;;  %4929 = vadd.xlane.f32.xlu1 %v11943_v4  ;;  %8303 = vmatprep.subr.bf16.mxu1 %v9549_v50 }
 0xfed   :  { %v4905_v41 = vmul.f32 1.442695, %v4883_v28  ;;  %8304 = vmatpush3.bf16.msra.mxu1 %v9549_v50 }
 0xfee   :  { %v4903_v26 = vmul.f32 1.442695, %v4882_v56  ;;  %v11949_v16 = vpop.eup %9650  ;;  %8305 = vmatprep.subr.bf16.mxu1 %v9550_v49 }
 0xfef   :  { %v4860_v51 = vpop.xlane.xlu0 %4859  ;;  %9654 = vpow2.f32 %v4905_v41  ;;  %4931 = vadd.xlane.f32.xlu0 %v11949_v16 }
 0xff0   :  { %v4884_v36 = vsub.f32 %v11864_v13, %v4860_v51  ;;  %9656 = vpow2.f32 %v4903_v26 }
 0xff1   :  { %8306 = vmatpush3.bf16.msra.mxu1 %v9550_v49 }
 0xff2   :  { %v4907_v46 = vmul.f32 1.442695, %v4884_v36 }
 0xff4   :  { %9658 = vpow2.f32 %v4907_v46 }
 0xff6   :  { %v4862_v34 = vpop.xlane.xlu1 %4861 }
 0xff7   :  { %v4885_v15 = vsub.f32 %v11872_v62, %v4862_v34 }
 0xff8   :  { %v11960_v52 = vpop.eup %9652 }
 0xff9   :  { %v4909_v13 = vmul.f32 1.442695, %v4885_v15  ;;  %4933 = vadd.xlane.f32.xlu1 %v11960_v52 }
 0xffa   :  { %v4866_v1 = vpop.xlane.xlu1 %4865  ;;  %v4864_v38 = vpop.xlane.xlu0 %4863 }
 0xffb   :  { %9660 = vpow2.f32 %v4909_v13  ;;  %v4887_v55 = vsub.f32 %v11881_v31, %v4866_v1  ;;  %v4886_v57 = vsub.f32 %v11885_v22, %v4864_v38  ;;  %v9551_v31 = vld [vmem:[%s12705_s5 + $0x50] sm:$0xff]  }
 0xffc   :  { %v11968_v3 = vpop.eup %9654  ;;  %8307 = vmatprep.subr.bf16.mxu1 %v9551_v31 }
 0xffd   :  { %v11970_v62 = vpop.eup %9656  ;;  %v4913_v47 = vmul.f32 1.442695, %v4887_v55  ;;  %v4911_v42 = vmul.f32 1.442695, %v4886_v57  ;;  %4937 = vadd.xlane.f32.xlu1 %v11968_v3  ;;  %8308 = vmatpush3.bf16.msra.mxu1 %v9551_v31 }
 0xffe   :  { %4935 = vadd.xlane.f32.xlu0 %v11970_v62  ;;  %v4868_v2 = vpop.xlane.xlu0 %4867  ;;  %8309 = vmatprep.subr.bf16.mxu1 %v9552_v23 }
 0xfff   :  { %9662 = vpow2.f32 %v4913_v47  ;;  %v4888_v6 = vsub.f32 %v11894_v29, %v4868_v2 }
0x1000   :  { %9664 = vpow2.f32 %v4911_v42 }
0x1001   :  { %v11978_v22 = vpop.eup %9658  ;;  %v4915_v10 = vmul.f32 1.442695, %v4888_v6  ;;  %8310 = vmatpush3.bf16.msra.mxu1 %v9552_v23 }
0x1002   :  { %4939 = vadd.xlane.f32.xlu0 %v11978_v22  ;;  %8311 = vmatprep.subr.bf16.mxu1 %v9553_v5 }
0x1003   :  { %9666 = vpow2.f32 %v4915_v10 }
0x1005   :  { %8312 = vmatpush3.bf16.msra.mxu1 %v9553_v5 }
0x1006   :  { %v4870_v37 = vpop.xlane.xlu1 %4869 }
0x1007   :  { %v4889_v29 = vsub.f32 %v11902_v19, %v4870_v37 }
0x1008   :  { %v11988_v21 = vpop.eup %9660 }
0x1009   :  { %v4917_v61 = vmul.f32 1.442695, %v4889_v29  ;;  %4941 = vadd.xlane.f32.xlu1 %v11988_v21 }
0x100a   :  { %v4874_v18 = vpop.xlane.xlu1 %4873  ;;  %v4872_v33 = vpop.xlane.xlu0 %4871 }
0x100b   :  { %9668 = vpow2.f32 %v4917_v61  ;;  %v4891_v24 = vsub.f32 %v11911_v45, %v4874_v18  ;;  %v4890_v54 = vsub.f32 %v11915_v20, %v4872_v33 }
0x100c   :  { %v11993_v12 = vpop.eup %9662 }
0x100d   :  { %v11995_v19 = vpop.eup %9664  ;;  %v4921_v35 = vmul.f32 1.442695, %v4891_v24  ;;  %v4919_v25 = vmul.f32 1.442695, %v4890_v54  ;;  %4945 = vadd.xlane.f32.xlu1 %v11993_v12 }
0x100e   :  { %4943 = vadd.xlane.f32.xlu0 %v11995_v19  ;;  %v4876_v58 = vpop.xlane.xlu0 %4875 }
0x100f   :  { %9670 = vpow2.f32 %v4921_v35  ;;  %v4892_v43 = vsub.f32 %v11924_v17, %v4876_v58  ;;  %v9554_v58 = vld [vmem:[%s12706_s7 + $0xb8] sm:$0xff]  }
0x1010   :  { %v12000_v27 = vpop.eup %9666  ;;  %9672 = vpow2.f32 %v4919_v25  ;;  %8329 = vmatprep.subr.bf16.mxu0 %v9554_v58 }
0x1011   :  { %v4923_v45 = vmul.f32 1.442695, %v4892_v43  ;;  %v9555_v43 = vld [vmem:[%s12706_s7 + $0xb0] sm:$0xff]   ;;  %8330 = vmatpush3.bf16.msra.mxu0 %v9554_v58 }
0x1012   :  { %4947 = vadd.xlane.f32.xlu0 %v12000_v27  ;;  %8331 = vmatprep.subr.bf16.mxu0 %v9555_v43 }
0x1013   :  { %9674 = vpow2.f32 %v4923_v45  ;;  %v9556_v45 = vld [vmem:[%s12706_s7 + $0xa8] sm:$0xff]  }
0x1015   :  { %8332 = vmatpush3.bf16.msra.mxu0 %v9555_v43 }
0x1016   :  { %8333 = vmatprep.subr.bf16.mxu0 %v9556_v45 }
0x1018   :  { %v12003_v20 = vpop.eup %9668 }
0x1019   :  { %4949 = vadd.xlane.f32.xlu1 %v12003_v20  ;;  %8334 = vmatpush3.bf16.msra.mxu0 %v9556_v45 }
0x101c   :  { %v12006_v0 = vpop.eup %9670 }
0x101d   :  { %v12008_v30 = vpop.eup %9672  ;;  %4953 = vadd.xlane.f32.xlu1 %v12006_v0 }
0x101e   :  { %4951 = vadd.xlane.f32.xlu0 %v12008_v30 }
0x1020   :  { %v12012_v17 = vpop.eup %9674 }
0x1022   :  { %4955 = vadd.xlane.f32.xlu0 %v12012_v17 }
0x1070   :  { %v4926_v11 = vpop.xlane.xlu1 %4925 }
0x1071   :  { %9676 = vrcp.f32 %v4926_v11 }
0x1074   :  { %v4928_v59 = vpop.xlane.xlu0 %4927 }
0x1075   :  { %v4930_v60 = vpop.xlane.xlu1 %4929  ;;  %9678 = vrcp.f32 %v4928_v59 }
0x1076   :  { %9680 = vrcp.f32 %v4930_v60 }
0x1078   :  { %v4932_v32 = vpop.xlane.xlu0 %4931 }
0x1079   :  { %9682 = vrcp.f32 %v4932_v32 }
0x107e   :  { %v9677_v8 = vpop.eup %9676 }
0x107f   :  { %v4973_v40 = vmul.f32 %v9677_v8, %v11937_v14 }
0x1082   :  { %v9679_v7 = vpop.eup %9678  ;;  %v4934_v44 = vpop.xlane.xlu1 %4933 }
0x1083   :  { %v4974_v9 = vmul.f32 %v9679_v7, %v11941_v48  ;;  %v9681_v39 = vpop.eup %9680  ;;  %9684 = vrcp.f32 %v4934_v44  ;;  %v9558_v7 = vld [vmem:[%s12706_s7 + $0x98] sm:$0xff]  }
0x1084   :  { %v4975_v56 = vmul.f32 %v9681_v39, %v11943_v4 }
0x1085   :  { %v4989_v53 = vpack.c.bf16 %v4974_v9, %v4973_v40  ;;  %v9559_v40 = vld [vmem:[%s12706_s7 + $0x90] sm:$0xff]  }
0x1086   :  { %v9683_v28 = vpop.eup %9682  ;;  %v4938_v26 = vpop.xlane.xlu1 %4937 }
0x1087   :  { %v4976_v41 = vmul.f32 %v9683_v28, %v11949_v16  ;;  %v4936_v51 = vpop.xlane.xlu0 %4935  ;;  %8313 = vmatprep.mubr.bf16.mxu1 %v4989_v53 }
0x1088   :  { %9686 = vrcp.f32 %v4936_v51 }
0x1089   :  { %v4990_v36 = vpack.c.bf16 %v4976_v41, %v4975_v56  ;;  %9688 = vrcp.f32 %v4938_v26 }
0x108b   :  { %v4940_v46 = vpop.xlane.xlu0 %4939  ;;  %8314 = vmatmul.mubr.bf16.vlgmr.msra.gmra.mxu1 %v4990_v36 }
0x108c   :  { %9690 = vrcp.f32 %v4940_v46 }
0x1090   :  { %v9685_v63 = vpop.eup %9684 }
0x1091   :  { %v4977_v34 = vmul.f32 %v9685_v63, %v11960_v52 }
0x1092   :  { %v4942_v14 = vpop.xlane.xlu1 %4941 }
0x1093   :  { %9692 = vrcp.f32 %v4942_v14 }
0x1095   :  { %v9687_v48 = vpop.eup %9686 }
0x1096   :  { %v4978_v15 = vmul.f32 %v9687_v48, %v11970_v62  ;;  %v9689_v4 = vpop.eup %9688  ;;  %v4946_v50 = vpop.xlane.xlu1 %4945 }
0x1097   :  { %v4944_v16 = vpop.xlane.xlu0 %4943  ;;  %v4979_v38 = vmul.f32 %v9689_v4, %v11968_v3 }
0x1098   :  { %9694 = vrcp.f32 %v4944_v16  ;;  %v4991_v13 = vpack.c.bf16 %v4978_v15, %v4977_v34 }
0x1099   :  { %v9691_v1 = vpop.eup %9690  ;;  %9696 = vrcp.f32 %v4946_v50 }
0x109a   :  { %8317 = vmatprep.mubr.bf16.mxu1 %v4991_v13  ;;  %v4980_v55 = vmul.f32 %v9691_v1, %v11978_v22 }
0x109b   :  { %v4948_v57 = vpop.xlane.xlu0 %4947 }
0x109c   :  { %9698 = vrcp.f32 %v4948_v57  ;;  %v4992_v49 = vpack.c.bf16 %v4980_v55, %v4979_v38 }
0x109e   :  { %8318 = vmatmul.mubr.bf16.gmra.mxu1 %v4992_v49 }
0x10a0   :  { %v9693_v52 = vpop.eup %9692 }
0x10a1   :  { %v4981_v62 = vmul.f32 %v9693_v52, %v11988_v21 }
0x10a2   :  { %v4950_v47 = vpop.xlane.xlu1 %4949 }
0x10a3   :  { %9700 = vrcp.f32 %v4950_v47 }
0x10a5   :  { %v9695_v42 = vpop.eup %9694 }
0x10a6   :  { %v4982_v2 = vmul.f32 %v9695_v42, %v11995_v19  ;;  %v9697_v6 = vpop.eup %9696  ;;  %v4954_v31 = vpop.xlane.xlu1 %4953 }
0x10a7   :  { %v4952_v10 = vpop.xlane.xlu0 %4951  ;;  %v4983_v22 = vmul.f32 %v9697_v6, %v11993_v12 }
0x10a8   :  { %9702 = vrcp.f32 %v4952_v10  ;;  %v4993_v23 = vpack.c.bf16 %v4982_v2, %v4981_v62 }
0x10a9   :  { %v9699_v3 = vpop.eup %9698  ;;  %9704 = vrcp.f32 %v4954_v31 }
0x10aa   :  { %8321 = vmatprep.mubr.bf16.mxu1 %v4993_v23  ;;  %v4984_v37 = vmul.f32 %v9699_v3, %v12000_v27  ;;  %v12040_v27 = vld [vmem:[%s12707_s6 + $0x1] ss:$0 sm:$0xff] }
0x10ab   :  { %v4956_v29 = vpop.xlane.xlu0 %4955 }
0x10ac   :  { %9706 = vrcp.f32 %v4956_v29  ;;  %v4994_v5 = vpack.c.bf16 %v4984_v37, %v4983_v22 }
0x10ae   :  { %8322 = vmatmul.mubr.bf16.gmra.mxu1 %v4994_v5 }
0x10b0   :  { %v9701_v61 = vpop.eup %9700 }
0x10b1   :  { %v4985_v18 = vmul.f32 %v9701_v61, %v12003_v20  ;;  %v9557_v20 = vld [vmem:[%s12706_s7 + $0xa0] sm:$0xff]  }
0x10b2   :  { %8335 = vmatprep.subr.bf16.mxu0 %v9557_v20 }
0x10b3   :  { %8336 = vmatpush3.bf16.msra.mxu0 %v9557_v20 }
0x10b4   :  { %8337 = vmatprep.subr.bf16.mxu0 %v9558_v7 }
0x10b5   :  { %v9703_v21 = vpop.eup %9702 }
0x10b6   :  { %v4986_v33 = vmul.f32 %v9703_v21, %v12008_v30  ;;  %v9705_v24 = vpop.eup %9704 }
0x10b7   :  { %v4987_v35 = vmul.f32 %v9705_v24, %v12006_v0  ;;  %8338 = vmatpush3.bf16.msra.mxu0 %v9558_v7 }
0x10b8   :  { %v4995_v54 = vpack.c.bf16 %v4986_v33, %v4985_v18  ;;  %8339 = vmatprep.subr.bf16.mxu0 %v9559_v40 }
0x10b9   :  { %v9707_v19 = vpop.eup %9706 }
0x10ba   :  { %8325 = vmatprep.mubr.bf16.mxu1 %v4995_v54  ;;  %v4988_v12 = vmul.f32 %v9707_v19, %v12012_v17 }
0x10bb   :  { %8340 = vmatpush3.bf16.msra.mxu0 %v9559_v40 }
0x10bc   :  { %v4996_v25 = vpack.c.bf16 %v4988_v12, %v4987_v35 }
0x10be   :  { %8326 = vmatmul.mubr.bf16.gmra.mxu1 %v4996_v25 }
0x114b   :  { %v8315_v0 = vpop.f32.mrf.mxu1 }
0x114c   :  { %v12049_v30 = vadd.f32 %v8315_v0, %v12040_v27 }
0x114d   :  { %v5104_v17 = vpop.f32.mrf.mxu1 }
0x114e   :  { %5169 = vst.msk [vmem:[#allocation2 + $0x20] sm:$0xff] %vm45_vm0, %v12049_v30  ;;  %v12054_v11 = vadd.f32 %v12040_v27, %v5104_v17 }
0x114f   :  { %v8316_v59 = vpop.f32.mrf.mxu1 }
0x1150   :  { %5167 = vst.msk [vmem:[#allocation2 + $0x10] sm:$0xff] %vm45_vm0, %v12054_v11  ;;  %v12059_v60 = vadd.f32 %v8316_v59, %v12040_v27 }
0x1151   :  { %v5107_v32 = vpop.f32.mrf.mxu1 }
0x1152   :  { %5170 = vst.msk [vmem:[#allocation2 + $0x28] sm:$0xff] %vm45_vm0, %v12059_v60  ;;  %v12064_v8 = vadd.f32 %v12040_v27, %v5107_v32  ;;  %v9240_v36 = vpack.i.bf16 %v12059_v60, %v12049_v30 }
0x1154   :  { %v9230_v44 = vpack.i.bf16 %v12064_v8, %v12054_v11  ;;  %5168 = vst.msk [vmem:[#allocation2 + $0x18] sm:$0xff] %vm45_vm0, %v12064_v8 }
0x1156   :  { %9231 = vrot.lane.b32.xlu1 %v9230_v44, %s9712_s28 }
0x1157   :  { %v5199_v9 = vld [vmem:[#allocation2 + $0xf] sm:$0xff] }
0x1159   :  { %v5202_v53 = vld [vmem:[#allocation2 + $0x27] sm:$0xff] }
0x115b   :  { %v5201_v39 = vld [vmem:[#allocation2 + $0x1f] sm:$0xff]  ;;  %v5200_v28 = vld [vmem:[#allocation2 + $0x17] sm:$0xff] }
0x115c   :  { %v9245_v56 = vpack.i.bf16 %v5202_v53, %v5201_v39  ;;  %v9235_v41 = vpack.i.bf16 %v5200_v28, %v5199_v9  ;;  %v5183_v53 = vld [vmem:[#allocation2 + $0xe] sm:$0xff]  ;;  %v5184_v28 = vld [vmem:[#allocation2 + $0x16] sm:$0xff] }
0x115e   :  { %v8319_v26 = vpop.f32.mrf.mxu1  ;;  %9246 = vrot.lane.b32.xlu0 %v9245_v56, %s9710_s0  ;;  %9236 = vrot.lane.b32.xlu1 %v9235_v41, %s9710_s0 }
0x115f   :  { %v12080_v51 = vadd.f32 %v8319_v26, %v12040_v27 }
0x1160   :  { %v5120_v46 = vpop.f32.mrf.mxu1 }
0x1161   :  { %5173 = vst.msk [vmem:[#allocation2 + $0x40] sm:$0xff] %vm45_vm0, %v12080_v51  ;;  %v12087_v14 = vadd.f32 %v12040_v27, %v5120_v46 }
0x1162   :  { %v8320_v63 = vpop.f32.mrf.mxu1  ;;  %9241 = vrot.lane.b32.xlu1 %v9240_v36, %s9712_s28 }
0x1163   :  { %5171 = vst.msk [vmem:[#allocation2 + $0x30] sm:$0xff] %vm45_vm0, %v12087_v14  ;;  %v12093_v48 = vadd.f32 %v8320_v63, %v12040_v27 }
0x1164   :  { %v5123_v34 = vpop.f32.mrf.mxu1 }
0x1165   :  { %5174 = vst.msk [vmem:[#allocation2 + $0x48] sm:$0xff] %vm45_vm0, %v12093_v48  ;;  %v12098_v15 = vadd.f32 %v12040_v27, %v5123_v34  ;;  %v9265_v42 = vpack.i.bf16 %v12093_v48, %v12080_v51 }
0x1167   :  { %5172 = vst.msk [vmem:[#allocation2 + $0x38] sm:$0xff] %vm45_vm0, %v12098_v15  ;;  %v9255_v62 = vpack.i.bf16 %v12098_v15, %v12087_v14 }
0x116a   :  { %v5203_v4 = vld [vmem:[#allocation2 + $0x2f] sm:$0xff] }
0x116c   :  { %v5206_v13 = vld [vmem:[#allocation2 + $0x47] sm:$0xff] }
0x116e   :  { %v8323_v50 = vpop.f32.mrf.mxu1  ;;  %v5205_v16 = vld [vmem:[#allocation2 + $0x3f] sm:$0xff]  ;;  %v5204_v1 = vld [vmem:[#allocation2 + $0x37] sm:$0xff] }
0x116f   :  { %v12103_v38 = vadd.f32 %v8323_v50, %v12040_v27  ;;  %v9260_v55 = vpack.i.bf16 %v5206_v13, %v5205_v16  ;;  %v9250_v57 = vpack.i.bf16 %v5204_v1, %v5203_v4  ;;  %v5185_v4 = vld [vmem:[#allocation2 + $0x1e] sm:$0xff]  ;;  %v5186_v50 = vld [vmem:[#allocation2 + $0x26] sm:$0xff] }
0x1170   :  { %v5136_v49 = vpop.f32.mrf.mxu1 }
0x1171   :  { %5177 = vst.msk [vmem:[#allocation2 + $0x70] sm:$0xff] %vm45_vm0, %v12103_v38  ;;  %v12108_v47 = vadd.f32 %v12040_v27, %v5136_v49  ;;  %9261 = vrot.lane.b32.xlu1 %v9260_v55, %s9710_s0  ;;  %9251 = vrot.lane.b32.xlu0 %v9250_v57, %s9710_s0 }
0x1172   :  { %v8324_v52 = vpop.f32.mrf.mxu1 }
0x1173   :  { %5175 = vst.msk [vmem:[#allocation2 + $0x60] sm:$0xff] %vm45_vm0, %v12108_v47  ;;  %v12119_v2 = vadd.f32 %v8324_v52, %v12040_v27 }
0x1174   :  { %v5139_v6 = vpop.f32.mrf.mxu1 }
0x1175   :  { %5178 = vst.msk [vmem:[#allocation2 + $0x78] sm:$0xff] %vm45_vm0, %v12119_v2  ;;  %v12124_v31 = vadd.f32 %v12040_v27, %v5139_v6  ;;  %9266 = vrot.lane.b32.xlu1 %v9265_v42, %s9712_s28  ;;  %9256 = vrot.lane.b32.xlu0 %v9255_v62, %s9712_s28  ;;  %v9285_v24 = vpack.i.bf16 %v12119_v2, %v12103_v38 }
0x1177   :  { %5176 = vst.msk [vmem:[#allocation2 + $0x68] sm:$0xff] %vm45_vm0, %v12124_v31  ;;  %v9275_v54 = vpack.i.bf16 %v12124_v31, %v12108_v47 }
0x117a   :  { %v5207_v10 = vld [vmem:[#allocation2 + $0x5f] sm:$0xff] }
0x117c   :  { %v5210_v22 = vld [vmem:[#allocation2 + $0x77] sm:$0xff] }
0x117e   :  { %v8327_v23 = vpop.f32.mrf.mxu1  ;;  %v5209_v3 = vld [vmem:[#allocation2 + $0x6f] sm:$0xff]  ;;  %v5208_v37 = vld [vmem:[#allocation2 + $0x67] sm:$0xff] }
0x117f   :  { %v12131_v29 = vadd.f32 %v8327_v23, %v12040_v27  ;;  %v9280_v5 = vpack.i.bf16 %v5210_v22, %v5209_v3  ;;  %v9270_v61 = vpack.i.bf16 %v5208_v37, %v5207_v10  ;;  %v5187_v37 = vld [vmem:[#allocation2 + $0x2e] sm:$0xff] }
0x1180   :  { %v5152_v21 = vpop.f32.mrf.mxu1 }
0x1181   :  { %5181 = vst.msk [vmem:[#allocation2 + $0x90] sm:$0xff] %vm45_vm0, %v12131_v29  ;;  %v12136_v18 = vadd.f32 %v12040_v27, %v5152_v21  ;;  %9281 = vrot.lane.b32.xlu1 %v9280_v5, %s9710_s0  ;;  %9271 = vrot.lane.b32.xlu0 %v9270_v61, %s9710_s0  ;;  %v5190_v21 = vld [vmem:[#allocation2 + $0x46] sm:$0xff] }
0x1182   :  { %v8328_v33 = vpop.f32.mrf.mxu1 }
0x1183   :  { %5179 = vst.msk [vmem:[#allocation2 + $0x80] sm:$0xff] %vm45_vm0, %v12136_v18  ;;  %v12147_v19 = vadd.f32 %v8328_v33, %v12040_v27  ;;  %v5189_v33 = vld [vmem:[#allocation2 + $0x3e] sm:$0xff] }
0x1184   :  { %v5155_v35 = vpop.f32.mrf.mxu1 }
0x1185   :  { %5182 = vst.msk [vmem:[#allocation2 + $0x98] sm:$0xff] %vm45_vm0, %v12147_v19  ;;  %v12152_v12 = vadd.f32 %v12040_v27, %v5155_v35  ;;  %9286 = vrot.lane.b32.xlu1 %v9285_v24, %s9712_s28  ;;  %9276 = vrot.lane.b32.xlu0 %v9275_v54, %s9712_s28  ;;  %v9305_v27 = vpack.i.bf16 %v12147_v19, %v12131_v29  ;;  %v5188_v24 = vld [vmem:[#allocation2 + $0x36] sm:$0xff] }
0x1187   :  { %5180 = vst.msk [vmem:[#allocation2 + $0x88] sm:$0xff] %vm45_vm0, %v12152_v12  ;;  %v9295_v17 = vpack.i.bf16 %v12152_v12, %v12136_v18 }
0x118a   :  { %v5211_v25 = vld [vmem:[#allocation2 + $0x7f] sm:$0xff] }
0x118c   :  { %v5214_v43 = vld [vmem:[#allocation2 + $0x97] sm:$0xff] }
0x118e   :  { %v5213_v58 = vld [vmem:[#allocation2 + $0x8f] sm:$0xff]  ;;  %v5212_v45 = vld [vmem:[#allocation2 + $0x87] sm:$0xff] }
0x118f   :  { %v9300_v20 = vpack.i.bf16 %v5214_v43, %v5213_v58  ;;  %v9290_v0 = vpack.i.bf16 %v5212_v45, %v5211_v25 }
0x1191   :  { %9301 = vrot.lane.b32.xlu1 %v9300_v20, %s9710_s0  ;;  %9291 = vrot.lane.b32.xlu0 %v9290_v0, %s9710_s0 }
0x1195   :  { %9306 = vrot.lane.b32.xlu1 %v9305_v27, %s9712_s28  ;;  %9296 = vrot.lane.b32.xlu0 %v9295_v17, %s9712_s28 }
0x11c8   :  { %v9232_v59 = vpop.permute.xlu1 %9231 }
0x11c9   :  { %v9234_v9 = vunpack.i.h.bf16 %v9232_v59  ;;  %v9233_v39 = vunpack.i.l.bf16 %v9232_v59 }
0x11d0   :  { %v9237_v32 = vpop.permute.xlu1 %9236  ;;  %v9247_v7 = vpop.permute.xlu0 %9246 }
0x11d1   :  { %v9239_v44 = vunpack.i.h.bf16 %v9237_v32  ;;  %v9238_v40 = vunpack.i.l.bf16 %v9237_v32  ;;  %v9249_v56 = vunpack.i.h.bf16 %v9247_v7  ;;  %v9248_v41 = vunpack.i.l.bf16 %v9247_v7 }
0x11d3   :  { %v5343_v26 = vsel %vm45_vm0, %v5183_v53, %v9238_v40  ;;  %v5344_v36 = vsel %vm45_vm0, %v5184_v28, %v9239_v44  ;;  %v5346_v55 = vsel %vm45_vm0, %v5186_v50, %v9249_v56  ;;  %v5345_v57 = vsel %vm45_vm0, %v5185_v4, %v9248_v41  ;;  %v5191_v41 = vld [vmem:[#allocation2 + $0x5e] sm:$0xff] }
0x11d4   :  { %v9242_v46 = vpop.permute.xlu1 %9241  ;;  %v5359_v63 = vsel %vm341_vm1, %v5343_v26, %v9233_v39  ;;  %v5360_v34 = vsel %vm341_vm1, %v5344_v36, %v9234_v9 }
0x11d5   :  { %v9244_v16 = vunpack.i.h.bf16 %v9242_v46  ;;  %v9243_v13 = vunpack.i.l.bf16 %v9242_v46  ;;  %v5375_v1 = vpack.c.bf16 %v5360_v34, %v5359_v63  ;;  %v5194_v46 = vld [vmem:[#allocation2 + $0x76] sm:$0xff]  ;;  %v5193_v63 = vld [vmem:[#allocation2 + $0x6e] sm:$0xff]  ;;  %v5192_v34 = vld [vmem:[#allocation2 + $0x66] sm:$0xff] }
0x11d7   :  { %v5361_v49 = vsel %vm341_vm1, %v5345_v57, %v9243_v13  ;;  %v5362_v52 = vsel %vm341_vm1, %v5346_v55, %v9244_v16  ;;  %8341 = vmatprep.mubr.msk.bf16.mxu0 %vm358_vm2, %v5375_v1 }
0x11d8   :  { %v5376_v42 = vpack.c.bf16 %v5362_v52, %v5361_v49 }
0x11da   :  { %8342 = vmatmul.mubr.msk.bf16.vlgmr.msra.gmra.mxu0 %vm358_vm2, %v5376_v42 }
0x11e3   :  { %v9262_v62 = vpop.permute.xlu1 %9261  ;;  %v9252_v6 = vpop.permute.xlu0 %9251 }
0x11e4   :  { %v9264_v10 = vunpack.i.h.bf16 %v9262_v62  ;;  %v9263_v23 = vunpack.i.l.bf16 %v9262_v62  ;;  %v9254_v3 = vunpack.i.h.bf16 %v9252_v6  ;;  %v9253_v22 = vunpack.i.l.bf16 %v9252_v6 }
0x11e6   :  { %v5350_v43 = vsel %vm45_vm0, %v5190_v21, %v9264_v10  ;;  %v5349_v45 = vsel %vm45_vm0, %v5189_v33, %v9263_v23  ;;  %v5348_v20 = vsel %vm45_vm0, %v5188_v24, %v9254_v3  ;;  %v5347_v0 = vsel %vm45_vm0, %v5187_v37, %v9253_v22  ;;  %v5195_v33 = vld [vmem:[#allocation2 + $0x7e] sm:$0xff] }
0x11e7   :  { %v9267_v5 = vpop.permute.xlu1 %9266  ;;  %v9257_v61 = vpop.permute.xlu0 %9256 }
0x11e8   :  { %v9269_v54 = vunpack.i.h.bf16 %v9267_v5  ;;  %v9268_v35 = vunpack.i.l.bf16 %v9267_v5  ;;  %v9259_v25 = vunpack.i.h.bf16 %v9257_v61  ;;  %v9258_v58 = vunpack.i.l.bf16 %v9257_v61 }
0x11ea   :  { %v5365_v27 = vsel %vm341_vm1, %v5349_v45, %v9268_v35  ;;  %v5366_v17 = vsel %vm341_vm1, %v5350_v43, %v9269_v54  ;;  %v5363_v59 = vsel %vm341_vm1, %v5347_v0, %v9258_v58  ;;  %v5364_v32 = vsel %vm341_vm1, %v5348_v20, %v9259_v25  ;;  %v5198_v35 = vld [vmem:[#allocation2 + $0x96] sm:$0xff]  ;;  %v5197_v25 = vld [vmem:[#allocation2 + $0x8e] sm:$0xff]  ;;  %v5196_v58 = vld [vmem:[#allocation2 + $0x86] sm:$0xff] }
0x11eb   :  { %v5378_v7 = vpack.c.bf16 %v5366_v17, %v5365_v27  ;;  %v5377_v44 = vpack.c.bf16 %v5364_v32, %v5363_v59 }
0x11ed   :  { %8345 = vmatprep.mubr.msk.bf16.mxu0 %vm358_vm2, %v5377_v44 }
0x11ee   :  { %8346 = vmatmul.mubr.msk.bf16.gmra.mxu0 %vm358_vm2, %v5378_v7 }
0x11f3   :  { %v9282_v40 = vpop.permute.xlu1 %9281  ;;  %v9272_v9 = vpop.permute.xlu0 %9271 }
0x11f4   :  { %v9284_v39 = vunpack.i.h.bf16 %v9282_v40  ;;  %v9283_v53 = vunpack.i.l.bf16 %v9282_v40  ;;  %v9274_v28 = vunpack.i.h.bf16 %v9272_v9  ;;  %v9273_v56 = vunpack.i.l.bf16 %v9272_v9 }
0x11f6   :  { %v5354_v1 = vsel %vm45_vm0, %v5194_v46, %v9284_v39  ;;  %v5353_v55 = vsel %vm45_vm0, %v5193_v63, %v9283_v53  ;;  %v5352_v57 = vsel %vm45_vm0, %v5192_v34, %v9274_v28  ;;  %v5351_v49 = vsel %vm45_vm0, %v5191_v41, %v9273_v56  ;;  %v9560_v28 = vld [vmem:[%s12708_s9 + $0x38] sm:$0xff]   ;;  %v9561_v56 = vld [vmem:[%s12708_s9 + $0x30] sm:$0xff]  }
0x11f7   :  { %v9287_v26 = vpop.permute.xlu1 %9286  ;;  %v9277_v36 = vpop.permute.xlu0 %9276  ;;  %8357 = vmatprep.subr.bf16.mxu1 %v9560_v28 }
0x11f8   :  { %v9289_v4 = vunpack.i.h.bf16 %v9287_v26  ;;  %v9288_v50 = vunpack.i.l.bf16 %v9287_v26  ;;  %v9279_v16 = vunpack.i.h.bf16 %v9277_v36  ;;  %v9278_v13 = vunpack.i.l.bf16 %v9277_v36  ;;  %8358 = vmatpush3.bf16.msra.mxu1 %v9560_v28  ;;  %v7517_v36 = vld [vmem:[%s12709_s8 + $0x3] ss:$0 sm:$0xff] }
0x11f9   :  { %8359 = vmatprep.subr.bf16.mxu1 %v9561_v56 }
0x11fa   :  { %v5369_v52 = vsel %vm341_vm1, %v5353_v55, %v9288_v50  ;;  %v5370_v42 = vsel %vm341_vm1, %v5354_v1, %v9289_v4  ;;  %v5367_v62 = vsel %vm341_vm1, %v5351_v49, %v9278_v13  ;;  %v5368_v6 = vsel %vm341_vm1, %v5352_v57, %v9279_v16 }
0x11fb   :  { %v5380_v10 = vpack.c.bf16 %v5370_v42, %v5369_v52  ;;  %v5379_v23 = vpack.c.bf16 %v5368_v6, %v5367_v62 }
0x11fc   :  { %8360 = vmatpush3.bf16.msra.mxu1 %v9561_v56 }
0x11fd   :  { %8349 = vmatprep.mubr.msk.bf16.mxu0 %vm358_vm2, %v5379_v23 }
0x11fe   :  { %8350 = vmatmul.mubr.msk.bf16.gmra.mxu0 %vm358_vm2, %v5380_v10 }
0x1203   :  { %v9302_v3 = vpop.permute.xlu1 %9301  ;;  %v9292_v22 = vpop.permute.xlu0 %9291 }
0x1204   :  { %v9304_v37 = vunpack.i.h.bf16 %v9302_v3  ;;  %v9303_v5 = vunpack.i.l.bf16 %v9302_v3  ;;  %v9294_v61 = vunpack.i.h.bf16 %v9292_v22  ;;  %v9293_v21 = vunpack.i.l.bf16 %v9292_v22 }
0x1206   :  { %v5358_v27 = vsel %vm45_vm0, %v5198_v35, %v9304_v37  ;;  %v5357_v17 = vsel %vm45_vm0, %v5197_v25, %v9303_v5  ;;  %v5356_v59 = vsel %vm45_vm0, %v5196_v58, %v9294_v61  ;;  %v5355_v32 = vsel %vm45_vm0, %v5195_v33, %v9293_v21 }
0x1207   :  { %v9307_v24 = vpop.permute.xlu1 %9306  ;;  %v9297_v54 = vpop.permute.xlu0 %9296 }
0x1208   :  { %v9309_v43 = vunpack.i.h.bf16 %v9307_v24  ;;  %v9308_v45 = vunpack.i.l.bf16 %v9307_v24  ;;  %v9299_v20 = vunpack.i.h.bf16 %v9297_v54  ;;  %v9298_v0 = vunpack.i.l.bf16 %v9297_v54 }
0x120a   :  { %v5373_v7 = vsel %vm341_vm1, %v5357_v17, %v9308_v45  ;;  %v5374_v44 = vsel %vm341_vm1, %v5358_v27, %v9309_v43  ;;  %v5371_v40 = vsel %vm341_vm1, %v5355_v32, %v9298_v0  ;;  %v5372_v9 = vsel %vm341_vm1, %v5356_v59, %v9299_v20 }
0x120b   :  { %v5382_v39 = vpack.c.bf16 %v5374_v44, %v5373_v7  ;;  %v5381_v53 = vpack.c.bf16 %v5372_v9, %v5371_v40 }
0x120d   :  { %8353 = vmatprep.mubr.msk.bf16.mxu0 %vm358_vm2, %v5381_v53 }
0x120e   :  { %8354 = vmatmul.mubr.msk.bf16.gmra.mxu0 %vm358_vm2, %v5382_v39 }
0x129a   :  { %v8343_v41 = vpop.f32.mrf.mxu0 }
0x129b   :  { %v5507_v4 = vadd.f32 %v8343_v41, %v7517_v36 }
0x129c   :  { %v5498_v26 = vpop.f32.mrf.mxu0 }
0x129d   :  { %v5499_v63 = vadd.f32 %v7517_v36, %v5498_v26  ;;  %v5563_v57 = vmax.f32 %v5507_v4, 0.0 }
0x129e   :  { %v8344_v46 = vpop.f32.mrf.mxu0 }
0x129f   :  { %v5510_v34 = vadd.f32 %v8344_v46, %v7517_v36  ;;  %v5561_v1 = vmax.f32 %v5499_v63, 0.0 }
0x12a0   :  { %v5501_v50 = vpop.f32.mrf.mxu0 }
0x12a1   :  { %v5502_v16 = vadd.f32 %v7517_v36, %v5501_v50  ;;  %v5564_v13 = vmax.f32 %v5510_v34, 0.0 }
0x12a3   :  { %v5562_v55 = vmax.f32 %v5502_v16, 0.0  ;;  %v5578_v52 = vpack.c.bf16 %v5564_v13, %v5563_v57  ;;  %v9565_v57 = vld [vmem:[%s12706_s7 + $0xd0] sm:$0xff]  }
0x12a5   :  { %v5577_v49 = vpack.c.bf16 %v5562_v55, %v5561_v1  ;;  %v9562_v1 = vld [vmem:[%s12706_s7 + $0xe8] sm:$0xff]   ;;  %v9563_v55 = vld [vmem:[%s12706_s7 + $0xe0] sm:$0xff]  }
0x12a6   :  { %8377 = vmatprep.subr.bf16.mxu0 %v9562_v1 }
0x12a7   :  { %8361 = vmatprep.mubr.msk.bf16.mxu1 %vm45_vm0, %v5577_v49  ;;  %8378 = vmatpush3.bf16.msra.mxu0 %v9562_v1  ;;  %v12238_v49 = vld [vmem:[%s12710_s10 + $0x3] ss:$0 sm:$0xff] }
0x12a8   :  { %8362 = vmatmul.mubr.msk.bf16.vlgmr.msra.gmra.mxu1 %vm45_vm0, %v5578_v52  ;;  %8379 = vmatprep.subr.bf16.mxu0 %v9563_v55 }
0x12ab   :  { %8380 = vmatpush3.bf16.msra.mxu0 %v9563_v55 }
0x12ae   :  { %v8347_v42 = vpop.f32.mrf.mxu0 }
0x12af   :  { %v5523_v3 = vadd.f32 %v8347_v42, %v7517_v36 }
0x12b0   :  { %v5514_v62 = vpop.f32.mrf.mxu0 }
0x12b1   :  { %v5515_v10 = vadd.f32 %v7517_v36, %v5514_v62  ;;  %v5567_v33 = vmax.f32 %v5523_v3, 0.0 }
0x12b2   :  { %v8348_v6 = vpop.f32.mrf.mxu0 }
0x12b3   :  { %v5526_v23 = vadd.f32 %v8348_v6, %v7517_v36  ;;  %v5565_v61 = vmax.f32 %v5515_v10, 0.0 }
0x12b4   :  { %v5517_v22 = vpop.f32.mrf.mxu0 }
0x12b5   :  { %v5518_v37 = vadd.f32 %v7517_v36, %v5517_v22  ;;  %v5568_v5 = vmax.f32 %v5526_v23, 0.0 }
0x12b7   :  { %v5566_v21 = vmax.f32 %v5518_v37, 0.0  ;;  %v5580_v54 = vpack.c.bf16 %v5568_v5, %v5567_v33 }
0x12b9   :  { %v5579_v24 = vpack.c.bf16 %v5566_v21, %v5565_v61 }
0x12bb   :  { %8365 = vmatprep.mubr.msk.bf16.mxu1 %vm45_vm0, %v5579_v24 }
0x12bc   :  { %8366 = vmatmul.mubr.msk.bf16.gmra.mxu1 %vm45_vm0, %v5580_v54 }
0x12be   :  { %v8351_v35 = vpop.f32.mrf.mxu0 }
0x12bf   :  { %v5539_v20 = vadd.f32 %v8351_v35, %v7517_v36 }
0x12c0   :  { %v5530_v25 = vpop.f32.mrf.mxu0 }
0x12c1   :  { %v5531_v43 = vadd.f32 %v7517_v36, %v5530_v25  ;;  %v5571_v7 = vmax.f32 %v5539_v20, 0.0 }
0x12c2   :  { %v8352_v58 = vpop.f32.mrf.mxu0 }
0x12c3   :  { %v5542_v45 = vadd.f32 %v8352_v58, %v7517_v36  ;;  %v5569_v59 = vmax.f32 %v5531_v43, 0.0 }
0x12c4   :  { %v5533_v0 = vpop.f32.mrf.mxu0 }
0x12c5   :  { %v5534_v27 = vadd.f32 %v7517_v36, %v5533_v0  ;;  %v5572_v17 = vmax.f32 %v5542_v45, 0.0 }
0x12c7   :  { %v5570_v32 = vmax.f32 %v5534_v27, 0.0  ;;  %v5582_v40 = vpack.c.bf16 %v5572_v17, %v5571_v7 }
0x12c9   :  { %v5581_v44 = vpack.c.bf16 %v5570_v32, %v5569_v59 }
0x12cb   :  { %8369 = vmatprep.mubr.msk.bf16.mxu1 %vm45_vm0, %v5581_v44 }
0x12cc   :  { %8370 = vmatmul.mubr.msk.bf16.gmra.mxu1 %vm45_vm0, %v5582_v40 }
0x12ce   :  { %v8355_v9 = vpop.f32.mrf.mxu0 }
0x12cf   :  { %v5555_v41 = vadd.f32 %v8355_v9, %v7517_v36 }
0x12d0   :  { %v5546_v39 = vpop.f32.mrf.mxu0 }
0x12d1   :  { %v5547_v28 = vadd.f32 %v7517_v36, %v5546_v39  ;;  %v5575_v50 = vmax.f32 %v5555_v41, 0.0 }
0x12d2   :  { %v8356_v53 = vpop.f32.mrf.mxu0 }
0x12d3   :  { %v5558_v56 = vadd.f32 %v8356_v53, %v7517_v36  ;;  %v5573_v34 = vmax.f32 %v5547_v28, 0.0 }
0x12d4   :  { %v5549_v26 = vpop.f32.mrf.mxu0 }
0x12d5   :  { %v5550_v46 = vadd.f32 %v7517_v36, %v5549_v26  ;;  %v5576_v63 = vmax.f32 %v5558_v56, 0.0  ;;  %v9564_v36 = vld [vmem:[%s12706_s7 + $0xd8] sm:$0xff]  }
0x12d6   :  { %8381 = vmatprep.subr.bf16.mxu0 %v9564_v36 }
0x12d7   :  { %v5574_v4 = vmax.f32 %v5550_v46, 0.0  ;;  %v5584_v13 = vpack.c.bf16 %v5576_v63, %v5575_v50  ;;  %8382 = vmatpush3.bf16.msra.mxu0 %v9564_v36 }
0x12d8   :  { %8383 = vmatprep.subr.bf16.mxu0 %v9565_v57 }
0x12d9   :  { %v5583_v16 = vpack.c.bf16 %v5574_v4, %v5573_v34 }
0x12db   :  { %8373 = vmatprep.mubr.msk.bf16.mxu1 %vm45_vm0, %v5583_v16  ;;  %8384 = vmatpush3.bf16.msra.mxu0 %v9565_v57 }
0x12dc   :  { %8374 = vmatmul.mubr.msk.bf16.gmra.mxu1 %vm45_vm0, %v5584_v13 }
0x1368   :  { %v8363_v52 = vpop.f32.mrf.mxu1 }
0x1369   :  { %v5677_v42 = vadd.f32 %v8363_v52, %v12238_v49 }
0x136a   :  { %v5668_v62 = vpop.f32.mrf.mxu1 }
0x136b   :  { %v12242_v6 = vadd.f32 %v5677_v42, %v12049_v30  ;;  %v5669_v10 = vadd.f32 %v12238_v49, %v5668_v62 }
0x136c   :  { %v8364_v23 = vpop.f32.mrf.mxu1 }
0x136d   :  { %5749 = vst.msk [vmem:[#allocation2 + $0x20] sm:$0xff] %vm45_vm0, %v12242_v6  ;;  %v12248_v3 = vadd.f32 %v5669_v10, %v12054_v11  ;;  %v5680_v22 = vadd.f32 %v8364_v23, %v12238_v49  ;;  %v9566_v11 = vld [vmem:[%s12706_s7 + $0xc8] sm:$0xff]  }
0x136e   :  { %v5671_v37 = vpop.f32.mrf.mxu1  ;;  %8385 = vmatprep.subr.bf16.mxu0 %v9566_v11 }
0x136f   :  { %5747 = vst.msk [vmem:[#allocation2 + $0x10] sm:$0xff] %vm45_vm0, %v12248_v3  ;;  %v12254_v5 = vadd.f32 %v5680_v22, %v12059_v60  ;;  %v5672_v30 = vadd.f32 %v12238_v49, %v5671_v37  ;;  %8386 = vmatpush3.bf16.msra.mxu0 %v9566_v11  ;;  %v9567_v60 = vld [vmem:[%s12706_s7 + $0xc0] sm:$0xff]  }
0x1370   :  { %8387 = vmatprep.subr.bf16.mxu0 %v9567_v60 }
0x1371   :  { %5750 = vst.msk [vmem:[#allocation2 + $0x28] sm:$0xff] %vm45_vm0, %v12254_v5  ;;  %v12260_v61 = vadd.f32 %v5672_v30, %v12064_v8  ;;  %v9325_v45 = vpack.i.bf16 %v12254_v5, %v12242_v6 }
0x1373   :  { %5748 = vst.msk [vmem:[#allocation2 + $0x18] sm:$0xff] %vm45_vm0, %v12260_v61  ;;  %8388 = vmatpush3.bf16.msra.mxu0 %v9567_v60  ;;  %v9315_v20 = vpack.i.bf16 %v12260_v61, %v12248_v3 }
0x1376   :  { %v5779_v21 = vld [vmem:[#allocation2 + $0xe] sm:$0xff] }
0x1378   :  { %v5782_v24 = vld [vmem:[#allocation2 + $0x26] sm:$0xff] }
0x137a   :  { %v5781_v33 = vld [vmem:[#allocation2 + $0x1e] sm:$0xff]  ;;  %v5780_v54 = vld [vmem:[#allocation2 + $0x16] sm:$0xff] }
0x137b   :  { %v9320_v8 = vpack.i.bf16 %v5782_v24, %v5781_v33  ;;  %v9310_v35 = vpack.i.bf16 %v5780_v54, %v5779_v21 }
0x137c   :  { %v8367_v25 = vpop.f32.mrf.mxu1 }
0x137d   :  { %v5693_v58 = vadd.f32 %v8367_v25, %v12238_v49  ;;  %9321 = vrot.lane.b32.xlu1 %v9320_v8, %s9710_s0  ;;  %9311 = vrot.lane.b32.xlu0 %v9310_v35, %s9710_s0 }
0x137e   :  { %v5684_v43 = vpop.f32.mrf.mxu1 }
0x137f   :  { %v12278_v0 = vadd.f32 %v5693_v58, %v12080_v51  ;;  %v5685_v27 = vadd.f32 %v12238_v49, %v5684_v43 }
0x1380   :  { %v8368_v17 = vpop.f32.mrf.mxu1 }
0x1381   :  { %5753 = vst.msk [vmem:[#allocation2 + $0x40] sm:$0xff] %vm45_vm0, %v12278_v0  ;;  %v12284_v59 = vadd.f32 %v5685_v27, %v12087_v14  ;;  %v5696_v32 = vadd.f32 %v8368_v17, %v12238_v49  ;;  %9326 = vrot.lane.b32.xlu1 %v9325_v45, %s9712_s28  ;;  %9316 = vrot.lane.b32.xlu0 %v9315_v20, %s9712_s28 }
0x1382   :  { %v5687_v7 = vpop.f32.mrf.mxu1 }
0x1383   :  { %5751 = vst.msk [vmem:[#allocation2 + $0x30] sm:$0xff] %vm45_vm0, %v12284_v59  ;;  %v12292_v51 = vadd.f32 %v5696_v32, %v12093_v48  ;;  %v5688_v44 = vadd.f32 %v12238_v49, %v5687_v7  ;;  %v5763_v7 = vld [vmem:[#allocation2 + $0xc] sm:$0xff] }
0x1385   :  { %5754 = vst.msk [vmem:[#allocation2 + $0x48] sm:$0xff] %vm45_vm0, %v12292_v51  ;;  %v12298_v14 = vadd.f32 %v5688_v44, %v12098_v15 }
0x1387   :  { %5752 = vst.msk [vmem:[#allocation2 + $0x38] sm:$0xff] %vm45_vm0, %v12298_v14  ;;  %v9335_v16 = vpack.i.bf16 %v12298_v14, %v12284_v59 }
0x138a   :  { %v5783_v39 = vld [vmem:[#allocation2 + $0x2e] sm:$0xff] }
0x138c   :  { %v8371_v40 = vpop.f32.mrf.mxu1  ;;  %v5786_v56 = vld [vmem:[#allocation2 + $0x46] sm:$0xff] }
0x138d   :  { %v5709_v9 = vadd.f32 %v8371_v40, %v12238_v49 }
0x138e   :  { %v5700_v53 = vpop.f32.mrf.mxu1  ;;  %v5785_v28 = vld [vmem:[#allocation2 + $0x3e] sm:$0xff]  ;;  %v5784_v48 = vld [vmem:[#allocation2 + $0x36] sm:$0xff] }
0x138f   :  { %v12304_v41 = vadd.f32 %v5709_v9, %v12103_v38  ;;  %v5701_v26 = vadd.f32 %v12238_v49, %v5700_v53  ;;  %v9340_v46 = vpack.i.bf16 %v5786_v56, %v5785_v28  ;;  %v9330_v63 = vpack.i.bf16 %v5784_v48, %v5783_v39  ;;  %v5766_v9 = vld [vmem:[#allocation2 + $0x24] sm:$0xff]  ;;  %v5765_v39 = vld [vmem:[#allocation2 + $0x1c] sm:$0xff]  ;;  %v5764_v53 = vld [vmem:[#allocation2 + $0x14] sm:$0xff] }
0x1390   :  { %v8372_v15 = vpop.f32.mrf.mxu1  ;;  %v9345_v38 = vpack.i.bf16 %v12292_v51, %v12278_v0 }
0x1391   :  { %5757 = vst.msk [vmem:[#allocation2 + $0x70] sm:$0xff] %vm45_vm0, %v12304_v41  ;;  %v12310_v34 = vadd.f32 %v5701_v26, %v12108_v47  ;;  %v5712_v4 = vadd.f32 %v8372_v15, %v12238_v49  ;;  %9341 = vrot.lane.b32.xlu1 %v9340_v46, %s9710_s0  ;;  %9331 = vrot.lane.b32.xlu0 %v9330_v63, %s9710_s0 }
0x1392   :  { %v5703_v50 = vpop.f32.mrf.mxu1 }
0x1393   :  { %5755 = vst.msk [vmem:[#allocation2 + $0x60] sm:$0xff] %vm45_vm0, %v12310_v34  ;;  %v12322_v13 = vadd.f32 %v5712_v4, %v12119_v2  ;;  %v5704_v47 = vadd.f32 %v12238_v49, %v5703_v50 }
0x1395   :  { %5758 = vst.msk [vmem:[#allocation2 + $0x78] sm:$0xff] %vm45_vm0, %v12322_v13  ;;  %v12328_v1 = vadd.f32 %v5704_v47, %v12124_v31  ;;  %9346 = vrot.lane.b32.xlu1 %v9345_v38, %s9712_s28  ;;  %9336 = vrot.lane.b32.xlu0 %v9335_v16, %s9712_s28 }
0x1397   :  { %5756 = vst.msk [vmem:[#allocation2 + $0x68] sm:$0xff] %vm45_vm0, %v12328_v1  ;;  %v9355_v21 = vpack.i.bf16 %v12328_v1, %v12310_v34 }
0x139a   :  { %v5787_v2 = vld [vmem:[#allocation2 + $0x5e] sm:$0xff] }
0x139c   :  { %v8375_v55 = vpop.f32.mrf.mxu1  ;;  %v5790_v42 = vld [vmem:[#allocation2 + $0x76] sm:$0xff] }
0x139d   :  { %v5725_v36 = vadd.f32 %v8375_v55, %v12238_v49 }
0x139e   :  { %v5716_v57 = vpop.f32.mrf.mxu1  ;;  %v5789_v52 = vld [vmem:[#allocation2 + $0x6e] sm:$0xff]  ;;  %v5788_v62 = vld [vmem:[#allocation2 + $0x66] sm:$0xff] }
0x139f   :  { %v12336_v10 = vadd.f32 %v5725_v36, %v12131_v29  ;;  %v5717_v31 = vadd.f32 %v12238_v49, %v5716_v57  ;;  %v9360_v23 = vpack.i.bf16 %v5790_v42, %v5789_v52  ;;  %v9350_v22 = vpack.i.bf16 %v5788_v62, %v5787_v2 }
0x13a0   :  { %v8376_v37 = vpop.f32.mrf.mxu1  ;;  %v9365_v29 = vpack.i.bf16 %v12322_v13, %v12304_v41 }
0x13a1   :  { %5761 = vst.msk [vmem:[#allocation2 + $0x90] sm:$0xff] %vm45_vm0, %v12336_v10  ;;  %v12342_v30 = vadd.f32 %v5717_v31, %v12136_v18  ;;  %v5728_v11 = vadd.f32 %v8376_v37, %v12238_v49  ;;  %9361 = vrot.lane.b32.xlu1 %v9360_v23, %s9710_s0  ;;  %9351 = vrot.lane.b32.xlu0 %v9350_v22, %s9710_s0  ;;  %v5767_v23 = vld [vmem:[#allocation2 + $0x2c] sm:$0xff] }
0x13a2   :  { %v5719_v60 = vpop.f32.mrf.mxu1 }
0x13a3   :  { %5759 = vst.msk [vmem:[#allocation2 + $0x80] sm:$0xff] %vm45_vm0, %v12342_v30  ;;  %v12354_v33 = vadd.f32 %v5728_v11, %v12147_v19  ;;  %v5720_v18 = vadd.f32 %v12238_v49, %v5719_v60  ;;  %v5769_v11 = vld [vmem:[#allocation2 + $0x3c] sm:$0xff]  ;;  %v5770_v60 = vld [vmem:[#allocation2 + $0x44] sm:$0xff] }
0x13a5   :  { %5762 = vst.msk [vmem:[#allocation2 + $0x98] sm:$0xff] %vm45_vm0, %v12354_v33  ;;  %v12360_v24 = vadd.f32 %v5720_v18, %v12152_v12  ;;  %9366 = vrot.lane.b32.xlu1 %v9365_v29, %s9712_s28  ;;  %9356 = vrot.lane.b32.xlu0 %v9355_v21, %s9712_s28  ;;  %v9385_v12 = vpack.i.bf16 %v12354_v33, %v12336_v10  ;;  %v5768_v29 = vld [vmem:[#allocation2 + $0x34] sm:$0xff] }
0x13a7   :  { %5760 = vst.msk [vmem:[#allocation2 + $0x88] sm:$0xff] %vm45_vm0, %v12360_v24  ;;  %v9375_v49 = vpack.i.bf16 %v12360_v24, %v12342_v30 }
0x13aa   :  { %v5791_v54 = vld [vmem:[#allocation2 + $0x7e] sm:$0xff] }
0x13ac   :  { %v5794_v35 = vld [vmem:[#allocation2 + $0x96] sm:$0xff] }
0x13ae   :  { %v5793_v8 = vld [vmem:[#allocation2 + $0x8e] sm:$0xff]  ;;  %v5792_v19 = vld [vmem:[#allocation2 + $0x86] sm:$0xff] }
0x13af   :  { %v9380_v25 = vpack.i.bf16 %v5794_v35, %v5793_v8  ;;  %v9370_v58 = vpack.i.bf16 %v5792_v19, %v5791_v54 }
0x13b1   :  { %9381 = vrot.lane.b32.xlu1 %v9380_v25, %s9710_s0  ;;  %9371 = vrot.lane.b32.xlu0 %v9370_v58, %s9710_s0 }
0x13b5   :  { %9386 = vrot.lane.b32.xlu1 %v9385_v12, %s9712_s28  ;;  %9376 = vrot.lane.b32.xlu0 %v9375_v49, %s9712_s28 }
0x13ef   :  { %v9322_v43 = vpop.permute.xlu1 %9321  ;;  %v9312_v45 = vpop.permute.xlu0 %9311 }
0x13f0   :  { %v9324_v20 = vunpack.i.h.bf16 %v9322_v43  ;;  %v9323_v27 = vunpack.i.l.bf16 %v9322_v43  ;;  %v9314_v17 = vunpack.i.h.bf16 %v9312_v45  ;;  %v9313_v32 = vunpack.i.l.bf16 %v9312_v45 }
0x13f2   :  { %v5926_v46 = vsel %vm45_vm0, %v5766_v9, %v9324_v20  ;;  %v5925_v63 = vsel %vm45_vm0, %v5765_v39, %v9323_v27  ;;  %v5923_v15 = vsel %vm45_vm0, %v5763_v7, %v9313_v32  ;;  %v5924_v4 = vsel %vm45_vm0, %v5764_v53, %v9314_v17  ;;  %v5771_v39 = vld [vmem:[#allocation2 + $0x5c] sm:$0xff] }
0x13f3   :  { %v9327_v44 = vpop.permute.xlu1 %9326  ;;  %v9317_v40 = vpop.permute.xlu0 %9316 }
0x13f4   :  { %v9329_v28 = vunpack.i.h.bf16 %v9327_v44  ;;  %v9328_v56 = vunpack.i.l.bf16 %v9327_v44  ;;  %v9319_v48 = vunpack.i.h.bf16 %v9317_v40  ;;  %v9318_v26 = vunpack.i.l.bf16 %v9317_v40 }
0x13f6   :  { %v5941_v50 = vsel %vm341_vm1, %v5925_v63, %v9328_v56  ;;  %v5942_v38 = vsel %vm341_vm1, %v5926_v46, %v9329_v28  ;;  %v5939_v16 = vsel %vm341_vm1, %v5923_v15, %v9318_v26  ;;  %v5940_v47 = vsel %vm341_vm1, %v5924_v4, %v9319_v48  ;;  %v5773_v56 = vld [vmem:[#allocation2 + $0x6c] sm:$0xff]  ;;  %v5774_v48 = vld [vmem:[#allocation2 + $0x74] sm:$0xff]  ;;  %v5772_v26 = vld [vmem:[#allocation2 + $0x64] sm:$0xff] }
0x13f7   :  { %v5956_v55 = vpack.c.bf16 %v5942_v38, %v5941_v50  ;;  %v5955_v36 = vpack.c.bf16 %v5940_v47, %v5939_v16 }
0x13f9   :  { %8389 = vmatprep.mubr.msk.bf16.mxu0 %vm358_vm2, %v5955_v36 }
0x13fa   :  { %8390 = vmatmul.mubr.msk.bf16.vlgmr.msra.gmra.mxu0 %vm358_vm2, %v5956_v55 }
0x1403   :  { %v9342_v2 = vpop.permute.xlu1 %9341  ;;  %v9332_v57 = vpop.permute.xlu0 %9331 }
0x1404   :  { %v9344_v52 = vunpack.i.h.bf16 %v9342_v2  ;;  %v9343_v42 = vunpack.i.l.bf16 %v9342_v2  ;;  %v9334_v62 = vunpack.i.h.bf16 %v9332_v57  ;;  %v9333_v31 = vunpack.i.l.bf16 %v9332_v57 }
0x1406   :  { %v5930_v35 = vsel %vm45_vm0, %v5770_v60, %v9344_v52  ;;  %v5929_v19 = vsel %vm45_vm0, %v5769_v11, %v9343_v42  ;;  %v5928_v25 = vsel %vm45_vm0, %v5768_v29, %v9334_v62  ;;  %v5927_v58 = vsel %vm45_vm0, %v5767_v23, %v9333_v31  ;;  %v5775_v60 = vld [vmem:[#allocation2 + $0x7c] sm:$0xff] }
0x1407   :  { %v9347_v22 = vpop.permute.xlu1 %9346  ;;  %v9337_v37 = vpop.permute.xlu0 %9336 }
0x1408   :  { %v9349_v21 = vunpack.i.h.bf16 %v9347_v22  ;;  %v9348_v18 = vunpack.i.l.bf16 %v9347_v22  ;;  %v9339_v54 = vunpack.i.h.bf16 %v9337_v37  ;;  %v9338_v8 = vunpack.i.l.bf16 %v9337_v37 }
0x140a   :  { %v5945_v12 = vsel %vm341_vm1, %v5929_v19, %v9348_v18  ;;  %v5946_v49 = vsel %vm341_vm1, %v5930_v35, %v9349_v21  ;;  %v5943_v43 = vsel %vm341_vm1, %v5927_v58, %v9338_v8  ;;  %v5944_v45 = vsel %vm341_vm1, %v5928_v25, %v9339_v54  ;;  %v5777_v18 = vld [vmem:[#allocation2 + $0x8c] sm:$0xff]  ;;  %v5778_v54 = vld [vmem:[#allocation2 + $0x94] sm:$0xff]  ;;  %v5776_v8 = vld [vmem:[#allocation2 + $0x84] sm:$0xff] }
0x140b   :  { %v5958_v20 = vpack.c.bf16 %v5946_v49, %v5945_v12  ;;  %v5957_v27 = vpack.c.bf16 %v5944_v45, %v5943_v43 }
0x140d   :  { %8393 = vmatprep.mubr.msk.bf16.mxu0 %vm358_vm2, %v5957_v27 }
0x140e   :  { %8394 = vmatmul.mubr.msk.bf16.gmra.mxu0 %vm358_vm2, %v5958_v20 }
0x1413   :  { %v9362_v17 = vpop.permute.xlu1 %9361  ;;  %v9352_v32 = vpop.permute.xlu0 %9351 }
0x1414   :  { %v9364_v7 = vunpack.i.h.bf16 %v9362_v17  ;;  %v9363_v44 = vunpack.i.l.bf16 %v9362_v17  ;;  %v9354_v40 = vunpack.i.h.bf16 %v9352_v32  ;;  %v9353_v9 = vunpack.i.l.bf16 %v9352_v32 }
0x1416   :  { %v5934_v50 = vsel %vm45_vm0, %v5774_v48, %v9364_v7  ;;  %v5933_v38 = vsel %vm45_vm0, %v5773_v56, %v9363_v44  ;;  %v5932_v16 = vsel %vm45_vm0, %v5772_v26, %v9354_v40  ;;  %v5931_v47 = vsel %vm45_vm0, %v5771_v39, %v9353_v9  ;;  %v9568_v40 = vld [vmem:[%s12708_s9 + $0x48] sm:$0xff]   ;;  %v9569_v9 = vld [vmem:[%s12708_s9 + $0x40] sm:$0xff]  }
0x1417   :  { %v9367_v53 = vpop.permute.xlu1 %9366  ;;  %v9357_v28 = vpop.permute.xlu0 %9356  ;;  %8405 = vmatprep.subr.bf16.mxu1 %v9568_v40 }
0x1418   :  { %v9369_v46 = vunpack.i.h.bf16 %v9367_v53  ;;  %v9368_v63 = vunpack.i.l.bf16 %v9367_v53  ;;  %v9359_v15 = vunpack.i.h.bf16 %v9357_v28  ;;  %v9358_v4 = vunpack.i.l.bf16 %v9357_v28  ;;  %8406 = vmatpush3.bf16.msra.mxu1 %v9568_v40  ;;  %v7561_v28 = vld [vmem:[%s12709_s8 + $0x4] ss:$0 sm:$0xff] }
0x1419   :  { %8407 = vmatprep.subr.bf16.mxu1 %v9569_v9 }
0x141a   :  { %v5949_v55 = vsel %vm341_vm1, %v5933_v38, %v9368_v63  ;;  %v5950_v36 = vsel %vm341_vm1, %v5934_v50, %v9369_v46  ;;  %v5947_v2 = vsel %vm341_vm1, %v5931_v47, %v9358_v4  ;;  %v5948_v57 = vsel %vm341_vm1, %v5932_v16, %v9359_v15 }
0x141b   :  { %v5960_v52 = vpack.c.bf16 %v5950_v36, %v5949_v55  ;;  %v5959_v42 = vpack.c.bf16 %v5948_v57, %v5947_v2 }
0x141c   :  { %8408 = vmatpush3.bf16.msra.mxu1 %v9569_v9 }
0x141d   :  { %8397 = vmatprep.mubr.msk.bf16.mxu0 %vm358_vm2, %v5959_v42 }
0x141e   :  { %8398 = vmatmul.mubr.msk.bf16.gmra.mxu0 %vm358_vm2, %v5960_v52 }
0x1423   :  { %v9382_v62 = vpop.permute.xlu1 %9381  ;;  %v9372_v31 = vpop.permute.xlu0 %9371 }
0x1424   :  { %v9384_v23 = vunpack.i.h.bf16 %v9382_v62  ;;  %v9383_v22 = vunpack.i.l.bf16 %v9382_v62  ;;  %v9374_v37 = vunpack.i.h.bf16 %v9372_v31  ;;  %v9373_v11 = vunpack.i.l.bf16 %v9372_v31 }
0x1426   :  { %v5938_v12 = vsel %vm45_vm0, %v5778_v54, %v9384_v23  ;;  %v5937_v49 = vsel %vm45_vm0, %v5777_v18, %v9383_v22  ;;  %v5936_v43 = vsel %vm45_vm0, %v5776_v8, %v9374_v37  ;;  %v5935_v45 = vsel %vm45_vm0, %v5775_v60, %v9373_v11 }
0x1427   :  { %v9387_v29 = vpop.permute.xlu1 %9386  ;;  %v9377_v21 = vpop.permute.xlu0 %9376 }
0x1428   :  { %v9389_v35 = vunpack.i.h.bf16 %v9387_v29  ;;  %v9388_v19 = vunpack.i.l.bf16 %v9387_v29  ;;  %v9379_v25 = vunpack.i.h.bf16 %v9377_v21  ;;  %v9378_v58 = vunpack.i.l.bf16 %v9377_v21 }
0x142a   :  { %v5953_v20 = vsel %vm341_vm1, %v5937_v49, %v9388_v19  ;;  %v5954_v27 = vsel %vm341_vm1, %v5938_v12, %v9389_v35  ;;  %v5951_v17 = vsel %vm341_vm1, %v5935_v45, %v9378_v58  ;;  %v5952_v32 = vsel %vm341_vm1, %v5936_v43, %v9379_v25 }
0x142b   :  { %v5962_v7 = vpack.c.bf16 %v5954_v27, %v5953_v20  ;;  %v5961_v44 = vpack.c.bf16 %v5952_v32, %v5951_v17 }
0x142d   :  { %8401 = vmatprep.mubr.msk.bf16.mxu0 %vm358_vm2, %v5961_v44 }
0x142e   :  { %8402 = vmatmul.mubr.msk.bf16.gmra.mxu0 %vm358_vm2, %v5962_v7 }
0x14ba   :  { %v8391_v39 = vpop.f32.mrf.mxu0 }
0x14bb   :  { %v6087_v46 = vadd.f32 %v8391_v39, %v7561_v28 }
0x14bc   :  { %v6078_v53 = vpop.f32.mrf.mxu0 }
0x14bd   :  { %v6079_v48 = vadd.f32 %v7561_v28, %v6078_v53  ;;  %v6143_v16 = vmax.f32 %v6087_v46, 0.0 }
0x14be   :  { %v8392_v56 = vpop.f32.mrf.mxu0 }
0x14bf   :  { %v6090_v26 = vadd.f32 %v8392_v56, %v7561_v28  ;;  %v6141_v50 = vmax.f32 %v6079_v48, 0.0 }
0x14c0   :  { %v6081_v63 = vpop.f32.mrf.mxu0 }
0x14c1   :  { %v6082_v15 = vadd.f32 %v7561_v28, %v6081_v63  ;;  %v6144_v4 = vmax.f32 %v6090_v26, 0.0 }
0x14c3   :  { %v6142_v38 = vmax.f32 %v6082_v15, 0.0  ;;  %v6158_v55 = vpack.c.bf16 %v6144_v4, %v6143_v16  ;;  %v9573_v16 = vld [vmem:[%s12706_s7 + $0x100] sm:$0xff]  }
0x14c5   :  { %v6157_v47 = vpack.c.bf16 %v6142_v38, %v6141_v50  ;;  %v9570_v50 = vld [vmem:[%s12706_s7 + $0x118] sm:$0xff]   ;;  %v9571_v38 = vld [vmem:[%s12706_s7 + $0x110] sm:$0xff]  }
0x14c6   :  { %8425 = vmatprep.subr.bf16.mxu0 %v9570_v50 }
0x14c7   :  { %8409 = vmatprep.mubr.msk.bf16.mxu1 %vm45_vm0, %v6157_v47  ;;  %8426 = vmatpush3.bf16.msra.mxu0 %v9570_v50  ;;  %v12446_v47 = vld [vmem:[%s12710_s10 + $0x4] ss:$0 sm:$0xff] }
0x14c8   :  { %8410 = vmatmul.mubr.msk.bf16.vlgmr.msra.gmra.mxu1 %vm45_vm0, %v6158_v55  ;;  %8427 = vmatprep.subr.bf16.mxu0 %v9571_v38 }
0x14cb   :  { %8428 = vmatpush3.bf16.msra.mxu0 %v9571_v38 }
0x14ce   :  { %v8395_v36 = vpop.f32.mrf.mxu0 }
0x14cf   :  { %v6103_v62 = vadd.f32 %v8395_v36, %v7561_v28 }
0x14d0   :  { %v6094_v2 = vpop.f32.mrf.mxu0 }
0x14d1   :  { %v6095_v52 = vadd.f32 %v7561_v28, %v6094_v2  ;;  %v6147_v60 = vmax.f32 %v6103_v62, 0.0 }
0x14d2   :  { %v8396_v57 = vpop.f32.mrf.mxu0 }
0x14d3   :  { %v6106_v42 = vadd.f32 %v8396_v57, %v7561_v28  ;;  %v6145_v37 = vmax.f32 %v6095_v52, 0.0 }
0x14d4   :  { %v6097_v31 = vpop.f32.mrf.mxu0 }
0x14d5   :  { %v6098_v23 = vadd.f32 %v7561_v28, %v6097_v31  ;;  %v6148_v22 = vmax.f32 %v6106_v42, 0.0 }
0x14d7   :  { %v6146_v11 = vmax.f32 %v6098_v23, 0.0  ;;  %v6160_v21 = vpack.c.bf16 %v6148_v22, %v6147_v60 }
0x14d9   :  { %v6159_v29 = vpack.c.bf16 %v6146_v11, %v6145_v37 }
0x14db   :  { %8413 = vmatprep.mubr.msk.bf16.mxu1 %vm45_vm0, %v6159_v29 }
0x14dc   :  { %8414 = vmatmul.mubr.msk.bf16.gmra.mxu1 %vm45_vm0, %v6160_v21 }
0x14de   :  { %v8399_v18 = vpop.f32.mrf.mxu0 }
0x14df   :  { %v6119_v25 = vadd.f32 %v8399_v18, %v7561_v28 }
0x14e0   :  { %v6110_v54 = vpop.f32.mrf.mxu0 }
0x14e1   :  { %v6111_v35 = vadd.f32 %v7561_v28, %v6110_v54  ;;  %v6151_v20 = vmax.f32 %v6119_v25, 0.0 }
0x14e2   :  { %v8400_v8 = vpop.f32.mrf.mxu0 }
0x14e3   :  { %v6122_v19 = vadd.f32 %v8400_v8, %v7561_v28  ;;  %v6149_v43 = vmax.f32 %v6111_v35, 0.0 }
0x14e4   :  { %v6113_v58 = vpop.f32.mrf.mxu0 }
0x14e5   :  { %v6114_v12 = vadd.f32 %v7561_v28, %v6113_v58  ;;  %v6152_v49 = vmax.f32 %v6122_v19, 0.0 }
0x14e7   :  { %v6150_v45 = vmax.f32 %v6114_v12, 0.0  ;;  %v6162_v17 = vpack.c.bf16 %v6152_v49, %v6151_v20 }
0x14e9   :  { %v6161_v27 = vpack.c.bf16 %v6150_v45, %v6149_v43 }
0x14eb   :  { %8417 = vmatprep.mubr.msk.bf16.mxu1 %vm45_vm0, %v6161_v27 }
0x14ec   :  { %8418 = vmatmul.mubr.msk.bf16.gmra.mxu1 %vm45_vm0, %v6162_v17 }
0x14ee   :  { %v8403_v32 = vpop.f32.mrf.mxu0 }
0x14ef   :  { %v6135_v39 = vadd.f32 %v8403_v32, %v7561_v28 }
0x14f0   :  { %v6126_v7 = vpop.f32.mrf.mxu0 }
0x14f1   :  { %v6127_v40 = vadd.f32 %v7561_v28, %v6126_v7  ;;  %v6155_v63 = vmax.f32 %v6135_v39, 0.0 }
0x14f2   :  { %v8404_v44 = vpop.f32.mrf.mxu0 }
0x14f3   :  { %v6138_v9 = vadd.f32 %v8404_v44, %v7561_v28  ;;  %v6153_v26 = vmax.f32 %v6127_v40, 0.0 }
0x14f4   :  { %v6129_v53 = vpop.f32.mrf.mxu0 }
0x14f5   :  { %v6130_v56 = vadd.f32 %v7561_v28, %v6129_v53  ;;  %v6156_v48 = vmax.f32 %v6138_v9, 0.0  ;;  %v9572_v28 = vld [vmem:[%s12706_s7 + $0x108] sm:$0xff]  }
0x14f6   :  { %8429 = vmatprep.subr.bf16.mxu0 %v9572_v28 }
0x14f7   :  { %v6154_v46 = vmax.f32 %v6130_v56, 0.0  ;;  %v6164_v4 = vpack.c.bf16 %v6156_v48, %v6155_v63  ;;  %8430 = vmatpush3.bf16.msra.mxu0 %v9572_v28 }
0x14f8   :  { %8431 = vmatprep.subr.bf16.mxu0 %v9573_v16 }
0x14f9   :  { %v6163_v15 = vpack.c.bf16 %v6154_v46, %v6153_v26 }
0x14fb   :  { %8421 = vmatprep.mubr.msk.bf16.mxu1 %vm45_vm0, %v6163_v15  ;;  %8432 = vmatpush3.bf16.msra.mxu0 %v9573_v16 }
0x14fc   :  { %8422 = vmatmul.mubr.msk.bf16.gmra.mxu1 %vm45_vm0, %v6164_v4 }
0x1588   :  { %v8411_v55 = vpop.f32.mrf.mxu1 }
0x1589   :  { %v6257_v36 = vadd.f32 %v8411_v55, %v12446_v47 }
0x158a   :  { %v6248_v2 = vpop.f32.mrf.mxu1 }
0x158b   :  { %v12450_v57 = vadd.f32 %v6257_v36, %v12242_v6  ;;  %v6249_v52 = vadd.f32 %v12446_v47, %v6248_v2 }
0x158c   :  { %v8412_v42 = vpop.f32.mrf.mxu1 }
0x158d   :  { %6329 = vst.msk [vmem:[#allocation2 + $0x20] sm:$0xff] %vm45_vm0, %v12450_v57  ;;  %v12456_v62 = vadd.f32 %v6249_v52, %v12248_v3  ;;  %v6260_v31 = vadd.f32 %v8412_v42, %v12446_v47  ;;  %v9574_v3 = vld [vmem:[%s12706_s7 + $0xf8] sm:$0xff]  }
0x158e   :  { %v6251_v23 = vpop.f32.mrf.mxu1  ;;  %8433 = vmatprep.subr.bf16.mxu0 %v9574_v3 }
0x158f   :  { %6327 = vst.msk [vmem:[#allocation2 + $0x10] sm:$0xff] %vm45_vm0, %v12456_v62  ;;  %v12462_v22 = vadd.f32 %v6260_v31, %v12254_v5  ;;  %v6252_v6 = vadd.f32 %v12446_v47, %v6251_v23  ;;  %8434 = vmatpush3.bf16.msra.mxu0 %v9574_v3  ;;  %v9575_v5 = vld [vmem:[%s12706_s7 + $0xf0] sm:$0xff]  }
0x1590   :  { %8435 = vmatprep.subr.bf16.mxu0 %v9575_v5 }
0x1591   :  { %6330 = vst.msk [vmem:[#allocation2 + $0x28] sm:$0xff] %vm45_vm0, %v12462_v22  ;;  %v12468_v37 = vadd.f32 %v6252_v6, %v12260_v61  ;;  %v9405_v19 = vpack.i.bf16 %v12462_v22, %v12450_v57 }
0x1593   :  { %6328 = vst.msk [vmem:[#allocation2 + $0x18] sm:$0xff] %vm45_vm0, %v12468_v37  ;;  %8436 = vmatpush3.bf16.msra.mxu0 %v9575_v5  ;;  %v9395_v25 = vpack.i.bf16 %v12468_v37, %v12456_v62 }
0x1596   :  { %v6359_v11 = vld [vmem:[#allocation2 + $0xc] sm:$0xff] }
0x1598   :  { %v6362_v29 = vld [vmem:[#allocation2 + $0x24] sm:$0xff] }
0x159a   :  { %v6361_v60 = vld [vmem:[#allocation2 + $0x1c] sm:$0xff]  ;;  %v6360_v21 = vld [vmem:[#allocation2 + $0x14] sm:$0xff] }
0x159b   :  { %v9400_v61 = vpack.i.bf16 %v6362_v29, %v6361_v60  ;;  %v9390_v18 = vpack.i.bf16 %v6360_v21, %v6359_v11 }
0x159c   :  { %v8415_v54 = vpop.f32.mrf.mxu1 }
0x159d   :  { %v6273_v8 = vadd.f32 %v8415_v54, %v12446_v47  ;;  %9401 = vrot.lane.b32.xlu1 %v9400_v61, %s9710_s0  ;;  %9391 = vrot.lane.b32.xlu0 %v9390_v18, %s9710_s0 }
0x159e   :  { %v6264_v35 = vpop.f32.mrf.mxu1 }
0x159f   :  { %v12486_v58 = vadd.f32 %v6273_v8, %v12278_v0  ;;  %v6265_v12 = vadd.f32 %v12446_v47, %v6264_v35 }
0x15a0   :  { %v8416_v49 = vpop.f32.mrf.mxu1 }
0x15a1   :  { %6333 = vst.msk [vmem:[#allocation2 + $0x40] sm:$0xff] %vm45_vm0, %v12486_v58  ;;  %v12492_v43 = vadd.f32 %v6265_v12, %v12284_v59  ;;  %v6276_v45 = vadd.f32 %v8416_v49, %v12446_v47  ;;  %9406 = vrot.lane.b32.xlu1 %v9405_v19, %s9712_s28  ;;  %9396 = vrot.lane.b32.xlu0 %v9395_v25, %s9712_s28 }
0x15a2   :  { %v6267_v20 = vpop.f32.mrf.mxu1 }
0x15a3   :  { %6331 = vst.msk [vmem:[#allocation2 + $0x30] sm:$0xff] %vm45_vm0, %v12492_v43  ;;  %v12500_v0 = vadd.f32 %v6276_v45, %v12292_v51  ;;  %v6268_v27 = vadd.f32 %v12446_v47, %v6267_v20  ;;  %v6343_v20 = vld [vmem:[#allocation2 + $0x8] sm:$0xff] }
0x15a5   :  { %6334 = vst.msk [vmem:[#allocation2 + $0x48] sm:$0xff] %vm45_vm0, %v12500_v0  ;;  %v12506_v59 = vadd.f32 %v6268_v27, %v12298_v14 }
0x15a7   :  { %6332 = vst.msk [vmem:[#allocation2 + $0x38] sm:$0xff] %vm45_vm0, %v12506_v59  ;;  %v9415_v15 = vpack.i.bf16 %v12506_v59, %v12492_v43 }
0x15aa   :  { %v6363_v7 = vld [vmem:[#allocation2 + $0x2c] sm:$0xff] }
0x15ac   :  { %v8419_v17 = vpop.f32.mrf.mxu1  ;;  %v6366_v9 = vld [vmem:[#allocation2 + $0x44] sm:$0xff] }
0x15ad   :  { %v6289_v32 = vadd.f32 %v8419_v17, %v12446_v47 }
0x15ae   :  { %v6280_v44 = vpop.f32.mrf.mxu1  ;;  %v6365_v40 = vld [vmem:[#allocation2 + $0x3c] sm:$0xff]  ;;  %v6364_v51 = vld [vmem:[#allocation2 + $0x34] sm:$0xff] }
0x15af   :  { %v12512_v39 = vadd.f32 %v6289_v32, %v12304_v41  ;;  %v6281_v53 = vadd.f32 %v12446_v47, %v6280_v44  ;;  %v9420_v56 = vpack.i.bf16 %v6366_v9, %v6365_v40  ;;  %v9410_v48 = vpack.i.bf16 %v6364_v51, %v6363_v7  ;;  %v6346_v32 = vld [vmem:[#allocation2 + $0x20] sm:$0xff]  ;;  %v6345_v7 = vld [vmem:[#allocation2 + $0x18] sm:$0xff]  ;;  %v6344_v44 = vld [vmem:[#allocation2 + $0x10] sm:$0xff] }
0x15b0   :  { %v8420_v14 = vpop.f32.mrf.mxu1  ;;  %v9425_v41 = vpack.i.bf16 %v12500_v0, %v12486_v58 }
0x15b1   :  { %6337 = vst.msk [vmem:[#allocation2 + $0x70] sm:$0xff] %vm45_vm0, %v12512_v39  ;;  %v12518_v26 = vadd.f32 %v6281_v53, %v12310_v34  ;;  %v6292_v46 = vadd.f32 %v8420_v14, %v12446_v47  ;;  %9421 = vrot.lane.b32.xlu1 %v9420_v56, %s9710_s0  ;;  %9411 = vrot.lane.b32.xlu0 %v9410_v48, %s9710_s0 }
0x15b2   :  { %v6283_v63 = vpop.f32.mrf.mxu1 }
0x15b3   :  { %6335 = vst.msk [vmem:[#allocation2 + $0x60] sm:$0xff] %vm45_vm0, %v12518_v26  ;;  %v12530_v4 = vadd.f32 %v6292_v46, %v12322_v13  ;;  %v6284_v34 = vadd.f32 %v12446_v47, %v6283_v63 }
0x15b5   :  { %6338 = vst.msk [vmem:[#allocation2 + $0x78] sm:$0xff] %vm45_vm0, %v12530_v4  ;;  %v12536_v50 = vadd.f32 %v6284_v34, %v12328_v1  ;;  %9426 = vrot.lane.b32.xlu1 %v9425_v41, %s9712_s28  ;;  %9416 = vrot.lane.b32.xlu0 %v9415_v15, %s9712_s28 }
0x15b7   :  { %6336 = vst.msk [vmem:[#allocation2 + $0x68] sm:$0xff] %vm45_vm0, %v12536_v50  ;;  %v9435_v11 = vpack.i.bf16 %v12536_v50, %v12518_v26 }
0x15ba   :  { %v6367_v13 = vld [vmem:[#allocation2 + $0x5c] sm:$0xff] }
0x15bc   :  { %v8423_v38 = vpop.f32.mrf.mxu1  ;;  %v6370_v36 = vld [vmem:[#allocation2 + $0x74] sm:$0xff] }
0x15bd   :  { %v6305_v28 = vadd.f32 %v8423_v38, %v12446_v47 }
0x15be   :  { %v6296_v16 = vpop.f32.mrf.mxu1  ;;  %v6369_v55 = vld [vmem:[#allocation2 + $0x6c] sm:$0xff]  ;;  %v6368_v2 = vld [vmem:[#allocation2 + $0x64] sm:$0xff] }
0x15bf   :  { %v12544_v52 = vadd.f32 %v6305_v28, %v12336_v10  ;;  %v6297_v1 = vadd.f32 %v12446_v47, %v6296_v16  ;;  %v9440_v42 = vpack.i.bf16 %v6370_v36, %v6369_v55  ;;  %v9430_v31 = vpack.i.bf16 %v6368_v2, %v6367_v13 }
0x15c0   :  { %v8424_v23 = vpop.f32.mrf.mxu1  ;;  %v9445_v10 = vpack.i.bf16 %v12530_v4, %v12512_v39 }
0x15c1   :  { %6341 = vst.msk [vmem:[#allocation2 + $0x90] sm:$0xff] %vm45_vm0, %v12544_v52  ;;  %v12550_v6 = vadd.f32 %v6297_v1, %v12342_v30  ;;  %v6308_v3 = vadd.f32 %v8424_v23, %v12446_v47  ;;  %9441 = vrot.lane.b32.xlu1 %v9440_v42, %s9710_s0  ;;  %9431 = vrot.lane.b32.xlu0 %v9430_v31, %s9710_s0  ;;  %v6347_v42 = vld [vmem:[#allocation2 + $0x28] sm:$0xff] }
0x15c2   :  { %v6299_v5 = vpop.f32.mrf.mxu1 }
0x15c3   :  { %6339 = vst.msk [vmem:[#allocation2 + $0x80] sm:$0xff] %vm45_vm0, %v12550_v6  ;;  %v12562_v60 = vadd.f32 %v6308_v3, %v12354_v33  ;;  %v6300_v30 = vadd.f32 %v12446_v47, %v6299_v5  ;;  %v6349_v3 = vld [vmem:[#allocation2 + $0x38] sm:$0xff]  ;;  %v6350_v5 = vld [vmem:[#allocation2 + $0x40] sm:$0xff] }
0x15c5   :  { %6342 = vst.msk [vmem:[#allocation2 + $0x98] sm:$0xff] %vm45_vm0, %v12562_v60  ;;  %v12568_v29 = vadd.f32 %v6300_v30, %v12360_v24  ;;  %9446 = vrot.lane.b32.xlu1 %v9445_v10, %s9712_s28  ;;  %9436 = vrot.lane.b32.xlu0 %v9435_v11, %s9712_s28  ;;  %v9465_v24 = vpack.i.bf16 %v12562_v60, %v12544_v52  ;;  %v6348_v10 = vld [vmem:[#allocation2 + $0x30] sm:$0xff] }
0x15c7   :  { %6340 = vst.msk [vmem:[#allocation2 + $0x88] sm:$0xff] %vm45_vm0, %v12568_v29  ;;  %v9460_v47 = vpack.i.bf16 %v12568_v29, %v12550_v6 }
0x15ca   :  { %v6371_v21 = vld [vmem:[#allocation2 + $0x7c] sm:$0xff] }
0x15cc   :  { %v6374_v18 = vld [vmem:[#allocation2 + $0x94] sm:$0xff] }
0x15ce   :  { %v6373_v61 = vld [vmem:[#allocation2 + $0x8c] sm:$0xff]  ;;  %v6372_v33 = vld [vmem:[#allocation2 + $0x84] sm:$0xff] }
0x15cf   :  { %v9455_v54 = vpack.i.bf16 %v6374_v18, %v6373_v61  ;;  %v9450_v8 = vpack.i.bf16 %v6372_v33, %v6371_v21 }
0x15d1   :  { %9456 = vrot.lane.b32.xlu1 %v9455_v54, %s9710_s0  ;;  %9451 = vrot.lane.b32.xlu0 %v9450_v8, %s9710_s0 }
0x15d5   :  { %9466 = vrot.lane.b32.xlu1 %v9465_v24, %s9712_s28  ;;  %9461 = vrot.lane.b32.xlu0 %v9460_v47, %s9712_s28 }
0x160f   :  { %v9402_v35 = vpop.permute.xlu1 %9401  ;;  %v9392_v19 = vpop.permute.xlu0 %9391 }
0x1610   :  { %v9404_v25 = vunpack.i.h.bf16 %v9402_v35  ;;  %v9403_v12 = vunpack.i.l.bf16 %v9402_v35  ;;  %v9394_v49 = vunpack.i.h.bf16 %v9392_v19  ;;  %v9393_v45 = vunpack.i.l.bf16 %v9392_v19 }
0x1612   :  { %v6506_v56 = vsel %vm45_vm0, %v6346_v32, %v9404_v25  ;;  %v6505_v48 = vsel %vm45_vm0, %v6345_v7, %v9403_v12  ;;  %v6503_v14 = vsel %vm45_vm0, %v6343_v20, %v9393_v45  ;;  %v6504_v46 = vsel %vm45_vm0, %v6344_v44, %v9394_v49  ;;  %v6351_v7 = vld [vmem:[#allocation2 + $0x58] sm:$0xff] }
0x1613   :  { %v9407_v27 = vpop.permute.xlu1 %9406  ;;  %v9397_v17 = vpop.permute.xlu0 %9396 }
0x1614   :  { %v9409_v40 = vunpack.i.h.bf16 %v9407_v27  ;;  %v9408_v9 = vunpack.i.l.bf16 %v9407_v27  ;;  %v9399_v51 = vunpack.i.h.bf16 %v9397_v17  ;;  %v9398_v53 = vunpack.i.l.bf16 %v9397_v17 }
0x1616   :  { %v6521_v63 = vsel %vm341_vm1, %v6505_v48, %v9408_v9  ;;  %v6522_v41 = vsel %vm341_vm1, %v6506_v56, %v9409_v40  ;;  %v6519_v15 = vsel %vm341_vm1, %v6503_v14, %v9398_v53  ;;  %v6520_v34 = vsel %vm341_vm1, %v6504_v46, %v9399_v51  ;;  %v6353_v9 = vld [vmem:[#allocation2 + $0x68] sm:$0xff]  ;;  %v6354_v51 = vld [vmem:[#allocation2 + $0x70] sm:$0xff]  ;;  %v6352_v53 = vld [vmem:[#allocation2 + $0x60] sm:$0xff] }
0x1617   :  { %v6536_v38 = vpack.c.bf16 %v6522_v41, %v6521_v63  ;;  %v6535_v28 = vpack.c.bf16 %v6520_v34, %v6519_v15 }
0x1619   :  { %8437 = vmatprep.mubr.msk.bf16.mxu0 %vm358_vm2, %v6535_v28 }
0x161a   :  { %8438 = vmatmul.mubr.msk.bf16.vlgmr.msra.gmra.mxu0 %vm358_vm2, %v6536_v38 }
0x1623   :  { %v9422_v13 = vpop.permute.xlu1 %9421  ;;  %v9412_v16 = vpop.permute.xlu0 %9411 }
0x1624   :  { %v9424_v55 = vunpack.i.h.bf16 %v9422_v13  ;;  %v9423_v36 = vunpack.i.l.bf16 %v9422_v13  ;;  %v9414_v2 = vunpack.i.h.bf16 %v9412_v16  ;;  %v9413_v1 = vunpack.i.l.bf16 %v9412_v16 }
0x1626   :  { %v6510_v18 = vsel %vm45_vm0, %v6350_v5, %v9424_v55  ;;  %v6509_v33 = vsel %vm45_vm0, %v6349_v3, %v9423_v36  ;;  %v6508_v54 = vsel %vm45_vm0, %v6348_v10, %v9414_v2  ;;  %v6507_v8 = vsel %vm45_vm0, %v6347_v42, %v9413_v1  ;;  %v6355_v5 = vld [vmem:[#allocation2 + $0x78] sm:$0xff] }
0x1627   :  { %v9427_v31 = vpop.permute.xlu1 %9426  ;;  %v9417_v23 = vpop.permute.xlu0 %9416 }
0x1628   :  { %v9429_v11 = vunpack.i.h.bf16 %v9427_v31  ;;  %v9428_v30 = vunpack.i.l.bf16 %v9427_v31  ;;  %v9419_v21 = vunpack.i.h.bf16 %v9417_v23  ;;  %v9418_v61 = vunpack.i.l.bf16 %v9417_v23 }
0x162a   :  { %v6525_v24 = vsel %vm341_vm1, %v6509_v33, %v9428_v30  ;;  %v6526_v47 = vsel %vm341_vm1, %v6510_v18, %v9429_v11  ;;  %v6523_v35 = vsel %vm341_vm1, %v6507_v8, %v9418_v61  ;;  %v6524_v19 = vsel %vm341_vm1, %v6508_v54, %v9419_v21  ;;  %v6357_v30 = vld [vmem:[#allocation2 + $0x88] sm:$0xff]  ;;  %v6358_v21 = vld [vmem:[#allocation2 + $0x90] sm:$0xff]  ;;  %v6356_v61 = vld [vmem:[#allocation2 + $0x80] sm:$0xff] }
0x162b   :  { %v6538_v25 = vpack.c.bf16 %v6526_v47, %v6525_v24  ;;  %v6537_v12 = vpack.c.bf16 %v6524_v19, %v6523_v35 }
0x162d   :  { %8441 = vmatprep.mubr.msk.bf16.mxu0 %vm358_vm2, %v6537_v12 }
0x162e   :  { %8442 = vmatmul.mubr.msk.bf16.gmra.mxu0 %vm358_vm2, %v6538_v25 }
0x1633   :  { %v9442_v49 = vpop.permute.xlu1 %9441  ;;  %v9432_v45 = vpop.permute.xlu0 %9431 }
0x1634   :  { %v9444_v20 = vunpack.i.h.bf16 %v9442_v49  ;;  %v9443_v27 = vunpack.i.l.bf16 %v9442_v49  ;;  %v9434_v17 = vunpack.i.h.bf16 %v9432_v45  ;;  %v9433_v32 = vunpack.i.l.bf16 %v9432_v45 }
0x1636   :  { %v6514_v63 = vsel %vm45_vm0, %v6354_v51, %v9444_v20  ;;  %v6513_v41 = vsel %vm45_vm0, %v6353_v9, %v9443_v27  ;;  %v6512_v15 = vsel %vm45_vm0, %v6352_v53, %v9434_v17  ;;  %v6511_v34 = vsel %vm45_vm0, %v6351_v7, %v9433_v32  ;;  %v9576_v17 = vld [vmem:[%s12708_s9 + $0x58] sm:$0xff]   ;;  %v9577_v32 = vld [vmem:[%s12708_s9 + $0x50] sm:$0xff]  }
0x1637   :  { %v9447_v44 = vpop.permute.xlu1 %9446  ;;  %v9437_v40 = vpop.permute.xlu0 %9436  ;;  %8453 = vmatprep.subr.bf16.mxu1 %v9576_v17 }
0x1638   :  { %v9449_v56 = vunpack.i.h.bf16 %v9447_v44  ;;  %v9448_v48 = vunpack.i.l.bf16 %v9447_v44  ;;  %v9439_v14 = vunpack.i.h.bf16 %v9437_v40  ;;  %v9438_v46 = vunpack.i.l.bf16 %v9437_v40  ;;  %8454 = vmatpush3.bf16.msra.mxu1 %v9576_v17  ;;  %v7605_v40 = vld [vmem:[%s12709_s8 + $0x5] ss:$0 sm:$0xff] }
0x1639   :  { %8455 = vmatprep.subr.bf16.mxu1 %v9577_v32 }
0x163a   :  { %v6529_v38 = vsel %vm341_vm1, %v6513_v41, %v9448_v48  ;;  %v6530_v28 = vsel %vm341_vm1, %v6514_v63, %v9449_v56  ;;  %v6527_v13 = vsel %vm341_vm1, %v6511_v34, %v9438_v46  ;;  %v6528_v16 = vsel %vm341_vm1, %v6512_v15, %v9439_v14 }
0x163b   :  { %v6540_v55 = vpack.c.bf16 %v6530_v28, %v6529_v38  ;;  %v6539_v36 = vpack.c.bf16 %v6528_v16, %v6527_v13 }
0x163c   :  { %8456 = vmatpush3.bf16.msra.mxu1 %v9577_v32 }
0x163d   :  { %8445 = vmatprep.mubr.msk.bf16.mxu0 %vm358_vm2, %v6539_v36 }
0x163e   :  { %8446 = vmatmul.mubr.msk.bf16.gmra.mxu0 %vm358_vm2, %v6540_v55 }
0x1643   :  { %v9457_v2 = vpop.permute.xlu1 %9456  ;;  %v9452_v1 = vpop.permute.xlu0 %9451 }
0x1644   :  { %v9459_v42 = vunpack.i.h.bf16 %v9457_v2  ;;  %v9458_v31 = vunpack.i.l.bf16 %v9457_v2  ;;  %v9454_v23 = vunpack.i.h.bf16 %v9452_v1  ;;  %v9453_v3 = vunpack.i.l.bf16 %v9452_v1 }
0x1646   :  { %v6518_v24 = vsel %vm45_vm0, %v6358_v21, %v9459_v42  ;;  %v6517_v47 = vsel %vm45_vm0, %v6357_v30, %v9458_v31  ;;  %v6516_v35 = vsel %vm45_vm0, %v6356_v61, %v9454_v23  ;;  %v6515_v19 = vsel %vm45_vm0, %v6355_v5, %v9453_v3 }
0x1647   :  { %v9467_v10 = vpop.permute.xlu1 %9466  ;;  %v9462_v11 = vpop.permute.xlu0 %9461 }
0x1648   :  { %v9469_v18 = vunpack.i.h.bf16 %v9467_v10  ;;  %v9468_v33 = vunpack.i.l.bf16 %v9467_v10  ;;  %v9464_v54 = vunpack.i.h.bf16 %v9462_v11  ;;  %v9463_v8 = vunpack.i.l.bf16 %v9462_v11 }
0x164a   :  { %v6533_v25 = vsel %vm341_vm1, %v6517_v47, %v9468_v33  ;;  %v6534_v12 = vsel %vm341_vm1, %v6518_v24, %v9469_v18  ;;  %v6531_v49 = vsel %vm341_vm1, %v6515_v19, %v9463_v8  ;;  %v6532_v45 = vsel %vm341_vm1, %v6516_v35, %v9464_v54 }
0x164b   :  { %v6542_v20 = vpack.c.bf16 %v6534_v12, %v6533_v25  ;;  %v6541_v27 = vpack.c.bf16 %v6532_v45, %v6531_v49 }
0x164d   :  { %8449 = vmatprep.mubr.msk.bf16.mxu0 %vm358_vm2, %v6541_v27 }
0x164e   :  { %8450 = vmatmul.mubr.msk.bf16.gmra.mxu0 %vm358_vm2, %v6542_v20 }
0x16da   :  { %v8439_v7 = vpop.f32.mrf.mxu0 }
0x16db   :  { %v6667_v56 = vadd.f32 %v8439_v7, %v7605_v40 }
0x16dc   :  { %v6658_v44 = vpop.f32.mrf.mxu0 }
0x16dd   :  { %v6659_v51 = vadd.f32 %v7605_v40, %v6658_v44  ;;  %v6723_v15 = vmax.f32 %v6667_v56, 0.0 }
0x16de   :  { %v8440_v9 = vpop.f32.mrf.mxu0 }
0x16df   :  { %v6670_v53 = vadd.f32 %v8440_v9, %v7605_v40  ;;  %v6721_v63 = vmax.f32 %v6659_v51, 0.0 }
0x16e0   :  { %v6661_v48 = vpop.f32.mrf.mxu0 }
0x16e1   :  { %v6662_v14 = vadd.f32 %v7605_v40, %v6661_v48  ;;  %v6724_v46 = vmax.f32 %v6670_v53, 0.0 }
0x16e3   :  { %v6722_v41 = vmax.f32 %v6662_v14, 0.0  ;;  %v6738_v38 = vpack.c.bf16 %v6724_v46, %v6723_v15 }
0x16e5   :  { %v6737_v34 = vpack.c.bf16 %v6722_v41, %v6721_v63  ;;  %v9578_v63 = vld [vmem:[%s12711_s11 + $0x18] sm:$0xff]  }
0x16e6   :  { %8473 = vmatprep.subr.bf16.mxu0 %v9578_v63 }
0x16e7   :  { %8457 = vmatprep.mubr.msk.bf16.mxu1 %vm45_vm0, %v6737_v34  ;;  %8474 = vmatpush3.bf16.msra.mxu0 %v9578_v63  ;;  %v7625_v34 = vld [vmem:[%s12710_s10 + $0x5] ss:$0 sm:$0xff]  ;;  %v7641_v63 = vld [vmem:[%s12712_s12 + $0x1] ss:$0 sm:$0xff] }
0x16e8   :  { %8458 = vmatmul.mubr.msk.bf16.vlgmr.msra.gmra.mxu1 %vm45_vm0, %v6738_v38 }
0x16ee   :  { %v8443_v28 = vpop.f32.mrf.mxu0 }
0x16ef   :  { %v6683_v2 = vadd.f32 %v8443_v28, %v7605_v40 }
0x16f0   :  { %v6674_v13 = vpop.f32.mrf.mxu0 }
0x16f1   :  { %v6675_v55 = vadd.f32 %v7605_v40, %v6674_v13  ;;  %v6727_v5 = vmax.f32 %v6683_v2, 0.0 }
0x16f2   :  { %v8444_v16 = vpop.f32.mrf.mxu0 }
0x16f3   :  { %v6686_v36 = vadd.f32 %v8444_v16, %v7605_v40  ;;  %v6725_v23 = vmax.f32 %v6675_v55, 0.0 }
0x16f4   :  { %v6677_v1 = vpop.f32.mrf.mxu0 }
0x16f5   :  { %v6678_v42 = vadd.f32 %v7605_v40, %v6677_v1  ;;  %v6728_v31 = vmax.f32 %v6686_v36, 0.0 }
0x16f7   :  { %v6726_v3 = vmax.f32 %v6678_v42, 0.0  ;;  %v6740_v11 = vpack.c.bf16 %v6728_v31, %v6727_v5 }
0x16f9   :  { %v6739_v10 = vpack.c.bf16 %v6726_v3, %v6725_v23 }
0x16fb   :  { %8461 = vmatprep.mubr.msk.bf16.mxu1 %vm45_vm0, %v6739_v10 }
0x16fc   :  { %8462 = vmatmul.mubr.msk.bf16.gmra.mxu1 %vm45_vm0, %v6740_v11 }
0x16fe   :  { %v8447_v30 = vpop.f32.mrf.mxu0 }
0x16ff   :  { %v6699_v54 = vadd.f32 %v8447_v30, %v7605_v40 }
0x1700   :  { %v6690_v21 = vpop.f32.mrf.mxu0 }
0x1701   :  { %v6691_v18 = vadd.f32 %v7605_v40, %v6690_v21  ;;  %v6731_v25 = vmax.f32 %v6699_v54, 0.0 }
0x1702   :  { %v8448_v61 = vpop.f32.mrf.mxu0 }
0x1703   :  { %v6702_v33 = vadd.f32 %v8448_v61, %v7605_v40  ;;  %v6729_v35 = vmax.f32 %v6691_v18, 0.0 }
0x1704   :  { %v6693_v8 = vpop.f32.mrf.mxu0 }
0x1705   :  { %v6694_v24 = vadd.f32 %v7605_v40, %v6693_v8  ;;  %v6732_v47 = vmax.f32 %v6702_v33, 0.0 }
0x1707   :  { %v6730_v19 = vmax.f32 %v6694_v24, 0.0  ;;  %v6742_v49 = vpack.c.bf16 %v6732_v47, %v6731_v25 }
0x1709   :  { %v6741_v12 = vpack.c.bf16 %v6730_v19, %v6729_v35 }
0x170b   :  { %8465 = vmatprep.mubr.msk.bf16.mxu1 %vm45_vm0, %v6741_v12 }
0x170c   :  { %8466 = vmatmul.mubr.msk.bf16.gmra.mxu1 %vm45_vm0, %v6742_v49 }
0x170e   :  { %v8451_v45 = vpop.f32.mrf.mxu0 }
0x170f   :  { %v6715_v7 = vadd.f32 %v8451_v45, %v7605_v40 }
0x1710   :  { %v6706_v20 = vpop.f32.mrf.mxu0 }
0x1711   :  { %v6707_v17 = vadd.f32 %v7605_v40, %v6706_v20  ;;  %v6735_v48 = vmax.f32 %v6715_v7, 0.0 }
0x1712   :  { %v8452_v27 = vpop.f32.mrf.mxu0 }
0x1713   :  { %v6718_v32 = vadd.f32 %v8452_v27, %v7605_v40  ;;  %v6733_v53 = vmax.f32 %v6707_v17, 0.0 }
0x1714   :  { %v6709_v44 = vpop.f32.mrf.mxu0 }
0x1715   :  { %v6710_v9 = vadd.f32 %v7605_v40, %v6709_v44  ;;  %v6736_v51 = vmax.f32 %v6718_v32, 0.0  ;;  %v9579_v40 = vld [vmem:[%s12711_s11 + $0x10] sm:$0xff]  }
0x1716   :  { %8475 = vmatprep.subr.bf16.mxu0 %v9579_v40 }
0x1717   :  { %v6734_v56 = vmax.f32 %v6710_v9, 0.0  ;;  %v6744_v46 = vpack.c.bf16 %v6736_v51, %v6735_v48  ;;  %8476 = vmatpush3.bf16.msra.mxu0 %v9579_v40 }
0x1719   :  { %v6743_v14 = vpack.c.bf16 %v6734_v56, %v6733_v53 }
0x171b   :  { %8469 = vmatprep.mubr.msk.bf16.mxu1 %vm45_vm0, %v6743_v14 }
0x171c   :  { %8470 = vmatmul.mubr.msk.bf16.gmra.mxu1 %vm45_vm0, %v6744_v46 }
0x17a8   :  { %v8459_v41 = vpop.f32.mrf.mxu1 }
0x17a9   :  { %v6837_v16 = vadd.f32 %v8459_v41, %v7625_v34 }
0x17aa   :  { %v6828_v15 = vpop.f32.mrf.mxu1 }
0x17ab   :  { %v6829_v28 = vadd.f32 %v7625_v34, %v6828_v15  ;;  %v6893_v31 = vadd.f32 %v6837_v16, %v12450_v57 }
0x17ac   :  { %v8460_v38 = vpop.f32.mrf.mxu1 }
0x17ad   :  { %v6840_v13 = vadd.f32 %v8460_v38, %v7625_v34  ;;  %v6891_v1 = vadd.f32 %v6829_v28, %v12456_v62 }
0x17ae   :  { %v6831_v55 = vpop.f32.mrf.mxu1 }
0x17af   :  { %v6832_v36 = vadd.f32 %v7625_v34, %v6831_v55  ;;  %v6894_v2 = vadd.f32 %v6840_v13, %v12462_v22 }
0x17b1   :  { %v6892_v42 = vadd.f32 %v6832_v36, %v12468_v37  ;;  %v6908_v3 = vpack.c.bf16 %v6894_v2, %v6893_v31 }
0x17b3   :  { %v6907_v23 = vpack.c.bf16 %v6892_v42, %v6891_v1 }
0x17b5   :  { %8477 = vmatprep.mubr.msk.bf16.mxu0 %vm45_vm0, %v6907_v23 }
0x17b6   :  { %8478 = vmatmul.mubr.msk.bf16.vlgmr.msra.gmra.mxu0 %vm45_vm0, %v6908_v3 }
0x17bc   :  { %v8463_v5 = vpop.f32.mrf.mxu1 }
0x17bd   :  { %v6853_v61 = vadd.f32 %v8463_v5, %v7625_v34 }
0x17be   :  { %v6844_v10 = vpop.f32.mrf.mxu1 }
0x17bf   :  { %v6845_v30 = vadd.f32 %v7625_v34, %v6844_v10  ;;  %v6897_v33 = vadd.f32 %v6853_v61, %v12486_v58 }
0x17c0   :  { %v8464_v11 = vpop.f32.mrf.mxu1 }
0x17c1   :  { %v6856_v21 = vadd.f32 %v8464_v11, %v7625_v34  ;;  %v6895_v37 = vadd.f32 %v6845_v30, %v12492_v43 }
0x17c2   :  { %v6847_v18 = vpop.f32.mrf.mxu1 }
0x17c3   :  { %v6848_v22 = vadd.f32 %v7625_v34, %v6847_v18  ;;  %v6898_v62 = vadd.f32 %v6856_v21, %v12500_v0 }
0x17c5   :  { %v6896_v57 = vadd.f32 %v6848_v22, %v12506_v59  ;;  %v6910_v8 = vpack.c.bf16 %v6898_v62, %v6897_v33 }
0x17c7   :  { %v6909_v54 = vpack.c.bf16 %v6896_v57, %v6895_v37 }
0x17c9   :  { %8481 = vmatprep.mubr.msk.bf16.mxu0 %vm45_vm0, %v6909_v54 }
0x17ca   :  { %8482 = vmatmul.mubr.msk.bf16.gmra.mxu0 %vm45_vm0, %v6910_v8 }
0x17cc   :  { %v8467_v24 = vpop.f32.mrf.mxu1 }
0x17cd   :  { %v6869_v12 = vadd.f32 %v8467_v24, %v7625_v34 }
0x17ce   :  { %v6860_v47 = vpop.f32.mrf.mxu1 }
0x17cf   :  { %v6861_v19 = vadd.f32 %v7625_v34, %v6860_v47  ;;  %v6901_v45 = vadd.f32 %v6869_v12, %v12512_v39 }
0x17d0   :  { %v8468_v35 = vpop.f32.mrf.mxu1 }
0x17d1   :  { %v6872_v25 = vadd.f32 %v8468_v35, %v7625_v34  ;;  %v6899_v59 = vadd.f32 %v6861_v19, %v12518_v26 }
0x17d2   :  { %v6863_v49 = vpop.f32.mrf.mxu1 }
0x17d3   :  { %v6864_v0 = vadd.f32 %v7625_v34, %v6863_v49  ;;  %v6902_v43 = vadd.f32 %v6872_v25, %v12530_v4 }
0x17d5   :  { %v6900_v58 = vadd.f32 %v6864_v0, %v12536_v50  ;;  %v6912_v27 = vpack.c.bf16 %v6902_v43, %v6901_v45 }
0x17d7   :  { %v6911_v20 = vpack.c.bf16 %v6900_v58, %v6899_v59 }
0x17d9   :  { %8485 = vmatprep.mubr.msk.bf16.mxu0 %vm45_vm0, %v6911_v20 }
0x17da   :  { %8486 = vmatmul.mubr.msk.bf16.gmra.mxu0 %vm45_vm0, %v6912_v27 }
0x17dc   :  { %v8471_v17 = vpop.f32.mrf.mxu1 }
0x17dd   :  { %v6885_v51 = vadd.f32 %v8471_v17, %v7625_v34 }
0x17de   :  { %v6876_v32 = vpop.f32.mrf.mxu1 }
0x17df   :  { %v6877_v44 = vadd.f32 %v7625_v34, %v6876_v32  ;;  %v6905_v56 = vadd.f32 %v6885_v51, %v12544_v52 }
0x17e0   :  { %v8472_v7 = vpop.f32.mrf.mxu1 }
0x17e1   :  { %v6888_v9 = vadd.f32 %v8472_v7, %v7625_v34  ;;  %v6903_v50 = vadd.f32 %v6877_v44, %v12550_v6 }
0x17e2   :  { %v6879_v53 = vpop.f32.mrf.mxu1 }
0x17e3   :  { %v6880_v4 = vadd.f32 %v7625_v34, %v6879_v53  ;;  %v6906_v26 = vadd.f32 %v6888_v9, %v12562_v60 }
0x17e5   :  { %v6904_v39 = vadd.f32 %v6880_v4, %v12568_v29  ;;  %v6914_v14 = vpack.c.bf16 %v6906_v26, %v6905_v56 }
0x17e7   :  { %v6913_v48 = vpack.c.bf16 %v6904_v39, %v6903_v50 }
0x17e9   :  { %8489 = vmatprep.mubr.msk.bf16.mxu0 %vm45_vm0, %v6913_v48 }
0x17ea   :  { %8490 = vmatmul.mubr.msk.bf16.gmra.mxu0 %vm45_vm0, %v6914_v14 }
0x1876   :  { %v8479_v46 = vpop.f32.mrf.mxu0 }
0x1877   :  { %v7007_v60 = vadd.f32 %v8479_v46, %v7641_v63 }
0x1878   :  { %v6998_v40 = vpop.f32.mrf.mxu0 }
0x1879   :  { %v6999_v34 = vadd.f32 %v7641_v63, %v6998_v40 }
0x187a   :  { %v8480_v41 = vpop.f32.mrf.mxu0 }
0x187b   :  { %v7010_v15 = vadd.f32 %v8480_v41, %v7641_v63 }
0x187c   :  { %v7001_v6 = vpop.f32.mrf.mxu0 }
0x187d   :  { %v7820_v29 = vpack.c.bf16 %v7010_v15, %v7007_v60  ;;  %v7002_v38 = vadd.f32 %v7641_v63, %v7001_v6 }
0x187f   :  { %7868 = vst [vmem:[%s12704_s13 + $0x88] sm:$0xff] %v7820_v29   ;;  %v7815_v52 = vpack.c.bf16 %v7002_v38, %v6999_v34 }
0x1881   :  { %7867 = vst [vmem:[%s12704_s13 + $0x80] sm:$0xff] %v7815_v52  }
0x188a   :  { %v8483_v28 = vpop.f32.mrf.mxu0 }
0x188b   :  { %v7023_v55 = vadd.f32 %v8483_v28, %v7641_v63 }
0x188c   :  { %v7014_v13 = vpop.f32.mrf.mxu0 }
0x188d   :  { %v7015_v1 = vadd.f32 %v7641_v63, %v7014_v13 }
0x188e   :  { %v8484_v16 = vpop.f32.mrf.mxu0 }
0x188f   :  { %v7026_v36 = vadd.f32 %v8484_v16, %v7641_v63 }
0x1890   :  { %v7017_v2 = vpop.f32.mrf.mxu0 }
0x1891   :  { %v7830_v42 = vpack.c.bf16 %v7026_v36, %v7023_v55  ;;  %v7018_v31 = vadd.f32 %v7641_v63, %v7017_v2 }
0x1893   :  { %7870 = vst [vmem:[%s12704_s13 + $0x98] sm:$0xff] %v7830_v42   ;;  %v7825_v23 = vpack.c.bf16 %v7018_v31, %v7015_v1 }
0x1895   :  { %7869 = vst [vmem:[%s12704_s13 + $0x90] sm:$0xff] %v7825_v23  }
0x189a   :  { %v8487_v3 = vpop.f32.mrf.mxu0 }
0x189b   :  { %v7039_v11 = vadd.f32 %v8487_v3, %v7641_v63 }
0x189c   :  { %v7030_v5 = vpop.f32.mrf.mxu0 }
0x189d   :  { %v7031_v61 = vadd.f32 %v7641_v63, %v7030_v5 }
0x189e   :  { %v8488_v10 = vpop.f32.mrf.mxu0 }
0x189f   :  { %v7042_v30 = vadd.f32 %v8488_v10, %v7641_v63 }
0x18a0   :  { %v7033_v21 = vpop.f32.mrf.mxu0 }
0x18a1   :  { %v7840_v18 = vpack.c.bf16 %v7042_v30, %v7039_v11  ;;  %v7034_v22 = vadd.f32 %v7641_v63, %v7033_v21 }
0x18a3   :  { %7872 = vst [vmem:[%s12704_s13 + $0xa8] sm:$0xff] %v7840_v18   ;;  %v7835_v62 = vpack.c.bf16 %v7034_v22, %v7031_v61 }
0x18a5   :  { %7871 = vst [vmem:[%s12704_s13 + $0xa0] sm:$0xff] %v7835_v62  }
0x18aa   :  { %v8491_v37 = vpop.f32.mrf.mxu0 }
0x18ab   :  { %v7055_v54 = vadd.f32 %v8491_v37, %v7641_v63 }
0x18ac   :  { %v7046_v57 = vpop.f32.mrf.mxu0 }
0x18ad   :  { %v7047_v47 = vadd.f32 %v7641_v63, %v7046_v57 }
0x18ae   :  { %v8492_v33 = vpop.f32.mrf.mxu0 }
0x18af   :  { %v7058_v8 = vadd.f32 %v8492_v33, %v7641_v63 }
0x18b0   :  { %v7049_v24 = vpop.f32.mrf.mxu0 }
0x18b1   :  { %v7850_v35 = vpack.c.bf16 %v7058_v8, %v7055_v54  ;;  %v7050_v19 = vadd.f32 %v7641_v63, %v7049_v24 }
0x18b3   :  { %7874 = vst [vmem:[%s12704_s13 + $0xb8] sm:$0xff] %v7850_v35   ;;  %v7845_v25 = vpack.c.bf16 %v7050_v19, %v7047_v47 }
0x18b5   :  { %7873 = vst [vmem:[%s12704_s13 + $0xb0] sm:$0xff] %v7845_v25  }

</bundles_post_ra>
